<compile_context>
chip_gen: v7x
topology: tpu7x:2x2x1
jax: 0.10.0
libtpu: 0.0.40
codegen_flags: <defaults>
</compile_context>

<pallas_src>
import functools
import math

import jax
import jax.numpy as jnp
from jax.experimental import pallas as pl
from jax.experimental.pallas import tpu as pltpu


# -----------------------------------------------------------------------------
# Pallas kernels
# -----------------------------------------------------------------------------
def _relu_epilogue(y, relu, period):
    """relu: True -> ReLU all columns; False/0 -> none; int w -> ReLU only on
    columns whose (col mod period) < w (fused conv1 + 1x1-downsample matmul)."""
    if relu is True or (isinstance(relu, int) and not isinstance(relu, bool)
                        and relu >= period):
        return jnp.maximum(y, 0.0)
    if relu is False or relu == 0 or relu is None:
        return y
    col = jax.lax.broadcasted_iota(jnp.int32, y.shape, 1)
    if (period & (period - 1)) == 0:           # power of two -> bitwise and
        colmod = col & (period - 1)
    else:                                      # generic fallback
        colmod = col % period
    return jnp.where(colmod < relu, jnp.maximum(y, 0.0), y)


def _gemm_kernel(a_ref, w_ref, b_ref, o_ref, *, relu, period):
    # fused: (bf16 folded im2col patches) @ (bf16 BN-folded block-diag weights)
    #        + bias [+ (partial) relu]
    y = jnp.dot(a_ref[...], w_ref[...], preferred_element_type=jnp.float32)
    y = y + b_ref[...]
    y = _relu_epilogue(y, relu, period)
    o_ref[...] = y.astype(o_ref.dtype)


def _gemm_res_kernel(a_ref, w_ref, b_ref, r_ref, o_ref, *, relu, period):
    # fused: conv + folded-BN + residual add [+ relu]   (BasicBlock tail)
    y = jnp.dot(a_ref[...], w_ref[...], preferred_element_type=jnp.float32)
    y = y + b_ref[...] + r_ref[...].astype(jnp.float32)
    y = _relu_epilogue(y, relu, period)
    o_ref[...] = y.astype(o_ref.dtype)


def _max9_kernel(*refs):
    # 3x3 max-pool: elementwise max over the 9 shifted views (9 inputs, 1 output)
    o_ref = refs[-1]
    m = refs[0][...]
    for r in refs[1:-1]:
        m = jnp.maximum(m, r[...])
    o_ref[...] = m


# -----------------------------------------------------------------------------
# Pallas wrappers
# -----------------------------------------------------------------------------
def _round_up(x, m):
    return -(-x // m) * m


def _choose_tm(m):
    """Row tile over the g-folded rows.  Single whole-M step at benchmark scale
    (per perf review: extra grid steps are pure overhead here); tile only for
    very large M so the kernel stays usable at production shapes."""
    if m <= 2048:
        return m
    return 1024


def fused_matmul(a, p, residual=None, relu=True):
    """a: (M, K) bf16 patches (K = p['k']).  Returns (M, p['n']) bf16.

    p['w'] is the (g*K, g*n) bf16 block-diagonal BN-folded weight, p['b'] the
    (1, g*n) f32 tiled bias.  Rows are folded g-at-a-time (free reshape) so the
    matmul output last dim is >=128 lanes (dense stores)."""
    M, K = a.shape
    g, n = p["g"], p["n"]
    assert K == p["k"], (K, p["k"])

    # pad rows so M divides by g (never hit at the benchmark shapes)
    Mp = _round_up(M, g)
    if Mp != M:
        a = jnp.pad(a, ((0, Mp - M), (0, 0)))
        if residual is not None:
            residual = jnp.pad(residual, ((0, Mp - M), (0, 0)))

    mw, kw_, nw = Mp // g, g * K, g * n
    aw = a.reshape(mw, kw_)                               # free contiguous reshape
    rw = residual.reshape(mw, nw) if residual is not None else None

    tm = _choose_tm(mw)
    mwp = _round_up(mw, tm)
    if mwp != mw:                                         # generality only
        aw = jnp.pad(aw, ((0, mwp - mw), (0, 0)))
        if rw is not None:
            rw = jnp.pad(rw, ((0, mwp - mw), (0, 0)))
    nblk = mwp // tm

    in_specs = [
        pl.BlockSpec((tm, kw_), lambda i: (i, 0)),        # folded patches
        pl.BlockSpec((kw_, nw), lambda i: (0, 0)),        # weights: resident
        pl.BlockSpec((1, nw), lambda i: (0, 0)),          # bias:    resident
    ]
    args = [aw, p["w"], p["b"]]
    if rw is not None:
        in_specs.append(pl.BlockSpec((tm, nw), lambda i: (i, 0)))
        args.append(rw)
        kernel = functools.partial(_gemm_res_kernel, relu=relu, period=n)
    else:
        kernel = functools.partial(_gemm_kernel, relu=relu, period=n)

    bytes_accessed = 2 * mwp * kw_ + 2 * kw_ * nw + 2 * mwp * nw + 4 * nw
    if rw is not None:
        bytes_accessed += 2 * mwp * nw

    out = pl.pallas_call(
        kernel,
        out_shape=jax.ShapeDtypeStruct((mwp, nw), jnp.bfloat16),
        grid=(nblk,),
        in_specs=in_specs,
        out_specs=pl.BlockSpec((tm, nw), lambda i: (i, 0)),
        compiler_params=pltpu.CompilerParams(
            dimension_semantics=("parallel",) if nblk > 1 else ("arbitrary",)),
        cost_estimate=pl.CostEstimate(flops=2 * mwp * kw_ * nw,
                                      transcendentals=0,
                                      bytes_accessed=bytes_accessed),
    )(*args)

    if mwp != mw:
        out = out[:mw]
    y = out.reshape(Mp, n)                                # free contiguous reshape
    return y[:M] if Mp != M else y


def _im2col(x, kh, kw, stride, pad):
    """x: NHWC bf16 -> (N*Ho*Wo, kh*kw*C) patch matrix (column order i, j, c)."""
    N, H, W, C = x.shape
    Ho = (H + 2 * pad - kh) // stride + 1
    Wo = (W + 2 * pad - kw) // stride + 1
    x_p = jnp.pad(x, ((0, 0), (pad, pad), (pad, pad), (0, 0)))
    cols = []
    for i in range(kh):
        for j in range(kw):
            cols.append(
                jax.lax.slice(
                    x_p,
                    (0, i, j, 0),
                    (N, i + (Ho - 1) * stride + 1, j + (Wo - 1) * stride + 1, C),
                    (1, stride, stride, 1),
                )
            )
    patches = jnp.concatenate(cols, axis=-1)  # (N, Ho, Wo, kh*kw*C), bf16
    return patches.reshape(N * Ho * Wo, kh * kw * C), (N, Ho, Wo)


def conv_gemm(x, p, relu=True, residual=None):
    """Conv2d(no bias) + folded BatchNorm [+ residual] [+ (partial) ReLU]; NHWC bf16."""
    cols, (N, Ho, Wo) = _im2col(x, p["kh"], p["kw"], p["stride"], p["pad"])
    res2d = None
    if residual is not None:
        res2d = residual.reshape(N * Ho * Wo, p["n"])     # free (contiguous)
    y = fused_matmul(cols, p, residual=res2d, relu=relu)
    return y.reshape(N, Ho, Wo, p["n"])


def maxpool_3x3_s2(x):
    """nn.MaxPool2d(kernel_size=3, stride=2, padding=1) on NHWC bf16."""
    N, H, W, C = x.shape
    stride, pad, k = 2, 1, 3
    Ho = (H + 2 * pad - k) // stride + 1
    Wo = (W + 2 * pad - k) // stride + 1
    x_p = jnp.pad(x, ((0, 0), (pad, pad), (pad, pad), (0, 0)),
                  constant_values=float("-inf"))
    views = []
    for i in range(k):
        for j in range(k):
            v = jax.lax.slice(
                x_p,
                (0, i, j, 0),
                (N, i + (Ho - 1) * stride + 1, j + (Wo - 1) * stride + 1, C),
                (1, stride, stride, 1),
            )
            # lane-dense 2-D presentation (free contiguous reshape): 256-wide lanes
            views.append(v.reshape(N * Ho, Wo * C))
    out = pl.pallas_call(
        _max9_kernel,
        out_shape=jax.ShapeDtypeStruct((N * Ho, Wo * C), x.dtype),
    )(*views)
    return out.reshape(N, Ho, Wo, C)


# -----------------------------------------------------------------------------
# Deterministic parameter construction (synthetic, shapes follow ResNet-18 recipe).
# BN (eval mode) is folded into the conv weights/bias at init; the 1x1 downsample is
# fused into the block conv1 weights; weights are stored as bf16 block-diagonal
# (g*K, g*N) so the forward does ZERO weight prep and produces lane-dense outputs.
# -----------------------------------------------------------------------------
def _bn_fold(key, c, eps=1e-5):
    k1, k2, k3, k4 = jax.random.split(key, 4)
    gamma = 1.0 + 0.1 * jax.random.normal(k1, (c,), jnp.float32)
    beta = 0.1 * jax.random.normal(k2, (c,), jnp.float32)
    mean = 0.1 * jax.random.normal(k3, (c,), jnp.float32)
    var = 1.0 + 0.1 * jax.random.uniform(k4, (c,), jnp.float32)
    scale = gamma / jnp.sqrt(var + eps)
    bias = beta - mean * scale
    return scale, bias


def _conv_bn_w2d(w_key, bn_key, kh, kw, cin, cout):
    """Conv weights reshaped to (kh*kw*cin, cout) with BN scale folded in."""
    fan_in = kh * kw * cin
    w = jax.random.normal(w_key, (kh, kw, cin, cout), jnp.float32) / math.sqrt(fan_in)
    scale, bias = _bn_fold(bn_key, cout)
    w2d = w.reshape(kh * kw * cin, cout) * scale[None, :]
    return w2d, bias


def _gemm_param(w2d, bias, kh, kw, stride, pad):
    """Pack a (K, N) folded conv into a block-diagonal lane-dense GEMM param."""
    K, n = w2d.shape
    g = (128 // n) if (n < 128 and 128 % n == 0) else 1
    if g > 1:
        w_use = jnp.kron(jnp.eye(g, dtype=jnp.float32), w2d)   # (g*K, g*n) block-diag
        b_use = jnp.tile(bias, g)
    else:
        w_use, b_use = w2d, bias
    return {"w": w_use.astype(jnp.bfloat16),
            "b": b_use.reshape(1, -1).astype(jnp.float32),
            "kh": kh, "kw": kw, "stride": stride, "pad": pad,
            "k": K, "n": n, "g": g}


def _make_block(key, cin, cout, stride):
    ks = jax.random.split(key, 6)
    w1, b1 = _conv_bn_w2d(ks[0], ks[2], 3, 3, cin, cout)
    w2, b2 = _conv_bn_w2d(ks[1], ks[3], 3, 3, cout, cout)
    blk = {"cout": cout, "conv2": _gemm_param(w2, b2, 3, 3, 1, 1)}
    if stride != 1 or cin != cout:
        # 1x1 downsample (same stride/output grid as conv1): embed its weights at the
        # 3x3 center-tap rows (tap index 4 -> rows [4*cin, 5*cin)) and fuse along N.
        wd, bd = _conv_bn_w2d(ks[4], ks[5], 1, 1, cin, cout)
        wd9 = jnp.zeros((9 * cin, cout), jnp.float32).at[4 * cin:5 * cin].set(wd)
        wf = jnp.concatenate([w1, wd9], axis=1)            # (9*cin, 2*cout)
        bf = jnp.concatenate([b1, bd])
        blk["conv1down"] = _gemm_param(wf, bf, 3, 3, stride, 1)
    else:
        blk["conv1"] = _gemm_param(w1, b1, 3, 3, stride, 1)
    return blk


def init_params(key, base=16):
    ks = jax.random.split(key, 11)
    w0, b0 = _conv_bn_w2d(ks[0], ks[1], 7, 7, 3, base)
    params = {"conv1": _gemm_param(w0, b0, 7, 7, 2, 3)}
    cfg = [(base, base, 1), (base, 2 * base, 2),
           (2 * base, 4 * base, 2), (4 * base, 8 * base, 2)]
    ki = 2
    for li, (cin, cout, stride) in enumerate(cfg, start=1):
        params[f"layer{li}"] = [_make_block(ks[ki], cin, cout, stride),
                                _make_block(ks[ki + 1], cout, cout, 1)]
        ki += 2
    params["in_features"] = 8 * base
    return params


# -----------------------------------------------------------------------------
# Forward pass (mirrors ResBase.forward with is_feat=False)
# -----------------------------------------------------------------------------
def basic_block(x, blk):
    cout = blk["cout"]
    if "conv1down" in blk:
        # one matmul computes both conv1(+bn+relu) and downsample(+bn) columns
        y = conv_gemm(x, blk["conv1down"], relu=cout)      # partial relu (conv1 cols)
        out = y[..., :cout]
        identity = y[..., cout:]
    else:
        out = conv_gemm(x, blk["conv1"], relu=True)
        identity = x
    # conv2 + bn2 + residual add + final relu, fused in one Pallas kernel
    out = conv_gemm(out, blk["conv2"], relu=True, residual=identity)
    return out


def resbase_forward(params, x_nchw):
    # NCHW (PyTorch convention) -> NHWC bf16 for the kernels.
    x = jnp.transpose(x_nchw, (0, 2, 3, 1)).astype(jnp.bfloat16)
    x = conv_gemm(x, params["conv1"], relu=True)           # conv1 + bn1 + relu
    x = maxpool_3x3_s2(x)                                  # maxpool -> f0
    for lname in ("layer1", "layer2", "layer3", "layer4"):
        for blk in params[lname]:
            x = basic_block(x, blk)                        # f1..f4
    # AdaptiveAvgPool2d((1,1)) + flatten: done in XLA (per perf review — at
    # (2,2,2,128) a pallas_call launch costs more than the reduction itself).
    x = jnp.mean(x.astype(jnp.float32), axis=(1, 2))       # (N, in_features), f32
    return x


# -----------------------------------------------------------------------------
if __name__ == "__main__":
    key = jax.random.PRNGKey(0)
    pkey, xkey = jax.random.split(key)

    params = init_params(pkey, base=16)
    x = jax.random.normal(xkey, (2, 3, 64, 64), jnp.float32)  # NCHW, like PyTorch

    # Close over params (keeps kh/stride/... static, weights become jit constants)
    fwd = jax.jit(functools.partial(resbase_forward, params))
    feat = jax.block_until_ready(fwd(x))

    assert feat.shape == (2, params["in_features"]), feat.shape
    assert bool(jnp.all(jnp.isfinite(feat)))
    print("KERNEL_OK")
</pallas_src>

<mosaic_0001>
module attributes {stable_mosaic.version = 11 : i64} {
  func.func @_gemm_kernel(%arg0: i32, %arg1: memref<256x1176xbf16, #tpu.memory_space<vmem>>, %arg2: memref<1176x128xbf16, #tpu.memory_space<vmem>>, %arg3: memref<1x128xf32, #tpu.memory_space<vmem>>, %arg4: memref<256x128xbf16, #tpu.memory_space<vmem>>) attributes {dimension_semantics = [#tpu.dimension_semantics<arbitrary>], iteration_bounds = array<i64: 1>, scalar_prefetch = 0 : i64, scratch_operands = 0 : i64, tpu.core_type = #tpu.core_type<tc>, window_params = [{transform_indices = @transform_0, window_bounds = array<i64: 256, 1176>}, {pipeline_mode = #tpu.pipeline_mode<synchronous>, transform_indices = @transform_1, window_bounds = array<i64: 1176, 128>}, {pipeline_mode = #tpu.pipeline_mode<synchronous>, transform_indices = @transform_2, window_bounds = array<i64: 1, 128>}, {transform_indices = @transform_3, window_bounds = array<i64: 256, 128>}]} {
    %c0 = arith.constant 0 : index
    %c0_0 = arith.constant 0 : index
    %0 = vector.load %arg1[%c0, %c0_0] : memref<256x1176xbf16, #tpu.memory_space<vmem>>, vector<256x1176xbf16>
    %c0_1 = arith.constant 0 : index
    %c0_2 = arith.constant 0 : index
    %1 = vector.load %arg2[%c0_1, %c0_2] : memref<1176x128xbf16, #tpu.memory_space<vmem>>, vector<1176x128xbf16>
    %cst = arith.constant dense<0.000000e+00> : vector<256x128xf32>
    %2 = tpu.matmul %0, %1, %cst {dimension_numbers = #tpu.dot_dimension_numbers<[1], [0], [0], [1], [0, 0, 1, 1], [], []>} : vector<256x1176xbf16>, vector<1176x128xbf16>, vector<256x128xf32> -> vector<256x128xf32>
    %c0_3 = arith.constant 0 : index
    %c0_4 = arith.constant 0 : index
    %3 = vector.load %arg3[%c0_3, %c0_4] : memref<1x128xf32, #tpu.memory_space<vmem>>, vector<1x128xf32>
    %4 = vector.broadcast %3 : vector<1x128xf32> to vector<256x128xf32>
    %5 = arith.addf %2, %4 : vector<256x128xf32>
    %cst_5 = arith.constant 0.000000e+00 : f32
    %6 = vector.broadcast %cst_5 : f32 to vector<256x128xf32>
    %7 = arith.maximumf %5, %6 : vector<256x128xf32>
    %8 = arith.truncf %7 : vector<256x128xf32> to vector<256x128xbf16>
    %c0_6 = arith.constant 0 : index
    %c0_7 = arith.constant 0 : index
    %9 = vector.load %arg4[%c0_6, %c0_7] : memref<256x128xbf16, #tpu.memory_space<vmem>>, vector<256x128xbf16>
    tpu.vector_store %arg4[%c0_6, %c0_7], %8 {strides = array<i32>} : memref<256x128xbf16, #tpu.memory_space<vmem>>, vector<256x128xbf16>,
    return
  }
  func.func @transform_0(%arg0: i32) -> (i32, i32) {
    %c0_i32 = arith.constant 0 : i32
    %c0_i32_0 = arith.constant 0 : i32
    return %arg0, %c0_i32 : i32, i32
  }
  func.func @transform_1(%arg0: i32) -> (i32, i32) {
    %c0_i32 = arith.constant 0 : i32
    %c0_i32_0 = arith.constant 0 : i32
    %c0_i32_1 = arith.constant 0 : i32
    return %c0_i32, %c0_i32_0 : i32, i32
  }
  func.func @transform_2(%arg0: i32) -> (i32, i32) {
    %c0_i32 = arith.constant 0 : i32
    %c0_i32_0 = arith.constant 0 : i32
    %c0_i32_1 = arith.constant 0 : i32
    return %c0_i32, %c0_i32_0 : i32, i32
  }
  func.func @transform_3(%arg0: i32) -> (i32, i32) {
    %c0_i32 = arith.constant 0 : i32
    %c0_i32_0 = arith.constant 0 : i32
    return %arg0, %c0_i32 : i32, i32
  }
}

module attributes {stable_mosaic.version = 11 : i64} {
  func.func @_max9_kernel(%arg0: memref<32x256xbf16, #tpu.memory_space<vmem>>, %arg1: memref<32x256xbf16, #tpu.memory_space<vmem>>, %arg2: memref<32x256xbf16, #tpu.memory_space<vmem>>, %arg3: memref<32x256xbf16, #tpu.memory_space<vmem>>, %arg4: memref<32x256xbf16, #tpu.memory_space<vmem>>, %arg5: memref<32x256xbf16, #tpu.memory_space<vmem>>, %arg6: memref<32x256xbf16, #tpu.memory_space<vmem>>, %arg7: memref<32x256xbf16, #tpu.memory_space<vmem>>, %arg8: memref<32x256xbf16, #tpu.memory_space<vmem>>, %arg9: memref<32x256xbf16, #tpu.memory_space<vmem>>) attributes {dimension_semantics = [], scalar_prefetch = 0 : i64, scratch_operands = 0 : i64, tpu.core_type = #tpu.core_type<tc>} {
    %c0 = arith.constant 0 : index
    %c0_0 = arith.constant 0 : index
    %0 = vector.load %arg0[%c0, %c0_0] : memref<32x256xbf16, #tpu.memory_space<vmem>>, vector<32x256xbf16>
    %c0_1 = arith.constant 0 : index
    %c0_2 = arith.constant 0 : index
    %1 = vector.load %arg1[%c0_1, %c0_2] : memref<32x256xbf16, #tpu.memory_space<vmem>>, vector<32x256xbf16>
    %2 = arith.maximumf %0, %1 : vector<32x256xbf16>
    %c0_3 = arith.constant 0 : index
    %c0_4 = arith.constant 0 : index
    %3 = vector.load %arg2[%c0_3, %c0_4] : memref<32x256xbf16, #tpu.memory_space<vmem>>, vector<32x256xbf16>
    %4 = arith.maximumf %2, %3 : vector<32x256xbf16>
    %c0_5 = arith.constant 0 : index
    %c0_6 = arith.constant 0 : index
    %5 = vector.load %arg3[%c0_5, %c0_6] : memref<32x256xbf16, #tpu.memory_space<vmem>>, vector<32x256xbf16>
    %6 = arith.maximumf %4, %5 : vector<32x256xbf16>
    %c0_7 = arith.constant 0 : index
    %c0_8 = arith.constant 0 : index
    %7 = vector.load %arg4[%c0_7, %c0_8] : memref<32x256xbf16, #tpu.memory_space<vmem>>, vector<32x256xbf16>
    %8 = arith.maximumf %6, %7 : vector<32x256xbf16>
    %c0_9 = arith.constant 0 : index
    %c0_10 = arith.constant 0 : index
    %9 = vector.load %arg5[%c0_9, %c0_10] : memref<32x256xbf16, #tpu.memory_space<vmem>>, vector<32x256xbf16>
    %10 = arith.maximumf %8, %9 : vector<32x256xbf16>
    %c0_11 = arith.constant 0 : index
    %c0_12 = arith.constant 0 : index
    %11 = vector.load %arg6[%c0_11, %c0_12] : memref<32x256xbf16, #tpu.memory_space<vmem>>, vector<32x256xbf16>
    %12 = arith.maximumf %10, %11 : vector<32x256xbf16>
    %c0_13 = arith.constant 0 : index
    %c0_14 = arith.constant 0 : index
    %13 = vector.load %arg7[%c0_13, %c0_14] : memref<32x256xbf16, #tpu.memory_space<vmem>>, vector<32x256xbf16>
    %14 = arith.maximumf %12, %13 : vector<32x256xbf16>
    %c0_15 = arith.constant 0 : index
    %c0_16 = arith.constant 0 : index
    %15 = vector.load %arg8[%c0_15, %c0_16] : memref<32x256xbf16, #tpu.memory_space<vmem>>, vector<32x256xbf16>
    %16 = arith.maximumf %14, %15 : vector<32x256xbf16>
    %c0_17 = arith.constant 0 : index
    %c0_18 = arith.constant 0 : index
    %17 = vector.load %arg9[%c0_17, %c0_18] : memref<32x256xbf16, #tpu.memory_space<vmem>>, vector<32x256xbf16>
    tpu.vector_store %arg9[%c0_17, %c0_18], %16 {strides = array<i32>} : memref<32x256xbf16, #tpu.memory_space<vmem>>, vector<32x256xbf16>,
    return
  }
}

module attributes {stable_mosaic.version = 11 : i64} {
  func.func @_gemm_kernel(%arg0: i32, %arg1: memref<64x1152xbf16, #tpu.memory_space<vmem>>, %arg2: memref<1152x128xbf16, #tpu.memory_space<vmem>>, %arg3: memref<1x128xf32, #tpu.memory_space<vmem>>, %arg4: memref<64x128xbf16, #tpu.memory_space<vmem>>) attributes {dimension_semantics = [#tpu.dimension_semantics<arbitrary>], iteration_bounds = array<i64: 1>, scalar_prefetch = 0 : i64, scratch_operands = 0 : i64, tpu.core_type = #tpu.core_type<tc>, window_params = [{transform_indices = @transform_0, window_bounds = array<i64: 64, 1152>}, {pipeline_mode = #tpu.pipeline_mode<synchronous>, transform_indices = @transform_1, window_bounds = array<i64: 1152, 128>}, {pipeline_mode = #tpu.pipeline_mode<synchronous>, transform_indices = @transform_2, window_bounds = array<i64: 1, 128>}, {transform_indices = @transform_3, window_bounds = array<i64: 64, 128>}]} {
    %c0 = arith.constant 0 : index
    %c0_0 = arith.constant 0 : index
    %0 = vector.load %arg1[%c0, %c0_0] : memref<64x1152xbf16, #tpu.memory_space<vmem>>, vector<64x1152xbf16>
    %c0_1 = arith.constant 0 : index
    %c0_2 = arith.constant 0 : index
    %1 = vector.load %arg2[%c0_1, %c0_2] : memref<1152x128xbf16, #tpu.memory_space<vmem>>, vector<1152x128xbf16>
    %cst = arith.constant dense<0.000000e+00> : vector<64x128xf32>
    %2 = tpu.matmul %0, %1, %cst {dimension_numbers = #tpu.dot_dimension_numbers<[1], [0], [0], [1], [0, 0, 1, 1], [], []>} : vector<64x1152xbf16>, vector<1152x128xbf16>, vector<64x128xf32> -> vector<64x128xf32>
    %c0_3 = arith.constant 0 : index
    %c0_4 = arith.constant 0 : index
    %3 = vector.load %arg3[%c0_3, %c0_4] : memref<1x128xf32, #tpu.memory_space<vmem>>, vector<1x128xf32>
    %4 = vector.broadcast %3 : vector<1x128xf32> to vector<64x128xf32>
    %5 = arith.addf %2, %4 : vector<64x128xf32>
    %cst_5 = arith.constant 0.000000e+00 : f32
    %6 = vector.broadcast %cst_5 : f32 to vector<64x128xf32>
    %7 = arith.maximumf %5, %6 : vector<64x128xf32>
    %8 = arith.truncf %7 : vector<64x128xf32> to vector<64x128xbf16>
    %c0_6 = arith.constant 0 : index
    %c0_7 = arith.constant 0 : index
    %9 = vector.load %arg4[%c0_6, %c0_7] : memref<64x128xbf16, #tpu.memory_space<vmem>>, vector<64x128xbf16>
    tpu.vector_store %arg4[%c0_6, %c0_7], %8 {strides = array<i32>} : memref<64x128xbf16, #tpu.memory_space<vmem>>, vector<64x128xbf16>,
    return
  }
  func.func @transform_0(%arg0: i32) -> (i32, i32) {
    %c0_i32 = arith.constant 0 : i32
    %c0_i32_0 = arith.constant 0 : i32
    return %arg0, %c0_i32 : i32, i32
  }
  func.func @transform_1(%arg0: i32) -> (i32, i32) {
    %c0_i32 = arith.constant 0 : i32
    %c0_i32_0 = arith.constant 0 : i32
    %c0_i32_1 = arith.constant 0 : i32
    return %c0_i32, %c0_i32_0 : i32, i32
  }
  func.func @transform_2(%arg0: i32) -> (i32, i32) {
    %c0_i32 = arith.constant 0 : i32
    %c0_i32_0 = arith.constant 0 : i32
    %c0_i32_1 = arith.constant 0 : i32
    return %c0_i32, %c0_i32_0 : i32, i32
  }
  func.func @transform_3(%arg0: i32) -> (i32, i32) {
    %c0_i32 = arith.constant 0 : i32
    %c0_i32_0 = arith.constant 0 : i32
    return %arg0, %c0_i32 : i32, i32
  }
}

module attributes {stable_mosaic.version = 11 : i64} {
  func.func @_gemm_res_kernel(%arg0: i32, %arg1: memref<64x1152xbf16, #tpu.memory_space<vmem>>, %arg2: memref<1152x128xbf16, #tpu.memory_space<vmem>>, %arg3: memref<1x128xf32, #tpu.memory_space<vmem>>, %arg4: memref<64x128xbf16, #tpu.memory_space<vmem>>, %arg5: memref<64x128xbf16, #tpu.memory_space<vmem>>) attributes {dimension_semantics = [#tpu.dimension_semantics<arbitrary>], iteration_bounds = array<i64: 1>, scalar_prefetch = 0 : i64, scratch_operands = 0 : i64, tpu.core_type = #tpu.core_type<tc>, window_params = [{transform_indices = @transform_0, window_bounds = array<i64: 64, 1152>}, {pipeline_mode = #tpu.pipeline_mode<synchronous>, transform_indices = @transform_1, window_bounds = array<i64: 1152, 128>}, {pipeline_mode = #tpu.pipeline_mode<synchronous>, transform_indices = @transform_2, window_bounds = array<i64: 1, 128>}, {transform_indices = @transform_3, window_bounds = array<i64: 64, 128>}, {transform_indices = @transform_4, window_bounds = array<i64: 64, 128>}]} {
    %c0 = arith.constant 0 : index
    %c0_0 = arith.constant 0 : index
    %0 = vector.load %arg1[%c0, %c0_0] : memref<64x1152xbf16, #tpu.memory_space<vmem>>, vector<64x1152xbf16>
    %c0_1 = arith.constant 0 : index
    %c0_2 = arith.constant 0 : index
    %1 = vector.load %arg2[%c0_1, %c0_2] : memref<1152x128xbf16, #tpu.memory_space<vmem>>, vector<1152x128xbf16>
    %cst = arith.constant dense<0.000000e+00> : vector<64x128xf32>
    %2 = tpu.matmul %0, %1, %cst {dimension_numbers = #tpu.dot_dimension_numbers<[1], [0], [0], [1], [0, 0, 1, 1], [], []>} : vector<64x1152xbf16>, vector<1152x128xbf16>, vector<64x128xf32> -> vector<64x128xf32>
    %c0_3 = arith.constant 0 : index
    %c0_4 = arith.constant 0 : index
    %3 = vector.load %arg3[%c0_3, %c0_4] : memref<1x128xf32, #tpu.memory_space<vmem>>, vector<1x128xf32>
    %4 = vector.broadcast %3 : vector<1x128xf32> to vector<64x128xf32>
    %5 = arith.addf %2, %4 : vector<64x128xf32>
    %c0_5 = arith.constant 0 : index
    %c0_6 = arith.constant 0 : index
    %6 = vector.load %arg4[%c0_5, %c0_6] : memref<64x128xbf16, #tpu.memory_space<vmem>>, vector<64x128xbf16>
    %7 = arith.extf %6 : vector<64x128xbf16> to vector<64x128xf32>
    %8 = arith.addf %5, %7 : vector<64x128xf32>
    %cst_7 = arith.constant 0.000000e+00 : f32
    %9 = vector.broadcast %cst_7 : f32 to vector<64x128xf32>
    %10 = arith.maximumf %8, %9 : vector<64x128xf32>
    %11 = arith.truncf %10 : vector<64x128xf32> to vector<64x128xbf16>
    %c0_8 = arith.constant 0 : index
    %c0_9 = arith.constant 0 : index
    %12 = vector.load %arg5[%c0_8, %c0_9] : memref<64x128xbf16, #tpu.memory_space<vmem>>, vector<64x128xbf16>
    tpu.vector_store %arg5[%c0_8, %c0_9], %11 {strides = array<i32>} : memref<64x128xbf16, #tpu.memory_space<vmem>>, vector<64x128xbf16>,
    return
  }
  func.func @transform_0(%arg0: i32) -> (i32, i32) {
    %c0_i32 = arith.constant 0 : i32
    %c0_i32_0 = arith.constant 0 : i32
    return %arg0, %c0_i32 : i32, i32
  }
  func.func @transform_1(%arg0: i32) -> (i32, i32) {
    %c0_i32 = arith.constant 0 : i32
    %c0_i32_0 = arith.constant 0 : i32
    %c0_i32_1 = arith.constant 0 : i32
    return %c0_i32, %c0_i32_0 : i32, i32
  }
  func.func @transform_2(%arg0: i32) -> (i32, i32) {
    %c0_i32 = arith.constant 0 : i32
    %c0_i32_0 = arith.constant 0 : i32
    %c0_i32_1 = arith.constant 0 : i32
    return %c0_i32, %c0_i32_0 : i32, i32
  }
  func.func @transform_3(%arg0: i32) -> (i32, i32) {
    %c0_i32 = arith.constant 0 : i32
    %c0_i32_0 = arith.constant 0 : i32
    return %arg0, %c0_i32 : i32, i32
  }
  func.func @transform_4(%arg0: i32) -> (i32, i32) {
    %c0_i32 = arith.constant 0 : i32
    %c0_i32_0 = arith.constant 0 : i32
    return %arg0, %c0_i32 : i32, i32
  }
}

module attributes {stable_mosaic.version = 11 : i64} {
  func.func @_gemm_kernel(%arg0: i32, %arg1: memref<64x288xbf16, #tpu.memory_space<vmem>>, %arg2: memref<288x128xbf16, #tpu.memory_space<vmem>>, %arg3: memref<1x128xf32, #tpu.memory_space<vmem>>, %arg4: memref<64x128xbf16, #tpu.memory_space<vmem>>) attributes {dimension_semantics = [#tpu.dimension_semantics<arbitrary>], iteration_bounds = array<i64: 1>, scalar_prefetch = 0 : i64, scratch_operands = 0 : i64, tpu.core_type = #tpu.core_type<tc>, window_params = [{transform_indices = @transform_0, window_bounds = array<i64: 64, 288>}, {pipeline_mode = #tpu.pipeline_mode<synchronous>, transform_indices = @transform_1, window_bounds = array<i64: 288, 128>}, {pipeline_mode = #tpu.pipeline_mode<synchronous>, transform_indices = @transform_2, window_bounds = array<i64: 1, 128>}, {transform_indices = @transform_3, window_bounds = array<i64: 64, 128>}]} {
    %c0 = arith.constant 0 : index
    %c0_0 = arith.constant 0 : index
    %0 = vector.load %arg1[%c0, %c0_0] : memref<64x288xbf16, #tpu.memory_space<vmem>>, vector<64x288xbf16>
    %c0_1 = arith.constant 0 : index
    %c0_2 = arith.constant 0 : index
    %1 = vector.load %arg2[%c0_1, %c0_2] : memref<288x128xbf16, #tpu.memory_space<vmem>>, vector<288x128xbf16>
    %cst = arith.constant dense<0.000000e+00> : vector<64x128xf32>
    %2 = tpu.matmul %0, %1, %cst {dimension_numbers = #tpu.dot_dimension_numbers<[1], [0], [0], [1], [0, 0, 1, 1], [], []>} : vector<64x288xbf16>, vector<288x128xbf16>, vector<64x128xf32> -> vector<64x128xf32>
    %c0_3 = arith.constant 0 : index
    %c0_4 = arith.constant 0 : index
    %3 = vector.load %arg3[%c0_3, %c0_4] : memref<1x128xf32, #tpu.memory_space<vmem>>, vector<1x128xf32>
    %4 = vector.broadcast %3 : vector<1x128xf32> to vector<64x128xf32>
    %5 = arith.addf %2, %4 : vector<64x128xf32>
    %6 = tpu.iota {dimensions = array<i32: 1>} : vector<64x128xi32>
    %c63_i32 = arith.constant 63 : i32
    %7 = vector.broadcast %c63_i32 : i32 to vector<64x128xi32>
    %8 = arith.andi %6, %7 : vector<64x128xi32>
    %c32_i32 = arith.constant 32 : i32
    %9 = vector.broadcast %c32_i32 : i32 to vector<64x128xi32>
    %10 = arith.cmpi slt, %8, %9 : vector<64x128xi32>
    %cst_5 = arith.constant 0.000000e+00 : f32
    %11 = vector.broadcast %cst_5 : f32 to vector<64x128xf32>
    %12 = arith.maximumf %5, %11 : vector<64x128xf32>
    %13 = arith.select %10, %12, %5 : vector<64x128xi1>, vector<64x128xf32>
    %14 = arith.truncf %13 : vector<64x128xf32> to vector<64x128xbf16>
    %c0_6 = arith.constant 0 : index
    %c0_7 = arith.constant 0 : index
    %15 = vector.load %arg4[%c0_6, %c0_7] : memref<64x128xbf16, #tpu.memory_space<vmem>>, vector<64x128xbf16>
    tpu.vector_store %arg4[%c0_6, %c0_7], %14 {strides = array<i32>} : memref<64x128xbf16, #tpu.memory_space<vmem>>, vector<64x128xbf16>,
    return
  }
  func.func @transform_0(%arg0: i32) -> (i32, i32) {
    %c0_i32 = arith.constant 0 : i32
    %c0_i32_0 = arith.constant 0 : i32
    return %arg0, %c0_i32 : i32, i32
  }
  func.func @transform_1(%arg0: i32) -> (i32, i32) {
    %c0_i32 = arith.constant 0 : i32
    %c0_i32_0 = arith.constant 0 : i32
    %c0_i32_1 = arith.constant 0 : i32
    return %c0_i32, %c0_i32_0 : i32, i32
  }
  func.func @transform_2(%arg0: i32) -> (i32, i32) {
    %c0_i32 = arith.constant 0 : i32
    %c0_i32_0 = arith.constant 0 : i32
    %c0_i32_1 = arith.constant 0 : i32
    return %c0_i32, %c0_i32_0 : i32, i32
  }
  func.func @transform_3(%arg0: i32) -> (i32, i32) {
    %c0_i32 = arith.constant 0 : i32
    %c0_i32_0 = arith.constant 0 : i32
    return %arg0, %c0_i32 : i32, i32
  }
}

module attributes {stable_mosaic.version = 11 : i64} {
  func.func @_gemm_res_kernel(%arg0: i32, %arg1: memref<32x1152xbf16, #tpu.memory_space<vmem>>, %arg2: memref<1152x128xbf16, #tpu.memory_space<vmem>>, %arg3: memref<1x128xf32, #tpu.memory_space<vmem>>, %arg4: memref<32x128xbf16, #tpu.memory_space<vmem>>, %arg5: memref<32x128xbf16, #tpu.memory_space<vmem>>) attributes {dimension_semantics = [#tpu.dimension_semantics<arbitrary>], iteration_bounds = array<i64: 1>, scalar_prefetch = 0 : i64, scratch_operands = 0 : i64, tpu.core_type = #tpu.core_type<tc>, window_params = [{transform_indices = @transform_0, window_bounds = array<i64: 32, 1152>}, {pipeline_mode = #tpu.pipeline_mode<synchronous>, transform_indices = @transform_1, window_bounds = array<i64: 1152, 128>}, {pipeline_mode = #tpu.pipeline_mode<synchronous>, transform_indices = @transform_2, window_bounds = array<i64: 1, 128>}, {transform_indices = @transform_3, window_bounds = array<i64: 32, 128>}, {transform_indices = @transform_4, window_bounds = array<i64: 32, 128>}]} {
    %c0 = arith.constant 0 : index
    %c0_0 = arith.constant 0 : index
    %0 = vector.load %arg1[%c0, %c0_0] : memref<32x1152xbf16, #tpu.memory_space<vmem>>, vector<32x1152xbf16>
    %c0_1 = arith.constant 0 : index
    %c0_2 = arith.constant 0 : index
    %1 = vector.load %arg2[%c0_1, %c0_2] : memref<1152x128xbf16, #tpu.memory_space<vmem>>, vector<1152x128xbf16>
    %cst = arith.constant dense<0.000000e+00> : vector<32x128xf32>
    %2 = tpu.matmul %0, %1, %cst {dimension_numbers = #tpu.dot_dimension_numbers<[1], [0], [0], [1], [0, 0, 1, 1], [], []>} : vector<32x1152xbf16>, vector<1152x128xbf16>, vector<32x128xf32> -> vector<32x128xf32>
    %c0_3 = arith.constant 0 : index
    %c0_4 = arith.constant 0 : index
    %3 = vector.load %arg3[%c0_3, %c0_4] : memref<1x128xf32, #tpu.memory_space<vmem>>, vector<1x128xf32>
    %4 = vector.broadcast %3 : vector<1x128xf32> to vector<32x128xf32>
    %5 = arith.addf %2, %4 : vector<32x128xf32>
    %c0_5 = arith.constant 0 : index
    %c0_6 = arith.constant 0 : index
    %6 = vector.load %arg4[%c0_5, %c0_6] : memref<32x128xbf16, #tpu.memory_space<vmem>>, vector<32x128xbf16>
    %7 = arith.extf %6 : vector<32x128xbf16> to vector<32x128xf32>
    %8 = arith.addf %5, %7 : vector<32x128xf32>
    %cst_7 = arith.constant 0.000000e+00 : f32
    %9 = vector.broadcast %cst_7 : f32 to vector<32x128xf32>
    %10 = arith.maximumf %8, %9 : vector<32x128xf32>
    %11 = arith.truncf %10 : vector<32x128xf32> to vector<32x128xbf16>
    %c0_8 = arith.constant 0 : index
    %c0_9 = arith.constant 0 : index
    %12 = vector.load %arg5[%c0_8, %c0_9] : memref<32x128xbf16, #tpu.memory_space<vmem>>, vector<32x128xbf16>
    tpu.vector_store %arg5[%c0_8, %c0_9], %11 {strides = array<i32>} : memref<32x128xbf16, #tpu.memory_space<vmem>>, vector<32x128xbf16>,
    return
  }
  func.func @transform_0(%arg0: i32) -> (i32, i32) {
    %c0_i32 = arith.constant 0 : i32
    %c0_i32_0 = arith.constant 0 : i32
    return %arg0, %c0_i32 : i32, i32
  }
  func.func @transform_1(%arg0: i32) -> (i32, i32) {
    %c0_i32 = arith.constant 0 : i32
    %c0_i32_0 = arith.constant 0 : i32
    %c0_i32_1 = arith.constant 0 : i32
    return %c0_i32, %c0_i32_0 : i32, i32
  }
  func.func @transform_2(%arg0: i32) -> (i32, i32) {
    %c0_i32 = arith.constant 0 : i32
    %c0_i32_0 = arith.constant 0 : i32
    %c0_i32_1 = arith.constant 0 : i32
    return %c0_i32, %c0_i32_0 : i32, i32
  }
  func.func @transform_3(%arg0: i32) -> (i32, i32) {
    %c0_i32 = arith.constant 0 : i32
    %c0_i32_0 = arith.constant 0 : i32
    return %arg0, %c0_i32 : i32, i32
  }
  func.func @transform_4(%arg0: i32) -> (i32, i32) {
    %c0_i32 = arith.constant 0 : i32
    %c0_i32_0 = arith.constant 0 : i32
    return %arg0, %c0_i32 : i32, i32
  }
}

module attributes {stable_mosaic.version = 11 : i64} {
  func.func @_gemm_kernel(%arg0: i32, %arg1: memref<32x1152xbf16, #tpu.memory_space<vmem>>, %arg2: memref<1152x128xbf16, #tpu.memory_space<vmem>>, %arg3: memref<1x128xf32, #tpu.memory_space<vmem>>, %arg4: memref<32x128xbf16, #tpu.memory_space<vmem>>) attributes {dimension_semantics = [#tpu.dimension_semantics<arbitrary>], iteration_bounds = array<i64: 1>, scalar_prefetch = 0 : i64, scratch_operands = 0 : i64, tpu.core_type = #tpu.core_type<tc>, window_params = [{transform_indices = @transform_0, window_bounds = array<i64: 32, 1152>}, {pipeline_mode = #tpu.pipeline_mode<synchronous>, transform_indices = @transform_1, window_bounds = array<i64: 1152, 128>}, {pipeline_mode = #tpu.pipeline_mode<synchronous>, transform_indices = @transform_2, window_bounds = array<i64: 1, 128>}, {transform_indices = @transform_3, window_bounds = array<i64: 32, 128>}]} {
    %c0 = arith.constant 0 : index
    %c0_0 = arith.constant 0 : index
    %0 = vector.load %arg1[%c0, %c0_0] : memref<32x1152xbf16, #tpu.memory_space<vmem>>, vector<32x1152xbf16>
    %c0_1 = arith.constant 0 : index
    %c0_2 = arith.constant 0 : index
    %1 = vector.load %arg2[%c0_1, %c0_2] : memref<1152x128xbf16, #tpu.memory_space<vmem>>, vector<1152x128xbf16>
    %cst = arith.constant dense<0.000000e+00> : vector<32x128xf32>
    %2 = tpu.matmul %0, %1, %cst {dimension_numbers = #tpu.dot_dimension_numbers<[1], [0], [0], [1], [0, 0, 1, 1], [], []>} : vector<32x1152xbf16>, vector<1152x128xbf16>, vector<32x128xf32> -> vector<32x128xf32>
    %c0_3 = arith.constant 0 : index
    %c0_4 = arith.constant 0 : index
    %3 = vector.load %arg3[%c0_3, %c0_4] : memref<1x128xf32, #tpu.memory_space<vmem>>, vector<1x128xf32>
    %4 = vector.broadcast %3 : vector<1x128xf32> to vector<32x128xf32>
    %5 = arith.addf %2, %4 : vector<32x128xf32>
    %cst_5 = arith.constant 0.000000e+00 : f32
    %6 = vector.broadcast %cst_5 : f32 to vector<32x128xf32>
    %7 = arith.maximumf %5, %6 : vector<32x128xf32>
    %8 = arith.truncf %7 : vector<32x128xf32> to vector<32x128xbf16>
    %c0_6 = arith.constant 0 : index
    %c0_7 = arith.constant 0 : index
    %9 = vector.load %arg4[%c0_6, %c0_7] : memref<32x128xbf16, #tpu.memory_space<vmem>>, vector<32x128xbf16>
    tpu.vector_store %arg4[%c0_6, %c0_7], %8 {strides = array<i32>} : memref<32x128xbf16, #tpu.memory_space<vmem>>, vector<32x128xbf16>,
    return
  }
  func.func @transform_0(%arg0: i32) -> (i32, i32) {
    %c0_i32 = arith.constant 0 : i32
    %c0_i32_0 = arith.constant 0 : i32
    return %arg0, %c0_i32 : i32, i32
  }
  func.func @transform_1(%arg0: i32) -> (i32, i32) {
    %c0_i32 = arith.constant 0 : i32
    %c0_i32_0 = arith.constant 0 : i32
    %c0_i32_1 = arith.constant 0 : i32
    return %c0_i32, %c0_i32_0 : i32, i32
  }
  func.func @transform_2(%arg0: i32) -> (i32, i32) {
    %c0_i32 = arith.constant 0 : i32
    %c0_i32_0 = arith.constant 0 : i32
    %c0_i32_1 = arith.constant 0 : i32
    return %c0_i32, %c0_i32_0 : i32, i32
  }
  func.func @transform_3(%arg0: i32) -> (i32, i32) {
    %c0_i32 = arith.constant 0 : i32
    %c0_i32_0 = arith.constant 0 : i32
    return %arg0, %c0_i32 : i32, i32
  }
}

module attributes {stable_mosaic.version = 11 : i64} {
  func.func @_gemm_kernel(%arg0: i32, %arg1: memref<32x288xbf16, #tpu.memory_space<vmem>>, %arg2: memref<288x128xbf16, #tpu.memory_space<vmem>>, %arg3: memref<1x128xf32, #tpu.memory_space<vmem>>, %arg4: memref<32x128xbf16, #tpu.memory_space<vmem>>) attributes {dimension_semantics = [#tpu.dimension_semantics<arbitrary>], iteration_bounds = array<i64: 1>, scalar_prefetch = 0 : i64, scratch_operands = 0 : i64, tpu.core_type = #tpu.core_type<tc>, window_params = [{transform_indices = @transform_0, window_bounds = array<i64: 32, 288>}, {pipeline_mode = #tpu.pipeline_mode<synchronous>, transform_indices = @transform_1, window_bounds = array<i64: 288, 128>}, {pipeline_mode = #tpu.pipeline_mode<synchronous>, transform_indices = @transform_2, window_bounds = array<i64: 1, 128>}, {transform_indices = @transform_3, window_bounds = array<i64: 32, 128>}]} {
    %c0 = arith.constant 0 : index
    %c0_0 = arith.constant 0 : index
    %0 = vector.load %arg1[%c0, %c0_0] : memref<32x288xbf16, #tpu.memory_space<vmem>>, vector<32x288xbf16>
    %c0_1 = arith.constant 0 : index
    %c0_2 = arith.constant 0 : index
    %1 = vector.load %arg2[%c0_1, %c0_2] : memref<288x128xbf16, #tpu.memory_space<vmem>>, vector<288x128xbf16>
    %cst = arith.constant dense<0.000000e+00> : vector<32x128xf32>
    %2 = tpu.matmul %0, %1, %cst {dimension_numbers = #tpu.dot_dimension_numbers<[1], [0], [0], [1], [0, 0, 1, 1], [], []>} : vector<32x288xbf16>, vector<288x128xbf16>, vector<32x128xf32> -> vector<32x128xf32>
    %c0_3 = arith.constant 0 : index
    %c0_4 = arith.constant 0 : index
    %3 = vector.load %arg3[%c0_3, %c0_4] : memref<1x128xf32, #tpu.memory_space<vmem>>, vector<1x128xf32>
    %4 = vector.broadcast %3 : vector<1x128xf32> to vector<32x128xf32>
    %5 = arith.addf %2, %4 : vector<32x128xf32>
    %6 = tpu.iota {dimensions = array<i32: 1>} : vector<32x128xi32>
    %c127_i32 = arith.constant 127 : i32
    %7 = vector.broadcast %c127_i32 : i32 to vector<32x128xi32>
    %8 = arith.andi %6, %7 : vector<32x128xi32>
    %c64_i32 = arith.constant 64 : i32
    %9 = vector.broadcast %c64_i32 : i32 to vector<32x128xi32>
    %10 = arith.cmpi slt, %8, %9 : vector<32x128xi32>
    %cst_5 = arith.constant 0.000000e+00 : f32
    %11 = vector.broadcast %cst_5 : f32 to vector<32x128xf32>
    %12 = arith.maximumf %5, %11 : vector<32x128xf32>
    %13 = arith.select %10, %12, %5 : vector<32x128xi1>, vector<32x128xf32>
    %14 = arith.truncf %13 : vector<32x128xf32> to vector<32x128xbf16>
    %c0_6 = arith.constant 0 : index
    %c0_7 = arith.constant 0 : index
    %15 = vector.load %arg4[%c0_6, %c0_7] : memref<32x128xbf16, #tpu.memory_space<vmem>>, vector<32x128xbf16>
    tpu.vector_store %arg4[%c0_6, %c0_7], %14 {strides = array<i32>} : memref<32x128xbf16, #tpu.memory_space<vmem>>, vector<32x128xbf16>,
    return
  }
  func.func @transform_0(%arg0: i32) -> (i32, i32) {
    %c0_i32 = arith.constant 0 : i32
    %c0_i32_0 = arith.constant 0 : i32
    return %arg0, %c0_i32 : i32, i32
  }
  func.func @transform_1(%arg0: i32) -> (i32, i32) {
    %c0_i32 = arith.constant 0 : i32
    %c0_i32_0 = arith.constant 0 : i32
    %c0_i32_1 = arith.constant 0 : i32
    return %c0_i32, %c0_i32_0 : i32, i32
  }
  func.func @transform_2(%arg0: i32) -> (i32, i32) {
    %c0_i32 = arith.constant 0 : i32
    %c0_i32_0 = arith.constant 0 : i32
    %c0_i32_1 = arith.constant 0 : i32
    return %c0_i32, %c0_i32_0 : i32, i32
  }
  func.func @transform_3(%arg0: i32) -> (i32, i32) {
    %c0_i32 = arith.constant 0 : i32
    %c0_i32_0 = arith.constant 0 : i32
    return %arg0, %c0_i32 : i32, i32
  }
}

module attributes {stable_mosaic.version = 11 : i64} {
  func.func @_gemm_kernel(%arg0: i32, %arg1: memref<16x1152xbf16, #tpu.memory_space<vmem>>, %arg2: memref<1152x128xbf16, #tpu.memory_space<vmem>>, %arg3: memref<1x128xf32, #tpu.memory_space<vmem>>, %arg4: memref<16x128xbf16, #tpu.memory_space<vmem>>) attributes {dimension_semantics = [#tpu.dimension_semantics<arbitrary>], iteration_bounds = array<i64: 1>, scalar_prefetch = 0 : i64, scratch_operands = 0 : i64, tpu.core_type = #tpu.core_type<tc>, window_params = [{transform_indices = @transform_0, window_bounds = array<i64: 16, 1152>}, {pipeline_mode = #tpu.pipeline_mode<synchronous>, transform_indices = @transform_1, window_bounds = array<i64: 1152, 128>}, {pipeline_mode = #tpu.pipeline_mode<synchronous>, transform_indices = @transform_2, window_bounds = array<i64: 1, 128>}, {transform_indices = @transform_3, window_bounds = array<i64: 16, 128>}]} {
    %c0 = arith.constant 0 : index
    %c0_0 = arith.constant 0 : index
    %0 = vector.load %arg1[%c0, %c0_0] : memref<16x1152xbf16, #tpu.memory_space<vmem>>, vector<16x1152xbf16>
    %c0_1 = arith.constant 0 : index
    %c0_2 = arith.constant 0 : index
    %1 = vector.load %arg2[%c0_1, %c0_2] : memref<1152x128xbf16, #tpu.memory_space<vmem>>, vector<1152x128xbf16>
    %cst = arith.constant dense<0.000000e+00> : vector<16x128xf32>
    %2 = tpu.matmul %0, %1, %cst {dimension_numbers = #tpu.dot_dimension_numbers<[1], [0], [0], [1], [0, 0, 1, 1], [], []>} : vector<16x1152xbf16>, vector<1152x128xbf16>, vector<16x128xf32> -> vector<16x128xf32>
    %c0_3 = arith.constant 0 : index
    %c0_4 = arith.constant 0 : index
    %3 = vector.load %arg3[%c0_3, %c0_4] : memref<1x128xf32, #tpu.memory_space<vmem>>, vector<1x128xf32>
    %4 = vector.broadcast %3 : vector<1x128xf32> to vector<16x128xf32>
    %5 = arith.addf %2, %4 : vector<16x128xf32>
    %cst_5 = arith.constant 0.000000e+00 : f32
    %6 = vector.broadcast %cst_5 : f32 to vector<16x128xf32>
    %7 = arith.maximumf %5, %6 : vector<16x128xf32>
    %8 = arith.truncf %7 : vector<16x128xf32> to vector<16x128xbf16>
    %c0_6 = arith.constant 0 : index
    %c0_7 = arith.constant 0 : index
    %9 = vector.load %arg4[%c0_6, %c0_7] : memref<16x128xbf16, #tpu.memory_space<vmem>>, vector<16x128xbf16>
    tpu.vector_store %arg4[%c0_6, %c0_7], %8 {strides = array<i32>} : memref<16x128xbf16, #tpu.memory_space<vmem>>, vector<16x128xbf16>,
    return
  }
  func.func @transform_0(%arg0: i32) -> (i32, i32) {
    %c0_i32 = arith.constant 0 : i32
    %c0_i32_0 = arith.constant 0 : i32
    return %arg0, %c0_i32 : i32, i32
  }
  func.func @transform_1(%arg0: i32) -> (i32, i32) {
    %c0_i32 = arith.constant 0 : i32
    %c0_i32_0 = arith.constant 0 : i32
    %c0_i32_1 = arith.constant 0 : i32
    return %c0_i32, %c0_i32_0 : i32, i32
  }
  func.func @transform_2(%arg0: i32) -> (i32, i32) {
    %c0_i32 = arith.constant 0 : i32
    %c0_i32_0 = arith.constant 0 : i32
    %c0_i32_1 = arith.constant 0 : i32
    return %c0_i32, %c0_i32_0 : i32, i32
  }
  func.func @transform_3(%arg0: i32) -> (i32, i32) {
    %c0_i32 = arith.constant 0 : i32
    %c0_i32_0 = arith.constant 0 : i32
    return %arg0, %c0_i32 : i32, i32
  }
}

module attributes {stable_mosaic.version = 11 : i64} {
  func.func @_gemm_res_kernel(%arg0: i32, %arg1: memref<16x1152xbf16, #tpu.memory_space<vmem>>, %arg2: memref<1152x128xbf16, #tpu.memory_space<vmem>>, %arg3: memref<1x128xf32, #tpu.memory_space<vmem>>, %arg4: memref<16x128xbf16, #tpu.memory_space<vmem>>, %arg5: memref<16x128xbf16, #tpu.memory_space<vmem>>) attributes {dimension_semantics = [#tpu.dimension_semantics<arbitrary>], iteration_bounds = array<i64: 1>, scalar_prefetch = 0 : i64, scratch_operands = 0 : i64, tpu.core_type = #tpu.core_type<tc>, window_params = [{transform_indices = @transform_0, window_bounds = array<i64: 16, 1152>}, {pipeline_mode = #tpu.pipeline_mode<synchronous>, transform_indices = @transform_1, window_bounds = array<i64: 1152, 128>}, {pipeline_mode = #tpu.pipeline_mode<synchronous>, transform_indices = @transform_2, window_bounds = array<i64: 1, 128>}, {transform_indices = @transform_3, window_bounds = array<i64: 16, 128>}, {transform_indices = @transform_4, window_bounds = array<i64: 16, 128>}]} {
    %c0 = arith.constant 0 : index
    %c0_0 = arith.constant 0 : index
    %0 = vector.load %arg1[%c0, %c0_0] : memref<16x1152xbf16, #tpu.memory_space<vmem>>, vector<16x1152xbf16>
    %c0_1 = arith.constant 0 : index
    %c0_2 = arith.constant 0 : index
    %1 = vector.load %arg2[%c0_1, %c0_2] : memref<1152x128xbf16, #tpu.memory_space<vmem>>, vector<1152x128xbf16>
    %cst = arith.constant dense<0.000000e+00> : vector<16x128xf32>
    %2 = tpu.matmul %0, %1, %cst {dimension_numbers = #tpu.dot_dimension_numbers<[1], [0], [0], [1], [0, 0, 1, 1], [], []>} : vector<16x1152xbf16>, vector<1152x128xbf16>, vector<16x128xf32> -> vector<16x128xf32>
    %c0_3 = arith.constant 0 : index
    %c0_4 = arith.constant 0 : index
    %3 = vector.load %arg3[%c0_3, %c0_4] : memref<1x128xf32, #tpu.memory_space<vmem>>, vector<1x128xf32>
    %4 = vector.broadcast %3 : vector<1x128xf32> to vector<16x128xf32>
    %5 = arith.addf %2, %4 : vector<16x128xf32>
    %c0_5 = arith.constant 0 : index
    %c0_6 = arith.constant 0 : index
    %6 = vector.load %arg4[%c0_5, %c0_6] : memref<16x128xbf16, #tpu.memory_space<vmem>>, vector<16x128xbf16>
    %7 = arith.extf %6 : vector<16x128xbf16> to vector<16x128xf32>
    %8 = arith.addf %5, %7 : vector<16x128xf32>
    %cst_7 = arith.constant 0.000000e+00 : f32
    %9 = vector.broadcast %cst_7 : f32 to vector<16x128xf32>
    %10 = arith.maximumf %8, %9 : vector<16x128xf32>
    %11 = arith.truncf %10 : vector<16x128xf32> to vector<16x128xbf16>
    %c0_8 = arith.constant 0 : index
    %c0_9 = arith.constant 0 : index
    %12 = vector.load %arg5[%c0_8, %c0_9] : memref<16x128xbf16, #tpu.memory_space<vmem>>, vector<16x128xbf16>
    tpu.vector_store %arg5[%c0_8, %c0_9], %11 {strides = array<i32>} : memref<16x128xbf16, #tpu.memory_space<vmem>>, vector<16x128xbf16>,
    return
  }
  func.func @transform_0(%arg0: i32) -> (i32, i32) {
    %c0_i32 = arith.constant 0 : i32
    %c0_i32_0 = arith.constant 0 : i32
    return %arg0, %c0_i32 : i32, i32
  }
  func.func @transform_1(%arg0: i32) -> (i32, i32) {
    %c0_i32 = arith.constant 0 : i32
    %c0_i32_0 = arith.constant 0 : i32
    %c0_i32_1 = arith.constant 0 : i32
    return %c0_i32, %c0_i32_0 : i32, i32
  }
  func.func @transform_2(%arg0: i32) -> (i32, i32) {
    %c0_i32 = arith.constant 0 : i32
    %c0_i32_0 = arith.constant 0 : i32
    %c0_i32_1 = arith.constant 0 : i32
    return %c0_i32, %c0_i32_0 : i32, i32
  }
  func.func @transform_3(%arg0: i32) -> (i32, i32) {
    %c0_i32 = arith.constant 0 : i32
    %c0_i32_0 = arith.constant 0 : i32
    return %arg0, %c0_i32 : i32, i32
  }
  func.func @transform_4(%arg0: i32) -> (i32, i32) {
    %c0_i32 = arith.constant 0 : i32
    %c0_i32_0 = arith.constant 0 : i32
    return %arg0, %c0_i32 : i32, i32
  }
}

module attributes {stable_mosaic.version = 11 : i64} {
  func.func @_gemm_kernel(%arg0: i32, %arg1: memref<8x576xbf16, #tpu.memory_space<vmem>>, %arg2: memref<576x256xbf16, #tpu.memory_space<vmem>>, %arg3: memref<1x256xf32, #tpu.memory_space<vmem>>, %arg4: memref<8x256xbf16, #tpu.memory_space<vmem>>) attributes {dimension_semantics = [#tpu.dimension_semantics<arbitrary>], iteration_bounds = array<i64: 1>, scalar_prefetch = 0 : i64, scratch_operands = 0 : i64, tpu.core_type = #tpu.core_type<tc>, window_params = [{transform_indices = @transform_0, window_bounds = array<i64: 8, 576>}, {pipeline_mode = #tpu.pipeline_mode<synchronous>, transform_indices = @transform_1, window_bounds = array<i64: 576, 256>}, {pipeline_mode = #tpu.pipeline_mode<synchronous>, transform_indices = @transform_2, window_bounds = array<i64: 1, 256>}, {transform_indices = @transform_3, window_bounds = array<i64: 8, 256>}]} {
    %c0 = arith.constant 0 : index
    %c0_0 = arith.constant 0 : index
    %0 = vector.load %arg1[%c0, %c0_0] : memref<8x576xbf16, #tpu.memory_space<vmem>>, vector<8x576xbf16>
    %c0_1 = arith.constant 0 : index
    %c0_2 = arith.constant 0 : index
    %1 = vector.load %arg2[%c0_1, %c0_2] : memref<576x256xbf16, #tpu.memory_space<vmem>>, vector<576x256xbf16>
    %cst = arith.constant dense<0.000000e+00> : vector<8x256xf32>
    %2 = tpu.matmul %0, %1, %cst {dimension_numbers = #tpu.dot_dimension_numbers<[1], [0], [0], [1], [0, 0, 1, 1], [], []>} : vector<8x576xbf16>, vector<576x256xbf16>, vector<8x256xf32> -> vector<8x256xf32>
    %c0_3 = arith.constant 0 : index
    %c0_4 = arith.constant 0 : index
    %3 = vector.load %arg3[%c0_3, %c0_4] : memref<1x256xf32, #tpu.memory_space<vmem>>, vector<1x256xf32>
    %4 = vector.broadcast %3 : vector<1x256xf32> to vector<8x256xf32>
    %5 = arith.addf %2, %4 : vector<8x256xf32>
    %6 = tpu.iota {dimensions = array<i32: 1>} : vector<8x256xi32>
    %c255_i32 = arith.constant 255 : i32
    %7 = vector.broadcast %c255_i32 : i32 to vector<8x256xi32>
    %8 = arith.andi %6, %7 : vector<8x256xi32>
    %c128_i32 = arith.constant 128 : i32
    %9 = vector.broadcast %c128_i32 : i32 to vector<8x256xi32>
    %10 = arith.cmpi slt, %8, %9 : vector<8x256xi32>
    %cst_5 = arith.constant 0.000000e+00 : f32
    %11 = vector.broadcast %cst_5 : f32 to vector<8x256xf32>
    %12 = arith.maximumf %5, %11 : vector<8x256xf32>
    %13 = arith.select %10, %12, %5 : vector<8x256xi1>, vector<8x256xf32>
    %14 = arith.truncf %13 : vector<8x256xf32> to vector<8x256xbf16>
    %c0_6 = arith.constant 0 : index
    %c0_7 = arith.constant 0 : index
    %15 = vector.load %arg4[%c0_6, %c0_7] : memref<8x256xbf16, #tpu.memory_space<vmem>>, vector<8x256xbf16>
    tpu.vector_store %arg4[%c0_6, %c0_7], %14 {strides = array<i32>} : memref<8x256xbf16, #tpu.memory_space<vmem>>, vector<8x256xbf16>,
    return
  }
  func.func @transform_0(%arg0: i32) -> (i32, i32) {
    %c0_i32 = arith.constant 0 : i32
    %c0_i32_0 = arith.constant 0 : i32
    return %arg0, %c0_i32 : i32, i32
  }
  func.func @transform_1(%arg0: i32) -> (i32, i32) {
    %c0_i32 = arith.constant 0 : i32
    %c0_i32_0 = arith.constant 0 : i32
    %c0_i32_1 = arith.constant 0 : i32
    return %c0_i32, %c0_i32_0 : i32, i32
  }
  func.func @transform_2(%arg0: i32) -> (i32, i32) {
    %c0_i32 = arith.constant 0 : i32
    %c0_i32_0 = arith.constant 0 : i32
    %c0_i32_1 = arith.constant 0 : i32
    return %c0_i32, %c0_i32_0 : i32, i32
  }
  func.func @transform_3(%arg0: i32) -> (i32, i32) {
    %c0_i32 = arith.constant 0 : i32
    %c0_i32_0 = arith.constant 0 : i32
    return %arg0, %c0_i32 : i32, i32
  }
}

module attributes {stable_mosaic.version = 11 : i64} {
  func.func @_gemm_res_kernel(%arg0: i32, %arg1: memref<8x1152xbf16, #tpu.memory_space<vmem>>, %arg2: memref<1152x128xbf16, #tpu.memory_space<vmem>>, %arg3: memref<1x128xf32, #tpu.memory_space<vmem>>, %arg4: memref<8x128xbf16, #tpu.memory_space<vmem>>, %arg5: memref<8x128xbf16, #tpu.memory_space<vmem>>) attributes {dimension_semantics = [#tpu.dimension_semantics<arbitrary>], iteration_bounds = array<i64: 1>, scalar_prefetch = 0 : i64, scratch_operands = 0 : i64, tpu.core_type = #tpu.core_type<tc>, window_params = [{transform_indices = @transform_0, window_bounds = array<i64: 8, 1152>}, {pipeline_mode = #tpu.pipeline_mode<synchronous>, transform_indices = @transform_1, window_bounds = array<i64: 1152, 128>}, {pipeline_mode = #tpu.pipeline_mode<synchronous>, transform_indices = @transform_2, window_bounds = array<i64: 1, 128>}, {transform_indices = @transform_3, window_bounds = array<i64: 8, 128>}, {transform_indices = @transform_4, window_bounds = array<i64: 8, 128>}]} {
    %c0 = arith.constant 0 : index
    %c0_0 = arith.constant 0 : index
    %0 = vector.load %arg1[%c0, %c0_0] : memref<8x1152xbf16, #tpu.memory_space<vmem>>, vector<8x1152xbf16>
    %c0_1 = arith.constant 0 : index
    %c0_2 = arith.constant 0 : index
    %1 = vector.load %arg2[%c0_1, %c0_2] : memref<1152x128xbf16, #tpu.memory_space<vmem>>, vector<1152x128xbf16>
    %cst = arith.constant dense<0.000000e+00> : vector<8x128xf32>
    %2 = tpu.matmul %0, %1, %cst {dimension_numbers = #tpu.dot_dimension_numbers<[1], [0], [0], [1], [0, 0, 1, 1], [], []>} : vector<8x1152xbf16>, vector<1152x128xbf16>, vector<8x128xf32> -> vector<8x128xf32>
    %c0_3 = arith.constant 0 : index
    %c0_4 = arith.constant 0 : index
    %3 = vector.load %arg3[%c0_3, %c0_4] : memref<1x128xf32, #tpu.memory_space<vmem>>, vector<1x128xf32>
    %4 = vector.broadcast %3 : vector<1x128xf32> to vector<8x128xf32>
    %5 = arith.addf %2, %4 : vector<8x128xf32>
    %c0_5 = arith.constant 0 : index
    %c0_6 = arith.constant 0 : index
    %6 = vector.load %arg4[%c0_5, %c0_6] : memref<8x128xbf16, #tpu.memory_space<vmem>>, vector<8x128xbf16>
    %7 = arith.extf %6 : vector<8x128xbf16> to vector<8x128xf32>
    %8 = arith.addf %5, %7 : vector<8x128xf32>
    %cst_7 = arith.constant 0.000000e+00 : f32
    %9 = vector.broadcast %cst_7 : f32 to vector<8x128xf32>
    %10 = arith.maximumf %8, %9 : vector<8x128xf32>
    %11 = arith.truncf %10 : vector<8x128xf32> to vector<8x128xbf16>
    %c0_8 = arith.constant 0 : index
    %c0_9 = arith.constant 0 : index
    %12 = vector.load %arg5[%c0_8, %c0_9] : memref<8x128xbf16, #tpu.memory_space<vmem>>, vector<8x128xbf16>
    tpu.vector_store %arg5[%c0_8, %c0_9], %11 {strides = array<i32>} : memref<8x128xbf16, #tpu.memory_space<vmem>>, vector<8x128xbf16>,
    return
  }
  func.func @transform_0(%arg0: i32) -> (i32, i32) {
    %c0_i32 = arith.constant 0 : i32
    %c0_i32_0 = arith.constant 0 : i32
    return %arg0, %c0_i32 : i32, i32
  }
  func.func @transform_1(%arg0: i32) -> (i32, i32) {
    %c0_i32 = arith.constant 0 : i32
    %c0_i32_0 = arith.constant 0 : i32
    %c0_i32_1 = arith.constant 0 : i32
    return %c0_i32, %c0_i32_0 : i32, i32
  }
  func.func @transform_2(%arg0: i32) -> (i32, i32) {
    %c0_i32 = arith.constant 0 : i32
    %c0_i32_0 = arith.constant 0 : i32
    %c0_i32_1 = arith.constant 0 : i32
    return %c0_i32, %c0_i32_0 : i32, i32
  }
  func.func @transform_3(%arg0: i32) -> (i32, i32) {
    %c0_i32 = arith.constant 0 : i32
    %c0_i32_0 = arith.constant 0 : i32
    return %arg0, %c0_i32 : i32, i32
  }
  func.func @transform_4(%arg0: i32) -> (i32, i32) {
    %c0_i32 = arith.constant 0 : i32
    %c0_i32_0 = arith.constant 0 : i32
    return %arg0, %c0_i32 : i32, i32
  }
}

module attributes {stable_mosaic.version = 11 : i64} {
  func.func @_gemm_kernel(%arg0: i32, %arg1: memref<8x1152xbf16, #tpu.memory_space<vmem>>, %arg2: memref<1152x128xbf16, #tpu.memory_space<vmem>>, %arg3: memref<1x128xf32, #tpu.memory_space<vmem>>, %arg4: memref<8x128xbf16, #tpu.memory_space<vmem>>) attributes {dimension_semantics = [#tpu.dimension_semantics<arbitrary>], iteration_bounds = array<i64: 1>, scalar_prefetch = 0 : i64, scratch_operands = 0 : i64, tpu.core_type = #tpu.core_type<tc>, window_params = [{transform_indices = @transform_0, window_bounds = array<i64: 8, 1152>}, {pipeline_mode = #tpu.pipeline_mode<synchronous>, transform_indices = @transform_1, window_bounds = array<i64: 1152, 128>}, {pipeline_mode = #tpu.pipeline_mode<synchronous>, transform_indices = @transform_2, window_bounds = array<i64: 1, 128>}, {transform_indices = @transform_3, window_bounds = array<i64: 8, 128>}]} {
    %c0 = arith.constant 0 : index
    %c0_0 = arith.constant 0 : index
    %0 = vector.load %arg1[%c0, %c0_0] : memref<8x1152xbf16, #tpu.memory_space<vmem>>, vector<8x1152xbf16>
    %c0_1 = arith.constant 0 : index
    %c0_2 = arith.constant 0 : index
    %1 = vector.load %arg2[%c0_1, %c0_2] : memref<1152x128xbf16, #tpu.memory_space<vmem>>, vector<1152x128xbf16>
    %cst = arith.constant dense<0.000000e+00> : vector<8x128xf32>
    %2 = tpu.matmul %0, %1, %cst {dimension_numbers = #tpu.dot_dimension_numbers<[1], [0], [0], [1], [0, 0, 1, 1], [], []>} : vector<8x1152xbf16>, vector<1152x128xbf16>, vector<8x128xf32> -> vector<8x128xf32>
    %c0_3 = arith.constant 0 : index
    %c0_4 = arith.constant 0 : index
    %3 = vector.load %arg3[%c0_3, %c0_4] : memref<1x128xf32, #tpu.memory_space<vmem>>, vector<1x128xf32>
    %4 = vector.broadcast %3 : vector<1x128xf32> to vector<8x128xf32>
    %5 = arith.addf %2, %4 : vector<8x128xf32>
    %cst_5 = arith.constant 0.000000e+00 : f32
    %6 = vector.broadcast %cst_5 : f32 to vector<8x128xf32>
    %7 = arith.maximumf %5, %6 : vector<8x128xf32>
    %8 = arith.truncf %7 : vector<8x128xf32> to vector<8x128xbf16>
    %c0_6 = arith.constant 0 : index
    %c0_7 = arith.constant 0 : index
    %9 = vector.load %arg4[%c0_6, %c0_7] : memref<8x128xbf16, #tpu.memory_space<vmem>>, vector<8x128xbf16>
    tpu.vector_store %arg4[%c0_6, %c0_7], %8 {strides = array<i32>} : memref<8x128xbf16, #tpu.memory_space<vmem>>, vector<8x128xbf16>,
    return
  }
  func.func @transform_0(%arg0: i32) -> (i32, i32) {
    %c0_i32 = arith.constant 0 : i32
    %c0_i32_0 = arith.constant 0 : i32
    return %arg0, %c0_i32 : i32, i32
  }
  func.func @transform_1(%arg0: i32) -> (i32, i32) {
    %c0_i32 = arith.constant 0 : i32
    %c0_i32_0 = arith.constant 0 : i32
    %c0_i32_1 = arith.constant 0 : i32
    return %c0_i32, %c0_i32_0 : i32, i32
  }
  func.func @transform_2(%arg0: i32) -> (i32, i32) {
    %c0_i32 = arith.constant 0 : i32
    %c0_i32_0 = arith.constant 0 : i32
    %c0_i32_1 = arith.constant 0 : i32
    return %c0_i32, %c0_i32_0 : i32, i32
  }
  func.func @transform_3(%arg0: i32) -> (i32, i32) {
    %c0_i32 = arith.constant 0 : i32
    %c0_i32_0 = arith.constant 0 : i32
    return %arg0, %c0_i32 : i32, i32
  }
}

</mosaic_0001>

<bundles_post_ra>
// kernel: resbase_forward.18
= control target key start
LH: loop header
LB: loop body
LE: loop exit
PB: predicated region body
PF: predicated region fallthrough
CT: control target
= control target key end

     0   :  { %vm1603_vm0 = vcmask 1043456   ;;  %vm1554_vm1 = vcmask 195584   ;;  %s4823_s1 = inlined_call_operand.vmem [shape: bf16[1176,128], index: 1, kind: input, shape index: {}]   ;;  %s4824_s0 = inlined_call_operand.vmem [shape: bf16[256,1176], index: 0, kind: input, shape index: {}]   ;;  %s4825_s2 = inlined_call_operand.vmem [shape: f32[1,128], index: 2, kind: input, shape index: {}]   ;;  %s4826_s3 = inlined_call_operand.vmem [shape: bf16[256,128], index: 3, kind: output, shape index: {}]  }
   0x1   :  { %v3483_v0 = vld [vmem:[%s4823_s1 + $0x40] sm:$0xff]   ;;  %v3485_v2 = vld [vmem:[%s4823_s1 + $0x48] sm:$0xff]   ;;  %v3487_v4 = vld [vmem:[%s4823_s1 + $0x50] sm:$0xff]  }
   0x2   :  { %v3484_v1 = vld [vmem:[%s4823_s1] sm:$0xff]   ;;  %3466 = vmatprep.subr.bf16.mxu1 %v3483_v0  ;;  %3018 = vmatprep.subr.bf16.mxu0 %v3483_v0  ;;  %v3486_v3 = vld [vmem:[%s4823_s1 + $0x8] sm:$0xff]   ;;  %v3488_v5 = vld [vmem:[%s4823_s1 + $0x10] sm:$0xff]  }
   0x3   :  { %3474 = vmatpush3.bf16.msra.mxu1 %v3484_v1  ;;  %3019 = vmatpush3.bf16.msra.mxu0 %v3484_v1  ;;  %v3489_v6 = vld [vmem:[%s4823_s1 + $0x58] sm:$0xff]   ;;  %v3491_v8 = vld [vmem:[%s4823_s1 + $0x60] sm:$0xff]   ;;  %v3493_v10 = vld [vmem:[%s4823_s1 + $0x68] sm:$0xff]  }
   0x4   :  { %3467 = vmatprep.subr.bf16.mxu1 %v3485_v2  ;;  %3020 = vmatprep.subr.bf16.mxu0 %v3485_v2  ;;  %v3490_v7 = vld [vmem:[%s4823_s1 + $0x18] sm:$0xff]   ;;  %v3492_v9 = vld [vmem:[%s4823_s1 + $0x20] sm:$0xff]   ;;  %v3494_v12 = vld [vmem:[%s4823_s1 + $0x28] sm:$0xff]  }
   0x5   :  { %v3501_v11 = vld [vmem:[%s4824_s0 + $0x284] ss:$40 sps:$4 sm:$0xff]   ;;  %v3495_v14 = vld [vmem:[%s4823_s1 + $0x70] sm:$0xff]   ;;  %v3497_v16 = vld [vmem:[%s4823_s1 + $0x78] sm:$0xff]  }
   0x6   :  { %v3505_v13 = vld [vmem:[%s4824_s0 + $0x4] ss:$40 sps:$4 sm:$0xff]   ;;  %1703 = vmatprep.mubr.bf16.mxu1 %v3501_v11  ;;  %v3496_v15 = vld [vmem:[%s4823_s1 + $0x30] sm:$0xff]   ;;  %v3498_v17 = vld [vmem:[%s4823_s1 + $0x38] sm:$0xff]   ;;  %v3797_v11 = vmov 0  }
   0x7   :  { %3475 = vmatpush3.bf16.msra.mxu1 %v3486_v3  ;;  %3021 = vmatpush3.bf16.msra.mxu0 %v3486_v3  ;;  %v3502_v18 = vld [vmem:[%s4823_s1 + $0xc0] sm:$0xff]   ;;  %v3509_v24 = vld [vmem:[%s4824_s0 + $0x2d4] ss:$40 sps:$4 sm:$0xff]   ;;  %v3512_v25 = vld [vmem:[%s4823_s1 + $0xc8] sm:$0xff]  }
   0x8   :  { %3468 = vmatprep.subr.bf16.mxu1 %v3487_v4  ;;  %3022 = vmatprep.subr.bf16.mxu0 %v3487_v4  ;;  %v3499_v19 = vld [vmem:[%s4824_s0 + $0x280] ss:$40 sps:$4 sm:$0xff]   ;;  %v3513_v26 = vld [vmem:[%s4824_s0 + $0x54] ss:$40 sps:$4 sm:$0xff]   ;;  %v3511_v31 = vld [vmem:[%s4824_s0 + $0x2d0] ss:$40 sps:$4 sm:$0xff]  }
   0x9   :  { %1639 = vmatprep.mubr.bf16.mxu0 %v3505_v13  ;;  %v3503_v20 = vld [vmem:[%s4824_s0] ss:$40 sps:$4 sm:$0xff]   ;;  %v3522_v30 = vld [vmem:[%s4823_s1 + $0xd0] sm:$0xff]   ;;  %v3519_v34 = vld [vmem:[%s4824_s0 + $0x324] ss:$40 sps:$4 sm:$0xff]  }
   0xa   :  { %v3507_v21 = vld [vmem:[%s4823_s1 + $0x140] sm:$0xff]   ;;  %v3515_v27 = vld [vmem:[%s4823_s1 + $0x88] sm:$0xff]   ;;  %v3516_v32 = vld [vmem:[%s4824_s0 + $0x50] ss:$40 sps:$4 sm:$0xff]  }
   0xb   :  { %3476 = vmatpush3.bf16.msra.mxu1 %v3488_v5  ;;  %3023 = vmatpush3.bf16.msra.mxu0 %v3488_v5  ;;  %v3506_v22 = vld [vmem:[%s4823_s1 + $0x80] sm:$0xff]   ;;  %v3517_v28 = vld [vmem:[%s4823_s1 + $0x148] sm:$0xff]   ;;  %v3527_v33 = vld [vmem:[%s4823_s1 + $0x150] sm:$0xff]  }
   0xc   :  { %3469 = vmatprep.subr.bf16.mxu1 %v3489_v6  ;;  %3024 = vmatprep.subr.bf16.mxu0 %v3489_v6  ;;  %v3508_v23 = vld [vmem:[%s4823_s1 + $0x100] sm:$0xff]   ;;  %v3518_v29 = vld [vmem:[%s4823_s1 + $0x108] sm:$0xff]   ;;  %v3525_v36 = vld [vmem:[%s4823_s1 + $0x90] sm:$0xff]  }
   0xd   :  { %v3523_v35 = vld [vmem:[%s4824_s0 + $0xa4] ss:$40 sps:$4 sm:$0xff]   ;;  %v3528_v37 = vld [vmem:[%s4823_s1 + $0x110] sm:$0xff]   ;;  %v3532_v38 = vld [vmem:[%s4823_s1 + $0xd8] sm:$0xff]  }
   0xe   :  { %v3537_v39 = vld [vmem:[%s4823_s1 + $0x158] sm:$0xff]   ;;  %v3521_v41 = vld [vmem:[%s4824_s0 + $0x320] ss:$40 sps:$4 sm:$0xff]   ;;  %v3539_v53 = vld [vmem:[%s4824_s0 + $0x3c4] ss:$40 sps:$4 sm:$0xff]  }
   0xf   :  { %3477 = vmatpush3.bf16.msra.mxu1 %v3490_v7  ;;  %3025 = vmatpush3.bf16.msra.mxu0 %v3490_v7  ;;  %v3535_v40 = vld [vmem:[%s4823_s1 + $0x98] sm:$0xff]   ;;  %v3526_v42 = vld [vmem:[%s4824_s0 + $0xa0] ss:$40 sps:$4 sm:$0xff]   ;;  %v3543_v54 = vld [vmem:[%s4824_s0 + $0x144] ss:$40 sps:$4 sm:$0xff]  }
  0x10   :  { %3470 = vmatprep.subr.bf16.mxu1 %v3491_v8  ;;  %3026 = vmatprep.subr.bf16.mxu0 %v3491_v8  ;;  %v3538_v43 = vld [vmem:[%s4823_s1 + $0x118] sm:$0xff]   ;;  %v3542_v45 = vld [vmem:[%s4823_s1 + $0xe0] sm:$0xff]   ;;  %v3552_v50 = vld [vmem:[%s4823_s1 + $0xe8] sm:$0xff]  }
  0x11   :  { %v3529_v44 = vld [vmem:[%s4824_s0 + $0x374] ss:$40 sps:$4 sm:$0xff]   ;;  %v3545_v47 = vld [vmem:[%s4823_s1 + $0xa0] sm:$0xff]   ;;  %v3531_v51 = vld [vmem:[%s4824_s0 + $0x370] ss:$40 sps:$4 sm:$0xff]  }
  0x12   :  { %v3533_v46 = vld [vmem:[%s4824_s0 + $0xf4] ss:$40 sps:$4 sm:$0xff]   ;;  %v3547_v48 = vld [vmem:[%s4823_s1 + $0x160] sm:$0xff]   ;;  %v3536_v52 = vld [vmem:[%s4824_s0 + $0xf0] ss:$40 sps:$4 sm:$0xff]  }
  0x13   :  { %3478 = vmatpush3.bf16.msra.mxu1 %v3492_v9  ;;  %3027 = vmatpush3.bf16.msra.mxu0 %v3492_v9  ;;  %v3548_v49 = vld [vmem:[%s4823_s1 + $0x120] sm:$0xff]   ;;  %v3555_v55 = vld [vmem:[%s4823_s1 + $0xa8] sm:$0xff]   ;;  %v3562_v58 = vld [vmem:[%s4823_s1 + $0xf0] sm:$0xff]  }
  0x14   :  { %3471 = vmatprep.subr.bf16.mxu1 %v3493_v10  ;;  %3028 = vmatprep.subr.bf16.mxu0 %v3493_v10  ;;  %v3557_v56 = vld [vmem:[%s4823_s1 + $0x168] sm:$0xff]   ;;  %v3565_v61 = vld [vmem:[%s4823_s1 + $0xb0] sm:$0xff]   ;;  %v3572_v2 = vld [vmem:[%s4823_s1 + $0xf8] sm:$0xff]  }
  0x15   :  { %v3558_v57 = vld [vmem:[%s4823_s1 + $0x128] sm:$0xff]   ;;  %v3567_v62 = vld [vmem:[%s4823_s1 + $0x170] sm:$0xff]   ;;  %v3575_v3 = vld [vmem:[%s4823_s1 + $0xb8] sm:$0xff]  }
  0x16   :  { %v3541_v59 = vld [vmem:[%s4824_s0 + $0x3c0] ss:$40 sps:$4 sm:$0xff]   ;;  %v3568_v63 = vld [vmem:[%s4823_s1 + $0x130] sm:$0xff]   ;;  %v3577_v6 = vld [vmem:[%s4823_s1 + $0x178] sm:$0xff]  }
  0x17   :  { %3479 = vmatpush3.bf16.msra.mxu1 %v3494_v12  ;;  %3029 = vmatpush3.bf16.msra.mxu0 %v3494_v12  ;;  %v3546_v60 = vld [vmem:[%s4824_s0 + $0x140] ss:$40 sps:$4 sm:$0xff]   ;;  %v3549_v0 = vld [vmem:[%s4824_s0 + $0x414] ss:$40 sps:$4 sm:$0xff]   ;;  %v3551_v4 = vld [vmem:[%s4824_s0 + $0x410] ss:$40 sps:$4 sm:$0xff]  }
  0x18   :  { %3472 = vmatprep.subr.bf16.mxu1 %v3495_v14  ;;  %3030 = vmatprep.subr.bf16.mxu0 %v3495_v14  ;;  %v3553_v1 = vld [vmem:[%s4824_s0 + $0x194] ss:$40 sps:$4 sm:$0xff]   ;;  %v3556_v5 = vld [vmem:[%s4824_s0 + $0x190] ss:$40 sps:$4 sm:$0xff]   ;;  %v3559_v8 = vld [vmem:[%s4824_s0 + $0x464] ss:$40 sps:$4 sm:$0xff]  }
  0x19   :  { %v3578_v7 = vld [vmem:[%s4823_s1 + $0x138] sm:$0xff]   ;;  %v3563_v9 = vld [vmem:[%s4824_s0 + $0x1e4] ss:$40 sps:$4 sm:$0xff]   ;;  %v3561_v12 = vld [vmem:[%s4824_s0 + $0x460] ss:$40 sps:$4 sm:$0xff]  }
  0x1a   :  { %v3582_v10 = vld [vmem:[%s4823_s1 + $0x1c0] sm:$0xff]   ;;  %v3569_v14 = vld [vmem:[%s4824_s0 + $0x4b4] ss:$40 sps:$4 sm:$0xff]  }
  0x1b   :  { %3480 = vmatpush3.bf16.msra.mxu1 %v3496_v15  ;;  %3031 = vmatpush3.bf16.msra.mxu0 %v3496_v15  ;;  %v3566_v13 = vld [vmem:[%s4824_s0 + $0x1e0] ss:$40 sps:$4 sm:$0xff]   ;;  %v3573_v15 = vld [vmem:[%s4824_s0 + $0x234] ss:$40 sps:$4 sm:$0xff]  }
  0x1c   :  { %3473 = vmatprep.subr.bf16.mxu1 %v3497_v16  ;;  %3032 = vmatprep.subr.bf16.mxu0 %v3497_v16  ;;  %v3571_v16 = vld [vmem:[%s4824_s0 + $0x4b0] ss:$40 sps:$4 sm:$0xff]  }
  0x1f   :  { %3481 = vmatpush3.bf16.msra.mxu1 %v3498_v17  ;;  %3033 = vmatpush3.bf16.msra.mxu0 %v3498_v17  ;;  %v3576_v17 = vld [vmem:[%s4824_s0 + $0x230] ss:$40 sps:$4 sm:$0xff]  }
  0x20   :  { %3130 = vmatprep.subr.bf16.mxu1 %v3502_v18  ;;  %3242 = vmatprep.subr.bf16.mxu0 %v3507_v21  ;;  %v3581_v18 = vld [vmem:[%s4824_s0 + $0xc] ss:$40 sps:$4 sm:$0xff]   ;;  %v3583_v21 = vld [vmem:[%s4824_s0 + $0x10] ss:$40 sps:$4 sm:$0xff]  }
  0x22   :  { %1704 = vmatmul.mubr.bf16.vlgmr.msra.gmra.mrb[0].mxu1 %v3499_v19  ;;  %1640 = vmatmul.mubr.bf16.vlgmr.msra.gmra.mrb[0].mxu0 %v3503_v20  ;;  %v3585_v19 = vld [vmem:[%s4824_s0 + $0x14] ss:$40 sps:$4 sm:$0xff]   ;;  %v3579_v20 = vld [vmem:[%s4824_s0 + $0x8] ss:$40 sps:$4 sm:$0xff]  }
  0x23   :  { %3131 = vmatpush3.bf16.msra.mxu1 %v3506_v22  ;;  %3243 = vmatpush3.bf16.msra.mxu0 %v3508_v23  ;;  %v3586_v22 = vld [vmem:[%s4823_s1 + $0x180] sm:$0xff]  }
  0x24   :  { %1711 = vmatprep.mubr.bf16.mxu1 %v3509_v24  ;;  %3132 = vmatprep.subr.bf16.mxu1 %v3512_v25  ;;  %v3587_v23 = vld [vmem:[%s4823_s1 + $0x200] sm:$0xff]  }
  0x25   :  { %1647 = vmatprep.mubr.bf16.mxu0 %v3513_v26  ;;  %3244 = vmatprep.subr.bf16.mxu0 %v3517_v28  ;;  %v3588_v24 = vld [vmem:[%s4824_s0 + $0x5c] ss:$40 sps:$4 sm:$0xff]   ;;  %v3597_v26 = vld [vmem:[%s4823_s1 + $0x1c8] sm:$0xff]  }
  0x26   :  { %v3591_v25 = vld [vmem:[%s4824_s0 + $0x64] ss:$40 sps:$4 sm:$0xff]  }
  0x27   :  { %3133 = vmatpush3.bf16.msra.mxu1 %v3515_v27  ;;  %3245 = vmatpush3.bf16.msra.mxu0 %v3518_v29  ;;  %v3600_v27 = vld [vmem:[%s4823_s1 + $0x188] sm:$0xff]   ;;  %v3612_v29 = vld [vmem:[%s4823_s1 + $0x1d0] sm:$0xff]  }
  0x28   :  { %3134 = vmatprep.subr.bf16.mxu1 %v3522_v30  ;;  %3246 = vmatprep.subr.bf16.mxu0 %v3527_v33  ;;  %v3602_v28 = vld [vmem:[%s4823_s1 + $0x208] sm:$0xff]   ;;  %v3590_v30 = vld [vmem:[%s4824_s0 + $0x58] ss:$40 sps:$4 sm:$0xff]   ;;  %v3598_v33 = vld [vmem:[%s4824_s0 + $0xb4] ss:$40 sps:$4 sm:$0xff]  }
  0x2a   :  { %1712 = vmatmul.mubr.bf16.gmra.mrb[4].mxu1 %v3511_v31  ;;  %1648 = vmatmul.mubr.bf16.gmra.mrb[4].mxu0 %v3516_v32  ;;  %v3593_v31 = vld [vmem:[%s4824_s0 + $0x60] ss:$40 sps:$4 sm:$0xff]   ;;  %v3594_v32 = vld [vmem:[%s4824_s0 + $0xac] ss:$40 sps:$4 sm:$0xff]  }
  0x2b   :  { %1719 = vmatprep.mubr.bf16.mxu1 %v3519_v34  ;;  %1655 = vmatprep.mubr.bf16.mxu0 %v3523_v35  ;;  %v3613_v34 = vld [vmem:[%s4823_s1 + $0x210] sm:$0xff]  }
  0x2c   :  { %3135 = vmatpush3.bf16.msra.mxu1 %v3525_v36  ;;  %3247 = vmatpush3.bf16.msra.mxu0 %v3528_v37  ;;  %v3616_v35 = vld [vmem:[%s4823_s1 + $0x190] sm:$0xff]   ;;  %v3628_v36 = vld [vmem:[%s4823_s1 + $0x1d8] sm:$0xff]  }
  0x2d   :  { %3136 = vmatprep.subr.bf16.mxu1 %v3532_v38  ;;  %3248 = vmatprep.subr.bf16.mxu0 %v3537_v39  ;;  %v3624_v37 = vld [vmem:[%s4823_s1 + $0x218] sm:$0xff]   ;;  %v3596_v38 = vld [vmem:[%s4824_s0 + $0xa8] ss:$40 sps:$4 sm:$0xff]  }
  0x2e   :  { %v3631_v39 = vld [vmem:[%s4823_s1 + $0x198] sm:$0xff]  }
  0x30   :  { %3137 = vmatpush3.bf16.msra.mxu1 %v3535_v40  ;;  %3249 = vmatpush3.bf16.msra.mxu0 %v3538_v43  ;;  %v3643_v40 = vld [vmem:[%s4823_s1 + $0x1e0] sm:$0xff]  }
  0x31   :  { %3138 = vmatprep.subr.bf16.mxu1 %v3542_v45  ;;  %3250 = vmatprep.subr.bf16.mxu0 %v3547_v48  ;;  %v3606_v43 = vld [vmem:[%s4824_s0 + $0x104] ss:$40 sps:$4 sm:$0xff]  }
  0x32   :  { %1720 = vmatmul.mubr.bf16.gmra.mrb[8].mxu1 %v3521_v41  ;;  %1656 = vmatmul.mubr.bf16.gmra.mrb[8].mxu0 %v3526_v42  ;;  %v3601_v41 = vld [vmem:[%s4824_s0 + $0xb0] ss:$40 sps:$4 sm:$0xff]   ;;  %v3603_v42 = vld [vmem:[%s4824_s0 + $0xfc] ss:$40 sps:$4 sm:$0xff]   ;;  %v3661_v48 = vld [vmem:[%s4823_s1 + $0x1a8] sm:$0xff]  }
  0x33   :  { %1727 = vmatprep.mubr.bf16.mxu1 %v3529_v44  ;;  %1663 = vmatprep.mubr.bf16.mxu0 %v3533_v46  ;;  %v3639_v44 = vld [vmem:[%s4823_s1 + $0x220] sm:$0xff]   ;;  %v3658_v46 = vld [vmem:[%s4823_s1 + $0x1e8] sm:$0xff]  }
  0x34   :  { %3139 = vmatpush3.bf16.msra.mxu1 %v3545_v47  ;;  %3251 = vmatpush3.bf16.msra.mxu0 %v3548_v49  ;;  %v3646_v45 = vld [vmem:[%s4823_s1 + $0x1a0] sm:$0xff]   ;;  %v3648_v47 = vld [vmem:[%s4823_s1 + $0x228] sm:$0xff]  }
  0x35   :  { %3140 = vmatprep.subr.bf16.mxu1 %v3552_v50  ;;  %3252 = vmatprep.subr.bf16.mxu0 %v3557_v56  ;;  %v3605_v49 = vld [vmem:[%s4824_s0 + $0xf8] ss:$40 sps:$4 sm:$0xff]  }
  0x36   :  { %v3608_v50 = vld [vmem:[%s4824_s0 + $0x100] ss:$40 sps:$4 sm:$0xff]   ;;  %v3674_v56 = vld [vmem:[%s4823_s1 + $0x238] sm:$0xff]  }
  0x38   :  { %3141 = vmatpush3.bf16.msra.mxu1 %v3555_v55  ;;  %3253 = vmatpush3.bf16.msra.mxu0 %v3558_v57  ;;  %v3611_v55 = vld [vmem:[%s4824_s0 + $0x148] ss:$40 sps:$4 sm:$0xff]  }
  0x39   :  { %3142 = vmatprep.subr.bf16.mxu1 %v3562_v58  ;;  %3254 = vmatprep.subr.bf16.mxu0 %v3567_v62  ;;  %v3617_v57 = vld [vmem:[%s4824_s0 + $0x150] ss:$40 sps:$4 sm:$0xff]  }
  0x3a   :  { %1728 = vmatmul.mubr.bf16.gmra.mrb[12].mxu1 %v3531_v51  ;;  %1664 = vmatmul.mubr.bf16.gmra.mrb[12].mxu0 %v3536_v52  ;;  %v3609_v51 = vld [vmem:[%s4824_s0 + $0x14c] ss:$40 sps:$4 sm:$0xff]   ;;  %v3689_v62 = vld [vmem:[%s4823_s1 + $0x1f8] sm:$0xff]  }
  0x3b   :  { %1735 = vmatprep.mubr.bf16.mxu1 %v3539_v53  ;;  %1671 = vmatprep.mubr.bf16.mxu0 %v3543_v54  ;;  %v3614_v52 = vld [vmem:[%s4824_s0 + $0x154] ss:$40 sps:$4 sm:$0xff]  }
  0x3c   :  { %3143 = vmatpush3.bf16.msra.mxu1 %v3565_v61  ;;  %3255 = vmatpush3.bf16.msra.mxu0 %v3568_v63  ;;  %v3663_v53 = vld [vmem:[%s4823_s1 + $0x230] sm:$0xff]   ;;  %v3685_v61 = vld [vmem:[%s4823_s1 + $0x240] sm:$0xff]  }
  0x3d   :  { %3144 = vmatprep.subr.bf16.mxu1 %v3572_v2  ;;  %3256 = vmatprep.subr.bf16.mxu0 %v3577_v6  ;;  %v3673_v54 = vld [vmem:[%s4823_s1 + $0x1f0] sm:$0xff]   ;;  %v3620_v63 = vld [vmem:[%s4824_s0 + $0x198] ss:$40 sps:$4 sm:$0xff]  }
  0x3e   :  { %v3677_v58 = vld [vmem:[%s4823_s1 + $0x1b0] sm:$0xff]  }
  0x3f   :  { %v3625_v2 = vld [vmem:[%s4824_s0 + $0x1ec] ss:$40 sps:$4 sm:$0xff]   ;;  %v3627_v6 = vld [vmem:[%s4824_s0 + $0x1e8] ss:$40 sps:$4 sm:$0xff]  }
  0x40   :  { %3145 = vmatpush3.bf16.msra.mxu1 %v3575_v3  ;;  %3257 = vmatpush3.bf16.msra.mxu0 %v3578_v7  ;;  %v3629_v3 = vld [vmem:[%s4824_s0 + $0x1f4] ss:$40 sps:$4 sm:$0xff]   ;;  %v3632_v7 = vld [vmem:[%s4824_s0 + $0x1f0] ss:$40 sps:$4 sm:$0xff]  }
  0x41   :  { %2251 = vmatprep.subr.bf16.mxu0 %v3797_v11  ;;  %3354 = vmatprep.subr.bf16.mxu1 %v3582_v10  ;;  %v3635_v10 = vld [vmem:[%s4824_s0 + $0x238] ss:$40 sps:$4 sm:$0xff]  }
  0x42   :  { %1736 = vmatmul.mubr.bf16.gmra.mrb[16].mxu1 %v3541_v59  ;;  %1672 = vmatmul.mubr.bf16.gmra.mrb[16].mxu0 %v3546_v60  ;;  %v3618_v59 = vld [vmem:[%s4824_s0 + $0x19c] ss:$40 sps:$4 sm:$0xff]  }
  0x43   :  { %1743 = vmatprep.mubr.bf16.mxu1 %v3549_v0  ;;  %1679 = vmatprep.mubr.bf16.mxu0 %v3553_v1  ;;  %v3621_v60 = vld [vmem:[%s4824_s0 + $0x1a4] ss:$40 sps:$4 sm:$0xff]   ;;  %v3692_v0 = vld [vmem:[%s4823_s1 + $0x1b8] sm:$0xff]   ;;  %v3623_v1 = vld [vmem:[%s4824_s0 + $0x1a0] ss:$40 sps:$4 sm:$0xff]  }
  0x4a   :  { %1744 = vmatmul.mubr.bf16.gmra.mrb[20].mxu1 %v3551_v4  ;;  %1680 = vmatmul.mubr.bf16.gmra.mrb[20].mxu0 %v3556_v5  ;;  %v3700_v4 = vld [vmem:[%s4823_s1 + $0x248] ss:$0 sps:$4 sm:$0xff]  }
  0x4b   :  { %1751 = vmatprep.mubr.bf16.mxu1 %v3559_v8  ;;  %1687 = vmatprep.mubr.bf16.mxu0 %v3563_v9  ;;  %v1605_v5 = vsel %vm1603_vm0, %v3700_v4, 0  ;;  %v3633_v8 = vld [vmem:[%s4824_s0 + $0x23c] ss:$40 sps:$4 sm:$0xff]  }
  0x4c   :  { %v3636_v9 = vld [vmem:[%s4824_s0 + $0x244] ss:$40 sps:$4 sm:$0xff]  }
  0x52   :  { %1752 = vmatmul.mubr.bf16.gmra.mrb[24].mxu1 %v3561_v12  ;;  %1688 = vmatmul.mubr.bf16.gmra.mrb[24].mxu0 %v3566_v13  ;;  %v3640_v12 = vld [vmem:[%s4824_s0 + $0x28c] ss:$40 sps:$4 sm:$0xff]  }
  0x53   :  { %1759 = vmatprep.mubr.bf16.mxu1 %v3569_v14  ;;  %1695 = vmatprep.mubr.bf16.mxu0 %v3573_v15  ;;  %v3644_v13 = vld [vmem:[%s4824_s0 + $0x294] ss:$40 sps:$4 sm:$0xff]   ;;  %v3642_v14 = vld [vmem:[%s4824_s0 + $0x288] ss:$40 sps:$4 sm:$0xff]  }
  0x54   :  { %v3647_v15 = vld [vmem:[%s4824_s0 + $0x290] ss:$40 sps:$4 sm:$0xff]  }
  0x5a   :  { %1760 = vmatmul.mubr.bf16.gmra.mrb[28].mxu1 %v3571_v16  ;;  %1696 = vmatmul.mubr.bf16.gmra.mrb[28].mxu0 %v3576_v17  ;;  %v3649_v16 = vld [vmem:[%s4824_s0 + $0x2dc] ss:$40 sps:$4 sm:$0xff]  }
  0x5b   :  { %1800 = vmatprep.mubr.bf16.mxu1 %v3581_v18  ;;  %1961 = vmatprep.mubr.bf16.mxu0 %v3585_v19  ;;  %v3652_v17 = vld [vmem:[%s4824_s0 + $0x2e4] ss:$40 sps:$4 sm:$0xff]   ;;  %v3651_v18 = vld [vmem:[%s4824_s0 + $0x2d8] ss:$40 sps:$4 sm:$0xff]  }
  0x5c   :  { %v3654_v19 = vld [vmem:[%s4824_s0 + $0x2e0] ss:$40 sps:$4 sm:$0xff]  }
  0x62   :  { %1801 = vmatmul.mubr.bf16.vlgmr.msra.gmra.mrb[32].mxu1 %v3579_v20  ;;  %1962 = vmatmul.mubr.bf16.vlgmr.msra.gmra.mrb[32].mxu0 %v3583_v21  ;;  %v3655_v20 = vld [vmem:[%s4824_s0 + $0x32c] ss:$40 sps:$4 sm:$0xff]  }
  0x63   :  { %3355 = vmatpush3.bf16.msra.mxu1 %v3586_v22  ;;  %2252 = vmatpush1.bf16.msra.mxu0 %v3587_v23  ;;  %v3659_v21 = vld [vmem:[%s4824_s0 + $0x334] ss:$40 sps:$4 sm:$0xff]   ;;  %v3657_v22 = vld [vmem:[%s4824_s0 + $0x328] ss:$40 sps:$4 sm:$0xff]  }
  0x64   :  { %1808 = vmatprep.mubr.bf16.mxu1 %v3588_v24  ;;  %1969 = vmatprep.mubr.bf16.mxu0 %v3591_v25  ;;  %v3662_v23 = vld [vmem:[%s4824_s0 + $0x330] ss:$40 sps:$4 sm:$0xff]   ;;  %v3664_v24 = vld [vmem:[%s4824_s0 + $0x37c] ss:$40 sps:$4 sm:$0xff]  }
  0x65   :  { %3356 = vmatprep.subr.bf16.mxu1 %v3597_v26  ;;  %2253 = vmatprep.subr.bf16.mxu0 %v3797_v11  ;;  %v3667_v25 = vld [vmem:[%s4824_s0 + $0x384] ss:$40 sps:$4 sm:$0xff]   ;;  %v3666_v26 = vld [vmem:[%s4824_s0 + $0x378] ss:$40 sps:$4 sm:$0xff]  }
  0x67   :  { %3357 = vmatpush3.bf16.msra.mxu1 %v3600_v27  ;;  %2254 = vmatpush1.bf16.msra.mxu0 %v3602_v28  ;;  %v3669_v27 = vld [vmem:[%s4824_s0 + $0x380] ss:$40 sps:$4 sm:$0xff]   ;;  %v3670_v28 = vld [vmem:[%s4824_s0 + $0x3cc] ss:$40 sps:$4 sm:$0xff]  }
  0x68   :  { %2255 = vmatprep.subr.bf16.mxu0 %v3797_v11  ;;  %3358 = vmatprep.subr.bf16.mxu1 %v3612_v29  ;;  %v3675_v29 = vld [vmem:[%s4824_s0 + $0x3d4] ss:$40 sps:$4 sm:$0xff]  }
  0x6a   :  { %1809 = vmatmul.mubr.bf16.gmra.mrb[36].mxu1 %v3590_v30  ;;  %1970 = vmatmul.mubr.bf16.gmra.mrb[36].mxu0 %v3593_v31  ;;  %v3672_v30 = vld [vmem:[%s4824_s0 + $0x3c8] ss:$40 sps:$4 sm:$0xff]  }
  0x6b   :  { %1816 = vmatprep.mubr.bf16.mxu1 %v3594_v32  ;;  %1977 = vmatprep.mubr.bf16.mxu0 %v3598_v33  ;;  %v3678_v31 = vld [vmem:[%s4824_s0 + $0x3d0] ss:$40 sps:$4 sm:$0xff]   ;;  %v3679_v32 = vld [vmem:[%s4824_s0 + $0x41c] ss:$40 sps:$4 sm:$0xff]  }
  0x6c   :  { %2256 = vmatpush1.bf16.msra.mxu0 %v3613_v34  ;;  %3359 = vmatpush3.bf16.msra.mxu1 %v3616_v35  ;;  %v3682_v33 = vld [vmem:[%s4824_s0 + $0x424] ss:$40 sps:$4 sm:$0xff]   ;;  %v3681_v34 = vld [vmem:[%s4824_s0 + $0x418] ss:$40 sps:$4 sm:$0xff]  }
  0x6d   :  { %2257 = vmatprep.subr.bf16.mxu0 %v3797_v11  ;;  %3360 = vmatprep.subr.bf16.mxu1 %v3628_v36  ;;  %v3684_v35 = vld [vmem:[%s4824_s0 + $0x420] ss:$40 sps:$4 sm:$0xff]   ;;  %v3686_v36 = vld [vmem:[%s4824_s0 + $0x46c] ss:$40 sps:$4 sm:$0xff]  }
  0x70   :  { %2258 = vmatpush1.bf16.msra.mxu0 %v3624_v37  ;;  %3361 = vmatpush3.bf16.msra.mxu1 %v3631_v39  ;;  %v3690_v37 = vld [vmem:[%s4824_s0 + $0x474] ss:$40 sps:$4 sm:$0xff]   ;;  %v3693_v39 = vld [vmem:[%s4824_s0 + $0x470] ss:$40 sps:$4 sm:$0xff]  }
  0x71   :  { %2259 = vmatprep.subr.bf16.mxu0 %v3797_v11  ;;  %3362 = vmatprep.subr.bf16.mxu1 %v3643_v40  ;;  %v3694_v40 = vld [vmem:[%s4824_s0 + $0x4bc] ss:$40 sps:$4 sm:$0xff]  }
  0x72   :  { %1817 = vmatmul.mubr.bf16.gmra.mrb[40].mxu1 %v3596_v38  ;;  %1978 = vmatmul.mubr.bf16.gmra.mrb[40].mxu0 %v3601_v41  ;;  %v3688_v38 = vld [vmem:[%s4824_s0 + $0x468] ss:$40 sps:$4 sm:$0xff]   ;;  %v3697_v41 = vld [vmem:[%s4824_s0 + $0x4c4] ss:$40 sps:$4 sm:$0xff]  }
  0x73   :  { %1824 = vmatprep.mubr.bf16.mxu1 %v3603_v42  ;;  %1985 = vmatprep.mubr.bf16.mxu0 %v3606_v43  ;;  %v3696_v42 = vld [vmem:[%s4824_s0 + $0x4b8] ss:$40 sps:$4 sm:$0xff]  }
  0x74   :  { %2260 = vmatpush1.bf16.msra.mxu0 %v3639_v44  ;;  %3363 = vmatpush3.bf16.msra.mxu1 %v3646_v45  ;;  %v3699_v43 = vld [vmem:[%s4824_s0 + $0x4c0] ss:$40 sps:$4 sm:$0xff]   ;;  %v3703_v44 = vld [vmem:[%s4824_s0 + $0x1c] ss:$40 sps:$4 sm:$0xff]  }
  0x75   :  { %2261 = vmatprep.subr.bf16.mxu0 %v3797_v11  ;;  %3364 = vmatprep.subr.bf16.mxu1 %v3658_v46  ;;  %v3706_v45 = vld [vmem:[%s4824_s0 + $0x24] ss:$40 sps:$4 sm:$0xff]   ;;  %v3701_v46 = vld [vmem:[%s4824_s0 + $0x18] ss:$40 sps:$4 sm:$0xff]  }
  0x78   :  { %2262 = vmatpush1.bf16.msra.mxu0 %v3648_v47  ;;  %3365 = vmatpush3.bf16.msra.mxu1 %v3661_v48  ;;  %v3704_v47 = vld [vmem:[%s4824_s0 + $0x20] ss:$40 sps:$4 sm:$0xff]   ;;  %v3707_v48 = vld [vmem:[%s4824_s0 + $0x6c] ss:$40 sps:$4 sm:$0xff]  }
  0x79   :  { %2263 = vmatprep.subr.bf16.mxu0 %v3797_v11  ;;  %3366 = vmatprep.subr.bf16.mxu1 %v3673_v54  ;;  %v3715_v54 = vld [vmem:[%s4824_s0 + $0xb8] ss:$40 sps:$4 sm:$0xff]  }
  0x7a   :  { %1825 = vmatmul.mubr.bf16.gmra.mrb[44].mxu1 %v3605_v49  ;;  %1986 = vmatmul.mubr.bf16.gmra.mrb[44].mxu0 %v3608_v50  ;;  %v3710_v49 = vld [vmem:[%s4824_s0 + $0x74] ss:$40 sps:$4 sm:$0xff]   ;;  %v3709_v50 = vld [vmem:[%s4824_s0 + $0x68] ss:$40 sps:$4 sm:$0xff]  }
  0x7b   :  { %1832 = vmatprep.mubr.bf16.mxu1 %v3609_v51  ;;  %1993 = vmatprep.mubr.bf16.mxu0 %v3614_v52  ;;  %v3712_v51 = vld [vmem:[%s4824_s0 + $0x70] ss:$40 sps:$4 sm:$0xff]   ;;  %v3713_v52 = vld [vmem:[%s4824_s0 + $0xbc] ss:$40 sps:$4 sm:$0xff]  }
  0x7c   :  { %2264 = vmatpush1.bf16.msra.mxu0 %v3663_v53  ;;  %3367 = vmatpush3.bf16.msra.mxu1 %v3677_v58  ;;  %v3716_v53 = vld [vmem:[%s4824_s0 + $0xc4] ss:$40 sps:$4 sm:$0xff]  }
  0x7d   :  { %2265 = vmatprep.subr.bf16.mxu0 %v3797_v11  ;;  %3368 = vmatprep.subr.bf16.mxu1 %v3689_v62 }
  0x80   :  { %2266 = vmatpush1.bf16.msra.mxu0 %v3674_v56  ;;  %3369 = vmatpush3.bf16.msra.mxu1 %v3692_v0  ;;  %v3719_v56 = vld [vmem:[%s4824_s0 + $0x10c] ss:$40 sps:$4 sm:$0xff]   ;;  %v3724_v0 = vld [vmem:[%s4824_s0 + $0x110] ss:$40 sps:$4 sm:$0xff]  }
  0x81   :  { %2267 = vmatprep.subr.bf16.mxu0 %v3797_v11 }
  0x82   :  { %1833 = vmatmul.mubr.bf16.gmra.mrb[48].mxu1 %v3611_v55  ;;  %1994 = vmatmul.mubr.bf16.gmra.mrb[48].mxu0 %v3617_v57  ;;  %v3718_v55 = vld [vmem:[%s4824_s0 + $0xc0] ss:$40 sps:$4 sm:$0xff]   ;;  %v3722_v57 = vld [vmem:[%s4824_s0 + $0x114] ss:$40 sps:$4 sm:$0xff]  }
  0x83   :  { %1840 = vmatprep.mubr.bf16.mxu1 %v3618_v59  ;;  %2001 = vmatprep.mubr.bf16.mxu0 %v3621_v60  ;;  %v4387_v59 = vld [vmem:[%s4825_s2] ss:$0 sm:$0xff] }
  0x84   :  { %2268 = vmatpush1.bf16.msra.mxu0 %v3685_v61 }
  0x85   :  { %2269 = vmatprep.subr.bf16.mxu0 %v3797_v11  ;;  %v3638_v11 = vld [vmem:[%s4824_s0 + $0x240] ss:$40 sps:$4 sm:$0xff]  }
  0x88   :  { %2270 = vmatpush1.bf16.msra.mxu0 %v1605_v5  ;;  %v3725_v5 = vld [vmem:[%s4824_s0 + $0x15c] ss:$40 sps:$4 sm:$0xff]  }
  0x8a   :  { %1841 = vmatmul.mubr.bf16.gmra.mrb[52].mxu1 %v3620_v63  ;;  %2002 = vmatmul.mubr.bf16.gmra.mrb[52].mxu0 %v3623_v1  ;;  %v3721_v63 = vld [vmem:[%s4824_s0 + $0x108] ss:$40 sps:$4 sm:$0xff]  }
  0x8b   :  { %1848 = vmatprep.mubr.bf16.mxu1 %v3625_v2  ;;  %2009 = vmatprep.mubr.bf16.mxu0 %v3629_v3 }
  0x92   :  { %1849 = vmatmul.mubr.bf16.gmra.mrb[56].mxu1 %v3627_v6  ;;  %2010 = vmatmul.mubr.bf16.gmra.mrb[56].mxu0 %v3632_v7  ;;  %v3728_v6 = vld [vmem:[%s4824_s0 + $0x164] ss:$40 sps:$4 sm:$0xff]  }
  0x93   :  { %1856 = vmatprep.mubr.bf16.mxu1 %v3633_v8  ;;  %2017 = vmatprep.mubr.bf16.mxu0 %v3636_v9 }
  0x9a   :  { %1857 = vmatmul.mubr.bf16.gmra.mrb[60].mxu1 %v3635_v10  ;;  %2018 = vmatmul.mubr.bf16.gmra.mrb[60].mxu0 %v3638_v11 }
  0x9b   :  { %1864 = vmatprep.mubr.bf16.mxu1 %v3640_v12  ;;  %2025 = vmatprep.mubr.bf16.mxu0 %v3644_v13 }
  0xa2   :  { %1865 = vmatmul.mubr.bf16.gmra.mrb[64].mxu1 %v3642_v14  ;;  %2026 = vmatmul.mubr.bf16.gmra.mrb[64].mxu0 %v3647_v15 }
  0xa3   :  { %1872 = vmatprep.mubr.bf16.mxu1 %v3649_v16  ;;  %2033 = vmatprep.mubr.bf16.mxu0 %v3652_v17  ;;  %v3727_v17 = vld [vmem:[%s4824_s0 + $0x158] ss:$40 sps:$4 sm:$0xff]  }
  0xaa   :  { %1873 = vmatmul.mubr.bf16.gmra.mrb[68].mxu1 %v3651_v18  ;;  %2034 = vmatmul.mubr.bf16.gmra.mrb[68].mxu0 %v3654_v19  ;;  %v3730_v18 = vld [vmem:[%s4824_s0 + $0x160] ss:$40 sps:$4 sm:$0xff]  }
  0xab   :  { %1880 = vmatprep.mubr.bf16.mxu1 %v3655_v20  ;;  %2041 = vmatprep.mubr.bf16.mxu0 %v3659_v21 }
  0xb2   :  { %1881 = vmatmul.mubr.bf16.gmra.mrb[72].mxu1 %v3657_v22  ;;  %2042 = vmatmul.mubr.bf16.gmra.mrb[72].mxu0 %v3662_v23  ;;  %v3731_v23 = vld [vmem:[%s4824_s0 + $0x1ac] ss:$40 sps:$4 sm:$0xff]  }
  0xb3   :  { %1888 = vmatprep.mubr.bf16.mxu1 %v3664_v24  ;;  %2049 = vmatprep.mubr.bf16.mxu0 %v3667_v25  ;;  %v3734_v24 = vld [vmem:[%s4824_s0 + $0x1b4] ss:$40 sps:$4 sm:$0xff]  }
  0xba   :  { %1889 = vmatmul.mubr.bf16.gmra.mrb[76].mxu1 %v3666_v26  ;;  %2050 = vmatmul.mubr.bf16.gmra.mrb[76].mxu0 %v3669_v27 }
  0xbb   :  { %1896 = vmatprep.mubr.bf16.mxu1 %v3670_v28  ;;  %2057 = vmatprep.mubr.bf16.mxu0 %v3675_v29 }
  0xc2   :  { %1897 = vmatmul.mubr.bf16.gmra.mrb[80].mxu1 %v3672_v30  ;;  %2058 = vmatmul.mubr.bf16.gmra.mrb[80].mxu0 %v3678_v31 }
  0xc3   :  { %1904 = vmatprep.mubr.bf16.mxu1 %v3679_v32  ;;  %2065 = vmatprep.mubr.bf16.mxu0 %v3682_v33 }
  0xca   :  { %1905 = vmatmul.mubr.bf16.gmra.mrb[84].mxu1 %v3681_v34  ;;  %2066 = vmatmul.mubr.bf16.gmra.mrb[84].mxu0 %v3684_v35  ;;  %v3733_v35 = vld [vmem:[%s4824_s0 + $0x1a8] ss:$40 sps:$4 sm:$0xff]  }
  0xcb   :  { %1912 = vmatprep.mubr.bf16.mxu1 %v3686_v36  ;;  %2073 = vmatprep.mubr.bf16.mxu0 %v3690_v37  ;;  %v3736_v36 = vld [vmem:[%s4824_s0 + $0x1b0] ss:$40 sps:$4 sm:$0xff]  }
  0xd2   :  { %1913 = vmatmul.mubr.bf16.gmra.mrb[88].mxu1 %v3688_v38  ;;  %2074 = vmatmul.mubr.bf16.gmra.mrb[88].mxu0 %v3693_v39 }
  0xd3   :  { %1920 = vmatprep.mubr.bf16.mxu1 %v3694_v40  ;;  %2081 = vmatprep.mubr.bf16.mxu0 %v3697_v41  ;;  %v3737_v41 = vld [vmem:[%s4824_s0 + $0x1fc] ss:$40 sps:$4 sm:$0xff]  }
  0xda   :  { %1921 = vmatmul.mubr.bf16.gmra.mrb[92].mxu1 %v3696_v42  ;;  %2082 = vmatmul.mubr.bf16.gmra.mrb[92].mxu0 %v3699_v43  ;;  %v3740_v42 = vld [vmem:[%s4824_s0 + $0x204] ss:$40 sps:$4 sm:$0xff]  }
  0xdb   :  { %2122 = vmatprep.mubr.bf16.mxu1 %v3703_v44  ;;  %2843 = vmatprep.mubr.msk.bf16.mxu0 %vm1554_vm1, %v3706_v45 }
  0xe2   :  { %2123 = vmatmul.mubr.bf16.vlgmr.msra.gmra.mrb[96].mxu1 %v3701_v46  ;;  %2284 = vmatmul.mubr.bf16.vlgmr.msra.gmra.mrb[96].mxu0 %v3704_v47 }
  0xe3   :  { %2130 = vmatprep.mubr.bf16.mxu1 %v3707_v48  ;;  %2844 = vmatprep.mubr.msk.bf16.mxu0 %vm1554_vm1, %v3710_v49 }
  0xea   :  { %2131 = vmatmul.mubr.bf16.gmra.mrb[100].mxu1 %v3709_v50  ;;  %2292 = vmatmul.mubr.bf16.gmra.mrb[100].mxu0 %v3712_v51 }
  0xeb   :  { %2138 = vmatprep.mubr.bf16.mxu1 %v3713_v52  ;;  %2845 = vmatprep.mubr.msk.bf16.mxu0 %vm1554_vm1, %v3716_v53  ;;  %v3739_v53 = vld [vmem:[%s4824_s0 + $0x1f8] ss:$40 sps:$4 sm:$0xff]  }
  0xf2   :  { %2139 = vmatmul.mubr.bf16.gmra.mrb[104].mxu1 %v3715_v54  ;;  %2300 = vmatmul.mubr.bf16.gmra.mrb[104].mxu0 %v3718_v55  ;;  %v3742_v54 = vld [vmem:[%s4824_s0 + $0x200] ss:$40 sps:$4 sm:$0xff]  }
  0xf3   :  { %2146 = vmatprep.mubr.bf16.mxu1 %v3719_v56  ;;  %2846 = vmatprep.mubr.msk.bf16.mxu0 %vm1554_vm1, %v3722_v57 }
  0xf5   :  { %v3082_v58 = vpop.f32.mrb[0].mxu1  ;;  %v3034_v60 = vpop.f32.mrb[0].mxu0 }
  0xf6   :  { %v3083_v61 = vpop.f32.mrb[1].mxu1  ;;  %v3035_v62 = vpop.f32.mrb[1].mxu0 }
  0xf7   :  { %v3084_v1 = vadd.f32 %v3083_v61, %v3082_v58  ;;  %v3085_v2 = vpop.f32.mrb[2].mxu1  ;;  %v4395_v3 = vadd.f32 %v3035_v62, %v3034_v60  ;;  %v3037_v4 = vpop.f32.mrb[2].mxu0  ;;  %v3743_v60 = vld [vmem:[%s4824_s0 + $0x24c] ss:$40 sps:$4 sm:$0xff]  }
  0xf8   :  { %v3086_v7 = vpop.f32.mrb[3].mxu1  ;;  %v3038_v8 = vpop.f32.mrb[3].mxu0  ;;  %v3746_v61 = vld [vmem:[%s4824_s0 + $0x254] ss:$40 sps:$4 sm:$0xff]  }
  0xf9   :  { %v4404_v9 = vadd.f32 %v3084_v1, %v4387_v59  ;;  %v3087_v10 = vadd.f32 %v3086_v7, %v3085_v2  ;;  %v4406_v11 = vadd.f32 %v3038_v8, %v3037_v4 }
  0xfa   :  { %2147 = vmatmul.mubr.bf16.gmra.mrb[108].mxu1 %v3721_v63  ;;  %2308 = vmatmul.mubr.bf16.gmra.mrb[108].mxu0 %v3724_v0 }
  0xfb   :  { %v4409_v12 = vadd.f32 %v3087_v10, %v4387_v59  ;;  %2154 = vmatprep.mubr.bf16.mxu1 %v3725_v5  ;;  %2847 = vmatprep.mubr.msk.bf16.mxu0 %vm1554_vm1, %v3728_v6  ;;  %v3745_v10 = vld [vmem:[%s4824_s0 + $0x248] ss:$40 sps:$4 sm:$0xff]  }
  0xfd   :  { %v3088_v13 = vpop.f32.mrb[4].mxu1  ;;  %v3040_v14 = vpop.f32.mrb[4].mxu0 }
  0xfe   :  { %v3089_v15 = vpop.f32.mrb[5].mxu1  ;;  %v3041_v16 = vpop.f32.mrb[5].mxu0 }
  0xff   :  { %v3090_v19 = vadd.f32 %v3089_v15, %v3088_v13  ;;  %v3091_v20 = vpop.f32.mrb[6].mxu1  ;;  %v4418_v21 = vadd.f32 %v3041_v16, %v3040_v14  ;;  %v3043_v22 = vpop.f32.mrb[6].mxu0  ;;  %v3748_v13 = vld [vmem:[%s4824_s0 + $0x250] ss:$40 sps:$4 sm:$0xff]  }
 0x100   :  { %v3092_v25 = vpop.f32.mrb[7].mxu1  ;;  %v3044_v26 = vpop.f32.mrb[7].mxu0 }
 0x101   :  { %v4427_v27 = vadd.f32 %v3090_v19, %v4387_v59  ;;  %v3093_v28 = vadd.f32 %v3092_v25, %v3091_v20  ;;  %v4429_v29 = vadd.f32 %v3044_v26, %v3043_v22  ;;  %v3752_v19 = vld [vmem:[%s4824_s0 + $0x2a4] ss:$40 sps:$4 sm:$0xff]  }
 0x102   :  { %2155 = vmatmul.mubr.bf16.gmra.mrb[112].mxu1 %v3727_v17  ;;  %2316 = vmatmul.mubr.bf16.gmra.mrb[112].mxu0 %v3730_v18  ;;  %v3749_v18 = vld [vmem:[%s4824_s0 + $0x29c] ss:$40 sps:$4 sm:$0xff]  }
 0x103   :  { %v4432_v30 = vadd.f32 %v3093_v28, %v4387_v59  ;;  %2162 = vmatprep.mubr.bf16.mxu1 %v3731_v23  ;;  %2848 = vmatprep.mubr.msk.bf16.mxu0 %vm1554_vm1, %v3734_v24 }
 0x105   :  { %v3094_v31 = vpop.f32.mrb[8].mxu1  ;;  %v3046_v32 = vpop.f32.mrb[8].mxu0 }
 0x106   :  { %v3095_v33 = vpop.f32.mrb[9].mxu1  ;;  %v3047_v34 = vpop.f32.mrb[9].mxu0 }
 0x107   :  { %v3096_v37 = vadd.f32 %v3095_v33, %v3094_v31  ;;  %v3097_v38 = vpop.f32.mrb[10].mxu1  ;;  %v4441_v39 = vadd.f32 %v3047_v34, %v3046_v32  ;;  %v3049_v40 = vpop.f32.mrb[10].mxu0  ;;  %v3751_v34 = vld [vmem:[%s4824_s0 + $0x298] ss:$40 sps:$4 sm:$0xff]  }
 0x108   :  { %v3098_v43 = vpop.f32.mrb[11].mxu1  ;;  %v3050_v44 = vpop.f32.mrb[11].mxu0 }
 0x109   :  { %v4450_v45 = vadd.f32 %v3096_v37, %v4387_v59  ;;  %v3099_v46 = vadd.f32 %v3098_v43, %v3097_v38  ;;  %v4452_v47 = vadd.f32 %v3050_v44, %v3049_v40 }
 0x10a   :  { %2163 = vmatmul.mubr.bf16.gmra.mrb[116].mxu1 %v3733_v35  ;;  %2324 = vmatmul.mubr.bf16.gmra.mrb[116].mxu0 %v3736_v36  ;;  %v3754_v35 = vld [vmem:[%s4824_s0 + $0x2a0] ss:$40 sps:$4 sm:$0xff]  }
 0x10b   :  { %v4455_v48 = vadd.f32 %v3099_v46, %v4387_v59  ;;  %2170 = vmatprep.mubr.bf16.mxu1 %v3737_v41  ;;  %2849 = vmatprep.mubr.msk.bf16.mxu0 %vm1554_vm1, %v3740_v42  ;;  %v3755_v41 = vld [vmem:[%s4824_s0 + $0x2ec] ss:$40 sps:$4 sm:$0xff]  }
 0x10c   :  { %v3758_v42 = vld [vmem:[%s4824_s0 + $0x2f4] ss:$40 sps:$4 sm:$0xff]  }
 0x10d   :  { %v3100_v49 = vpop.f32.mrb[12].mxu1  ;;  %v3052_v50 = vpop.f32.mrb[12].mxu0 }
 0x10e   :  { %v3101_v51 = vpop.f32.mrb[13].mxu1  ;;  %v3053_v52 = vpop.f32.mrb[13].mxu0 }
 0x10f   :  { %v3102_v55 = vadd.f32 %v3101_v51, %v3100_v49  ;;  %v3103_v56 = vpop.f32.mrb[14].mxu1  ;;  %v4464_v57 = vadd.f32 %v3053_v52, %v3052_v50  ;;  %v3055_v58 = vpop.f32.mrb[14].mxu0 }
 0x110   :  { %v3104_v62 = vpop.f32.mrb[15].mxu1  ;;  %v3056_v63 = vpop.f32.mrb[15].mxu0 }
 0x111   :  { %v4473_v0 = vadd.f32 %v3102_v55, %v4387_v59  ;;  %v3105_v1 = vadd.f32 %v3104_v62, %v3103_v56  ;;  %v4475_v2 = vadd.f32 %v3056_v63, %v3055_v58  ;;  %v3757_v56 = vld [vmem:[%s4824_s0 + $0x2e8] ss:$40 sps:$4 sm:$0xff]  }
 0x112   :  { %2171 = vmatmul.mubr.bf16.gmra.mrb[120].mxu1 %v3739_v53  ;;  %2332 = vmatmul.mubr.bf16.gmra.mrb[120].mxu0 %v3742_v54  ;;  %v3760_v58 = vld [vmem:[%s4824_s0 + $0x2f0] ss:$40 sps:$4 sm:$0xff]  }
 0x113   :  { %v4478_v4 = vadd.f32 %v3105_v1, %v4387_v59  ;;  %2178 = vmatprep.mubr.bf16.mxu1 %v3743_v60  ;;  %2850 = vmatprep.mubr.msk.bf16.mxu0 %vm1554_vm1, %v3746_v61  ;;  %v3761_v1 = vld [vmem:[%s4824_s0 + $0x33c] ss:$40 sps:$4 sm:$0xff]  }
 0x115   :  { %v3106_v5 = vpop.f32.mrb[16].mxu1  ;;  %v3058_v6 = vpop.f32.mrb[16].mxu0 }
 0x116   :  { %v3107_v7 = vpop.f32.mrb[17].mxu1  ;;  %v3059_v8 = vpop.f32.mrb[17].mxu0 }
 0x117   :  { %v3108_v14 = vadd.f32 %v3107_v7, %v3106_v5  ;;  %v3109_v15 = vpop.f32.mrb[18].mxu1  ;;  %v4487_v16 = vadd.f32 %v3059_v8, %v3058_v6  ;;  %v3061_v17 = vpop.f32.mrb[18].mxu0  ;;  %v3764_v5 = vld [vmem:[%s4824_s0 + $0x344] ss:$40 sps:$4 sm:$0xff]  }
 0x118   :  { %v3110_v20 = vpop.f32.mrb[19].mxu1  ;;  %v3062_v22 = vpop.f32.mrb[19].mxu0 }
 0x119   :  { %v4496_v23 = vadd.f32 %v3108_v14, %v4387_v59  ;;  %v3111_v24 = vadd.f32 %v3110_v20, %v3109_v15  ;;  %v4498_v25 = vadd.f32 %v3062_v22, %v3061_v17  ;;  %v3763_v20 = vld [vmem:[%s4824_s0 + $0x338] ss:$40 sps:$4 sm:$0xff]  }
 0x11a   :  { %2179 = vmatmul.mubr.bf16.gmra.mrb[124].mxu1 %v3745_v10  ;;  %2340 = vmatmul.mubr.bf16.gmra.mrb[124].mxu0 %v3748_v13  ;;  %v3766_v22 = vld [vmem:[%s4824_s0 + $0x340] ss:$40 sps:$4 sm:$0xff]  }
 0x11b   :  { %v4501_v26 = vadd.f32 %v3111_v24, %v4387_v59  ;;  %2186 = vmatprep.mubr.bf16.mxu1 %v3749_v18  ;;  %2851 = vmatprep.mubr.msk.bf16.mxu0 %vm1554_vm1, %v3752_v19 }
 0x11d   :  { %v3112_v28 = vpop.f32.mrb[20].mxu1  ;;  %v3064_v31 = vpop.f32.mrb[20].mxu0 }
 0x11e   :  { %v3113_v32 = vpop.f32.mrb[21].mxu1  ;;  %v3065_v33 = vpop.f32.mrb[21].mxu0 }
 0x11f   :  { %v3114_v36 = vadd.f32 %v3113_v32, %v3112_v28  ;;  %v3115_v37 = vpop.f32.mrb[22].mxu1  ;;  %v4510_v38 = vadd.f32 %v3065_v33, %v3064_v31  ;;  %v3067_v40 = vpop.f32.mrb[22].mxu0  ;;  %v3767_v33 = vld [vmem:[%s4824_s0 + $0x38c] ss:$40 sps:$4 sm:$0xff]  }
 0x120   :  { %v3116_v43 = vpop.f32.mrb[23].mxu1  ;;  %v3068_v44 = vpop.f32.mrb[23].mxu0 }
 0x121   :  { %v4519_v46 = vadd.f32 %v3114_v36, %v4387_v59  ;;  %v3117_v49 = vadd.f32 %v3116_v43, %v3115_v37  ;;  %v4521_v50 = vadd.f32 %v3068_v44, %v3067_v40 }
 0x122   :  { %2187 = vmatmul.mubr.bf16.gmra.mrb[128].mxu1 %v3751_v34  ;;  %2348 = vmatmul.mubr.bf16.gmra.mrb[128].mxu0 %v3754_v35  ;;  %v3770_v34 = vld [vmem:[%s4824_s0 + $0x394] ss:$40 sps:$4 sm:$0xff]  }
 0x123   :  { %v4524_v51 = vadd.f32 %v3117_v49, %v4387_v59  ;;  %2194 = vmatprep.mubr.bf16.mxu1 %v3755_v41  ;;  %2852 = vmatprep.mubr.msk.bf16.mxu0 %vm1554_vm1, %v3758_v42 }
 0x125   :  { %v3118_v52 = vpop.f32.mrb[24].mxu1  ;;  %v3070_v53 = vpop.f32.mrb[24].mxu0 }
 0x126   :  { %v3119_v54 = vpop.f32.mrb[25].mxu1  ;;  %v3071_v55 = vpop.f32.mrb[25].mxu0 }
 0x127   :  { %v3120_v60 = vadd.f32 %v3119_v54, %v3118_v52  ;;  %v3121_v61 = vpop.f32.mrb[26].mxu1  ;;  %v4533_v62 = vadd.f32 %v3071_v55, %v3070_v53  ;;  %v3073_v63 = vpop.f32.mrb[26].mxu0  ;;  %v3769_v53 = vld [vmem:[%s4824_s0 + $0x388] ss:$40 sps:$4 sm:$0xff]   ;;  %v1642_v55 = vadd.f32 %v4395_v3, %v4387_v59 }
 0x128   :  { %v3122_v6 = vpop.f32.mrb[27].mxu1  ;;  %v3074_v7 = vpop.f32.mrb[27].mxu0  ;;  %v3772_v54 = vld [vmem:[%s4824_s0 + $0x390] ss:$40 sps:$4 sm:$0xff]  }
 0x129   :  { %v4542_v8 = vadd.f32 %v3120_v60, %v4387_v59  ;;  %v3123_v10 = vadd.f32 %v3122_v6, %v3121_v61  ;;  %v4544_v13 = vadd.f32 %v3074_v7, %v3073_v63  ;;  %v3773_v63 = vld [vmem:[%s4824_s0 + $0x3dc] ss:$40 sps:$4 sm:$0xff]   ;;  %v1645_v7 = vadd.f32 %v4406_v11, %v4387_v59  ;;  %v3775_v11 = vld [vmem:[%s4824_s0 + $0x3d8] ss:$40 sps:$4 sm:$0xff]  }
 0x12a   :  { %2195 = vmatmul.mubr.bf16.gmra.mrb[132].mxu1 %v3757_v56  ;;  %2356 = vmatmul.mubr.bf16.gmra.mrb[132].mxu0 %v3760_v58 }
 0x12b   :  { %v4547_v14 = vadd.f32 %v3123_v10, %v4387_v59  ;;  %2202 = vmatprep.mubr.bf16.mxu1 %v3761_v1  ;;  %2853 = vmatprep.mubr.msk.bf16.mxu0 %vm1554_vm1, %v3764_v5  ;;  %v3776_v1 = vld [vmem:[%s4824_s0 + $0x3e4] ss:$40 sps:$4 sm:$0xff]  }
 0x12d   :  { %v3124_v15 = vpop.f32.mrb[28].mxu1  ;;  %v3076_v17 = vpop.f32.mrb[28].mxu0 }
 0x12e   :  { %v3125_v18 = vpop.f32.mrb[29].mxu1  ;;  %v3077_v19 = vpop.f32.mrb[29].mxu0 }
 0x12f   :  { %v3126_v24 = vadd.f32 %v3125_v18, %v3124_v15  ;;  %v3127_v28 = vpop.f32.mrb[30].mxu1  ;;  %v4556_v31 = vadd.f32 %v3077_v19, %v3076_v17  ;;  %v3079_v32 = vpop.f32.mrb[30].mxu0 }
 0x130   :  { %v3128_v35 = vpop.f32.mrb[31].mxu1  ;;  %v3080_v36 = vpop.f32.mrb[31].mxu0 }
 0x131   :  { %v4565_v37 = vadd.f32 %v3126_v24, %v4387_v59  ;;  %v3129_v40 = vadd.f32 %v3128_v35, %v3127_v28  ;;  %v4567_v41 = vadd.f32 %v3080_v36, %v3079_v32  ;;  %v3778_v32 = vld [vmem:[%s4824_s0 + $0x3e0] ss:$40 sps:$4 sm:$0xff]  }
 0x132   :  { %2203 = vmatmul.mubr.bf16.gmra.mrb[136].mxu1 %v3763_v20  ;;  %2364 = vmatmul.mubr.bf16.gmra.mrb[136].mxu0 %v3766_v22 }
 0x133   :  { %v4570_v42 = vadd.f32 %v3129_v40, %v4387_v59  ;;  %2210 = vmatprep.mubr.bf16.mxu1 %v3767_v33  ;;  %2854 = vmatprep.mubr.msk.bf16.mxu0 %vm1554_vm1, %v3770_v34  ;;  %v1650_v33 = vadd.f32 %v4418_v21, %v4387_v59 }
 0x135   :  { %v3146_v43 = vpop.f32.mrb[32].mxu1  ;;  %v3258_v44 = vpop.f32.mrb[32].mxu0 }
 0x136   :  { %v3147_v49 = vpop.f32.mrb[33].mxu1  ;;  %v3259_v52 = vpop.f32.mrb[33].mxu0 }
 0x137   :  { %v3148_v56 = vadd.f32 %v3147_v49, %v3146_v43  ;;  %v3149_v58 = vpop.f32.mrb[34].mxu1  ;;  %v3260_v60 = vadd.f32 %v3259_v52, %v3258_v44  ;;  %v3261_v61 = vpop.f32.mrb[34].mxu0  ;;  %v3779_v43 = vld [vmem:[%s4824_s0 + $0x42c] ss:$40 sps:$4 sm:$0xff]  }
 0x138   :  { %v3150_v5 = vpop.f32.mrb[35].mxu1  ;;  %v3262_v6 = vpop.f32.mrb[35].mxu0  ;;  %v3782_v44 = vld [vmem:[%s4824_s0 + $0x434] ss:$40 sps:$4 sm:$0xff]  }
 0x139   :  { %v1803_v10 = vadd.f32 %v3148_v56, %v1642_v55  ;;  %v3151_v15 = vadd.f32 %v3150_v5, %v3149_v58  ;;  %v3263_v3 = vadd.f32 %v3262_v6, %v3261_v61  ;;  %v3784_v6 = vld [vmem:[%s4824_s0 + $0x430] ss:$40 sps:$4 sm:$0xff]  }
 0x13a   :  { %2211 = vmatmul.mubr.bf16.gmra.mrb[140].mxu1 %v3769_v53  ;;  %2372 = vmatmul.mubr.bf16.gmra.mrb[140].mxu0 %v3772_v54  ;;  %v1653_v53 = vadd.f32 %v4429_v29, %v4387_v59  ;;  %v3781_v29 = vld [vmem:[%s4824_s0 + $0x428] ss:$40 sps:$4 sm:$0xff]  }
 0x13b   :  { %v1806_v17 = vadd.f32 %v3151_v15, %v1645_v7  ;;  %v4589_v18 = vadd.f32 %v3260_v60, %v1803_v10  ;;  %2218 = vmatprep.mubr.bf16.mxu1 %v3773_v63  ;;  %2855 = vmatprep.mubr.msk.bf16.mxu0 %vm1554_vm1, %v3776_v1  ;;  %v1658_v7 = vadd.f32 %v4441_v39, %v4387_v59 }
 0x13d   :  { %v4592_v19 = vadd.f32 %v3263_v3, %v1806_v17  ;;  %v3152_v20 = vpop.f32.mrb[36].mxu1  ;;  %v3264_v22 = vpop.f32.mrb[36].mxu0 }
 0x13e   :  { %v3153_v24 = vpop.f32.mrb[37].mxu1  ;;  %v3265_v28 = vpop.f32.mrb[37].mxu0 }
 0x13f   :  { %v3154_v34 = vadd.f32 %v3153_v24, %v3152_v20  ;;  %v3155_v35 = vpop.f32.mrb[38].mxu1  ;;  %v3266_v36 = vadd.f32 %v3265_v28, %v3264_v22  ;;  %v3267_v40 = vpop.f32.mrb[38].mxu0  ;;  %v3785_v20 = vld [vmem:[%s4824_s0 + $0x47c] ss:$40 sps:$4 sm:$0xff]  }
 0x140   :  { %v3156_v49 = vpop.f32.mrb[39].mxu1  ;;  %v3268_v52 = vpop.f32.mrb[39].mxu0  ;;  %v3788_v22 = vld [vmem:[%s4824_s0 + $0x484] ss:$40 sps:$4 sm:$0xff]  }
 0x141   :  { %v1811_v54 = vadd.f32 %v3154_v34, %v1650_v33  ;;  %v3157_v55 = vadd.f32 %v3156_v49, %v3155_v35  ;;  %v3269_v21 = vadd.f32 %v3268_v52, %v3267_v40  ;;  %v3790_v52 = vld [vmem:[%s4824_s0 + $0x480] ss:$40 sps:$4 sm:$0xff]  }
 0x142   :  { %2219 = vmatmul.mubr.bf16.gmra.mrb[144].mxu1 %v3775_v11  ;;  %2380 = vmatmul.mubr.bf16.gmra.mrb[144].mxu0 %v3778_v32  ;;  %v1661_v11 = vadd.f32 %v4452_v47, %v4387_v59  ;;  %v3787_v47 = vld [vmem:[%s4824_s0 + $0x478] ss:$40 sps:$4 sm:$0xff]  }
 0x143   :  { %v1814_v56 = vadd.f32 %v3157_v55, %v1653_v53  ;;  %v4610_v58 = vadd.f32 %v3266_v36, %v1811_v54  ;;  %2226 = vmatprep.mubr.bf16.mxu1 %v3779_v43  ;;  %2856 = vmatprep.mubr.msk.bf16.mxu0 %vm1554_vm1, %v3782_v44  ;;  %v1666_v53 = vadd.f32 %v4464_v57, %v4387_v59 }
 0x145   :  { %v4613_v60 = vadd.f32 %v3269_v21, %v1814_v56  ;;  %v3158_v61 = vpop.f32.mrb[40].mxu1  ;;  %v3270_v63 = vpop.f32.mrb[40].mxu0 }
 0x146   :  { %v3159_v1 = vpop.f32.mrb[41].mxu1  ;;  %v3271_v5 = vpop.f32.mrb[41].mxu0 }
 0x147   :  { %v3160_v10 = vadd.f32 %v3159_v1, %v3158_v61  ;;  %v3161_v15 = vpop.f32.mrb[42].mxu1  ;;  %v3272_v3 = vadd.f32 %v3271_v5, %v3270_v63  ;;  %v3273_v17 = vpop.f32.mrb[42].mxu0  ;;  %v3791_v61 = vld [vmem:[%s4824_s0 + $0x4cc] ss:$40 sps:$4 sm:$0xff]  }
 0x148   :  { %v3162_v24 = vpop.f32.mrb[43].mxu1  ;;  %v3274_v28 = vpop.f32.mrb[43].mxu0  ;;  %v3794_v63 = vld [vmem:[%s4824_s0 + $0x4d4] ss:$40 sps:$4 sm:$0xff]  }
 0x149   :  { %v1819_v32 = vadd.f32 %v3160_v10, %v1658_v7  ;;  %v3163_v33 = vadd.f32 %v3162_v24, %v3161_v15  ;;  %v3275_v39 = vadd.f32 %v3274_v28, %v3273_v17  ;;  %v3796_v28 = vld [vmem:[%s4824_s0 + $0x4d0] ss:$40 sps:$4 sm:$0xff]  }
 0x14a   :  { %2227 = vmatmul.mubr.bf16.gmra.mrb[148].mxu1 %v3781_v29  ;;  %2388 = vmatmul.mubr.bf16.gmra.mrb[148].mxu0 %v3784_v6  ;;  %v1669_v29 = vadd.f32 %v4475_v2, %v4387_v59  ;;  %v3793_v2 = vld [vmem:[%s4824_s0 + $0x4c8] ss:$40 sps:$4 sm:$0xff]  }
 0x14b   :  { %v1822_v34 = vadd.f32 %v3163_v33, %v1661_v11  ;;  %v4631_v35 = vadd.f32 %v3272_v3, %v1819_v32  ;;  %2234 = vmatprep.mubr.bf16.mxu1 %v3785_v20  ;;  %2857 = vmatprep.mubr.msk.bf16.mxu0 %vm1554_vm1, %v3788_v22  ;;  %v1674_v11 = vadd.f32 %v4487_v16, %v4387_v59 }
 0x14d   :  { %v4634_v36 = vadd.f32 %v3275_v39, %v1822_v34  ;;  %v3164_v40 = vpop.f32.mrb[44].mxu1  ;;  %v3276_v43 = vpop.f32.mrb[44].mxu0 }
 0x14e   :  { %v3165_v44 = vpop.f32.mrb[45].mxu1  ;;  %v3277_v49 = vpop.f32.mrb[45].mxu0 }
 0x14f   :  { %v3166_v54 = vadd.f32 %v3165_v44, %v3164_v40  ;;  %v3167_v55 = vpop.f32.mrb[46].mxu1  ;;  %v3278_v21 = vadd.f32 %v3277_v49, %v3276_v43  ;;  %v3279_v56 = vpop.f32.mrb[46].mxu0  ;;  %v1677_v44 = vadd.f32 %v4498_v25, %v4387_v59 }
 0x150   :  { %v3168_v1 = vpop.f32.mrb[47].mxu1  ;;  %v3280_v5 = vpop.f32.mrb[47].mxu0 }
 0x151   :  { %v1827_v6 = vadd.f32 %v3166_v54, %v1666_v53  ;;  %v3169_v7 = vadd.f32 %v3168_v1, %v3167_v55  ;;  %v3281_v57 = vadd.f32 %v3280_v5, %v3279_v56 }
 0x152   :  { %2235 = vmatmul.mubr.bf16.gmra.mrb[152].mxu1 %v3787_v47  ;;  %2396 = vmatmul.mubr.bf16.gmra.mrb[152].mxu0 %v3790_v52 }
 0x153   :  { %v1830_v10 = vadd.f32 %v3169_v7, %v1669_v29  ;;  %v4652_v15 = vadd.f32 %v3278_v21, %v1827_v6  ;;  %2242 = vmatprep.mubr.bf16.mxu1 %v3791_v61  ;;  %2858 = vmatprep.mubr.msk.bf16.mxu0 %vm1554_vm1, %v3794_v63  ;;  %v1682_v63 = vadd.f32 %v4510_v38, %v4387_v59 }
 0x155   :  { %v4655_v3 = vadd.f32 %v3281_v57, %v1830_v10  ;;  %v3170_v17 = vpop.f32.mrb[48].mxu1  ;;  %v3282_v20 = vpop.f32.mrb[48].mxu0  ;;  %v1685_v57 = vadd.f32 %v4521_v50, %v4387_v59 }
 0x156   :  { %v3171_v22 = vpop.f32.mrb[49].mxu1  ;;  %v3283_v24 = vpop.f32.mrb[49].mxu0 }
 0x157   :  { %v3172_v32 = vadd.f32 %v3171_v22, %v3170_v17  ;;  %v3173_v33 = vpop.f32.mrb[50].mxu1  ;;  %v3284_v39 = vadd.f32 %v3283_v24, %v3282_v20  ;;  %v3285_v34 = vpop.f32.mrb[50].mxu0 }
 0x158   :  { %v3174_v40 = vpop.f32.mrb[51].mxu1  ;;  %v3286_v43 = vpop.f32.mrb[51].mxu0 }
 0x159   :  { %v1835_v49 = vadd.f32 %v3172_v32, %v1674_v11  ;;  %v3175_v47 = vadd.f32 %v3174_v40, %v3173_v33  ;;  %v3287_v52 = vadd.f32 %v3286_v43, %v3285_v34  ;;  %v1690_v33 = vadd.f32 %v4533_v62, %v4387_v59 }
 0x15a   :  { %2243 = vmatmul.mubr.bf16.gmra.mrb[156].mxu1 %v3793_v2  ;;  %2404 = vmatmul.mubr.bf16.gmra.mrb[156].mxu0 %v3796_v28 }
 0x15b   :  { %v1838_v53 = vadd.f32 %v3175_v47, %v1677_v44  ;;  %v4667_v54 = vadd.f32 %v3284_v39, %v1835_v49  ;;  %v1693_v49 = vadd.f32 %v4544_v13, %v4387_v59 }
 0x15d   :  { %v4669_v55 = vadd.f32 %v3287_v52, %v1838_v53  ;;  %v3176_v16 = vpop.f32.mrb[52].mxu1  ;;  %v3288_v21 = vpop.f32.mrb[52].mxu0 }
 0x15e   :  { %v3177_v56 = vpop.f32.mrb[53].mxu1  ;;  %v3289_v61 = vpop.f32.mrb[53].mxu0 }
 0x15f   :  { %v3178_v1 = vadd.f32 %v3177_v56, %v3176_v16  ;;  %v3179_v5 = vpop.f32.mrb[54].mxu1  ;;  %v3290_v25 = vadd.f32 %v3289_v61, %v3288_v21  ;;  %v3291_v29 = vpop.f32.mrb[54].mxu0 }
 0x160   :  { %v3180_v6 = vpop.f32.mrb[55].mxu1  ;;  %v3292_v7 = vpop.f32.mrb[55].mxu0 }
 0x161   :  { %v1843_v10 = vadd.f32 %v3178_v1, %v1682_v63  ;;  %v3181_v17 = vadd.f32 %v3180_v6, %v3179_v5  ;;  %v3293_v20 = vadd.f32 %v3292_v7, %v3291_v29  ;;  %v1698_v5 = vadd.f32 %v4556_v31, %v4387_v59 }
 0x163   :  { %v1846_v22 = vadd.f32 %v3181_v17, %v1685_v57  ;;  %v4675_v24 = vadd.f32 %v3290_v25, %v1843_v10  ;;  %v1701_v10 = vadd.f32 %v4567_v41, %v4387_v59 }
 0x165   :  { %v4677_v2 = vadd.f32 %v3293_v20, %v1846_v22  ;;  %v3182_v28 = vpop.f32.mrb[56].mxu1  ;;  %v3294_v11 = vpop.f32.mrb[56].mxu0 }
 0x166   :  { %v3183_v38 = vpop.f32.mrb[57].mxu1  ;;  %v3295_v32 = vpop.f32.mrb[57].mxu0 }
 0x167   :  { %v3184_v39 = vadd.f32 %v3183_v38, %v3182_v28  ;;  %v3185_v34 = vpop.f32.mrb[58].mxu1  ;;  %v3296_v40 = vadd.f32 %v3295_v32, %v3294_v11  ;;  %v3297_v43 = vpop.f32.mrb[58].mxu0 }
 0x168   :  { %v3186_v50 = vpop.f32.mrb[59].mxu1  ;;  %v3298_v44 = vpop.f32.mrb[59].mxu0 }
 0x169   :  { %v1851_v47 = vadd.f32 %v3184_v39, %v1690_v33  ;;  %v3187_v52 = vadd.f32 %v3186_v50, %v3185_v34  ;;  %v3299_v53 = vadd.f32 %v3298_v44, %v3297_v43 }
 0x16b   :  { %v1854_v16 = vadd.f32 %v3187_v52, %v1693_v49  ;;  %v4683_v21 = vadd.f32 %v3296_v40, %v1851_v47 }
 0x16d   :  { %v4685_v56 = vadd.f32 %v3299_v53, %v1854_v16  ;;  %v3188_v61 = vpop.f32.mrb[60].mxu1  ;;  %v3300_v63 = vpop.f32.mrb[60].mxu0 }
 0x16e   :  { %v3189_v62 = vpop.f32.mrb[61].mxu1  ;;  %v3301_v1 = vpop.f32.mrb[61].mxu0 }
 0x16f   :  { %v3190_v25 = vadd.f32 %v3189_v62, %v3188_v61  ;;  %v3191_v29 = vpop.f32.mrb[62].mxu1  ;;  %v3302_v6 = vadd.f32 %v3301_v1, %v3300_v63  ;;  %v3303_v7 = vpop.f32.mrb[62].mxu0 }
 0x170   :  { %v3192_v13 = vpop.f32.mrb[63].mxu1  ;;  %v3304_v57 = vpop.f32.mrb[63].mxu0 }
 0x171   :  { %v1859_v17 = vadd.f32 %v3190_v25, %v1698_v5  ;;  %v3193_v20 = vadd.f32 %v3192_v13, %v3191_v29  ;;  %v3305_v22 = vadd.f32 %v3304_v57, %v3303_v7 }
 0x173   :  { %v1862_v28 = vadd.f32 %v3193_v20, %v1701_v10  ;;  %v4691_v11 = vadd.f32 %v3302_v6, %v1859_v17 }
 0x175   :  { %v4693_v38 = vadd.f32 %v3305_v22, %v1862_v28  ;;  %v3194_v32 = vpop.f32.mrb[64].mxu1  ;;  %v3306_v33 = vpop.f32.mrb[64].mxu0 }
 0x176   :  { %v3195_v31 = vpop.f32.mrb[65].mxu1  ;;  %v3307_v39 = vpop.f32.mrb[65].mxu0 }
 0x177   :  { %v3196_v34 = vadd.f32 %v3195_v31, %v3194_v32  ;;  %v3197_v40 = vpop.f32.mrb[66].mxu1  ;;  %v3308_v43 = vadd.f32 %v3307_v39, %v3306_v33  ;;  %v3309_v50 = vpop.f32.mrb[66].mxu0 }
 0x178   :  { %v3198_v44 = vpop.f32.mrb[67].mxu1  ;;  %v3310_v49 = vpop.f32.mrb[67].mxu0 }
 0x179   :  { %v1867_v59 = vadd.f32 %v3196_v34, %v4404_v9  ;;  %v3199_v41 = vadd.f32 %v3198_v44, %v3197_v40  ;;  %v3311_v47 = vadd.f32 %v3310_v49, %v3309_v50 }
 0x17b   :  { %v1870_v52 = vadd.f32 %v3199_v41, %v4409_v12  ;;  %v4697_v53 = vadd.f32 %v3308_v43, %v1867_v59 }
 0x17d   :  { %v4699_v16 = vadd.f32 %v3311_v47, %v1870_v52  ;;  %v3200_v61 = vpop.f32.mrb[68].mxu1  ;;  %v3312_v63 = vpop.f32.mrb[68].mxu0 }
 0x17e   :  { %v3201_v62 = vpop.f32.mrb[69].mxu1  ;;  %v3313_v1 = vpop.f32.mrb[69].mxu0 }
 0x17f   :  { %v3202_v5 = vadd.f32 %v3201_v62, %v3200_v61  ;;  %v3203_v25 = vpop.f32.mrb[70].mxu1  ;;  %v3314_v29 = vadd.f32 %v3313_v1, %v3312_v63  ;;  %v3315_v6 = vpop.f32.mrb[70].mxu0 }
 0x180   :  { %v3204_v7 = vpop.f32.mrb[71].mxu1  ;;  %v3316_v13 = vpop.f32.mrb[71].mxu0 }
 0x181   :  { %v1875_v9 = vadd.f32 %v3202_v5, %v4427_v27  ;;  %v3205_v57 = vadd.f32 %v3204_v7, %v3203_v25  ;;  %v3317_v10 = vadd.f32 %v3316_v13, %v3315_v6 }
 0x183   :  { %v1878_v12 = vadd.f32 %v3205_v57, %v4432_v30  ;;  %v4703_v17 = vadd.f32 %v3314_v29, %v1875_v9 }
 0x185   :  { %v4705_v20 = vadd.f32 %v3317_v10, %v1878_v12  ;;  %v3206_v22 = vpop.f32.mrb[72].mxu1  ;;  %v3318_v28 = vpop.f32.mrb[72].mxu0 }
 0x186   :  { %v3207_v32 = vpop.f32.mrb[73].mxu1  ;;  %v3319_v33 = vpop.f32.mrb[73].mxu0 }
 0x187   :  { %v3208_v31 = vadd.f32 %v3207_v32, %v3206_v22  ;;  %v3209_v39 = vpop.f32.mrb[74].mxu1  ;;  %v3320_v34 = vadd.f32 %v3319_v33, %v3318_v28  ;;  %v3321_v40 = vpop.f32.mrb[74].mxu0 }
 0x188   :  { %v3210_v43 = vpop.f32.mrb[75].mxu1  ;;  %v3322_v50 = vpop.f32.mrb[75].mxu0 }
 0x189   :  { %v1883_v27 = vadd.f32 %v3208_v31, %v4450_v45  ;;  %v3211_v44 = vadd.f32 %v3210_v43, %v3209_v39  ;;  %v3323_v49 = vadd.f32 %v3322_v50, %v3321_v40 }
 0x18b   :  { %v1886_v30 = vadd.f32 %v3211_v44, %v4455_v48  ;;  %v4709_v59 = vadd.f32 %v3320_v34, %v1883_v27 }
 0x18d   :  { %v4711_v41 = vadd.f32 %v3323_v49, %v1886_v30  ;;  %v3212_v47 = vpop.f32.mrb[76].mxu1  ;;  %v3324_v52 = vpop.f32.mrb[76].mxu0 }
 0x18e   :  { %v3213_v61 = vpop.f32.mrb[77].mxu1  ;;  %v3325_v63 = vpop.f32.mrb[77].mxu0 }
 0x18f   :  { %v3214_v62 = vadd.f32 %v3213_v61, %v3212_v47  ;;  %v3215_v1 = vpop.f32.mrb[78].mxu1  ;;  %v3326_v5 = vadd.f32 %v3325_v63, %v3324_v52  ;;  %v3327_v25 = vpop.f32.mrb[78].mxu0 }
 0x190   :  { %v3216_v29 = vpop.f32.mrb[79].mxu1  ;;  %v3328_v6 = vpop.f32.mrb[79].mxu0 }
 0x191   :  { %v1891_v45 = vadd.f32 %v3214_v62, %v4473_v0  ;;  %v3217_v7 = vadd.f32 %v3216_v29, %v3215_v1  ;;  %v3329_v13 = vadd.f32 %v3328_v6, %v3327_v25 }
 0x193   :  { %v1894_v48 = vadd.f32 %v3217_v7, %v4478_v4  ;;  %v4715_v9 = vadd.f32 %v3326_v5, %v1891_v45 }
 0x195   :  { %v4717_v57 = vadd.f32 %v3329_v13, %v1894_v48  ;;  %v3218_v10 = vpop.f32.mrb[80].mxu1  ;;  %v3330_v12 = vpop.f32.mrb[80].mxu0 }
 0x196   :  { %v3219_v22 = vpop.f32.mrb[81].mxu1  ;;  %v3331_v28 = vpop.f32.mrb[81].mxu0 }
 0x197   :  { %v3220_v32 = vadd.f32 %v3219_v22, %v3218_v10  ;;  %v3221_v33 = vpop.f32.mrb[82].mxu1  ;;  %v3332_v31 = vadd.f32 %v3331_v28, %v3330_v12  ;;  %v3333_v39 = vpop.f32.mrb[82].mxu0 }
 0x198   :  { %v3222_v34 = vpop.f32.mrb[83].mxu1  ;;  %v3334_v40 = vpop.f32.mrb[83].mxu0 }
 0x199   :  { %v1899_v0 = vadd.f32 %v3220_v32, %v4496_v23  ;;  %v3223_v43 = vadd.f32 %v3222_v34, %v3221_v33  ;;  %v3335_v50 = vadd.f32 %v3334_v40, %v3333_v39 }
 0x19b   :  { %v1902_v4 = vadd.f32 %v3223_v43, %v4501_v26  ;;  %v4721_v27 = vadd.f32 %v3332_v31, %v1899_v0 }
 0x19d   :  { %v4723_v44 = vadd.f32 %v3335_v50, %v1902_v4  ;;  %v3224_v49 = vpop.f32.mrb[84].mxu1  ;;  %v3336_v30 = vpop.f32.mrb[84].mxu0 }
 0x19e   :  { %v3225_v47 = vpop.f32.mrb[85].mxu1  ;;  %v3337_v52 = vpop.f32.mrb[85].mxu0 }
 0x19f   :  { %v3226_v61 = vadd.f32 %v3225_v47, %v3224_v49  ;;  %v3227_v63 = vpop.f32.mrb[86].mxu1  ;;  %v3338_v62 = vadd.f32 %v3337_v52, %v3336_v30  ;;  %v3339_v1 = vpop.f32.mrb[86].mxu0 }
 0x1a0   :  { %v3228_v5 = vpop.f32.mrb[87].mxu1  ;;  %v3340_v25 = vpop.f32.mrb[87].mxu0 }
 0x1a1   :  { %v1907_v23 = vadd.f32 %v3226_v61, %v4519_v46  ;;  %v3229_v29 = vadd.f32 %v3228_v5, %v3227_v63  ;;  %v3341_v6 = vadd.f32 %v3340_v25, %v3339_v1 }
 0x1a3   :  { %v1910_v26 = vadd.f32 %v3229_v29, %v4524_v51  ;;  %v4727_v45 = vadd.f32 %v3338_v62, %v1907_v23 }
 0x1a5   :  { %v4729_v7 = vadd.f32 %v3341_v6, %v1910_v26  ;;  %v3230_v13 = vpop.f32.mrb[88].mxu1  ;;  %v3342_v48 = vpop.f32.mrb[88].mxu0 }
 0x1a6   :  { %v3231_v10 = vpop.f32.mrb[89].mxu1  ;;  %v3343_v12 = vpop.f32.mrb[89].mxu0 }
 0x1a7   :  { %v3232_v22 = vadd.f32 %v3231_v10, %v3230_v13  ;;  %v3233_v28 = vpop.f32.mrb[90].mxu1  ;;  %v3344_v32 = vadd.f32 %v3343_v12, %v3342_v48  ;;  %v3345_v33 = vpop.f32.mrb[90].mxu0 }
 0x1a8   :  { %v3234_v31 = vpop.f32.mrb[91].mxu1  ;;  %v3346_v39 = vpop.f32.mrb[91].mxu0 }
 0x1a9   :  { %v1915_v46 = vadd.f32 %v3232_v22, %v4542_v8  ;;  %v3235_v34 = vadd.f32 %v3234_v31, %v3233_v28  ;;  %v3347_v40 = vadd.f32 %v3346_v39, %v3345_v33 }
 0x1ab   :  { %v1918_v51 = vadd.f32 %v3235_v34, %v4547_v14  ;;  %v4733_v0 = vadd.f32 %v3344_v32, %v1915_v46 }
 0x1ad   :  { %v4735_v43 = vadd.f32 %v3347_v40, %v1918_v51  ;;  %v3236_v50 = vpop.f32.mrb[92].mxu1  ;;  %v3348_v4 = vpop.f32.mrb[92].mxu0 }
 0x1ae   :  { %v3237_v49 = vpop.f32.mrb[93].mxu1  ;;  %v3349_v30 = vpop.f32.mrb[93].mxu0 }
 0x1af   :  { %v3238_v47 = vadd.f32 %v3237_v49, %v3236_v50  ;;  %v3239_v52 = vpop.f32.mrb[94].mxu1  ;;  %v3350_v61 = vadd.f32 %v3349_v30, %v3348_v4  ;;  %v3351_v63 = vpop.f32.mrb[94].mxu0 }
 0x1b0   :  { %v3240_v62 = vpop.f32.mrb[95].mxu1  ;;  %v3352_v1 = vpop.f32.mrb[95].mxu0 }
 0x1b1   :  { %v1923_v8 = vadd.f32 %v3238_v47, %v4565_v37  ;;  %v3241_v5 = vadd.f32 %v3240_v62, %v3239_v52  ;;  %v3353_v25 = vadd.f32 %v3352_v1, %v3351_v63 }
 0x1b3   :  { %v1926_v14 = vadd.f32 %v3241_v5, %v4570_v42  ;;  %v4739_v23 = vadd.f32 %v3350_v61, %v1923_v8 }
 0x1b5   :  { %v4741_v29 = vadd.f32 %v3353_v25, %v1926_v14  ;;  %v3370_v6 = vpop.f32.mrb[96].mxu1  ;;  %v2285_v26 = vpop.f32.mrb[96].mxu0 }
 0x1b6   :  { %v3371_v13 = vpop.f32.mrb[97].mxu1  ;;  %v2287_v48 = vpop.f32.mrb[97].mxu0 }
 0x1b7   :  { %v3372_v10 = vadd.f32 %v3371_v13, %v3370_v6  ;;  %v3373_v12 = vpop.f32.mrb[98].mxu1  ;;  %v2288_v22 = vpop.f32.mrb[98].mxu0 }
 0x1b8   :  { %v3374_v28 = vpop.f32.mrb[99].mxu1  ;;  %v2290_v32 = vpop.f32.mrb[99].mxu0 }
 0x1b9   :  { %v3375_v33 = vadd.f32 %v3374_v28, %v3373_v12  ;;  %v2125_v37 = vadd.f32 %v3372_v10, %v4589_v18 }
 0x1bb   :  { %v2286_v31 = vadd.f32 %v2285_v26, %v2125_v37  ;;  %v2128_v39 = vadd.f32 %v3375_v33, %v4592_v19 }
 0x1bd   :  { %v2289_v42 = vadd.f32 %v2288_v22, %v2128_v39  ;;  %v3376_v46 = vpop.f32.mrb[100].mxu1  ;;  %v2293_v34 = vpop.f32.mrb[100].mxu0  ;;  %v2412_v50 = vmax.f32 %v2286_v31, 0.0 }
 0x1be   :  { %v3377_v40 = vpop.f32.mrb[101].mxu1  ;;  %v2295_v51 = vpop.f32.mrb[101].mxu0 }
 0x1bf   :  { %v2413_v4 = vmax.f32 %v2289_v42, 0.0  ;;  %v3378_v49 = vadd.f32 %v3377_v40, %v3376_v46  ;;  %v3379_v30 = vpop.f32.mrb[102].mxu1  ;;  %v2296_v47 = vpop.f32.mrb[102].mxu0 }
 0x1c0   :  { %v3380_v52 = vpop.f32.mrb[103].mxu1  ;;  %v2298_v61 = vpop.f32.mrb[103].mxu0 }
 0x1c1   :  { %v2926_v63 = vpack.c.bf16 %v2413_v4, %v2412_v50  ;;  %v3381_v62 = vadd.f32 %v3380_v52, %v3379_v30  ;;  %v2133_v1 = vadd.f32 %v3378_v49, %v4610_v58 }
 0x1c3   :  { %2927 = vst [vmem:[%s4826_s3] sm:$0xff] %v2926_v63   ;;  %v2294_v18 = vadd.f32 %v2293_v34, %v2133_v1  ;;  %v2136_v19 = vadd.f32 %v3381_v62, %v4613_v60 }
 0x1c5   :  { %v2297_v8 = vadd.f32 %v2296_v47, %v2136_v19  ;;  %v3382_v5 = vpop.f32.mrb[104].mxu1  ;;  %v2301_v25 = vpop.f32.mrb[104].mxu0  ;;  %v2414_v26 = vmax.f32 %v2294_v18, 0.0 }
 0x1c6   :  { %v3383_v14 = vpop.f32.mrb[105].mxu1  ;;  %v2303_v6 = vpop.f32.mrb[105].mxu0 }
 0x1c7   :  { %v2415_v13 = vmax.f32 %v2297_v8, 0.0  ;;  %v3384_v48 = vadd.f32 %v3383_v14, %v3382_v5  ;;  %v3385_v10 = vpop.f32.mrb[106].mxu1  ;;  %v2304_v12 = vpop.f32.mrb[106].mxu0 }
 0x1c8   :  { %v3386_v22 = vpop.f32.mrb[107].mxu1  ;;  %v2306_v28 = vpop.f32.mrb[107].mxu0 }
 0x1c9   :  { %v2931_v58 = vpack.c.bf16 %v2415_v13, %v2414_v26  ;;  %v3387_v32 = vadd.f32 %v3386_v22, %v3385_v10  ;;  %v2141_v33 = vadd.f32 %v3384_v48, %v4631_v35 }
 0x1cb   :  { %3003 = vst [vmem:[%s4826_s3 + $0x8] sm:$0xff] %v2931_v58   ;;  %v2302_v60 = vadd.f32 %v2301_v25, %v2141_v33  ;;  %v2144_v37 = vadd.f32 %v3387_v32, %v4634_v36 }
 0x1cd   :  { %v2305_v31 = vadd.f32 %v2304_v12, %v2144_v37  ;;  %v3388_v39 = vpop.f32.mrb[108].mxu1  ;;  %v2309_v42 = vpop.f32.mrb[108].mxu0  ;;  %v2416_v40 = vmax.f32 %v2302_v60, 0.0 }
 0x1ce   :  { %v3389_v46 = vpop.f32.mrb[109].mxu1  ;;  %v2311_v34 = vpop.f32.mrb[109].mxu0 }
 0x1cf   :  { %v2417_v51 = vmax.f32 %v2305_v31, 0.0  ;;  %v3390_v50 = vadd.f32 %v3389_v46, %v3388_v39  ;;  %v3391_v4 = vpop.f32.mrb[110].mxu1  ;;  %v2312_v49 = vpop.f32.mrb[110].mxu0 }
 0x1d0   :  { %v3392_v30 = vpop.f32.mrb[111].mxu1  ;;  %v2314_v47 = vpop.f32.mrb[111].mxu0 }
 0x1d1   :  { %v2936_v35 = vpack.c.bf16 %v2417_v51, %v2416_v40  ;;  %v3393_v52 = vadd.f32 %v3392_v30, %v3391_v4  ;;  %v2149_v61 = vadd.f32 %v3390_v50, %v4652_v15 }
 0x1d3   :  { %3004 = vst [vmem:[%s4826_s3 + $0x10] sm:$0xff] %v2936_v35   ;;  %v2310_v36 = vadd.f32 %v2309_v42, %v2149_v61  ;;  %v2152_v63 = vadd.f32 %v3393_v52, %v4655_v3 }
 0x1d5   :  { %v2313_v62 = vadd.f32 %v2312_v49, %v2152_v63  ;;  %v3394_v1 = vpop.f32.mrb[112].mxu1  ;;  %v2317_v18 = vpop.f32.mrb[112].mxu0  ;;  %v2418_v5 = vmax.f32 %v2310_v36, 0.0 }
 0x1d6   :  { %v3395_v19 = vpop.f32.mrb[113].mxu1  ;;  %v2319_v8 = vpop.f32.mrb[113].mxu0 }
 0x1d7   :  { %v2419_v25 = vmax.f32 %v2313_v62, 0.0  ;;  %v3396_v14 = vadd.f32 %v3395_v19, %v3394_v1  ;;  %v3397_v6 = vpop.f32.mrb[114].mxu1  ;;  %v2320_v26 = vpop.f32.mrb[114].mxu0 }
 0x1d8   :  { %v3398_v13 = vpop.f32.mrb[115].mxu1  ;;  %v2322_v48 = vpop.f32.mrb[115].mxu0 }
 0x1d9   :  { %v2941_v15 = vpack.c.bf16 %v2419_v25, %v2418_v5  ;;  %v3399_v10 = vadd.f32 %v3398_v13, %v3397_v6  ;;  %v2157_v12 = vadd.f32 %v3396_v14, %v4667_v54 }
 0x1db   :  { %3005 = vst [vmem:[%s4826_s3 + $0x18] sm:$0xff] %v2941_v15   ;;  %v2318_v3 = vadd.f32 %v2317_v18, %v2157_v12  ;;  %v2160_v22 = vadd.f32 %v3399_v10, %v4669_v55 }
 0x1dd   :  { %v2321_v28 = vadd.f32 %v2320_v26, %v2160_v22  ;;  %v3400_v58 = vpop.f32.mrb[116].mxu1  ;;  %v2325_v32 = vpop.f32.mrb[116].mxu0  ;;  %v2420_v37 = vmax.f32 %v2318_v3, 0.0 }
 0x1de   :  { %v3401_v33 = vpop.f32.mrb[117].mxu1  ;;  %v2327_v60 = vpop.f32.mrb[117].mxu0 }
 0x1df   :  { %v2421_v31 = vmax.f32 %v2321_v28, 0.0  ;;  %v3402_v39 = vadd.f32 %v3401_v33, %v3400_v58  ;;  %v3403_v42 = vpop.f32.mrb[118].mxu1  ;;  %v2328_v46 = vpop.f32.mrb[118].mxu0 }
 0x1e0   :  { %v3404_v34 = vpop.f32.mrb[119].mxu1  ;;  %v2330_v40 = vpop.f32.mrb[119].mxu0 }
 0x1e1   :  { %v2946_v54 = vpack.c.bf16 %v2421_v31, %v2420_v37  ;;  %v3405_v51 = vadd.f32 %v3404_v34, %v3403_v42  ;;  %v2165_v50 = vadd.f32 %v3402_v39, %v4675_v24 }
 0x1e3   :  { %3006 = vst [vmem:[%s4826_s3 + $0x20] sm:$0xff] %v2946_v54   ;;  %v2326_v55 = vadd.f32 %v2325_v32, %v2165_v50  ;;  %v2168_v4 = vadd.f32 %v3405_v51, %v4677_v2 }
 0x1e5   :  { %v2329_v49 = vadd.f32 %v2328_v46, %v2168_v4  ;;  %v3406_v30 = vpop.f32.mrb[120].mxu1  ;;  %v2333_v47 = vpop.f32.mrb[120].mxu0  ;;  %v2422_v61 = vmax.f32 %v2326_v55, 0.0 }
 0x1e6   :  { %v3407_v35 = vpop.f32.mrb[121].mxu1  ;;  %v2335_v52 = vpop.f32.mrb[121].mxu0 }
 0x1e7   :  { %v2423_v36 = vmax.f32 %v2329_v49, 0.0  ;;  %v3408_v63 = vadd.f32 %v3407_v35, %v3406_v30  ;;  %v3409_v62 = vpop.f32.mrb[122].mxu1  ;;  %v2336_v1 = vpop.f32.mrb[122].mxu0 }
 0x1e8   :  { %v3410_v18 = vpop.f32.mrb[123].mxu1  ;;  %v2338_v19 = vpop.f32.mrb[123].mxu0 }
 0x1e9   :  { %v2951_v24 = vpack.c.bf16 %v2423_v36, %v2422_v61  ;;  %v3411_v8 = vadd.f32 %v3410_v18, %v3409_v62  ;;  %v2173_v5 = vadd.f32 %v3408_v63, %v4683_v21 }
 0x1eb   :  { %3007 = vst [vmem:[%s4826_s3 + $0x28] sm:$0xff] %v2951_v24   ;;  %v2334_v2 = vadd.f32 %v2333_v47, %v2173_v5  ;;  %v2176_v25 = vadd.f32 %v3411_v8, %v4685_v56 }
 0x1ed   :  { %v2337_v14 = vadd.f32 %v2336_v1, %v2176_v25  ;;  %v3412_v6 = vpop.f32.mrb[124].mxu1  ;;  %v2341_v26 = vpop.f32.mrb[124].mxu0  ;;  %v2424_v15 = vmax.f32 %v2334_v2, 0.0 }
 0x1ee   :  { %v3413_v13 = vpop.f32.mrb[125].mxu1  ;;  %v2343_v48 = vpop.f32.mrb[125].mxu0 }
 0x1ef   :  { %v2425_v10 = vmax.f32 %v2337_v14, 0.0  ;;  %v3414_v12 = vadd.f32 %v3413_v13, %v3412_v6  ;;  %v3415_v3 = vpop.f32.mrb[126].mxu1  ;;  %v2344_v22 = vpop.f32.mrb[126].mxu0 }
 0x1f0   :  { %v3416_v28 = vpop.f32.mrb[127].mxu1  ;;  %v2346_v58 = vpop.f32.mrb[127].mxu0 }
 0x1f1   :  { %v2956_v21 = vpack.c.bf16 %v2425_v10, %v2424_v15  ;;  %v3417_v32 = vadd.f32 %v3416_v28, %v3415_v3  ;;  %v2181_v33 = vadd.f32 %v3414_v12, %v4691_v11 }
 0x1f3   :  { %3008 = vst [vmem:[%s4826_s3 + $0x30] sm:$0xff] %v2956_v21   ;;  %v2342_v56 = vadd.f32 %v2341_v26, %v2181_v33  ;;  %v2184_v60 = vadd.f32 %v3417_v32, %v4693_v38 }
 0x1f5   :  { %v2345_v37 = vadd.f32 %v2344_v22, %v2184_v60  ;;  %v3418_v31 = vpop.f32.mrb[128].mxu1  ;;  %v2349_v39 = vpop.f32.mrb[128].mxu0  ;;  %v2426_v34 = vmax.f32 %v2342_v56, 0.0 }
 0x1f6   :  { %v3419_v42 = vpop.f32.mrb[129].mxu1  ;;  %v2351_v46 = vpop.f32.mrb[129].mxu0 }
 0x1f7   :  { %v2427_v40 = vmax.f32 %v2345_v37, 0.0  ;;  %v3420_v54 = vadd.f32 %v3419_v42, %v3418_v31  ;;  %v3421_v51 = vpop.f32.mrb[130].mxu1  ;;  %v2352_v50 = vpop.f32.mrb[130].mxu0 }
 0x1f8   :  { %v3422_v55 = vpop.f32.mrb[131].mxu1  ;;  %v2354_v4 = vpop.f32.mrb[131].mxu0 }
 0x1f9   :  { %v2961_v11 = vpack.c.bf16 %v2427_v40, %v2426_v34  ;;  %v3423_v49 = vadd.f32 %v3422_v55, %v3421_v51  ;;  %v2189_v30 = vadd.f32 %v3420_v54, %v4697_v53 }
 0x1fb   :  { %3009 = vst [vmem:[%s4826_s3 + $0x38] sm:$0xff] %v2961_v11   ;;  %v2350_v38 = vadd.f32 %v2349_v39, %v2189_v30  ;;  %v2192_v47 = vadd.f32 %v3423_v49, %v4699_v16 }
 0x1fd   :  { %v2353_v35 = vadd.f32 %v2352_v50, %v2192_v47  ;;  %v3424_v52 = vpop.f32.mrb[132].mxu1  ;;  %v2357_v61 = vpop.f32.mrb[132].mxu0  ;;  %v2428_v62 = vmax.f32 %v2350_v38, 0.0 }
 0x1fe   :  { %v3425_v36 = vpop.f32.mrb[133].mxu1  ;;  %v2359_v63 = vpop.f32.mrb[133].mxu0 }
 0x1ff   :  { %v2429_v1 = vmax.f32 %v2353_v35, 0.0  ;;  %v3426_v18 = vadd.f32 %v3425_v36, %v3424_v52  ;;  %v3427_v19 = vpop.f32.mrb[134].mxu1  ;;  %v2360_v24 = vpop.f32.mrb[134].mxu0 }
 0x200   :  { %v3428_v8 = vpop.f32.mrb[135].mxu1  ;;  %v2362_v5 = vpop.f32.mrb[135].mxu0 }
 0x201   :  { %v2966_v53 = vpack.c.bf16 %v2429_v1, %v2428_v62  ;;  %v3429_v2 = vadd.f32 %v3428_v8, %v3427_v19  ;;  %v2197_v25 = vadd.f32 %v3426_v18, %v4703_v17 }
 0x203   :  { %3010 = vst [vmem:[%s4826_s3 + $0x40] sm:$0xff] %v2966_v53   ;;  %v2358_v16 = vadd.f32 %v2357_v61, %v2197_v25  ;;  %v2200_v14 = vadd.f32 %v3429_v2, %v4705_v20 }
 0x205   :  { %v2361_v6 = vadd.f32 %v2360_v24, %v2200_v14  ;;  %v3430_v26 = vpop.f32.mrb[136].mxu1  ;;  %v2365_v13 = vpop.f32.mrb[136].mxu0  ;;  %v2430_v10 = vmax.f32 %v2358_v16, 0.0 }
 0x206   :  { %v3431_v48 = vpop.f32.mrb[137].mxu1  ;;  %v2367_v15 = vpop.f32.mrb[137].mxu0 }
 0x207   :  { %v2431_v12 = vmax.f32 %v2361_v6, 0.0  ;;  %v3432_v3 = vadd.f32 %v3431_v48, %v3430_v26  ;;  %v3433_v22 = vpop.f32.mrb[138].mxu1  ;;  %v2368_v28 = vpop.f32.mrb[138].mxu0 }
 0x208   :  { %v3434_v58 = vpop.f32.mrb[139].mxu1  ;;  %v2370_v21 = vpop.f32.mrb[139].mxu0 }
 0x209   :  { %v2971_v17 = vpack.c.bf16 %v2431_v12, %v2430_v10  ;;  %v3435_v32 = vadd.f32 %v3434_v58, %v3433_v22  ;;  %v2205_v33 = vadd.f32 %v3432_v3, %v4709_v59 }
 0x20b   :  { %3011 = vst [vmem:[%s4826_s3 + $0x48] sm:$0xff] %v2971_v17   ;;  %v2366_v20 = vadd.f32 %v2365_v13, %v2205_v33  ;;  %v2208_v56 = vadd.f32 %v3435_v32, %v4711_v41 }
 0x20d   :  { %v2369_v60 = vadd.f32 %v2368_v28, %v2208_v56  ;;  %v3436_v37 = vpop.f32.mrb[140].mxu1  ;;  %v2373_v31 = vpop.f32.mrb[140].mxu0  ;;  %v2432_v46 = vmax.f32 %v2366_v20, 0.0 }
 0x20e   :  { %v3437_v39 = vpop.f32.mrb[141].mxu1  ;;  %v2375_v42 = vpop.f32.mrb[141].mxu0 }
 0x20f   :  { %v2433_v34 = vmax.f32 %v2369_v60, 0.0  ;;  %v3438_v40 = vadd.f32 %v3437_v39, %v3436_v37  ;;  %v3439_v54 = vpop.f32.mrb[142].mxu1  ;;  %v2376_v51 = vpop.f32.mrb[142].mxu0 }
 0x210   :  { %v3440_v50 = vpop.f32.mrb[143].mxu1  ;;  %v2378_v55 = vpop.f32.mrb[143].mxu0 }
 0x211   :  { %v2976_v59 = vpack.c.bf16 %v2433_v34, %v2432_v46  ;;  %v3441_v4 = vadd.f32 %v3440_v50, %v3439_v54  ;;  %v2213_v11 = vadd.f32 %v3438_v40, %v4715_v9 }
 0x213   :  { %3012 = vst [vmem:[%s4826_s3 + $0x50] sm:$0xff] %v2976_v59   ;;  %v2374_v41 = vadd.f32 %v2373_v31, %v2213_v11  ;;  %v2216_v49 = vadd.f32 %v3441_v4, %v4717_v57 }
 0x215   :  { %v2377_v30 = vadd.f32 %v2376_v51, %v2216_v49  ;;  %v3442_v38 = vpop.f32.mrb[144].mxu1  ;;  %v2381_v47 = vpop.f32.mrb[144].mxu0  ;;  %v2434_v61 = vmax.f32 %v2374_v41, 0.0 }
 0x216   :  { %v3443_v35 = vpop.f32.mrb[145].mxu1  ;;  %v2383_v52 = vpop.f32.mrb[145].mxu0 }
 0x217   :  { %v2435_v36 = vmax.f32 %v2377_v30, 0.0  ;;  %v3444_v63 = vadd.f32 %v3443_v35, %v3442_v38  ;;  %v3445_v62 = vpop.f32.mrb[146].mxu1  ;;  %v2384_v1 = vpop.f32.mrb[146].mxu0 }
 0x218   :  { %v3446_v18 = vpop.f32.mrb[147].mxu1  ;;  %v2386_v19 = vpop.f32.mrb[147].mxu0 }
 0x219   :  { %v2981_v9 = vpack.c.bf16 %v2435_v36, %v2434_v61  ;;  %v3447_v24 = vadd.f32 %v3446_v18, %v3445_v62  ;;  %v2221_v8 = vadd.f32 %v3444_v63, %v4721_v27 }
 0x21b   :  { %3013 = vst [vmem:[%s4826_s3 + $0x58] sm:$0xff] %v2981_v9   ;;  %v2382_v57 = vadd.f32 %v2381_v47, %v2221_v8  ;;  %v2224_v5 = vadd.f32 %v3447_v24, %v4723_v44 }
 0x21d   :  { %v2385_v53 = vadd.f32 %v2384_v1, %v2224_v5  ;;  %v3448_v2 = vpop.f32.mrb[148].mxu1  ;;  %v2389_v25 = vpop.f32.mrb[148].mxu0  ;;  %v2436_v6 = vmax.f32 %v2382_v57, 0.0 }
 0x21e   :  { %v3449_v16 = vpop.f32.mrb[149].mxu1  ;;  %v2391_v14 = vpop.f32.mrb[149].mxu0 }
 0x21f   :  { %v2437_v26 = vmax.f32 %v2385_v53, 0.0  ;;  %v3450_v13 = vadd.f32 %v3449_v16, %v3448_v2  ;;  %v3451_v48 = vpop.f32.mrb[150].mxu1  ;;  %v2392_v15 = vpop.f32.mrb[150].mxu0 }
 0x220   :  { %v3452_v10 = vpop.f32.mrb[151].mxu1  ;;  %v2394_v12 = vpop.f32.mrb[151].mxu0 }
 0x221   :  { %v2986_v27 = vpack.c.bf16 %v2437_v26, %v2436_v6  ;;  %v3453_v3 = vadd.f32 %v3452_v10, %v3451_v48  ;;  %v2229_v22 = vadd.f32 %v3450_v13, %v4727_v45 }
 0x223   :  { %3014 = vst [vmem:[%s4826_s3 + $0x60] sm:$0xff] %v2986_v27   ;;  %v2390_v44 = vadd.f32 %v2389_v25, %v2229_v22  ;;  %v2232_v28 = vadd.f32 %v3453_v3, %v4729_v7 }
 0x225   :  { %v2393_v58 = vadd.f32 %v2392_v15, %v2232_v28  ;;  %v3454_v21 = vpop.f32.mrb[152].mxu1  ;;  %v2397_v17 = vpop.f32.mrb[152].mxu0  ;;  %v2438_v20 = vmax.f32 %v2390_v44, 0.0 }
 0x226   :  { %v3455_v32 = vpop.f32.mrb[153].mxu1  ;;  %v2399_v33 = vpop.f32.mrb[153].mxu0 }
 0x227   :  { %v2439_v56 = vmax.f32 %v2393_v58, 0.0  ;;  %v3456_v60 = vadd.f32 %v3455_v32, %v3454_v21  ;;  %v3457_v37 = vpop.f32.mrb[154].mxu1  ;;  %v2400_v31 = vpop.f32.mrb[154].mxu0 }
 0x228   :  { %v3458_v39 = vpop.f32.mrb[155].mxu1  ;;  %v2402_v42 = vpop.f32.mrb[155].mxu0 }
 0x229   :  { %v2991_v45 = vpack.c.bf16 %v2439_v56, %v2438_v20  ;;  %v3459_v46 = vadd.f32 %v3458_v39, %v3457_v37  ;;  %v2237_v34 = vadd.f32 %v3456_v60, %v4733_v0 }
 0x22b   :  { %3015 = vst [vmem:[%s4826_s3 + $0x68] sm:$0xff] %v2991_v45   ;;  %v2398_v7 = vadd.f32 %v2397_v17, %v2237_v34  ;;  %v2240_v40 = vadd.f32 %v3459_v46, %v4735_v43 }
 0x22d   :  { %v2401_v54 = vadd.f32 %v2400_v31, %v2240_v40  ;;  %v3460_v51 = vpop.f32.mrb[156].mxu1  ;;  %v2405_v50 = vpop.f32.mrb[156].mxu0  ;;  %v2440_v4 = vmax.f32 %v2398_v7, 0.0 }
 0x22e   :  { %v3461_v55 = vpop.f32.mrb[157].mxu1  ;;  %v2407_v59 = vpop.f32.mrb[157].mxu0 }
 0x22f   :  { %v2441_v11 = vmax.f32 %v2401_v54, 0.0  ;;  %v3462_v41 = vadd.f32 %v3461_v55, %v3460_v51  ;;  %v3463_v49 = vpop.f32.mrb[158].mxu1  ;;  %v2408_v30 = vpop.f32.mrb[158].mxu0 }
 0x230   :  { %v3464_v38 = vpop.f32.mrb[159].mxu1  ;;  %v2410_v47 = vpop.f32.mrb[159].mxu0 }
 0x231   :  { %v2996_v0 = vpack.c.bf16 %v2441_v11, %v2440_v4  ;;  %v3465_v35 = vadd.f32 %v3464_v38, %v3463_v49  ;;  %v2245_v52 = vadd.f32 %v3462_v41, %v4739_v23 }
 0x233   :  { %3016 = vst [vmem:[%s4826_s3 + $0x70] sm:$0xff] %v2996_v0   ;;  %v2406_v43 = vadd.f32 %v2405_v50, %v2245_v52  ;;  %v2248_v61 = vadd.f32 %v3465_v35, %v4741_v29 }
 0x235   :  { %v2409_v36 = vadd.f32 %v2408_v30, %v2248_v61  ;;  %v2442_v63 = vmax.f32 %v2406_v43, 0.0 }
 0x237   :  { %v2443_v62 = vmax.f32 %v2409_v36, 0.0 }
 0x239   :  { %v3001_v1 = vpack.c.bf16 %v2443_v62, %v2442_v63 }
 0x23b   :  { %3017 = vst [vmem:[%s4826_s3 + $0x78] sm:$0xff] %v3001_v1  }

// kernel: resbase_forward.19
= control target key start
LH: loop header
LB: loop body
LE: loop exit
PB: predicated region body
PF: predicated region fallthrough
CT: control target
= control target key end

     0   :  { %s278_s0 = inlined_call_operand.vmem [shape: bf16[32,256], index: 0, kind: input, shape index: {}]   ;;  %s279_s1 = inlined_call_operand.vmem [shape: bf16[32,256], index: 1, kind: input, shape index: {}]   ;;  %s280_s2 = inlined_call_operand.vmem [shape: bf16[32,256], index: 2, kind: input, shape index: {}]   ;;  %s281_s3 = inlined_call_operand.vmem [shape: bf16[32,256], index: 3, kind: input, shape index: {}]   ;;  %s282_s4 = inlined_call_operand.vmem [shape: bf16[32,256], index: 4, kind: input, shape index: {}]   ;;  %s283_s5 = inlined_call_operand.vmem [shape: bf16[32,256], index: 5, kind: input, shape index: {}]   ;;  %s284_s6 = inlined_call_operand.vmem [shape: bf16[32,256], index: 6, kind: input, shape index: {}]   ;;  %s285_s7 = inlined_call_operand.vmem [shape: bf16[32,256], index: 7, kind: input, shape index: {}]   ;;  %s286_s8 = inlined_call_operand.vmem [shape: bf16[32,256], index: 8, kind: input, shape index: {}]   ;;  %s287_s9 = inlined_call_operand.vmem [shape: bf16[32,256], index: 9, kind: output, shape index: {}]  }
   0x1   :  { %v32_v0 = vld [vmem:[%s278_s0] sm:$0xff]  ;;  %v33_v6 = vld [vmem:[%s278_s0 + $0x8] sm:$0xff]  ;;  %v34_v15 = vld [vmem:[%s278_s0 + $0x10] sm:$0xff] }
   0x2   :  { %v36_v1 = vld [vmem:[%s279_s1] sm:$0xff]  ;;  %v37_v7 = vld [vmem:[%s279_s1 + $0x8] sm:$0xff]  ;;  %v38_v16 = vld [vmem:[%s279_s1 + $0x10] sm:$0xff] }
   0x3   :  { %v44_v2 = vld [vmem:[%s280_s2] sm:$0xff]  ;;  %v40_v3 = vmax.bf16 %v36_v1, %v32_v0  ;;  %v45_v8 = vld [vmem:[%s280_s2 + $0x8] sm:$0xff]  ;;  %v41_v10 = vmax.bf16 %v37_v7, %v33_v6  ;;  %v46_v17 = vld [vmem:[%s280_s2 + $0x10] sm:$0xff]  ;;  %v42_v20 = vmax.bf16 %v38_v16, %v34_v15 }
   0x4   :  { %v52_v4 = vld [vmem:[%s281_s3] sm:$0xff]  ;;  %v53_v13 = vld [vmem:[%s281_s3 + $0x8] sm:$0xff]  ;;  %v54_v24 = vld [vmem:[%s281_s3 + $0x10] sm:$0xff] }
   0x5   :  { %v48_v5 = vmax.bf16 %v44_v2, %v40_v3  ;;  %v60_v9 = vld [vmem:[%s282_s4] sm:$0xff]  ;;  %v49_v14 = vmax.bf16 %v45_v8, %v41_v10  ;;  %v61_v19 = vld [vmem:[%s282_s4 + $0x8] sm:$0xff]  ;;  %v50_v26 = vmax.bf16 %v46_v17, %v42_v20  ;;  %v35_v27 = vld [vmem:[%s278_s0 + $0x18] sm:$0xff] }
   0x6   :  { %v68_v12 = vld [vmem:[%s283_s5] sm:$0xff]  ;;  %v69_v23 = vld [vmem:[%s283_s5 + $0x8] sm:$0xff]  ;;  %v39_v28 = vld [vmem:[%s279_s1 + $0x18] sm:$0xff] }
   0x7   :  { %v56_v11 = vmax.bf16 %v52_v4, %v48_v5  ;;  %v76_v21 = vld [vmem:[%s284_s6] sm:$0xff]  ;;  %v57_v22 = vmax.bf16 %v53_v13, %v49_v14  ;;  %v47_v29 = vld [vmem:[%s280_s2 + $0x18] sm:$0xff]  ;;  %v62_v32 = vld [vmem:[%s282_s4 + $0x10] sm:$0xff]  ;;  %v43_v33 = vmax.bf16 %v39_v28, %v35_v27  ;;  %v58_v36 = vmax.bf16 %v54_v24, %v50_v26 }
   0x8   :  { %v84_v30 = vld [vmem:[%s285_s7] sm:$0xff]  ;;  %v77_v35 = vld [vmem:[%s284_s6 + $0x8] sm:$0xff]  ;;  %v55_v37 = vld [vmem:[%s281_s3 + $0x18] sm:$0xff] }
   0x9   :  { %v64_v18 = vmax.bf16 %v60_v9, %v56_v11  ;;  %v65_v31 = vmax.bf16 %v61_v19, %v57_v22  ;;  %v92_v38 = vld [vmem:[%s286_s8] sm:$0xff]  ;;  %v70_v40 = vld [vmem:[%s283_s5 + $0x10] sm:$0xff]  ;;  %v51_v41 = vmax.bf16 %v47_v29, %v43_v33  ;;  %v85_v43 = vld [vmem:[%s285_s7 + $0x8] sm:$0xff]  ;;  %v66_v44 = vmax.bf16 %v62_v32, %v58_v36 }
   0xa   :  { %v63_v45 = vld [vmem:[%s282_s4 + $0x18] sm:$0xff]  ;;  %v78_v47 = vld [vmem:[%s284_s6 + $0x10] sm:$0xff]  ;;  %v93_v50 = vld [vmem:[%s286_s8 + $0x8] sm:$0xff] }
   0xb   :  { %v72_v25 = vmax.bf16 %v68_v12, %v64_v18  ;;  %v73_v39 = vmax.bf16 %v69_v23, %v65_v31  ;;  %v59_v48 = vmax.bf16 %v55_v37, %v51_v41  ;;  %v74_v51 = vmax.bf16 %v70_v40, %v66_v44  ;;  %v71_v52 = vld [vmem:[%s283_s5 + $0x18] sm:$0xff]  ;;  %v86_v54 = vld [vmem:[%s285_s7 + $0x10] sm:$0xff] }
   0xc   :  { %v79_v57 = vld [vmem:[%s284_s6 + $0x18] sm:$0xff]  ;;  %v94_v59 = vld [vmem:[%s286_s8 + $0x10] sm:$0xff] }
   0xd   :  { %v80_v34 = vmax.bf16 %v76_v21, %v72_v25  ;;  %v81_v46 = vmax.bf16 %v77_v35, %v73_v39  ;;  %v67_v55 = vmax.bf16 %v63_v45, %v59_v48  ;;  %v82_v56 = vmax.bf16 %v78_v47, %v74_v51  ;;  %v87_v62 = vld [vmem:[%s285_s7 + $0x18] sm:$0xff] }
   0xe   :  { %v95_v1 = vld [vmem:[%s286_s8 + $0x18] sm:$0xff] }
   0xf   :  { %v88_v42 = vmax.bf16 %v84_v30, %v80_v34  ;;  %v89_v53 = vmax.bf16 %v85_v43, %v81_v46  ;;  %v75_v60 = vmax.bf16 %v71_v52, %v67_v55  ;;  %v90_v61 = vmax.bf16 %v86_v54, %v82_v56 }
  0x11   :  { %v96_v49 = vmax.bf16 %v92_v38, %v88_v42  ;;  %v97_v58 = vmax.bf16 %v93_v50, %v89_v53  ;;  %v83_v63 = vmax.bf16 %v79_v57, %v75_v60  ;;  %v98_v0 = vmax.bf16 %v94_v59, %v90_v61 }
  0x13   :  { %100 = vst [vmem:[%s287_s9] sm:$0xff] %v96_v49  ;;  %101 = vst [vmem:[%s287_s9 + $0x8] sm:$0xff] %v97_v58  ;;  %v91_v2 = vmax.bf16 %v87_v62, %v83_v63 }
  0x14   :  { %102 = vst [vmem:[%s287_s9 + $0x10] sm:$0xff] %v98_v0 }
  0x15   :  { %v99_v3 = vmax.bf16 %v95_v1, %v91_v2 }
  0x17   :  { %103 = vst [vmem:[%s287_s9 + $0x18] sm:$0xff] %v99_v3 }

// kernel: resbase_forward.20
= control target key start
LH: loop header
LB: loop body
LE: loop exit
PB: predicated region body
PF: predicated region fallthrough
CT: control target
= control target key end

     0   :  { %s2042_s1 = inlined_call_operand.vmem [shape: bf16[1152,128], index: 1, kind: input, shape index: {}]   ;;  %s2043_s0 = inlined_call_operand.vmem [shape: bf16[64,1152], index: 0, kind: input, shape index: {}]   ;;  %s2044_s2 = inlined_call_operand.vmem [shape: f32[1,128], index: 2, kind: input, shape index: {}]   ;;  %s2045_s3 = inlined_call_operand.vmem [shape: bf16[64,128], index: 3, kind: output, shape index: {}]  }
   0x1   :  { %v1559_v0 = vld [vmem:[%s2042_s1 + $0x40] sm:$0xff]   ;;  %v1563_v4 = vld [vmem:[%s2042_s1 + $0x48] sm:$0xff]   ;;  %v1567_v8 = vld [vmem:[%s2042_s1 + $0x50] sm:$0xff]  }
   0x2   :  { %v1560_v1 = vld [vmem:[%s2042_s1 + $0xc0] sm:$0xff]   ;;  %1347 = vmatprep.subr.bf16.mxu0 %v1559_v0  ;;  %v1564_v5 = vld [vmem:[%s2042_s1 + $0xc8] sm:$0xff]   ;;  %v1568_v9 = vld [vmem:[%s2042_s1 + $0xd0] sm:$0xff]  }
   0x3   :  { %v1561_v2 = vld [vmem:[%s2042_s1] sm:$0xff]   ;;  %1387 = vmatprep.subr.bf16.mxu1 %v1560_v1  ;;  %v1565_v6 = vld [vmem:[%s2042_s1 + $0x8] sm:$0xff]   ;;  %v1569_v10 = vld [vmem:[%s2042_s1 + $0x10] sm:$0xff]  }
   0x4   :  { %v1562_v3 = vld [vmem:[%s2042_s1 + $0x80] sm:$0xff]   ;;  %1348 = vmatpush3.bf16.msra.mxu0 %v1561_v2  ;;  %v1566_v7 = vld [vmem:[%s2042_s1 + $0x88] sm:$0xff]   ;;  %v1570_v11 = vld [vmem:[%s2042_s1 + $0x90] sm:$0xff]  }
   0x5   :  { %1388 = vmatpush3.bf16.msra.mxu1 %v1562_v3  ;;  %1349 = vmatprep.subr.bf16.mxu0 %v1563_v4  ;;  %v1571_v12 = vld [vmem:[%s2042_s1 + $0x58] sm:$0xff]   ;;  %v1575_v16 = vld [vmem:[%s2042_s1 + $0x60] sm:$0xff]   ;;  %v1579_v20 = vld [vmem:[%s2042_s1 + $0x68] sm:$0xff]  }
   0x6   :  { %1389 = vmatprep.subr.bf16.mxu1 %v1564_v5  ;;  %v1572_v13 = vld [vmem:[%s2042_s1 + $0xd8] sm:$0xff]   ;;  %v1576_v17 = vld [vmem:[%s2042_s1 + $0xe0] sm:$0xff]   ;;  %v1580_v21 = vld [vmem:[%s2042_s1 + $0xe8] sm:$0xff]  }
   0x7   :  { %v1573_v14 = vld [vmem:[%s2042_s1 + $0x18] sm:$0xff]   ;;  %v1577_v18 = vld [vmem:[%s2042_s1 + $0x20] sm:$0xff]   ;;  %v1581_v22 = vld [vmem:[%s2042_s1 + $0x28] sm:$0xff]  }
   0x8   :  { %1350 = vmatpush3.bf16.msra.mxu0 %v1565_v6  ;;  %v1574_v15 = vld [vmem:[%s2042_s1 + $0x98] sm:$0xff]   ;;  %v1578_v19 = vld [vmem:[%s2042_s1 + $0xa0] sm:$0xff]   ;;  %v1582_v23 = vld [vmem:[%s2042_s1 + $0xa8] sm:$0xff]  }
   0x9   :  { %1390 = vmatpush3.bf16.msra.mxu1 %v1566_v7  ;;  %1351 = vmatprep.subr.bf16.mxu0 %v1567_v8  ;;  %v1583_v24 = vld [vmem:[%s2042_s1 + $0x70] sm:$0xff]   ;;  %v1587_v28 = vld [vmem:[%s2042_s1 + $0x78] sm:$0xff]   ;;  %v1591_v32 = vld [vmem:[%s2043_s0] ss:$36 sps:$4 sm:$0xff]  }
   0xa   :  { %1391 = vmatprep.subr.bf16.mxu1 %v1568_v9  ;;  %v1584_v25 = vld [vmem:[%s2042_s1 + $0xf0] sm:$0xff]   ;;  %v1588_v29 = vld [vmem:[%s2042_s1 + $0xf8] sm:$0xff]   ;;  %v1593_v33 = vld [vmem:[%s2043_s0 + $0x4] ss:$36 sps:$4 sm:$0xff]  }
   0xb   :  { %v1585_v26 = vld [vmem:[%s2042_s1 + $0x30] sm:$0xff]   ;;  %v1589_v30 = vld [vmem:[%s2042_s1 + $0x38] sm:$0xff]   ;;  %v1594_v34 = vld [vmem:[%s2043_s0 + $0x8] ss:$36 sps:$4 sm:$0xff]   ;;  %854 = vmatprep.mubr.bf16.mxu0 %v1593_v33 }
   0xc   :  { %1352 = vmatpush3.bf16.msra.mxu0 %v1569_v10  ;;  %v1586_v27 = vld [vmem:[%s2042_s1 + $0xb0] sm:$0xff]   ;;  %v1590_v31 = vld [vmem:[%s2042_s1 + $0xb8] sm:$0xff]   ;;  %v1597_v36 = vld [vmem:[%s2042_s1 + $0x140] sm:$0xff]  }
   0xd   :  { %1392 = vmatpush3.bf16.msra.mxu1 %v1570_v11  ;;  %1353 = vmatprep.subr.bf16.mxu0 %v1571_v12  ;;  %v1596_v35 = vld [vmem:[%s2043_s0 + $0xc] ss:$36 sps:$4 sm:$0xff]   ;;  %v1598_v37 = vld [vmem:[%s2042_s1 + $0x1c0] sm:$0xff]   ;;  %v1607_v45 = vld [vmem:[%s2043_s0 + $0x54] ss:$36 sps:$4 sm:$0xff]  }
   0xe   :  { %1393 = vmatprep.subr.bf16.mxu1 %v1572_v13  ;;  %919 = vmatprep.mubr.bf16.mxu1 %v1596_v35  ;;  %v1599_v38 = vld [vmem:[%s2042_s1 + $0x100] sm:$0xff]   ;;  %v1601_v40 = vld [vmem:[%s2042_s1 + $0x148] sm:$0xff]   ;;  %v1610_v47 = vld [vmem:[%s2043_s0 + $0x50] ss:$36 sps:$4 sm:$0xff]  }
   0xf   :  { %v1600_v39 = vld [vmem:[%s2042_s1 + $0x180] sm:$0xff]   ;;  %v1602_v41 = vld [vmem:[%s2042_s1 + $0x1c8] sm:$0xff]   ;;  %v1611_v48 = vld [vmem:[%s2042_s1 + $0x150] sm:$0xff]  }
  0x10   :  { %1354 = vmatpush3.bf16.msra.mxu0 %v1573_v14  ;;  %v1603_v42 = vld [vmem:[%s2042_s1 + $0x108] sm:$0xff]   ;;  %v1612_v49 = vld [vmem:[%s2042_s1 + $0x1d0] sm:$0xff]   ;;  %v1615_v52 = vld [vmem:[%s2042_s1 + $0x158] sm:$0xff]  }
  0x11   :  { %1394 = vmatpush3.bf16.msra.mxu1 %v1574_v15  ;;  %1355 = vmatprep.subr.bf16.mxu0 %v1575_v16  ;;  %v1604_v43 = vld [vmem:[%s2042_s1 + $0x188] sm:$0xff]   ;;  %v1613_v50 = vld [vmem:[%s2042_s1 + $0x110] sm:$0xff]   ;;  %v1616_v53 = vld [vmem:[%s2042_s1 + $0x1d8] sm:$0xff]  }
  0x12   :  { %1395 = vmatprep.subr.bf16.mxu1 %v1576_v17  ;;  %v1605_v44 = vld [vmem:[%s2043_s0 + $0x4c] ss:$36 sps:$4 sm:$0xff]   ;;  %v1617_v54 = vld [vmem:[%s2042_s1 + $0x118] sm:$0xff]   ;;  %v1625_v60 = vld [vmem:[%s2042_s1 + $0x160] sm:$0xff]  }
  0x13   :  { %v1609_v46 = vld [vmem:[%s2043_s0 + $0x48] ss:$36 sps:$4 sm:$0xff]   ;;  %v1614_v51 = vld [vmem:[%s2042_s1 + $0x190] sm:$0xff]   ;;  %v1618_v55 = vld [vmem:[%s2042_s1 + $0x198] sm:$0xff]  }
  0x14   :  { %1356 = vmatpush3.bf16.msra.mxu0 %v1577_v18  ;;  %v1619_v56 = vld [vmem:[%s2043_s0 + $0x94] ss:$36 sps:$4 sm:$0xff]   ;;  %v1621_v57 = vld [vmem:[%s2043_s0 + $0x9c] ss:$36 sps:$4 sm:$0xff]   ;;  %v1629_v0 = vld [vmem:[%s2042_s1 + $0x168] sm:$0xff]  }
  0x15   :  { %1396 = vmatpush3.bf16.msra.mxu1 %v1578_v19  ;;  %1357 = vmatprep.subr.bf16.mxu0 %v1579_v20  ;;  %v1623_v58 = vld [vmem:[%s2043_s0 + $0x90] ss:$36 sps:$4 sm:$0xff]   ;;  %v1624_v59 = vld [vmem:[%s2043_s0 + $0x98] ss:$36 sps:$4 sm:$0xff]   ;;  %v1626_v61 = vld [vmem:[%s2042_s1 + $0x1e0] sm:$0xff]  }
  0x16   :  { %1397 = vmatprep.subr.bf16.mxu1 %v1580_v21  ;;  %v1627_v62 = vld [vmem:[%s2042_s1 + $0x120] sm:$0xff]   ;;  %v1630_v1 = vld [vmem:[%s2042_s1 + $0x1e8] sm:$0xff]   ;;  %v1637_v6 = vld [vmem:[%s2043_s0 + $0xd8] ss:$36 sps:$4 sm:$0xff]  }
  0x17   :  { %v1628_v63 = vld [vmem:[%s2042_s1 + $0x1a0] sm:$0xff]   ;;  %v1631_v2 = vld [vmem:[%s2042_s1 + $0x128] sm:$0xff]   ;;  %v1639_v8 = vld [vmem:[%s2042_s1 + $0x170] sm:$0xff]  }
  0x18   :  { %1358 = vmatpush3.bf16.msra.mxu0 %v1581_v22  ;;  %v1632_v3 = vld [vmem:[%s2042_s1 + $0x1a8] sm:$0xff]   ;;  %v1633_v4 = vld [vmem:[%s2043_s0 + $0xdc] ss:$36 sps:$4 sm:$0xff]   ;;  %v1640_v9 = vld [vmem:[%s2042_s1 + $0x1f0] sm:$0xff]  }
  0x19   :  { %1398 = vmatpush3.bf16.msra.mxu1 %v1582_v23  ;;  %1359 = vmatprep.subr.bf16.mxu0 %v1583_v24  ;;  %v1635_v5 = vld [vmem:[%s2043_s0 + $0xe4] ss:$36 sps:$4 sm:$0xff]   ;;  %v1641_v10 = vld [vmem:[%s2042_s1 + $0x130] sm:$0xff]   ;;  %v1643_v12 = vld [vmem:[%s2042_s1 + $0x178] sm:$0xff]  }
  0x1a   :  { %1399 = vmatprep.subr.bf16.mxu1 %v1584_v25  ;;  %v1638_v7 = vld [vmem:[%s2043_s0 + $0xe0] ss:$36 sps:$4 sm:$0xff]   ;;  %v1642_v11 = vld [vmem:[%s2042_s1 + $0x1b0] sm:$0xff]   ;;  %v1644_v13 = vld [vmem:[%s2042_s1 + $0x1f8] sm:$0xff]  }
  0x1b   :  { %v1645_v14 = vld [vmem:[%s2042_s1 + $0x138] sm:$0xff]   ;;  %v1647_v16 = vld [vmem:[%s2043_s0 + $0x10] ss:$36 sps:$4 sm:$0xff]   ;;  %v1653_v20 = vld [vmem:[%s2042_s1 + $0x200] sm:$0xff]  }
  0x1c   :  { %1360 = vmatpush3.bf16.msra.mxu0 %v1585_v26  ;;  %v1646_v15 = vld [vmem:[%s2042_s1 + $0x1b8] sm:$0xff]   ;;  %v1654_v21 = vld [vmem:[%s2042_s1 + $0x208] sm:$0xff]   ;;  %v1660_v25 = vld [vmem:[%s2043_s0 + $0x60] ss:$36 sps:$4 sm:$0xff]  }
  0x1d   :  { %1400 = vmatpush3.bf16.msra.mxu1 %v1586_v27  ;;  %1361 = vmatprep.subr.bf16.mxu0 %v1587_v28  ;;  %v1649_v17 = vld [vmem:[%s2043_s0 + $0x14] ss:$36 sps:$4 sm:$0xff]   ;;  %v1652_v19 = vld [vmem:[%s2043_s0 + $0x1c] ss:$36 sps:$4 sm:$0xff]   ;;  %v1657_v23 = vld [vmem:[%s2043_s0 + $0x64] ss:$36 sps:$4 sm:$0xff]  }
  0x1e   :  { %1401 = vmatprep.subr.bf16.mxu1 %v1588_v29  ;;  %v1650_v18 = vld [vmem:[%s2043_s0 + $0x18] ss:$36 sps:$4 sm:$0xff]   ;;  %v1661_v26 = vld [vmem:[%s2042_s1 + $0x210] sm:$0xff]   ;;  %v1663_v27 = vld [vmem:[%s2043_s0 + $0xa4] ss:$36 sps:$4 sm:$0xff]  }
  0x1f   :  { %v1655_v22 = vld [vmem:[%s2043_s0 + $0x5c] ss:$36 sps:$4 sm:$0xff]   ;;  %v1665_v28 = vld [vmem:[%s2043_s0 + $0xac] ss:$36 sps:$4 sm:$0xff]  }
  0x20   :  { %1362 = vmatpush3.bf16.msra.mxu0 %v1589_v30  ;;  %v1659_v24 = vld [vmem:[%s2043_s0 + $0x58] ss:$36 sps:$4 sm:$0xff]   ;;  %v1667_v30 = vld [vmem:[%s2043_s0 + $0xa0] ss:$36 sps:$4 sm:$0xff]   ;;  %v1671_v33 = vld [vmem:[%s2043_s0 + $0xec] ss:$36 sps:$4 sm:$0xff]  }
  0x21   :  { %1402 = vmatpush3.bf16.msra.mxu1 %v1590_v31  ;;  %1427 = vmatprep.subr.bf16.mxu0 %v1597_v36  ;;  %v1662_v29 = vld [vmem:[%s2042_s1 + $0x218] sm:$0xff]   ;;  %v1668_v31 = vld [vmem:[%s2043_s0 + $0xa8] ss:$36 sps:$4 sm:$0xff]  }
  0x22   :  { %1467 = vmatprep.subr.bf16.mxu1 %v1598_v37  ;;  %v1670_v35 = vld [vmem:[%s2042_s1 + $0x228] sm:$0xff]   ;;  %v1677_v37 = vld [vmem:[%s2042_s1 + $0x230] sm:$0xff]  }
  0x23   :  { %855 = vmatmul.mubr.bf16.vlgmr.msra.gmra.mrb[0].mxu0 %v1591_v32  ;;  %v1669_v32 = vld [vmem:[%s2042_s1 + $0x220] sm:$0xff]   ;;  %v1675_v36 = vld [vmem:[%s2043_s0 + $0xe8] ss:$36 sps:$4 sm:$0xff]  }
  0x24   :  { %920 = vmatmul.mubr.bf16.vlgmr.msra.gmra.mrb[0].mxu1 %v1594_v34  ;;  %1428 = vmatpush3.bf16.msra.mxu0 %v1599_v38  ;;  %v1673_v34 = vld [vmem:[%s2043_s0 + $0xf4] ss:$36 sps:$4 sm:$0xff]  }
  0x25   :  { %1468 = vmatpush3.bf16.msra.mxu1 %v1600_v39  ;;  %1429 = vmatprep.subr.bf16.mxu0 %v1601_v40  ;;  %v1676_v38 = vld [vmem:[%s2043_s0 + $0xf0] ss:$36 sps:$4 sm:$0xff]   ;;  %v1679_v39 = vld [vmem:[%s2043_s0 + $0x20] ss:$36 sps:$4 sm:$0xff]  }
  0x26   :  { %1469 = vmatprep.subr.bf16.mxu1 %v1602_v41  ;;  %862 = vmatprep.mubr.bf16.mxu0 %v1605_v44  ;;  %v1680_v40 = vld [vmem:[%s2043_s0 + $0xb0] ss:$36 sps:$4 sm:$0xff]   ;;  %v1678_v41 = vld [vmem:[%s2042_s1 + $0x238] sm:$0xff]  }
  0x27   :  { %927 = vmatprep.mubr.bf16.mxu1 %v1607_v45 }
  0x28   :  { %1430 = vmatpush3.bf16.msra.mxu0 %v1603_v42  ;;  %v1681_v42 = vld [vmem:[%s2043_s0 + $0x68] ss:$36 sps:$4 sm:$0xff]  }
  0x29   :  { %1470 = vmatpush3.bf16.msra.mxu1 %v1604_v43  ;;  %1431 = vmatprep.subr.bf16.mxu0 %v1611_v48  ;;  %v1682_v43 = vld [vmem:[%s2043_s0 + $0xf8] ss:$36 sps:$4 sm:$0xff]  }
  0x2a   :  { %1471 = vmatprep.subr.bf16.mxu1 %v1612_v49 }
  0x2b   :  { %863 = vmatmul.mubr.bf16.gmra.mrb[4].mxu0 %v1609_v46  ;;  %v1199_v46 = vld [vmem:[%s2044_s2] ss:$0 sm:$0xff] }
  0x2c   :  { %928 = vmatmul.mubr.bf16.gmra.mrb[4].mxu1 %v1610_v47  ;;  %1432 = vmatpush3.bf16.msra.mxu0 %v1613_v50 }
  0x2d   :  { %1472 = vmatpush3.bf16.msra.mxu1 %v1614_v51  ;;  %1433 = vmatprep.subr.bf16.mxu0 %v1615_v52 }
  0x2e   :  { %1473 = vmatprep.subr.bf16.mxu1 %v1616_v53  ;;  %870 = vmatprep.mubr.bf16.mxu0 %v1619_v56 }
  0x2f   :  { %935 = vmatprep.mubr.bf16.mxu1 %v1621_v57 }
  0x30   :  { %1434 = vmatpush3.bf16.msra.mxu0 %v1617_v54 }
  0x31   :  { %1474 = vmatpush3.bf16.msra.mxu1 %v1618_v55  ;;  %1435 = vmatprep.subr.bf16.mxu0 %v1625_v60 }
  0x32   :  { %1475 = vmatprep.subr.bf16.mxu1 %v1626_v61 }
  0x33   :  { %871 = vmatmul.mubr.bf16.gmra.mrb[8].mxu0 %v1623_v58 }
  0x34   :  { %936 = vmatmul.mubr.bf16.gmra.mrb[8].mxu1 %v1624_v59  ;;  %1436 = vmatpush3.bf16.msra.mxu0 %v1627_v62 }
  0x35   :  { %1476 = vmatpush3.bf16.msra.mxu1 %v1628_v63  ;;  %1437 = vmatprep.subr.bf16.mxu0 %v1629_v0 }
  0x36   :  { %1477 = vmatprep.subr.bf16.mxu1 %v1630_v1  ;;  %878 = vmatprep.mubr.bf16.mxu0 %v1633_v4 }
  0x37   :  { %943 = vmatprep.mubr.bf16.mxu1 %v1635_v5 }
  0x38   :  { %1438 = vmatpush3.bf16.msra.mxu0 %v1631_v2 }
  0x39   :  { %1478 = vmatpush3.bf16.msra.mxu1 %v1632_v3  ;;  %1439 = vmatprep.subr.bf16.mxu0 %v1639_v8 }
  0x3a   :  { %1479 = vmatprep.subr.bf16.mxu1 %v1640_v9 }
  0x3b   :  { %879 = vmatmul.mubr.bf16.gmra.mrb[12].mxu0 %v1637_v6 }
  0x3c   :  { %944 = vmatmul.mubr.bf16.gmra.mrb[12].mxu1 %v1638_v7  ;;  %1440 = vmatpush3.bf16.msra.mxu0 %v1641_v10 }
  0x3d   :  { %1480 = vmatpush3.bf16.msra.mxu1 %v1642_v11  ;;  %1441 = vmatprep.subr.bf16.mxu0 %v1643_v12 }
  0x3e   :  { %1481 = vmatprep.subr.bf16.mxu1 %v1644_v13  ;;  %984 = vmatprep.mubr.bf16.mxu0 %v1649_v17 }
  0x3f   :  { %1049 = vmatprep.mubr.bf16.mxu1 %v1652_v19 }
  0x40   :  { %1442 = vmatpush3.bf16.msra.mxu0 %v1645_v14 }
  0x41   :  { %1482 = vmatpush3.bf16.msra.mxu1 %v1646_v15  ;;  %1519 = vmatprep.subr.bf16.mxu0 %v1653_v20 }
  0x42   :  { %1543 = vmatprep.subr.bf16.mxu1 %v1653_v20 }
  0x43   :  { %985 = vmatmul.mubr.bf16.vlgmr.msra.gmra.mrb[16].mxu0 %v1647_v16 }
  0x44   :  { %1050 = vmatmul.mubr.bf16.vlgmr.msra.gmra.mrb[16].mxu1 %v1650_v18  ;;  %1520 = vmatpush3.bf16.msra.mxu0 %v1653_v20 }
  0x45   :  { %1551 = vmatpush3.bf16.msra.mxu1 %v1653_v20  ;;  %1521 = vmatprep.subr.bf16.mxu0 %v1654_v21 }
  0x46   :  { %1544 = vmatprep.subr.bf16.mxu1 %v1654_v21  ;;  %992 = vmatprep.mubr.bf16.mxu0 %v1655_v22 }
  0x47   :  { %1057 = vmatprep.mubr.bf16.mxu1 %v1657_v23 }
  0x48   :  { %1522 = vmatpush3.bf16.msra.mxu0 %v1654_v21 }
  0x49   :  { %1552 = vmatpush3.bf16.msra.mxu1 %v1654_v21  ;;  %1523 = vmatprep.subr.bf16.mxu0 %v1661_v26 }
  0x4a   :  { %1545 = vmatprep.subr.bf16.mxu1 %v1661_v26 }
  0x4b   :  { %993 = vmatmul.mubr.bf16.gmra.mrb[20].mxu0 %v1659_v24 }
  0x4c   :  { %1058 = vmatmul.mubr.bf16.gmra.mrb[20].mxu1 %v1660_v25  ;;  %1000 = vmatprep.mubr.bf16.mxu0 %v1663_v27 }
  0x4d   :  { %1524 = vmatpush3.bf16.msra.mxu0 %v1661_v26  ;;  %1065 = vmatprep.mubr.bf16.mxu1 %v1665_v28 }
  0x4e   :  { %1553 = vmatpush3.bf16.msra.mxu1 %v1661_v26  ;;  %1525 = vmatprep.subr.bf16.mxu0 %v1662_v29 }
  0x4f   :  { %1546 = vmatprep.subr.bf16.mxu1 %v1662_v29 }
  0x51   :  { %1526 = vmatpush3.bf16.msra.mxu0 %v1662_v29 }
  0x52   :  { %1554 = vmatpush3.bf16.msra.mxu1 %v1662_v29  ;;  %1527 = vmatprep.subr.bf16.mxu0 %v1669_v32 }
  0x53   :  { %1001 = vmatmul.mubr.bf16.gmra.mrb[24].mxu0 %v1667_v30  ;;  %1547 = vmatprep.subr.bf16.mxu1 %v1669_v32 }
  0x54   :  { %1066 = vmatmul.mubr.bf16.gmra.mrb[24].mxu1 %v1668_v31  ;;  %1008 = vmatprep.mubr.bf16.mxu0 %v1671_v33 }
  0x55   :  { %1528 = vmatpush3.bf16.msra.mxu0 %v1669_v32  ;;  %1073 = vmatprep.mubr.bf16.mxu1 %v1673_v34 }
  0x56   :  { %1555 = vmatpush3.bf16.msra.mxu1 %v1669_v32  ;;  %1529 = vmatprep.subr.bf16.mxu0 %v1670_v35 }
  0x57   :  { %1548 = vmatprep.subr.bf16.mxu1 %v1670_v35 }
  0x59   :  { %1530 = vmatpush3.bf16.msra.mxu0 %v1670_v35 }
  0x5a   :  { %1556 = vmatpush3.bf16.msra.mxu1 %v1670_v35  ;;  %1531 = vmatprep.subr.bf16.mxu0 %v1677_v37 }
  0x5b   :  { %1009 = vmatmul.mubr.bf16.gmra.mrb[28].mxu0 %v1675_v36  ;;  %1549 = vmatprep.subr.bf16.mxu1 %v1677_v37 }
  0x5c   :  { %1074 = vmatmul.mubr.bf16.gmra.mrb[28].mxu1 %v1676_v38  ;;  %1535 = vmatprep.mubr.bf16.mxu0 %v1679_v39 }
  0x5d   :  { %1532 = vmatpush3.bf16.msra.mxu0 %v1677_v37  ;;  %1539 = vmatprep.mubr.bf16.mxu1 %v1680_v40 }
  0x5e   :  { %1557 = vmatpush3.bf16.msra.mxu1 %v1677_v37  ;;  %1533 = vmatprep.subr.bf16.mxu0 %v1678_v41 }
  0x5f   :  { %1550 = vmatprep.subr.bf16.mxu1 %v1678_v41 }
  0x61   :  { %1534 = vmatpush3.bf16.msra.mxu0 %v1678_v41 }
  0x62   :  { %1558 = vmatpush3.bf16.msra.mxu1 %v1678_v41 }
  0x64   :  { %1536 = vmatmul.mubr.bf16.vlgmr.msra.gmra.mrb[32].mxu0 %v1681_v42 }
  0x65   :  { %1540 = vmatmul.mubr.bf16.vlgmr.msra.gmra.mrb[32].mxu1 %v1682_v43 }
  0xf6   :  { %v1363_v44 = vpop.f32.mrb[0].mxu0 }
  0xf7   :  { %v1403_v45 = vpop.f32.mrb[0].mxu1  ;;  %v1364_v47 = vpop.f32.mrb[1].mxu0 }
  0xf8   :  { %v1365_v48 = vadd.f32 %v1364_v47, %v1363_v44  ;;  %v1404_v49 = vpop.f32.mrb[1].mxu1  ;;  %v1366_v50 = vpop.f32.mrb[2].mxu0 }
  0xf9   :  { %v1405_v51 = vadd.f32 %v1404_v49, %v1403_v45  ;;  %v1406_v52 = vpop.f32.mrb[2].mxu1  ;;  %v1367_v53 = vpop.f32.mrb[3].mxu0 }
  0xfa   :  { %v857_v54 = vadd.f32 %v1365_v48, %v1199_v46  ;;  %v1368_v55 = vadd.f32 %v1367_v53, %v1366_v50  ;;  %v1407_v56 = vpop.f32.mrb[3].mxu1 }
  0xfb   :  { %v1408_v57 = vadd.f32 %v1407_v56, %v1406_v52 }
  0xfc   :  { %v922_v58 = vadd.f32 %v1405_v51, %v857_v54  ;;  %v860_v59 = vadd.f32 %v1368_v55, %v1199_v46 }
  0xfe   :  { %v925_v60 = vadd.f32 %v1408_v57, %v860_v59  ;;  %v1369_v61 = vpop.f32.mrb[4].mxu0 }
  0xff   :  { %v1409_v62 = vpop.f32.mrb[4].mxu1  ;;  %v1370_v63 = vpop.f32.mrb[5].mxu0 }
 0x100   :  { %v1371_v0 = vadd.f32 %v1370_v63, %v1369_v61  ;;  %v1410_v1 = vpop.f32.mrb[5].mxu1  ;;  %v1372_v2 = vpop.f32.mrb[6].mxu0 }
 0x101   :  { %v1411_v3 = vadd.f32 %v1410_v1, %v1409_v62  ;;  %v1412_v4 = vpop.f32.mrb[6].mxu1  ;;  %v1373_v5 = vpop.f32.mrb[7].mxu0 }
 0x102   :  { %v865_v6 = vadd.f32 %v1371_v0, %v1199_v46  ;;  %v1374_v7 = vadd.f32 %v1373_v5, %v1372_v2  ;;  %v1413_v8 = vpop.f32.mrb[7].mxu1 }
 0x103   :  { %v1414_v9 = vadd.f32 %v1413_v8, %v1412_v4 }
 0x104   :  { %v930_v10 = vadd.f32 %v1411_v3, %v865_v6  ;;  %v868_v11 = vadd.f32 %v1374_v7, %v1199_v46 }
 0x106   :  { %v933_v12 = vadd.f32 %v1414_v9, %v868_v11  ;;  %v1375_v13 = vpop.f32.mrb[8].mxu0 }
 0x107   :  { %v1415_v14 = vpop.f32.mrb[8].mxu1  ;;  %v1376_v15 = vpop.f32.mrb[9].mxu0 }
 0x108   :  { %v1377_v16 = vadd.f32 %v1376_v15, %v1375_v13  ;;  %v1416_v17 = vpop.f32.mrb[9].mxu1  ;;  %v1378_v18 = vpop.f32.mrb[10].mxu0 }
 0x109   :  { %v1417_v19 = vadd.f32 %v1416_v17, %v1415_v14  ;;  %v1418_v20 = vpop.f32.mrb[10].mxu1  ;;  %v1379_v21 = vpop.f32.mrb[11].mxu0 }
 0x10a   :  { %v873_v22 = vadd.f32 %v1377_v16, %v1199_v46  ;;  %v1380_v23 = vadd.f32 %v1379_v21, %v1378_v18  ;;  %v1419_v24 = vpop.f32.mrb[11].mxu1 }
 0x10b   :  { %v1420_v25 = vadd.f32 %v1419_v24, %v1418_v20 }
 0x10c   :  { %v938_v26 = vadd.f32 %v1417_v19, %v873_v22  ;;  %v876_v27 = vadd.f32 %v1380_v23, %v1199_v46 }
 0x10e   :  { %v941_v28 = vadd.f32 %v1420_v25, %v876_v27  ;;  %v1381_v29 = vpop.f32.mrb[12].mxu0 }
 0x10f   :  { %v1421_v30 = vpop.f32.mrb[12].mxu1  ;;  %v1382_v31 = vpop.f32.mrb[13].mxu0 }
 0x110   :  { %v1422_v32 = vpop.f32.mrb[13].mxu1  ;;  %v1383_v33 = vadd.f32 %v1382_v31, %v1381_v29  ;;  %v1384_v35 = vpop.f32.mrb[14].mxu0 }
 0x111   :  { %v1423_v34 = vadd.f32 %v1422_v32, %v1421_v30  ;;  %v1424_v36 = vpop.f32.mrb[14].mxu1  ;;  %v1385_v37 = vpop.f32.mrb[15].mxu0 }
 0x112   :  { %v1425_v38 = vpop.f32.mrb[15].mxu1  ;;  %v881_v39 = vadd.f32 %v1383_v33, %v1199_v46  ;;  %v1386_v40 = vadd.f32 %v1385_v37, %v1384_v35 }
 0x113   :  { %v1426_v41 = vadd.f32 %v1425_v38, %v1424_v36 }
 0x114   :  { %v946_v42 = vadd.f32 %v1423_v34, %v881_v39  ;;  %v884_v43 = vadd.f32 %v1386_v40, %v1199_v46 }
 0x116   :  { %v949_v44 = vadd.f32 %v1426_v41, %v884_v43  ;;  %v1443_v45 = vpop.f32.mrb[16].mxu0 }
 0x117   :  { %v1444_v47 = vpop.f32.mrb[17].mxu0  ;;  %v1483_v48 = vpop.f32.mrb[16].mxu1 }
 0x118   :  { %v1445_v49 = vadd.f32 %v1444_v47, %v1443_v45  ;;  %v1446_v50 = vpop.f32.mrb[18].mxu0  ;;  %v1484_v51 = vpop.f32.mrb[17].mxu1 }
 0x119   :  { %v1447_v52 = vpop.f32.mrb[19].mxu0  ;;  %v1485_v54 = vadd.f32 %v1484_v51, %v1483_v48  ;;  %v1486_v55 = vpop.f32.mrb[18].mxu1 }
 0x11a   :  { %v987_v53 = vadd.f32 %v1445_v49, %v922_v58  ;;  %v1448_v56 = vadd.f32 %v1447_v52, %v1446_v50  ;;  %v1487_v57 = vpop.f32.mrb[19].mxu1 }
 0x11b   :  { %v1488_v61 = vadd.f32 %v1487_v57, %v1486_v55 }
 0x11c   :  { %v990_v59 = vadd.f32 %v1448_v56, %v925_v60  ;;  %v1052_v62 = vadd.f32 %v1485_v54, %v987_v53 }
 0x11e   :  { %v1449_v63 = vpop.f32.mrb[20].mxu0  ;;  %v1055_v0 = vadd.f32 %v1488_v61, %v990_v59 }
 0x11f   :  { %v1450_v1 = vpop.f32.mrb[21].mxu0  ;;  %v1489_v46 = vpop.f32.mrb[20].mxu1 }
 0x120   :  { %v1451_v2 = vadd.f32 %v1450_v1, %v1449_v63  ;;  %v1452_v3 = vpop.f32.mrb[22].mxu0  ;;  %v1490_v4 = vpop.f32.mrb[21].mxu1 }
 0x121   :  { %v1453_v5 = vpop.f32.mrb[23].mxu0  ;;  %v1491_v7 = vadd.f32 %v1490_v4, %v1489_v46  ;;  %v1492_v8 = vpop.f32.mrb[22].mxu1 }
 0x122   :  { %v995_v6 = vadd.f32 %v1451_v2, %v930_v10  ;;  %v1454_v9 = vadd.f32 %v1453_v5, %v1452_v3  ;;  %v1493_v58 = vpop.f32.mrb[23].mxu1 }
 0x123   :  { %v1494_v13 = vadd.f32 %v1493_v58, %v1492_v8 }
 0x124   :  { %v998_v11 = vadd.f32 %v1454_v9, %v933_v12  ;;  %v1060_v14 = vadd.f32 %v1491_v7, %v995_v6 }
 0x126   :  { %v1455_v15 = vpop.f32.mrb[24].mxu0  ;;  %v1063_v60 = vadd.f32 %v1494_v13, %v998_v11 }
 0x127   :  { %v1456_v16 = vpop.f32.mrb[25].mxu0  ;;  %v1495_v17 = vpop.f32.mrb[24].mxu1 }
 0x128   :  { %v1457_v18 = vadd.f32 %v1456_v16, %v1455_v15  ;;  %v1458_v19 = vpop.f32.mrb[26].mxu0  ;;  %v1496_v20 = vpop.f32.mrb[25].mxu1 }
 0x129   :  { %v1459_v21 = vpop.f32.mrb[27].mxu0  ;;  %v1497_v23 = vadd.f32 %v1496_v20, %v1495_v17  ;;  %v1498_v24 = vpop.f32.mrb[26].mxu1 }
 0x12a   :  { %v1003_v22 = vadd.f32 %v1457_v18, %v938_v26  ;;  %v1460_v25 = vadd.f32 %v1459_v21, %v1458_v19  ;;  %v1499_v10 = vpop.f32.mrb[27].mxu1 }
 0x12b   :  { %v1500_v29 = vadd.f32 %v1499_v10, %v1498_v24 }
 0x12c   :  { %v1006_v27 = vadd.f32 %v1460_v25, %v941_v28  ;;  %v1068_v30 = vadd.f32 %v1497_v23, %v1003_v22 }
 0x12e   :  { %v1461_v31 = vpop.f32.mrb[28].mxu0  ;;  %v1071_v12 = vadd.f32 %v1500_v29, %v1006_v27 }
 0x12f   :  { %v1462_v32 = vpop.f32.mrb[29].mxu0  ;;  %v1501_v33 = vpop.f32.mrb[28].mxu1 }
 0x130   :  { %v1463_v34 = vadd.f32 %v1462_v32, %v1461_v31  ;;  %v1464_v35 = vpop.f32.mrb[30].mxu0  ;;  %v1502_v36 = vpop.f32.mrb[29].mxu1 }
 0x131   :  { %v1465_v37 = vpop.f32.mrb[31].mxu0  ;;  %v1503_v39 = vadd.f32 %v1502_v36, %v1501_v33  ;;  %v1504_v40 = vpop.f32.mrb[30].mxu1 }
 0x132   :  { %v1011_v38 = vadd.f32 %v1463_v34, %v946_v42  ;;  %v1466_v41 = vadd.f32 %v1465_v37, %v1464_v35  ;;  %v1505_v26 = vpop.f32.mrb[31].mxu1 }
 0x133   :  { %v1506_v45 = vadd.f32 %v1505_v26, %v1504_v40 }
 0x134   :  { %v1014_v43 = vadd.f32 %v1466_v41, %v949_v44  ;;  %v1076_v47 = vadd.f32 %v1503_v39, %v1011_v38 }
 0x136   :  { %v1079_v48 = vadd.f32 %v1506_v45, %v1014_v43 }
 0x137   :  { %v1537_v28 = vpop.f32.mrb[32].mxu0 }
 0x138   :  { %v1125_v49 = vadd.f32 %v1537_v28, %v1060_v14  ;;  %v1541_v50 = vpop.f32.mrb[32].mxu1  ;;  %v1116_v51 = vpop.f32.mrb[33].mxu0 }
 0x139   :  { %v1141_v52 = vadd.f32 %v1541_v50, %v1076_v47  ;;  %v1117_v53 = vadd.f32 %v1116_v51, %v1052_v62  ;;  %v1132_v54 = vpop.f32.mrb[33].mxu1  ;;  %v1538_v55 = vpop.f32.mrb[34].mxu0 }
 0x13a   :  { %v1133_v56 = vadd.f32 %v1132_v54, %v1068_v30  ;;  %v1128_v57 = vadd.f32 %v1538_v55, %v1063_v60  ;;  %v1542_v59 = vpop.f32.mrb[34].mxu1  ;;  %v1119_v42 = vpop.f32.mrb[35].mxu0  ;;  %v1149_v46 = vmax.f32 %v1125_v49, 0.0 }
 0x13b   :  { %v1144_v61 = vadd.f32 %v1542_v59, %v1079_v48  ;;  %v1120_v63 = vadd.f32 %v1119_v42, %v1055_v0  ;;  %v1135_v1 = vpop.f32.mrb[35].mxu1  ;;  %v1153_v3 = vmax.f32 %v1141_v52, 0.0  ;;  %v1147_v4 = vmax.f32 %v1117_v53, 0.0 }
 0x13c   :  { %v1150_v44 = vmax.f32 %v1128_v57, 0.0  ;;  %v1136_v2 = vadd.f32 %v1135_v1, %v1071_v12  ;;  %v1151_v7 = vmax.f32 %v1133_v56, 0.0 }
 0x13d   :  { %v1154_v5 = vmax.f32 %v1144_v61, 0.0  ;;  %v1148_v6 = vmax.f32 %v1120_v63, 0.0 }
 0x13e   :  { %v1332_v8 = vpack.c.bf16 %v1150_v44, %v1149_v46  ;;  %v1152_v9 = vmax.f32 %v1136_v2, 0.0 }
 0x13f   :  { %v1342_v62 = vpack.c.bf16 %v1154_v5, %v1153_v3  ;;  %v1327_v58 = vpack.c.bf16 %v1148_v6, %v1147_v4 }
 0x140   :  { %1344 = vst [vmem:[%s2045_s3 + $0x8] sm:$0xff] %v1332_v8   ;;  %v1337_v11 = vpack.c.bf16 %v1152_v9, %v1151_v7 }
 0x141   :  { %1346 = vst [vmem:[%s2045_s3 + $0x18] sm:$0xff] %v1342_v62   ;;  %1328 = vst [vmem:[%s2045_s3] sm:$0xff] %v1327_v58  }
 0x142   :  { %1345 = vst [vmem:[%s2045_s3 + $0x10] sm:$0xff] %v1337_v11  }

// kernel: resbase_forward.21
= control target key start
LH: loop header
LB: loop body
LE: loop exit
PB: predicated region body
PF: predicated region fallthrough
CT: control target
= control target key end

     0   :  { %s2111_s1 = inlined_call_operand.vmem [shape: bf16[1152,128], index: 1, kind: input, shape index: {}]   ;;  %s2112_s0 = inlined_call_operand.vmem [shape: bf16[64,1152], index: 0, kind: input, shape index: {}]   ;;  %s2113_s2 = inlined_call_operand.vmem [shape: f32[1,128], index: 2, kind: input, shape index: {}]   ;;  %s2114_s3 = inlined_call_operand.vmem [shape: bf16[64,128], index: 3, kind: input, shape index: {}]   ;;  %s2115_s4 = inlined_call_operand.vmem [shape: bf16[64,128], index: 4, kind: output, shape index: {}]  }
   0x1   :  { %v1605_v0 = vld [vmem:[%s2111_s1 + $0x40] sm:$0xff]   ;;  %v1609_v4 = vld [vmem:[%s2111_s1 + $0x48] sm:$0xff]   ;;  %v1613_v8 = vld [vmem:[%s2111_s1 + $0x50] sm:$0xff]  }
   0x2   :  { %v1606_v1 = vld [vmem:[%s2111_s1 + $0xc0] sm:$0xff]   ;;  %1393 = vmatprep.subr.bf16.mxu0 %v1605_v0  ;;  %v1610_v5 = vld [vmem:[%s2111_s1 + $0xc8] sm:$0xff]   ;;  %v1614_v9 = vld [vmem:[%s2111_s1 + $0xd0] sm:$0xff]  }
   0x3   :  { %v1607_v2 = vld [vmem:[%s2111_s1] sm:$0xff]   ;;  %1433 = vmatprep.subr.bf16.mxu1 %v1606_v1  ;;  %v1611_v6 = vld [vmem:[%s2111_s1 + $0x8] sm:$0xff]   ;;  %v1615_v10 = vld [vmem:[%s2111_s1 + $0x10] sm:$0xff]  }
   0x4   :  { %v1608_v3 = vld [vmem:[%s2111_s1 + $0x80] sm:$0xff]   ;;  %1394 = vmatpush3.bf16.msra.mxu0 %v1607_v2  ;;  %v1612_v7 = vld [vmem:[%s2111_s1 + $0x88] sm:$0xff]   ;;  %v1616_v11 = vld [vmem:[%s2111_s1 + $0x90] sm:$0xff]  }
   0x5   :  { %1434 = vmatpush3.bf16.msra.mxu1 %v1608_v3  ;;  %1395 = vmatprep.subr.bf16.mxu0 %v1609_v4  ;;  %v1617_v12 = vld [vmem:[%s2111_s1 + $0x58] sm:$0xff]   ;;  %v1621_v16 = vld [vmem:[%s2111_s1 + $0x60] sm:$0xff]   ;;  %v1625_v20 = vld [vmem:[%s2111_s1 + $0x68] sm:$0xff]  }
   0x6   :  { %1435 = vmatprep.subr.bf16.mxu1 %v1610_v5  ;;  %v1618_v13 = vld [vmem:[%s2111_s1 + $0xd8] sm:$0xff]   ;;  %v1622_v17 = vld [vmem:[%s2111_s1 + $0xe0] sm:$0xff]   ;;  %v1626_v21 = vld [vmem:[%s2111_s1 + $0xe8] sm:$0xff]  }
   0x7   :  { %v1619_v14 = vld [vmem:[%s2111_s1 + $0x18] sm:$0xff]   ;;  %v1623_v18 = vld [vmem:[%s2111_s1 + $0x20] sm:$0xff]   ;;  %v1627_v22 = vld [vmem:[%s2111_s1 + $0x28] sm:$0xff]  }
   0x8   :  { %1396 = vmatpush3.bf16.msra.mxu0 %v1611_v6  ;;  %v1620_v15 = vld [vmem:[%s2111_s1 + $0x98] sm:$0xff]   ;;  %v1624_v19 = vld [vmem:[%s2111_s1 + $0xa0] sm:$0xff]   ;;  %v1628_v23 = vld [vmem:[%s2111_s1 + $0xa8] sm:$0xff]  }
   0x9   :  { %1436 = vmatpush3.bf16.msra.mxu1 %v1612_v7  ;;  %1397 = vmatprep.subr.bf16.mxu0 %v1613_v8  ;;  %v1629_v24 = vld [vmem:[%s2111_s1 + $0x70] sm:$0xff]   ;;  %v1633_v28 = vld [vmem:[%s2111_s1 + $0x78] sm:$0xff]   ;;  %v1637_v32 = vld [vmem:[%s2112_s0] ss:$36 sps:$4 sm:$0xff]  }
   0xa   :  { %1437 = vmatprep.subr.bf16.mxu1 %v1614_v9  ;;  %v1630_v25 = vld [vmem:[%s2111_s1 + $0xf0] sm:$0xff]   ;;  %v1634_v29 = vld [vmem:[%s2111_s1 + $0xf8] sm:$0xff]   ;;  %v1639_v33 = vld [vmem:[%s2112_s0 + $0x4] ss:$36 sps:$4 sm:$0xff]  }
   0xb   :  { %v1631_v26 = vld [vmem:[%s2111_s1 + $0x30] sm:$0xff]   ;;  %v1635_v30 = vld [vmem:[%s2111_s1 + $0x38] sm:$0xff]   ;;  %v1640_v34 = vld [vmem:[%s2112_s0 + $0x8] ss:$36 sps:$4 sm:$0xff]   ;;  %857 = vmatprep.mubr.bf16.mxu0 %v1639_v33 }
   0xc   :  { %1398 = vmatpush3.bf16.msra.mxu0 %v1615_v10  ;;  %v1632_v27 = vld [vmem:[%s2111_s1 + $0xb0] sm:$0xff]   ;;  %v1636_v31 = vld [vmem:[%s2111_s1 + $0xb8] sm:$0xff]   ;;  %v1643_v36 = vld [vmem:[%s2111_s1 + $0x140] sm:$0xff]  }
   0xd   :  { %1438 = vmatpush3.bf16.msra.mxu1 %v1616_v11  ;;  %1399 = vmatprep.subr.bf16.mxu0 %v1617_v12  ;;  %v1642_v35 = vld [vmem:[%s2112_s0 + $0xc] ss:$36 sps:$4 sm:$0xff]   ;;  %v1644_v37 = vld [vmem:[%s2111_s1 + $0x1c0] sm:$0xff]   ;;  %v1653_v45 = vld [vmem:[%s2112_s0 + $0x54] ss:$36 sps:$4 sm:$0xff]  }
   0xe   :  { %1439 = vmatprep.subr.bf16.mxu1 %v1618_v13  ;;  %922 = vmatprep.mubr.bf16.mxu1 %v1642_v35  ;;  %v1645_v38 = vld [vmem:[%s2111_s1 + $0x100] sm:$0xff]   ;;  %v1647_v40 = vld [vmem:[%s2111_s1 + $0x148] sm:$0xff]   ;;  %v1656_v47 = vld [vmem:[%s2112_s0 + $0x50] ss:$36 sps:$4 sm:$0xff]  }
   0xf   :  { %v1646_v39 = vld [vmem:[%s2111_s1 + $0x180] sm:$0xff]   ;;  %v1648_v41 = vld [vmem:[%s2111_s1 + $0x1c8] sm:$0xff]   ;;  %v1657_v48 = vld [vmem:[%s2111_s1 + $0x150] sm:$0xff]  }
  0x10   :  { %1400 = vmatpush3.bf16.msra.mxu0 %v1619_v14  ;;  %v1649_v42 = vld [vmem:[%s2111_s1 + $0x108] sm:$0xff]   ;;  %v1658_v49 = vld [vmem:[%s2111_s1 + $0x1d0] sm:$0xff]   ;;  %v1661_v52 = vld [vmem:[%s2111_s1 + $0x158] sm:$0xff]  }
  0x11   :  { %1440 = vmatpush3.bf16.msra.mxu1 %v1620_v15  ;;  %1401 = vmatprep.subr.bf16.mxu0 %v1621_v16  ;;  %v1650_v43 = vld [vmem:[%s2111_s1 + $0x188] sm:$0xff]   ;;  %v1659_v50 = vld [vmem:[%s2111_s1 + $0x110] sm:$0xff]   ;;  %v1662_v53 = vld [vmem:[%s2111_s1 + $0x1d8] sm:$0xff]  }
  0x12   :  { %1441 = vmatprep.subr.bf16.mxu1 %v1622_v17  ;;  %v1651_v44 = vld [vmem:[%s2112_s0 + $0x4c] ss:$36 sps:$4 sm:$0xff]   ;;  %v1663_v54 = vld [vmem:[%s2111_s1 + $0x118] sm:$0xff]   ;;  %v1671_v60 = vld [vmem:[%s2111_s1 + $0x160] sm:$0xff]  }
  0x13   :  { %v1655_v46 = vld [vmem:[%s2112_s0 + $0x48] ss:$36 sps:$4 sm:$0xff]   ;;  %v1660_v51 = vld [vmem:[%s2111_s1 + $0x190] sm:$0xff]   ;;  %v1664_v55 = vld [vmem:[%s2111_s1 + $0x198] sm:$0xff]  }
  0x14   :  { %1402 = vmatpush3.bf16.msra.mxu0 %v1623_v18  ;;  %v1665_v56 = vld [vmem:[%s2112_s0 + $0x94] ss:$36 sps:$4 sm:$0xff]   ;;  %v1667_v57 = vld [vmem:[%s2112_s0 + $0x9c] ss:$36 sps:$4 sm:$0xff]   ;;  %v1675_v0 = vld [vmem:[%s2111_s1 + $0x168] sm:$0xff]  }
  0x15   :  { %1442 = vmatpush3.bf16.msra.mxu1 %v1624_v19  ;;  %1403 = vmatprep.subr.bf16.mxu0 %v1625_v20  ;;  %v1669_v58 = vld [vmem:[%s2112_s0 + $0x90] ss:$36 sps:$4 sm:$0xff]   ;;  %v1670_v59 = vld [vmem:[%s2112_s0 + $0x98] ss:$36 sps:$4 sm:$0xff]   ;;  %v1672_v61 = vld [vmem:[%s2111_s1 + $0x1e0] sm:$0xff]  }
  0x16   :  { %1443 = vmatprep.subr.bf16.mxu1 %v1626_v21  ;;  %v1673_v62 = vld [vmem:[%s2111_s1 + $0x120] sm:$0xff]   ;;  %v1676_v1 = vld [vmem:[%s2111_s1 + $0x1e8] sm:$0xff]   ;;  %v1683_v6 = vld [vmem:[%s2112_s0 + $0xd8] ss:$36 sps:$4 sm:$0xff]  }
  0x17   :  { %v1674_v63 = vld [vmem:[%s2111_s1 + $0x1a0] sm:$0xff]   ;;  %v1677_v2 = vld [vmem:[%s2111_s1 + $0x128] sm:$0xff]   ;;  %v1685_v8 = vld [vmem:[%s2111_s1 + $0x170] sm:$0xff]  }
  0x18   :  { %1404 = vmatpush3.bf16.msra.mxu0 %v1627_v22  ;;  %v1678_v3 = vld [vmem:[%s2111_s1 + $0x1a8] sm:$0xff]   ;;  %v1679_v4 = vld [vmem:[%s2112_s0 + $0xdc] ss:$36 sps:$4 sm:$0xff]   ;;  %v1686_v9 = vld [vmem:[%s2111_s1 + $0x1f0] sm:$0xff]  }
  0x19   :  { %1444 = vmatpush3.bf16.msra.mxu1 %v1628_v23  ;;  %1405 = vmatprep.subr.bf16.mxu0 %v1629_v24  ;;  %v1681_v5 = vld [vmem:[%s2112_s0 + $0xe4] ss:$36 sps:$4 sm:$0xff]   ;;  %v1687_v10 = vld [vmem:[%s2111_s1 + $0x130] sm:$0xff]   ;;  %v1689_v12 = vld [vmem:[%s2111_s1 + $0x178] sm:$0xff]  }
  0x1a   :  { %1445 = vmatprep.subr.bf16.mxu1 %v1630_v25  ;;  %v1684_v7 = vld [vmem:[%s2112_s0 + $0xe0] ss:$36 sps:$4 sm:$0xff]   ;;  %v1688_v11 = vld [vmem:[%s2111_s1 + $0x1b0] sm:$0xff]   ;;  %v1690_v13 = vld [vmem:[%s2111_s1 + $0x1f8] sm:$0xff]  }
  0x1b   :  { %v1691_v14 = vld [vmem:[%s2111_s1 + $0x138] sm:$0xff]   ;;  %v1693_v16 = vld [vmem:[%s2112_s0 + $0x10] ss:$36 sps:$4 sm:$0xff]   ;;  %v1699_v20 = vld [vmem:[%s2111_s1 + $0x200] sm:$0xff]  }
  0x1c   :  { %1406 = vmatpush3.bf16.msra.mxu0 %v1631_v26  ;;  %v1692_v15 = vld [vmem:[%s2111_s1 + $0x1b8] sm:$0xff]   ;;  %v1700_v21 = vld [vmem:[%s2111_s1 + $0x208] sm:$0xff]   ;;  %v1706_v25 = vld [vmem:[%s2112_s0 + $0x60] ss:$36 sps:$4 sm:$0xff]  }
  0x1d   :  { %1446 = vmatpush3.bf16.msra.mxu1 %v1632_v27  ;;  %1407 = vmatprep.subr.bf16.mxu0 %v1633_v28  ;;  %v1695_v17 = vld [vmem:[%s2112_s0 + $0x14] ss:$36 sps:$4 sm:$0xff]   ;;  %v1698_v19 = vld [vmem:[%s2112_s0 + $0x1c] ss:$36 sps:$4 sm:$0xff]   ;;  %v1703_v23 = vld [vmem:[%s2112_s0 + $0x64] ss:$36 sps:$4 sm:$0xff]  }
  0x1e   :  { %1447 = vmatprep.subr.bf16.mxu1 %v1634_v29  ;;  %v1696_v18 = vld [vmem:[%s2112_s0 + $0x18] ss:$36 sps:$4 sm:$0xff]   ;;  %v1707_v26 = vld [vmem:[%s2111_s1 + $0x210] sm:$0xff]   ;;  %v1709_v27 = vld [vmem:[%s2112_s0 + $0xa4] ss:$36 sps:$4 sm:$0xff]  }
  0x1f   :  { %v1701_v22 = vld [vmem:[%s2112_s0 + $0x5c] ss:$36 sps:$4 sm:$0xff]   ;;  %v1711_v28 = vld [vmem:[%s2112_s0 + $0xac] ss:$36 sps:$4 sm:$0xff]  }
  0x20   :  { %1408 = vmatpush3.bf16.msra.mxu0 %v1635_v30  ;;  %v1705_v24 = vld [vmem:[%s2112_s0 + $0x58] ss:$36 sps:$4 sm:$0xff]   ;;  %v1713_v30 = vld [vmem:[%s2112_s0 + $0xa0] ss:$36 sps:$4 sm:$0xff]   ;;  %v1717_v33 = vld [vmem:[%s2112_s0 + $0xec] ss:$36 sps:$4 sm:$0xff]  }
  0x21   :  { %1448 = vmatpush3.bf16.msra.mxu1 %v1636_v31  ;;  %1473 = vmatprep.subr.bf16.mxu0 %v1643_v36  ;;  %v1708_v29 = vld [vmem:[%s2111_s1 + $0x218] sm:$0xff]   ;;  %v1714_v31 = vld [vmem:[%s2112_s0 + $0xa8] ss:$36 sps:$4 sm:$0xff]  }
  0x22   :  { %1513 = vmatprep.subr.bf16.mxu1 %v1644_v37  ;;  %v1716_v35 = vld [vmem:[%s2111_s1 + $0x228] sm:$0xff]   ;;  %v1723_v37 = vld [vmem:[%s2111_s1 + $0x230] sm:$0xff]  }
  0x23   :  { %858 = vmatmul.mubr.bf16.vlgmr.msra.gmra.mrb[0].mxu0 %v1637_v32  ;;  %v1715_v32 = vld [vmem:[%s2111_s1 + $0x220] sm:$0xff]   ;;  %v1721_v36 = vld [vmem:[%s2112_s0 + $0xe8] ss:$36 sps:$4 sm:$0xff]  }
  0x24   :  { %923 = vmatmul.mubr.bf16.vlgmr.msra.gmra.mrb[0].mxu1 %v1640_v34  ;;  %1474 = vmatpush3.bf16.msra.mxu0 %v1645_v38  ;;  %v1719_v34 = vld [vmem:[%s2112_s0 + $0xf4] ss:$36 sps:$4 sm:$0xff]  }
  0x25   :  { %1514 = vmatpush3.bf16.msra.mxu1 %v1646_v39  ;;  %1475 = vmatprep.subr.bf16.mxu0 %v1647_v40  ;;  %v1722_v38 = vld [vmem:[%s2112_s0 + $0xf0] ss:$36 sps:$4 sm:$0xff]   ;;  %v1725_v39 = vld [vmem:[%s2112_s0 + $0x20] ss:$36 sps:$4 sm:$0xff]  }
  0x26   :  { %1515 = vmatprep.subr.bf16.mxu1 %v1648_v41  ;;  %865 = vmatprep.mubr.bf16.mxu0 %v1651_v44  ;;  %v1726_v40 = vld [vmem:[%s2112_s0 + $0xb0] ss:$36 sps:$4 sm:$0xff]   ;;  %v1724_v41 = vld [vmem:[%s2111_s1 + $0x238] sm:$0xff]  }
  0x27   :  { %930 = vmatprep.mubr.bf16.mxu1 %v1653_v45 }
  0x28   :  { %1476 = vmatpush3.bf16.msra.mxu0 %v1649_v42  ;;  %v1727_v42 = vld [vmem:[%s2112_s0 + $0x68] ss:$36 sps:$4 sm:$0xff]  }
  0x29   :  { %1516 = vmatpush3.bf16.msra.mxu1 %v1650_v43  ;;  %1477 = vmatprep.subr.bf16.mxu0 %v1657_v48  ;;  %v1728_v43 = vld [vmem:[%s2112_s0 + $0xf8] ss:$36 sps:$4 sm:$0xff]  }
  0x2a   :  { %1517 = vmatprep.subr.bf16.mxu1 %v1658_v49 }
  0x2b   :  { %866 = vmatmul.mubr.bf16.gmra.mrb[4].mxu0 %v1655_v46  ;;  %v1226_v46 = vld [vmem:[%s2113_s2] ss:$0 sm:$0xff] }
  0x2c   :  { %931 = vmatmul.mubr.bf16.gmra.mrb[4].mxu1 %v1656_v47  ;;  %1478 = vmatpush3.bf16.msra.mxu0 %v1659_v50 }
  0x2d   :  { %1518 = vmatpush3.bf16.msra.mxu1 %v1660_v51  ;;  %1479 = vmatprep.subr.bf16.mxu0 %v1661_v52 }
  0x2e   :  { %1519 = vmatprep.subr.bf16.mxu1 %v1662_v53  ;;  %873 = vmatprep.mubr.bf16.mxu0 %v1665_v56 }
  0x2f   :  { %938 = vmatprep.mubr.bf16.mxu1 %v1667_v57 }
  0x30   :  { %1480 = vmatpush3.bf16.msra.mxu0 %v1663_v54 }
  0x31   :  { %1520 = vmatpush3.bf16.msra.mxu1 %v1664_v55  ;;  %1481 = vmatprep.subr.bf16.mxu0 %v1671_v60 }
  0x32   :  { %1521 = vmatprep.subr.bf16.mxu1 %v1672_v61 }
  0x33   :  { %874 = vmatmul.mubr.bf16.gmra.mrb[8].mxu0 %v1669_v58 }
  0x34   :  { %939 = vmatmul.mubr.bf16.gmra.mrb[8].mxu1 %v1670_v59  ;;  %1482 = vmatpush3.bf16.msra.mxu0 %v1673_v62 }
  0x35   :  { %1522 = vmatpush3.bf16.msra.mxu1 %v1674_v63  ;;  %1483 = vmatprep.subr.bf16.mxu0 %v1675_v0 }
  0x36   :  { %1523 = vmatprep.subr.bf16.mxu1 %v1676_v1  ;;  %881 = vmatprep.mubr.bf16.mxu0 %v1679_v4 }
  0x37   :  { %946 = vmatprep.mubr.bf16.mxu1 %v1681_v5 }
  0x38   :  { %1484 = vmatpush3.bf16.msra.mxu0 %v1677_v2 }
  0x39   :  { %1524 = vmatpush3.bf16.msra.mxu1 %v1678_v3  ;;  %1485 = vmatprep.subr.bf16.mxu0 %v1685_v8 }
  0x3a   :  { %1525 = vmatprep.subr.bf16.mxu1 %v1686_v9 }
  0x3b   :  { %882 = vmatmul.mubr.bf16.gmra.mrb[12].mxu0 %v1683_v6 }
  0x3c   :  { %947 = vmatmul.mubr.bf16.gmra.mrb[12].mxu1 %v1684_v7  ;;  %1486 = vmatpush3.bf16.msra.mxu0 %v1687_v10 }
  0x3d   :  { %1526 = vmatpush3.bf16.msra.mxu1 %v1688_v11  ;;  %1487 = vmatprep.subr.bf16.mxu0 %v1689_v12 }
  0x3e   :  { %1527 = vmatprep.subr.bf16.mxu1 %v1690_v13  ;;  %987 = vmatprep.mubr.bf16.mxu0 %v1695_v17 }
  0x3f   :  { %1052 = vmatprep.mubr.bf16.mxu1 %v1698_v19 }
  0x40   :  { %1488 = vmatpush3.bf16.msra.mxu0 %v1691_v14 }
  0x41   :  { %1528 = vmatpush3.bf16.msra.mxu1 %v1692_v15  ;;  %1565 = vmatprep.subr.bf16.mxu0 %v1699_v20 }
  0x42   :  { %1589 = vmatprep.subr.bf16.mxu1 %v1699_v20 }
  0x43   :  { %988 = vmatmul.mubr.bf16.vlgmr.msra.gmra.mrb[16].mxu0 %v1693_v16 }
  0x44   :  { %1053 = vmatmul.mubr.bf16.vlgmr.msra.gmra.mrb[16].mxu1 %v1696_v18  ;;  %1566 = vmatpush3.bf16.msra.mxu0 %v1699_v20 }
  0x45   :  { %1597 = vmatpush3.bf16.msra.mxu1 %v1699_v20  ;;  %1567 = vmatprep.subr.bf16.mxu0 %v1700_v21 }
  0x46   :  { %1590 = vmatprep.subr.bf16.mxu1 %v1700_v21  ;;  %995 = vmatprep.mubr.bf16.mxu0 %v1701_v22 }
  0x47   :  { %1060 = vmatprep.mubr.bf16.mxu1 %v1703_v23 }
  0x48   :  { %1568 = vmatpush3.bf16.msra.mxu0 %v1700_v21 }
  0x49   :  { %1598 = vmatpush3.bf16.msra.mxu1 %v1700_v21  ;;  %1569 = vmatprep.subr.bf16.mxu0 %v1707_v26 }
  0x4a   :  { %1591 = vmatprep.subr.bf16.mxu1 %v1707_v26 }
  0x4b   :  { %996 = vmatmul.mubr.bf16.gmra.mrb[20].mxu0 %v1705_v24 }
  0x4c   :  { %1061 = vmatmul.mubr.bf16.gmra.mrb[20].mxu1 %v1706_v25  ;;  %1003 = vmatprep.mubr.bf16.mxu0 %v1709_v27 }
  0x4d   :  { %1570 = vmatpush3.bf16.msra.mxu0 %v1707_v26  ;;  %1068 = vmatprep.mubr.bf16.mxu1 %v1711_v28 }
  0x4e   :  { %1599 = vmatpush3.bf16.msra.mxu1 %v1707_v26  ;;  %1571 = vmatprep.subr.bf16.mxu0 %v1708_v29 }
  0x4f   :  { %1592 = vmatprep.subr.bf16.mxu1 %v1708_v29 }
  0x51   :  { %1572 = vmatpush3.bf16.msra.mxu0 %v1708_v29 }
  0x52   :  { %1600 = vmatpush3.bf16.msra.mxu1 %v1708_v29  ;;  %1573 = vmatprep.subr.bf16.mxu0 %v1715_v32 }
  0x53   :  { %1004 = vmatmul.mubr.bf16.gmra.mrb[24].mxu0 %v1713_v30  ;;  %1593 = vmatprep.subr.bf16.mxu1 %v1715_v32 }
  0x54   :  { %1069 = vmatmul.mubr.bf16.gmra.mrb[24].mxu1 %v1714_v31  ;;  %1011 = vmatprep.mubr.bf16.mxu0 %v1717_v33 }
  0x55   :  { %1574 = vmatpush3.bf16.msra.mxu0 %v1715_v32  ;;  %1076 = vmatprep.mubr.bf16.mxu1 %v1719_v34 }
  0x56   :  { %1601 = vmatpush3.bf16.msra.mxu1 %v1715_v32  ;;  %1575 = vmatprep.subr.bf16.mxu0 %v1716_v35 }
  0x57   :  { %1594 = vmatprep.subr.bf16.mxu1 %v1716_v35 }
  0x59   :  { %1576 = vmatpush3.bf16.msra.mxu0 %v1716_v35 }
  0x5a   :  { %1602 = vmatpush3.bf16.msra.mxu1 %v1716_v35  ;;  %1577 = vmatprep.subr.bf16.mxu0 %v1723_v37 }
  0x5b   :  { %1012 = vmatmul.mubr.bf16.gmra.mrb[28].mxu0 %v1721_v36  ;;  %1595 = vmatprep.subr.bf16.mxu1 %v1723_v37 }
  0x5c   :  { %1077 = vmatmul.mubr.bf16.gmra.mrb[28].mxu1 %v1722_v38  ;;  %1581 = vmatprep.mubr.bf16.mxu0 %v1725_v39 }
  0x5d   :  { %1578 = vmatpush3.bf16.msra.mxu0 %v1723_v37  ;;  %1585 = vmatprep.mubr.bf16.mxu1 %v1726_v40 }
  0x5e   :  { %1603 = vmatpush3.bf16.msra.mxu1 %v1723_v37  ;;  %1579 = vmatprep.subr.bf16.mxu0 %v1724_v41 }
  0x5f   :  { %1596 = vmatprep.subr.bf16.mxu1 %v1724_v41 }
  0x61   :  { %1580 = vmatpush3.bf16.msra.mxu0 %v1724_v41 }
  0x62   :  { %1604 = vmatpush3.bf16.msra.mxu1 %v1724_v41 }
  0x64   :  { %1582 = vmatmul.mubr.bf16.vlgmr.msra.gmra.mrb[32].mxu0 %v1727_v42 }
  0x65   :  { %1586 = vmatmul.mubr.bf16.vlgmr.msra.gmra.mrb[32].mxu1 %v1728_v43 }
  0xf6   :  { %v1409_v44 = vpop.f32.mrb[0].mxu0 }
  0xf7   :  { %v1449_v45 = vpop.f32.mrb[0].mxu1  ;;  %v1410_v47 = vpop.f32.mrb[1].mxu0 }
  0xf8   :  { %v1411_v48 = vadd.f32 %v1410_v47, %v1409_v44  ;;  %v1450_v49 = vpop.f32.mrb[1].mxu1  ;;  %v1412_v50 = vpop.f32.mrb[2].mxu0 }
  0xf9   :  { %v1451_v51 = vadd.f32 %v1450_v49, %v1449_v45  ;;  %v1452_v52 = vpop.f32.mrb[2].mxu1  ;;  %v1413_v53 = vpop.f32.mrb[3].mxu0 }
  0xfa   :  { %v860_v54 = vadd.f32 %v1411_v48, %v1226_v46  ;;  %v1414_v55 = vadd.f32 %v1413_v53, %v1412_v50  ;;  %v1453_v56 = vpop.f32.mrb[3].mxu1 }
  0xfb   :  { %v1454_v57 = vadd.f32 %v1453_v56, %v1452_v52 }
  0xfc   :  { %v925_v58 = vadd.f32 %v1451_v51, %v860_v54  ;;  %v863_v59 = vadd.f32 %v1414_v55, %v1226_v46 }
  0xfe   :  { %v928_v60 = vadd.f32 %v1454_v57, %v863_v59  ;;  %v1415_v61 = vpop.f32.mrb[4].mxu0 }
  0xff   :  { %v1455_v62 = vpop.f32.mrb[4].mxu1  ;;  %v1416_v63 = vpop.f32.mrb[5].mxu0 }
 0x100   :  { %v1417_v0 = vadd.f32 %v1416_v63, %v1415_v61  ;;  %v1456_v1 = vpop.f32.mrb[5].mxu1  ;;  %v1418_v2 = vpop.f32.mrb[6].mxu0 }
 0x101   :  { %v1457_v3 = vadd.f32 %v1456_v1, %v1455_v62  ;;  %v1458_v4 = vpop.f32.mrb[6].mxu1  ;;  %v1419_v5 = vpop.f32.mrb[7].mxu0 }
 0x102   :  { %v868_v6 = vadd.f32 %v1417_v0, %v1226_v46  ;;  %v1420_v7 = vadd.f32 %v1419_v5, %v1418_v2  ;;  %v1459_v8 = vpop.f32.mrb[7].mxu1 }
 0x103   :  { %v1460_v9 = vadd.f32 %v1459_v8, %v1458_v4 }
 0x104   :  { %v933_v10 = vadd.f32 %v1457_v3, %v868_v6  ;;  %v871_v11 = vadd.f32 %v1420_v7, %v1226_v46 }
 0x106   :  { %v936_v12 = vadd.f32 %v1460_v9, %v871_v11  ;;  %v1421_v13 = vpop.f32.mrb[8].mxu0 }
 0x107   :  { %v1461_v14 = vpop.f32.mrb[8].mxu1  ;;  %v1422_v15 = vpop.f32.mrb[9].mxu0 }
 0x108   :  { %v1423_v16 = vadd.f32 %v1422_v15, %v1421_v13  ;;  %v1462_v17 = vpop.f32.mrb[9].mxu1  ;;  %v1424_v18 = vpop.f32.mrb[10].mxu0 }
 0x109   :  { %v1463_v19 = vadd.f32 %v1462_v17, %v1461_v14  ;;  %v1464_v20 = vpop.f32.mrb[10].mxu1  ;;  %v1425_v21 = vpop.f32.mrb[11].mxu0 }
 0x10a   :  { %v876_v22 = vadd.f32 %v1423_v16, %v1226_v46  ;;  %v1426_v23 = vadd.f32 %v1425_v21, %v1424_v18  ;;  %v1465_v24 = vpop.f32.mrb[11].mxu1 }
 0x10b   :  { %v1466_v25 = vadd.f32 %v1465_v24, %v1464_v20 }
 0x10c   :  { %v941_v26 = vadd.f32 %v1463_v19, %v876_v22  ;;  %v879_v27 = vadd.f32 %v1426_v23, %v1226_v46 }
 0x10e   :  { %v944_v28 = vadd.f32 %v1466_v25, %v879_v27  ;;  %v1427_v29 = vpop.f32.mrb[12].mxu0 }
 0x10f   :  { %v1467_v30 = vpop.f32.mrb[12].mxu1  ;;  %v1428_v31 = vpop.f32.mrb[13].mxu0 }
 0x110   :  { %v1468_v32 = vpop.f32.mrb[13].mxu1  ;;  %v1429_v33 = vadd.f32 %v1428_v31, %v1427_v29  ;;  %v1430_v35 = vpop.f32.mrb[14].mxu0 }
 0x111   :  { %v1469_v34 = vadd.f32 %v1468_v32, %v1467_v30  ;;  %v1470_v36 = vpop.f32.mrb[14].mxu1  ;;  %v1431_v37 = vpop.f32.mrb[15].mxu0 }
 0x112   :  { %v1471_v38 = vpop.f32.mrb[15].mxu1  ;;  %v884_v39 = vadd.f32 %v1429_v33, %v1226_v46  ;;  %v1432_v40 = vadd.f32 %v1431_v37, %v1430_v35 }
 0x113   :  { %v1472_v41 = vadd.f32 %v1471_v38, %v1470_v36 }
 0x114   :  { %v949_v42 = vadd.f32 %v1469_v34, %v884_v39  ;;  %v887_v43 = vadd.f32 %v1432_v40, %v1226_v46 }
 0x116   :  { %v952_v44 = vadd.f32 %v1472_v41, %v887_v43  ;;  %v1489_v45 = vpop.f32.mrb[16].mxu0 }
 0x117   :  { %v1490_v47 = vpop.f32.mrb[17].mxu0  ;;  %v1529_v48 = vpop.f32.mrb[16].mxu1 }
 0x118   :  { %v1491_v49 = vadd.f32 %v1490_v47, %v1489_v45  ;;  %v1492_v50 = vpop.f32.mrb[18].mxu0  ;;  %v1530_v51 = vpop.f32.mrb[17].mxu1 }
 0x119   :  { %v1493_v52 = vpop.f32.mrb[19].mxu0  ;;  %v1531_v54 = vadd.f32 %v1530_v51, %v1529_v48  ;;  %v1532_v55 = vpop.f32.mrb[18].mxu1  ;;  %v1389_v48 = vld [vmem:[%s2114_s3 + $0x18] sm:$0xff]  }
 0x11a   :  { %v990_v53 = vadd.f32 %v1491_v49, %v925_v58  ;;  %v1494_v56 = vadd.f32 %v1493_v52, %v1492_v50  ;;  %v1533_v57 = vpop.f32.mrb[19].mxu1  ;;  %v1352_v49 = vld [vmem:[%s2114_s3] sm:$0xff]   ;;  %v1365_v52 = vunpack.c.l.bf16 %v1389_v48 }
 0x11b   :  { %v1534_v61 = vadd.f32 %v1533_v57, %v1532_v55 }
 0x11c   :  { %v993_v59 = vadd.f32 %v1494_v56, %v928_v60  ;;  %v2081_v62 = vadd.f32 %v1531_v54, %v990_v53  ;;  %v1353_v53 = vunpack.c.l.bf16 %v1352_v49 }
 0x11e   :  { %v1495_v63 = vpop.f32.mrb[20].mxu0  ;;  %v2083_v0 = vadd.f32 %v1534_v61, %v993_v59 }
 0x11f   :  { %v1496_v46 = vpop.f32.mrb[21].mxu0  ;;  %v1535_v1 = vpop.f32.mrb[20].mxu1 }
 0x120   :  { %v1497_v2 = vadd.f32 %v1496_v46, %v1495_v63  ;;  %v1498_v3 = vpop.f32.mrb[22].mxu0  ;;  %v1536_v4 = vpop.f32.mrb[21].mxu1 }
 0x121   :  { %v1499_v5 = vpop.f32.mrb[23].mxu0  ;;  %v1537_v7 = vadd.f32 %v1536_v4, %v1535_v1  ;;  %v1538_v58 = vpop.f32.mrb[22].mxu1 }
 0x122   :  { %v998_v6 = vadd.f32 %v1497_v2, %v933_v10  ;;  %v1500_v8 = vadd.f32 %v1499_v5, %v1498_v3  ;;  %v1539_v9 = vpop.f32.mrb[23].mxu1  ;;  %v1366_v2 = vunpack.c.h.bf16 %v1389_v48  ;;  %v1354_v3 = vunpack.c.h.bf16 %v1352_v49 }
 0x123   :  { %v1540_v13 = vadd.f32 %v1539_v9, %v1538_v58 }
 0x124   :  { %v1001_v11 = vadd.f32 %v1500_v8, %v936_v12  ;;  %v1063_v60 = vadd.f32 %v1537_v7, %v998_v6 }
 0x126   :  { %v1501_v14 = vpop.f32.mrb[24].mxu0  ;;  %v1066_v15 = vadd.f32 %v1540_v13, %v1001_v11 }
 0x127   :  { %v1502_v16 = vpop.f32.mrb[25].mxu0  ;;  %v1541_v17 = vpop.f32.mrb[24].mxu1 }
 0x128   :  { %v1503_v18 = vadd.f32 %v1502_v16, %v1501_v14  ;;  %v1504_v19 = vpop.f32.mrb[26].mxu0  ;;  %v1542_v20 = vpop.f32.mrb[25].mxu1 }
 0x129   :  { %v1505_v21 = vpop.f32.mrb[27].mxu0  ;;  %v1543_v23 = vadd.f32 %v1542_v20, %v1541_v17  ;;  %v1544_v24 = vpop.f32.mrb[26].mxu1 }
 0x12a   :  { %v1006_v22 = vadd.f32 %v1503_v18, %v941_v26  ;;  %v1506_v25 = vadd.f32 %v1505_v21, %v1504_v19  ;;  %v1545_v10 = vpop.f32.mrb[27].mxu1 }
 0x12b   :  { %v1546_v29 = vadd.f32 %v1545_v10, %v1544_v24 }
 0x12c   :  { %v1009_v27 = vadd.f32 %v1506_v25, %v944_v28  ;;  %v1071_v30 = vadd.f32 %v1543_v23, %v1006_v22  ;;  %v1387_v28 = vld [vmem:[%s2114_s3 + $0x8] sm:$0xff]  }
 0x12d   :  { %v1358_v59 = vunpack.c.h.bf16 %v1387_v28 }
 0x12e   :  { %v1507_v31 = vpop.f32.mrb[28].mxu0  ;;  %v1074_v12 = vadd.f32 %v1546_v29, %v1009_v27 }
 0x12f   :  { %v1508_v32 = vpop.f32.mrb[29].mxu0  ;;  %v1547_v33 = vpop.f32.mrb[28].mxu1 }
 0x130   :  { %v1509_v34 = vadd.f32 %v1508_v32, %v1507_v31  ;;  %v1510_v35 = vpop.f32.mrb[30].mxu0  ;;  %v1548_v36 = vpop.f32.mrb[29].mxu1 }
 0x131   :  { %v1511_v37 = vpop.f32.mrb[31].mxu0  ;;  %v1549_v39 = vadd.f32 %v1548_v36, %v1547_v33  ;;  %v1550_v40 = vpop.f32.mrb[30].mxu1 }
 0x132   :  { %v1014_v38 = vadd.f32 %v1509_v34, %v949_v42  ;;  %v1512_v41 = vadd.f32 %v1511_v37, %v1510_v35  ;;  %v1551_v26 = vpop.f32.mrb[31].mxu1  ;;  %v1388_v42 = vld [vmem:[%s2114_s3 + $0x10] sm:$0xff]  }
 0x133   :  { %v1552_v45 = vadd.f32 %v1551_v26, %v1550_v40  ;;  %v1361_v57 = vunpack.c.l.bf16 %v1388_v42  ;;  %v1362_v8 = vunpack.c.h.bf16 %v1388_v42 }
 0x134   :  { %v1017_v43 = vadd.f32 %v1512_v41, %v952_v44  ;;  %v1079_v47 = vadd.f32 %v1549_v39, %v1014_v38  ;;  %v1357_v44 = vunpack.c.l.bf16 %v1387_v28 }
 0x136   :  { %v1082_v50 = vadd.f32 %v1552_v45, %v1017_v43 }
 0x137   :  { %v1583_v51 = vpop.f32.mrb[32].mxu0 }
 0x138   :  { %v1128_v54 = vadd.f32 %v1583_v51, %v1063_v60  ;;  %v1587_v55 = vpop.f32.mrb[32].mxu1  ;;  %v1119_v56 = vpop.f32.mrb[33].mxu0 }
 0x139   :  { %v1144_v61 = vadd.f32 %v1587_v55, %v1079_v47  ;;  %v1120_v63 = vadd.f32 %v1119_v56, %v2081_v62  ;;  %v1135_v46 = vpop.f32.mrb[33].mxu1  ;;  %v1584_v1 = vpop.f32.mrb[34].mxu0 }
 0x13a   :  { %v1168_v4 = vadd.f32 %v1357_v44, %v1128_v54  ;;  %v1136_v5 = vadd.f32 %v1135_v46, %v1071_v30  ;;  %v1131_v6 = vadd.f32 %v1584_v1, %v1066_v15  ;;  %v1588_v7 = vpop.f32.mrb[34].mxu1  ;;  %v1122_v58 = vpop.f32.mrb[35].mxu0 }
 0x13b   :  { %v1172_v9 = vadd.f32 %v1365_v52, %v1144_v61  ;;  %v1166_v11 = vadd.f32 %v1353_v53, %v1120_v63  ;;  %v1147_v13 = vadd.f32 %v1588_v7, %v1082_v50  ;;  %v1123_v60 = vadd.f32 %v1122_v58, %v2083_v0  ;;  %v1138_v14 = vpop.f32.mrb[35].mxu1 }
 0x13c   :  { %v1170_v16 = vadd.f32 %v1361_v57, %v1136_v5  ;;  %v1169_v17 = vadd.f32 %v1358_v59, %v1131_v6  ;;  %v1139_v18 = vadd.f32 %v1138_v14, %v1074_v12  ;;  %v1176_v20 = vmax.f32 %v1168_v4, 0.0 }
 0x13d   :  { %v1173_v62 = vadd.f32 %v1366_v2, %v1147_v13  ;;  %v1167_v19 = vadd.f32 %v1354_v3, %v1123_v60  ;;  %v1180_v23 = vmax.f32 %v1172_v9, 0.0  ;;  %v1174_v24 = vmax.f32 %v1166_v11, 0.0 }
 0x13e   :  { %v1177_v21 = vmax.f32 %v1169_v17, 0.0  ;;  %v1171_v22 = vadd.f32 %v1362_v8, %v1139_v18  ;;  %v1178_v10 = vmax.f32 %v1170_v16, 0.0 }
 0x13f   :  { %v1181_v15 = vmax.f32 %v1173_v62, 0.0  ;;  %v1175_v25 = vmax.f32 %v1167_v19, 0.0 }
 0x140   :  { %v1375_v27 = vpack.c.bf16 %v1177_v21, %v1176_v20  ;;  %v1179_v29 = vmax.f32 %v1171_v22, 0.0 }
 0x141   :  { %v1385_v30 = vpack.c.bf16 %v1181_v15, %v1180_v23  ;;  %v1370_v31 = vpack.c.bf16 %v1175_v25, %v1174_v24 }
 0x142   :  { %1390 = vst [vmem:[%s2115_s4 + $0x8] sm:$0xff] %v1375_v27   ;;  %v1380_v0 = vpack.c.bf16 %v1179_v29, %v1178_v10 }
 0x143   :  { %1392 = vst [vmem:[%s2115_s4 + $0x18] sm:$0xff] %v1385_v30   ;;  %1371 = vst [vmem:[%s2115_s4] sm:$0xff] %v1370_v31  }
 0x144   :  { %1391 = vst [vmem:[%s2115_s4 + $0x10] sm:$0xff] %v1380_v0  }

// kernel: resbase_forward.24
= control target key start
LH: loop header
LB: loop body
LE: loop exit
PB: predicated region body
PF: predicated region fallthrough
CT: control target
= control target key end

     0   :  { %vm242_vm0 = vcmask 261120   ;;  %v385_v34 = vlaneseq  ;;  %s780_s1 = inlined_call_operand.vmem [shape: bf16[288,128], index: 1, kind: input, shape index: {}]   ;;  %s781_s0 = inlined_call_operand.vmem [shape: bf16[64,288], index: 0, kind: input, shape index: {}]   ;;  %s782_s2 = inlined_call_operand.vmem [shape: f32[1,128], index: 2, kind: input, shape index: {}]   ;;  %s783_s3 = inlined_call_operand.vmem [shape: bf16[64,128], index: 3, kind: output, shape index: {}]  }
   0x1   :  { %v597_v0 = vld [vmem:[%s780_s1 + $0x40] sm:$0xff]   ;;  %v599_v2 = vld [vmem:[%s780_s1 + $0x48] sm:$0xff]   ;;  %v601_v4 = vld [vmem:[%s780_s1 + $0x50] sm:$0xff]  }
   0x2   :  { %v598_v1 = vld [vmem:[%s780_s1] sm:$0xff]   ;;  %523 = vmatprep.subr.bf16.mxu0 %v597_v0  ;;  %581 = vmatprep.subr.bf16.mxu1 %v597_v0  ;;  %v600_v3 = vld [vmem:[%s780_s1 + $0x8] sm:$0xff]   ;;  %v602_v5 = vld [vmem:[%s780_s1 + $0x10] sm:$0xff]   ;;  %v386_v44 = vand.u32 127, %v385_v34 }
   0x3   :  { %524 = vmatpush3.bf16.msra.mxu0 %v598_v1  ;;  %589 = vmatpush3.bf16.msra.mxu1 %v598_v1  ;;  %v603_v6 = vld [vmem:[%s780_s1 + $0x58] sm:$0xff]   ;;  %v605_v8 = vld [vmem:[%s780_s1 + $0x60] sm:$0xff]   ;;  %v607_v10 = vld [vmem:[%s780_s1 + $0x68] sm:$0xff]  }
   0x4   :  { %525 = vmatprep.subr.bf16.mxu0 %v599_v2  ;;  %582 = vmatprep.subr.bf16.mxu1 %v599_v2  ;;  %v604_v7 = vld [vmem:[%s780_s1 + $0x18] sm:$0xff]   ;;  %v606_v9 = vld [vmem:[%s780_s1 + $0x20] sm:$0xff]   ;;  %v608_v13 = vld [vmem:[%s780_s1 + $0x28] sm:$0xff]   ;;  %v387_v49 = vand.u32 63, %v386_v44 }
   0x5   :  { %v615_v11 = vld [vmem:[%s781_s0 + $0x4] ss:$12 sps:$4 sm:$0xff]   ;;  %v618_v12 = vld [vmem:[%s781_s0 + $0x4c] ss:$12 sps:$4 sm:$0xff]   ;;  %v616_v20 = vld [vmem:[%s781_s0 + $0x48] ss:$12 sps:$4 sm:$0xff]  }
   0x6   :  { %v609_v14 = vld [vmem:[%s780_s1 + $0x70] sm:$0xff]   ;;  %287 = vmatprep.mubr.bf16.mxu0 %v615_v11  ;;  %311 = vmatprep.mubr.bf16.mxu1 %v618_v12  ;;  %v611_v16 = vld [vmem:[%s780_s1 + $0x78] sm:$0xff]   ;;  %v619_v18 = vld [vmem:[%s780_s1 + $0x80] sm:$0xff]   ;;  %vm748_vm1 = vcmp.lt.s32.totalorder %v387_v49, 32 }
   0x7   :  { %526 = vmatpush3.bf16.msra.mxu0 %v600_v3  ;;  %590 = vmatpush3.bf16.msra.mxu1 %v600_v3  ;;  %v610_v15 = vld [vmem:[%s780_s1 + $0x30] sm:$0xff]   ;;  %v612_v17 = vld [vmem:[%s780_s1 + $0x38] sm:$0xff]   ;;  %v613_v19 = vld [vmem:[%s781_s0] ss:$12 sps:$4 sm:$0xff]  }
   0x8   :  { %527 = vmatprep.subr.bf16.mxu0 %v601_v4  ;;  %583 = vmatprep.subr.bf16.mxu1 %v601_v4  ;;  %v621_v21 = vld [vmem:[%s781_s0 + $0x1c] ss:$12 sps:$4 sm:$0xff]   ;;  %v624_v24 = vld [vmem:[%s781_s0 + $0x18] ss:$12 sps:$4 sm:$0xff]   ;;  %v625_v25 = vld [vmem:[%s781_s0 + $0x20] ss:$12 sps:$4 sm:$0xff]  }
   0x9   :  { %v620_v22 = vld [vmem:[%s780_s1 + $0x88] sm:$0xff]   ;;  %v626_v26 = vld [vmem:[%s781_s0 + $0x34] ss:$12 sps:$4 sm:$0xff]   ;;  %v628_v27 = vld [vmem:[%s781_s0 + $0x38] ss:$12 sps:$4 sm:$0xff]  }
   0xa   :  { %v623_v23 = vld [vmem:[%s781_s0 + $0x8] ss:$12 sps:$4 sm:$0xff]   ;;  %v629_v28 = vld [vmem:[%s781_s0 + $0x30] ss:$12 sps:$4 sm:$0xff]   ;;  %v449_v43 = vld [vmem:[%s782_s2] ss:$0 sm:$0xff] }
   0xb   :  { %528 = vmatpush3.bf16.msra.mxu0 %v602_v5  ;;  %591 = vmatpush3.bf16.msra.mxu1 %v602_v5  ;;  %v630_v29 = vld [vmem:[%s781_s0 + $0x50] ss:$12 sps:$4 sm:$0xff]  }
   0xc   :  { %529 = vmatprep.subr.bf16.mxu0 %v603_v6  ;;  %584 = vmatprep.subr.bf16.mxu1 %v603_v6 }
   0xf   :  { %530 = vmatpush3.bf16.msra.mxu0 %v604_v7  ;;  %592 = vmatpush3.bf16.msra.mxu1 %v604_v7 }
  0x10   :  { %531 = vmatprep.subr.bf16.mxu0 %v605_v8  ;;  %585 = vmatprep.subr.bf16.mxu1 %v605_v8 }
  0x13   :  { %532 = vmatpush3.bf16.msra.mxu0 %v606_v9  ;;  %593 = vmatpush3.bf16.msra.mxu1 %v606_v9 }
  0x14   :  { %533 = vmatprep.subr.bf16.mxu0 %v607_v10  ;;  %586 = vmatprep.subr.bf16.mxu1 %v607_v10 }
  0x17   :  { %534 = vmatpush3.bf16.msra.mxu0 %v608_v13  ;;  %594 = vmatpush3.bf16.msra.mxu1 %v608_v13 }
  0x18   :  { %535 = vmatprep.subr.bf16.mxu0 %v609_v14  ;;  %587 = vmatprep.subr.bf16.mxu1 %v609_v14 }
  0x1b   :  { %536 = vmatpush3.bf16.msra.mxu0 %v610_v15  ;;  %595 = vmatpush3.bf16.msra.mxu1 %v610_v15 }
  0x1c   :  { %537 = vmatprep.subr.bf16.mxu0 %v611_v16  ;;  %588 = vmatprep.subr.bf16.mxu1 %v611_v16 }
  0x1f   :  { %538 = vmatpush3.bf16.msra.mxu0 %v612_v17  ;;  %596 = vmatpush3.bf16.msra.mxu1 %v612_v17 }
  0x20   :  { %569 = vmatprep.subr.bf16.mxu1 %v619_v18 }
  0x22   :  { %288 = vmatmul.mubr.bf16.vlgmr.msra.gmra.mrb[0].mxu0 %v613_v19  ;;  %312 = vmatmul.mubr.bf16.vlgmr.msra.gmra.mrb[0].mxu1 %v616_v20 }
  0x23   :  { %570 = vmatpush3.bf16.msra.mxu1 %v619_v18  ;;  %295 = vmatprep.mubr.bf16.mxu0 %v621_v21 }
  0x24   :  { %571 = vmatprep.subr.bf16.mxu1 %v620_v22  ;;  %573 = vmatprep.mubr.msk.bf16.mxu1 %vm242_vm0, %v623_v23 }
  0x27   :  { %572 = vmatpush3.bf16.msra.mxu1 %v620_v22 }
  0x2a   :  { %296 = vmatmul.mubr.bf16.gmra.mrb[4].mxu0 %v624_v24  ;;  %574 = vmatmul.mubr.msk.bf16.vlgmr.msra.gmra.mrb[4].mxu1 %vm242_vm0, %v625_v25 }
  0x2b   :  { %303 = vmatprep.mubr.bf16.mxu0 %v626_v26  ;;  %577 = vmatprep.mubr.msk.bf16.mxu1 %vm242_vm0, %v628_v27 }
  0x32   :  { %304 = vmatmul.mubr.bf16.gmra.mrb[8].mxu0 %v629_v28  ;;  %578 = vmatmul.mubr.msk.bf16.gmra.mrb[8].mxu1 %vm242_vm0, %v630_v29 }
  0xf5   :  { %v539_v30 = vpop.f32.mrb[0].mxu0  ;;  %v557_v31 = vpop.f32.mrb[0].mxu1 }
  0xf6   :  { %v540_v32 = vpop.f32.mrb[1].mxu0  ;;  %v558_v33 = vpop.f32.mrb[1].mxu1 }
  0xf7   :  { %v541_v35 = vadd.f32 %v540_v32, %v539_v30  ;;  %v542_v36 = vpop.f32.mrb[2].mxu0  ;;  %v559_v37 = vadd.f32 %v558_v33, %v557_v31  ;;  %v560_v38 = vpop.f32.mrb[2].mxu1 }
  0xf8   :  { %v543_v39 = vpop.f32.mrb[3].mxu0  ;;  %v561_v40 = vpop.f32.mrb[3].mxu1 }
  0xf9   :  { %v544_v41 = vadd.f32 %v543_v39, %v542_v36  ;;  %v562_v42 = vadd.f32 %v561_v40, %v560_v38  ;;  %v290_v47 = vadd.f32 %v541_v35, %v449_v43  ;;  %v314_v2 = vadd.f32 %v559_v37, %v449_v43 }
  0xfb   :  { %v293_v55 = vadd.f32 %v544_v41, %v449_v43  ;;  %v317_v13 = vadd.f32 %v562_v42, %v449_v43 }
  0xfd   :  { %v545_v45 = vpop.f32.mrb[4].mxu0  ;;  %v575_v46 = vpop.f32.mrb[4].mxu1 }
  0xfe   :  { %v546_v48 = vpop.f32.mrb[5].mxu0  ;;  %v354_v50 = vpop.f32.mrb[5].mxu1 }
  0xff   :  { %v547_v51 = vadd.f32 %v546_v48, %v545_v45  ;;  %v355_v52 = vadd.f32 %v354_v50, %v290_v47  ;;  %v548_v53 = vpop.f32.mrb[6].mxu0  ;;  %v576_v54 = vpop.f32.mrb[6].mxu1 }
 0x100   :  { %v549_v56 = vpop.f32.mrb[7].mxu0  ;;  %v357_v57 = vpop.f32.mrb[7].mxu1 }
 0x101   :  { %v298_v58 = vadd.f32 %v547_v51, %v449_v43  ;;  %v389_v59 = vmax.f32 %v355_v52, 0.0  ;;  %v550_v60 = vadd.f32 %v549_v56, %v548_v53  ;;  %v358_v61 = vadd.f32 %v357_v57, %v293_v55 }
 0x103   :  { %v363_v63 = vadd.f32 %v575_v46, %v298_v58  ;;  %v301_v0 = vadd.f32 %v550_v60, %v449_v43  ;;  %v390_v1 = vmax.f32 %v358_v61, 0.0  ;;  %v397_v4 = vsel %vm748_vm1, %v389_v59, %v355_v52 }
 0x105   :  { %v391_v3 = vmax.f32 %v363_v63, 0.0  ;;  %v366_v5 = vadd.f32 %v576_v54, %v301_v0  ;;  %v398_v6 = vsel %vm748_vm1, %v390_v1, %v358_v61  ;;  %v551_v7 = vpop.f32.mrb[8].mxu0  ;;  %v579_v8 = vpop.f32.mrb[8].mxu1 }
 0x106   :  { %v503_v9 = vpack.c.bf16 %v398_v6, %v397_v4  ;;  %v379_v10 = vadd.f32 %v579_v8, %v314_v2  ;;  %v552_v11 = vpop.f32.mrb[9].mxu0  ;;  %v370_v12 = vpop.f32.mrb[9].mxu1 }
 0x107   :  { %v392_v14 = vmax.f32 %v366_v5, 0.0  ;;  %v553_v15 = vadd.f32 %v552_v11, %v551_v7  ;;  %v554_v16 = vpop.f32.mrb[10].mxu0  ;;  %v580_v17 = vpop.f32.mrb[10].mxu1  ;;  %v399_v22 = vsel %vm748_vm1, %v391_v3, %v363_v63 }
 0x108   :  { %504 = vst [vmem:[%s783_s3] sm:$0xff] %v503_v9   ;;  %v395_v18 = vmax.f32 %v379_v10, 0.0  ;;  %v382_v19 = vadd.f32 %v580_v17, %v317_v13  ;;  %v555_v20 = vpop.f32.mrb[11].mxu0  ;;  %v373_v21 = vpop.f32.mrb[11].mxu1 }
 0x109   :  { %v400_v23 = vsel %vm748_vm1, %v392_v14, %v366_v5  ;;  %v306_v24 = vadd.f32 %v553_v15, %v449_v43  ;;  %v556_v25 = vadd.f32 %v555_v20, %v554_v16 }
 0x10a   :  { %v508_v26 = vpack.c.bf16 %v400_v23, %v399_v22  ;;  %v396_v27 = vmax.f32 %v382_v19, 0.0  ;;  %v403_v30 = vsel %vm748_vm1, %v395_v18, %v379_v10 }
 0x10b   :  { %v371_v28 = vadd.f32 %v370_v12, %v306_v24  ;;  %v309_v29 = vadd.f32 %v556_v25, %v449_v43 }
 0x10c   :  { %520 = vst [vmem:[%s783_s3 + $0x8] sm:$0xff] %v508_v26   ;;  %v404_v31 = vsel %vm748_vm1, %v396_v27, %v382_v19 }
 0x10d   :  { %v393_v32 = vmax.f32 %v371_v28, 0.0  ;;  %v518_v33 = vpack.c.bf16 %v404_v31, %v403_v30  ;;  %v374_v34 = vadd.f32 %v373_v21, %v309_v29 }
 0x10f   :  { %522 = vst [vmem:[%s783_s3 + $0x18] sm:$0xff] %v518_v33   ;;  %v394_v35 = vmax.f32 %v374_v34, 0.0  ;;  %v401_v36 = vsel %vm748_vm1, %v393_v32, %v371_v28 }
 0x111   :  { %v402_v37 = vsel %vm748_vm1, %v394_v35, %v374_v34 }
 0x112   :  { %v513_v38 = vpack.c.bf16 %v402_v37, %v401_v36 }
 0x114   :  { %521 = vst [vmem:[%s783_s3 + $0x10] sm:$0xff] %v513_v38  }

// kernel: resbase_forward.25
= control target key start
LH: loop header
LB: loop body
LE: loop exit
PB: predicated region body
PF: predicated region fallthrough
CT: control target
= control target key end

     0   :  { %s1667_s1 = inlined_call_operand.vmem [shape: bf16[1152,128], index: 1, kind: input, shape index: {}]   ;;  %s1668_s0 = inlined_call_operand.vmem [shape: bf16[32,1152], index: 0, kind: input, shape index: {}]   ;;  %s1669_s2 = inlined_call_operand.vmem [shape: f32[1,128], index: 2, kind: input, shape index: {}]   ;;  %s1670_s3 = inlined_call_operand.vmem [shape: bf16[32,128], index: 3, kind: input, shape index: {}]   ;;  %s1671_s4 = inlined_call_operand.vmem [shape: bf16[32,128], index: 4, kind: output, shape index: {}]  }
   0x1   :  { %v1259_v0 = vld [vmem:[%s1667_s1 + $0x40] sm:$0xff]   ;;  %v1263_v4 = vld [vmem:[%s1667_s1 + $0x48] sm:$0xff]   ;;  %v1267_v8 = vld [vmem:[%s1667_s1 + $0x50] sm:$0xff]  }
   0x2   :  { %v1260_v1 = vld [vmem:[%s1667_s1] sm:$0xff]   ;;  %1117 = vmatprep.subr.bf16.mxu0 %v1259_v0  ;;  %v1264_v5 = vld [vmem:[%s1667_s1 + $0x8] sm:$0xff]   ;;  %v1268_v9 = vld [vmem:[%s1667_s1 + $0x10] sm:$0xff]  }
   0x3   :  { %v1261_v2 = vld [vmem:[%s1667_s1 + $0xc0] sm:$0xff]   ;;  %1118 = vmatpush3.bf16.msra.mxu0 %v1260_v1  ;;  %v1265_v6 = vld [vmem:[%s1667_s1 + $0xc8] sm:$0xff]   ;;  %v1269_v10 = vld [vmem:[%s1667_s1 + $0xd0] sm:$0xff]  }
   0x4   :  { %v1262_v3 = vld [vmem:[%s1667_s1 + $0x80] sm:$0xff]   ;;  %1145 = vmatprep.subr.bf16.mxu1 %v1261_v2  ;;  %1119 = vmatprep.subr.bf16.mxu0 %v1263_v4  ;;  %v1266_v7 = vld [vmem:[%s1667_s1 + $0x88] sm:$0xff]   ;;  %v1270_v11 = vld [vmem:[%s1667_s1 + $0x90] sm:$0xff]  }
   0x5   :  { %1146 = vmatpush3.bf16.msra.mxu1 %v1262_v3  ;;  %v1271_v12 = vld [vmem:[%s1667_s1 + $0x58] sm:$0xff]   ;;  %v1275_v16 = vld [vmem:[%s1667_s1 + $0x60] sm:$0xff]   ;;  %v1279_v20 = vld [vmem:[%s1667_s1 + $0x68] sm:$0xff]  }
   0x6   :  { %1147 = vmatprep.subr.bf16.mxu1 %v1265_v6  ;;  %v1272_v13 = vld [vmem:[%s1667_s1 + $0x18] sm:$0xff]   ;;  %v1276_v17 = vld [vmem:[%s1667_s1 + $0x20] sm:$0xff]   ;;  %v1280_v21 = vld [vmem:[%s1667_s1 + $0x28] sm:$0xff]  }
   0x7   :  { %1120 = vmatpush3.bf16.msra.mxu0 %v1264_v5  ;;  %v1273_v14 = vld [vmem:[%s1667_s1 + $0xd8] sm:$0xff]   ;;  %v1277_v18 = vld [vmem:[%s1667_s1 + $0xe0] sm:$0xff]   ;;  %v1281_v22 = vld [vmem:[%s1667_s1 + $0xe8] sm:$0xff]  }
   0x8   :  { %1121 = vmatprep.subr.bf16.mxu0 %v1267_v8  ;;  %v1274_v15 = vld [vmem:[%s1667_s1 + $0x98] sm:$0xff]   ;;  %v1278_v19 = vld [vmem:[%s1667_s1 + $0xa0] sm:$0xff]   ;;  %v1282_v23 = vld [vmem:[%s1667_s1 + $0xa8] sm:$0xff]  }
   0x9   :  { %1148 = vmatpush3.bf16.msra.mxu1 %v1266_v7  ;;  %v1283_v24 = vld [vmem:[%s1667_s1 + $0x70] sm:$0xff]   ;;  %v1287_v28 = vld [vmem:[%s1667_s1 + $0x78] sm:$0xff]   ;;  %v1290_v31 = vld [vmem:[%s1668_s0] ss:$36 sps:$4 sm:$0xff]  }
   0xa   :  { %1149 = vmatprep.subr.bf16.mxu1 %v1269_v10  ;;  %v1284_v25 = vld [vmem:[%s1667_s1 + $0x30] sm:$0xff]   ;;  %v1288_v29 = vld [vmem:[%s1667_s1 + $0x38] sm:$0xff]   ;;  %v1292_v32 = vld [vmem:[%s1668_s0 + $0x4] ss:$36 sps:$4 sm:$0xff]  }
   0xb   :  { %1122 = vmatpush3.bf16.msra.mxu0 %v1268_v9  ;;  %v1285_v26 = vld [vmem:[%s1667_s1 + $0xf0] sm:$0xff]   ;;  %v1289_v30 = vld [vmem:[%s1667_s1 + $0xf8] sm:$0xff]   ;;  %745 = vmatprep.mubr.bf16.mxu0 %v1292_v32  ;;  %v1294_v34 = vld [vmem:[%s1667_s1 + $0x140] sm:$0xff]  }
   0xc   :  { %1123 = vmatprep.subr.bf16.mxu0 %v1271_v12  ;;  %v1286_v27 = vld [vmem:[%s1667_s1 + $0xb0] sm:$0xff]   ;;  %v1293_v33 = vld [vmem:[%s1667_s1 + $0xb8] sm:$0xff]   ;;  %v1295_v35 = vld [vmem:[%s1668_s0 + $0x8] ss:$36 sps:$4 sm:$0xff]  }
   0xd   :  { %1150 = vmatpush3.bf16.msra.mxu1 %v1270_v11  ;;  %v1297_v36 = vld [vmem:[%s1668_s0 + $0xc] ss:$36 sps:$4 sm:$0xff]   ;;  %v1298_v37 = vld [vmem:[%s1667_s1 + $0x100] sm:$0xff]   ;;  %v1309_v48 = vld [vmem:[%s1667_s1 + $0x158] sm:$0xff]  }
   0xe   :  { %1151 = vmatprep.subr.bf16.mxu1 %v1273_v14  ;;  %794 = vmatprep.mubr.bf16.mxu1 %v1297_v36  ;;  %v1299_v38 = vld [vmem:[%s1667_s1 + $0x1c0] sm:$0xff]   ;;  %v1301_v40 = vld [vmem:[%s1667_s1 + $0x148] sm:$0xff]   ;;  %v1305_v44 = vld [vmem:[%s1667_s1 + $0x150] sm:$0xff]  }
   0xf   :  { %1124 = vmatpush3.bf16.msra.mxu0 %v1272_v13  ;;  %v1300_v39 = vld [vmem:[%s1667_s1 + $0x180] sm:$0xff]   ;;  %v1302_v41 = vld [vmem:[%s1667_s1 + $0x108] sm:$0xff]   ;;  %v1306_v45 = vld [vmem:[%s1667_s1 + $0x110] sm:$0xff]  }
  0x10   :  { %1125 = vmatprep.subr.bf16.mxu0 %v1275_v16  ;;  %v1303_v42 = vld [vmem:[%s1667_s1 + $0x1c8] sm:$0xff]   ;;  %v1307_v46 = vld [vmem:[%s1667_s1 + $0x1d0] sm:$0xff]   ;;  %v1310_v49 = vld [vmem:[%s1667_s1 + $0x118] sm:$0xff]  }
  0x11   :  { %1152 = vmatpush3.bf16.msra.mxu1 %v1274_v15  ;;  %v1304_v43 = vld [vmem:[%s1667_s1 + $0x188] sm:$0xff]   ;;  %v1308_v47 = vld [vmem:[%s1667_s1 + $0x190] sm:$0xff]   ;;  %v1311_v50 = vld [vmem:[%s1667_s1 + $0x1d8] sm:$0xff]  }
  0x12   :  { %1153 = vmatprep.subr.bf16.mxu1 %v1277_v18  ;;  %v1312_v51 = vld [vmem:[%s1667_s1 + $0x198] sm:$0xff]   ;;  %v1313_v52 = vld [vmem:[%s1667_s1 + $0x160] sm:$0xff]   ;;  %v1317_v56 = vld [vmem:[%s1667_s1 + $0x168] sm:$0xff]  }
  0x13   :  { %1126 = vmatpush3.bf16.msra.mxu0 %v1276_v17  ;;  %v1314_v53 = vld [vmem:[%s1667_s1 + $0x120] sm:$0xff]   ;;  %v1318_v57 = vld [vmem:[%s1668_s0 + $0x4c] ss:$36 sps:$4 sm:$0xff]   ;;  %v1323_v61 = vld [vmem:[%s1668_s0 + $0x54] ss:$36 sps:$4 sm:$0xff]  }
  0x14   :  { %1127 = vmatprep.subr.bf16.mxu0 %v1279_v20  ;;  %v1315_v54 = vld [vmem:[%s1667_s1 + $0x1e0] sm:$0xff]   ;;  %v1320_v58 = vld [vmem:[%s1667_s1 + $0x128] sm:$0xff]   ;;  %v1326_v63 = vld [vmem:[%s1668_s0 + $0x50] ss:$36 sps:$4 sm:$0xff]  }
  0x15   :  { %1154 = vmatpush3.bf16.msra.mxu1 %v1278_v19  ;;  %v1316_v55 = vld [vmem:[%s1667_s1 + $0x1a0] sm:$0xff]   ;;  %v1321_v59 = vld [vmem:[%s1668_s0 + $0x48] ss:$36 sps:$4 sm:$0xff]   ;;  %v1327_v0 = vld [vmem:[%s1667_s1 + $0x170] sm:$0xff]  }
  0x16   :  { %1155 = vmatprep.subr.bf16.mxu1 %v1281_v22  ;;  %v1322_v60 = vld [vmem:[%s1667_s1 + $0x1e8] sm:$0xff]   ;;  %v1328_v1 = vld [vmem:[%s1667_s1 + $0x130] sm:$0xff]   ;;  %v1331_v4 = vld [vmem:[%s1667_s1 + $0x178] sm:$0xff]  }
  0x17   :  { %1128 = vmatpush3.bf16.msra.mxu0 %v1280_v21  ;;  %v1325_v62 = vld [vmem:[%s1667_s1 + $0x1a8] sm:$0xff]   ;;  %v1329_v2 = vld [vmem:[%s1667_s1 + $0x1f0] sm:$0xff]   ;;  %v1332_v5 = vld [vmem:[%s1667_s1 + $0x138] sm:$0xff]  }
  0x18   :  { %1129 = vmatprep.subr.bf16.mxu0 %v1283_v24  ;;  %v1330_v3 = vld [vmem:[%s1667_s1 + $0x1b0] sm:$0xff]   ;;  %v1333_v6 = vld [vmem:[%s1667_s1 + $0x1f8] sm:$0xff]   ;;  %v1338_v10 = vld [vmem:[%s1667_s1 + $0x200] sm:$0xff]  }
  0x19   :  { %1156 = vmatpush3.bf16.msra.mxu1 %v1282_v23  ;;  %v1334_v7 = vld [vmem:[%s1668_s0 + $0x10] ss:$36 sps:$4 sm:$0xff]   ;;  %v1337_v9 = vld [vmem:[%s1667_s1 + $0x1b8] sm:$0xff]   ;;  %v1342_v13 = vld [vmem:[%s1667_s1 + $0x208] sm:$0xff]  }
  0x1a   :  { %1157 = vmatprep.subr.bf16.mxu1 %v1285_v26  ;;  %v1336_v8 = vld [vmem:[%s1668_s0 + $0x14] ss:$36 sps:$4 sm:$0xff]   ;;  %v1341_v12 = vld [vmem:[%s1668_s0 + $0x1c] ss:$36 sps:$4 sm:$0xff]   ;;  %v1347_v17 = vld [vmem:[%s1668_s0 + $0x64] ss:$36 sps:$4 sm:$0xff]  }
  0x1b   :  { %1130 = vmatpush3.bf16.msra.mxu0 %v1284_v25  ;;  %v1339_v11 = vld [vmem:[%s1668_s0 + $0x18] ss:$36 sps:$4 sm:$0xff]   ;;  %v1346_v16 = vld [vmem:[%s1667_s1 + $0x210] sm:$0xff]   ;;  %v1349_v18 = vld [vmem:[%s1668_s0 + $0x60] ss:$36 sps:$4 sm:$0xff]  }
  0x1c   :  { %1131 = vmatprep.subr.bf16.mxu0 %v1287_v28  ;;  %v1343_v14 = vld [vmem:[%s1668_s0 + $0x5c] ss:$36 sps:$4 sm:$0xff]   ;;  %v1352_v22 = vld [vmem:[%s1667_s1 + $0x228] sm:$0xff]   ;;  %v1353_v23 = vld [vmem:[%s1667_s1 + $0x230] sm:$0xff]  }
  0x1d   :  { %1158 = vmatpush3.bf16.msra.mxu1 %v1286_v27  ;;  %v1345_v15 = vld [vmem:[%s1668_s0 + $0x58] ss:$36 sps:$4 sm:$0xff]   ;;  %v1351_v20 = vld [vmem:[%s1667_s1 + $0x220] sm:$0xff]   ;;  %v1356_v25 = vld [vmem:[%s1668_s0 + $0x68] ss:$36 sps:$4 sm:$0xff]  }
  0x1e   :  { %1159 = vmatprep.subr.bf16.mxu1 %v1289_v30  ;;  %v1350_v19 = vld [vmem:[%s1667_s1 + $0x218] sm:$0xff]   ;;  %v1355_v21 = vld [vmem:[%s1668_s0 + $0x20] ss:$36 sps:$4 sm:$0xff]  }
  0x1f   :  { %1132 = vmatpush3.bf16.msra.mxu0 %v1288_v29  ;;  %v1354_v24 = vld [vmem:[%s1667_s1 + $0x238] sm:$0xff]   ;;  %v998_v27 = vld [vmem:[%s1669_s2] ss:$0 sm:$0xff] }
  0x20   :  { %1173 = vmatprep.subr.bf16.mxu0 %v1294_v34 }
  0x21   :  { %1160 = vmatpush3.bf16.msra.mxu1 %v1293_v33 }
  0x22   :  { %746 = vmatmul.mubr.bf16.vlgmr.msra.gmra.mrb[0].mxu0 %v1290_v31  ;;  %1201 = vmatprep.subr.bf16.mxu1 %v1299_v38 }
  0x23   :  { %1174 = vmatpush3.bf16.msra.mxu0 %v1298_v37  ;;  %753 = vmatprep.mubr.bf16.mxu0 %v1318_v57 }
  0x24   :  { %795 = vmatmul.mubr.bf16.vlgmr.msra.gmra.mrb[0].mxu1 %v1295_v35  ;;  %1175 = vmatprep.subr.bf16.mxu0 %v1301_v40 }
  0x25   :  { %1202 = vmatpush3.bf16.msra.mxu1 %v1300_v39  ;;  %802 = vmatprep.mubr.bf16.mxu1 %v1323_v61 }
  0x26   :  { %1203 = vmatprep.subr.bf16.mxu1 %v1303_v42 }
  0x27   :  { %1176 = vmatpush3.bf16.msra.mxu0 %v1302_v41 }
  0x28   :  { %1177 = vmatprep.subr.bf16.mxu0 %v1305_v44 }
  0x29   :  { %1204 = vmatpush3.bf16.msra.mxu1 %v1304_v43 }
  0x2a   :  { %1205 = vmatprep.subr.bf16.mxu1 %v1307_v46  ;;  %754 = vmatmul.mubr.bf16.gmra.mrb[4].mxu0 %v1321_v59 }
  0x2b   :  { %1178 = vmatpush3.bf16.msra.mxu0 %v1306_v45  ;;  %843 = vmatprep.mubr.bf16.mxu0 %v1336_v8 }
  0x2c   :  { %1179 = vmatprep.subr.bf16.mxu0 %v1309_v48  ;;  %803 = vmatmul.mubr.bf16.gmra.mrb[4].mxu1 %v1326_v63 }
  0x2d   :  { %1206 = vmatpush3.bf16.msra.mxu1 %v1308_v47  ;;  %892 = vmatprep.mubr.bf16.mxu1 %v1341_v12 }
  0x2e   :  { %1207 = vmatprep.subr.bf16.mxu1 %v1311_v50 }
  0x2f   :  { %1180 = vmatpush3.bf16.msra.mxu0 %v1310_v49 }
  0x30   :  { %1181 = vmatprep.subr.bf16.mxu0 %v1313_v52 }
  0x31   :  { %1208 = vmatpush3.bf16.msra.mxu1 %v1312_v51 }
  0x32   :  { %1209 = vmatprep.subr.bf16.mxu1 %v1315_v54 }
  0x33   :  { %1182 = vmatpush3.bf16.msra.mxu0 %v1314_v53 }
  0x34   :  { %1183 = vmatprep.subr.bf16.mxu0 %v1317_v56 }
  0x35   :  { %1210 = vmatpush3.bf16.msra.mxu1 %v1316_v55 }
  0x36   :  { %1211 = vmatprep.subr.bf16.mxu1 %v1322_v60 }
  0x37   :  { %1184 = vmatpush3.bf16.msra.mxu0 %v1320_v58 }
  0x38   :  { %1185 = vmatprep.subr.bf16.mxu0 %v1327_v0 }
  0x39   :  { %1212 = vmatpush3.bf16.msra.mxu1 %v1325_v62 }
  0x3a   :  { %1213 = vmatprep.subr.bf16.mxu1 %v1329_v2 }
  0x3b   :  { %1186 = vmatpush3.bf16.msra.mxu0 %v1328_v1 }
  0x3c   :  { %1187 = vmatprep.subr.bf16.mxu0 %v1331_v4 }
  0x3d   :  { %1214 = vmatpush3.bf16.msra.mxu1 %v1330_v3 }
  0x3e   :  { %1215 = vmatprep.subr.bf16.mxu1 %v1333_v6 }
  0x3f   :  { %1188 = vmatpush3.bf16.msra.mxu0 %v1332_v5 }
  0x40   :  { %1239 = vmatprep.subr.bf16.mxu0 %v1338_v10 }
  0x41   :  { %1216 = vmatpush3.bf16.msra.mxu1 %v1337_v9 }
  0x42   :  { %844 = vmatmul.mubr.bf16.vlgmr.msra.gmra.mrb[8].mxu0 %v1334_v7 }
  0x43   :  { %1240 = vmatpush3.bf16.msra.mxu0 %v1338_v10  ;;  %851 = vmatprep.mubr.bf16.mxu0 %v1343_v14 }
  0x44   :  { %893 = vmatmul.mubr.bf16.vlgmr.msra.gmra.mrb[8].mxu1 %v1339_v11  ;;  %1241 = vmatprep.subr.bf16.mxu0 %v1342_v13 }
  0x45   :  { %900 = vmatprep.mubr.bf16.mxu1 %v1347_v17 }
  0x47   :  { %1242 = vmatpush3.bf16.msra.mxu0 %v1342_v13 }
  0x48   :  { %1243 = vmatprep.subr.bf16.mxu0 %v1346_v16 }
  0x4a   :  { %852 = vmatmul.mubr.bf16.gmra.mrb[12].mxu0 %v1345_v15 }
  0x4b   :  { %1244 = vmatpush3.bf16.msra.mxu0 %v1346_v16  ;;  %1255 = vmatprep.mubr.bf16.mxu0 %v1355_v21 }
  0x4c   :  { %901 = vmatmul.mubr.bf16.gmra.mrb[12].mxu1 %v1349_v18  ;;  %1245 = vmatprep.subr.bf16.mxu0 %v1350_v19 }
  0x4f   :  { %1246 = vmatpush3.bf16.msra.mxu0 %v1350_v19 }
  0x50   :  { %1247 = vmatprep.subr.bf16.mxu0 %v1351_v20 }
  0x53   :  { %1248 = vmatpush3.bf16.msra.mxu0 %v1351_v20 }
  0x54   :  { %1249 = vmatprep.subr.bf16.mxu0 %v1352_v22 }
  0x57   :  { %1250 = vmatpush3.bf16.msra.mxu0 %v1352_v22 }
  0x58   :  { %1251 = vmatprep.subr.bf16.mxu0 %v1353_v23 }
  0x5b   :  { %1252 = vmatpush3.bf16.msra.mxu0 %v1353_v23 }
  0x5c   :  { %1253 = vmatprep.subr.bf16.mxu0 %v1354_v24 }
  0x5f   :  { %1254 = vmatpush3.bf16.msra.mxu0 %v1354_v24 }
  0x62   :  { %1256 = vmatmul.mubr.bf16.vlgmr.msra.gmra.mrb[16].mxu0 %v1356_v25 }
  0xf5   :  { %v1133_v26 = vpop.f32.mrb[0].mxu0 }
  0xf6   :  { %v1134_v28 = vpop.f32.mrb[1].mxu0 }
  0xf7   :  { %v1135_v29 = vadd.f32 %v1134_v28, %v1133_v26  ;;  %v1136_v30 = vpop.f32.mrb[2].mxu0  ;;  %v1161_v31 = vpop.f32.mrb[0].mxu1  ;;  %v1098_v28 = vld [vmem:[%s1670_s3] sm:$0xff]  }
  0xf8   :  { %v1137_v32 = vpop.f32.mrb[3].mxu0  ;;  %v1162_v35 = vpop.f32.mrb[1].mxu1 }
  0xf9   :  { %v748_v33 = vadd.f32 %v1135_v29, %v998_v27  ;;  %v1138_v34 = vadd.f32 %v1137_v32, %v1136_v30  ;;  %v1163_v36 = vadd.f32 %v1162_v35, %v1161_v31  ;;  %v1164_v37 = vpop.f32.mrb[2].mxu1  ;;  %v1099_v31 = vunpack.c.l.bf16 %v1098_v28 }
  0xfa   :  { %v1165_v39 = vpop.f32.mrb[3].mxu1 }
  0xfb   :  { %v751_v38 = vadd.f32 %v1138_v34, %v998_v27  ;;  %v797_v40 = vadd.f32 %v1163_v36, %v748_v33  ;;  %v1166_v41 = vadd.f32 %v1165_v39, %v1164_v37  ;;  %v1100_v37 = vunpack.c.h.bf16 %v1098_v28 }
  0xfd   :  { %v800_v42 = vadd.f32 %v1166_v41, %v751_v38  ;;  %v1139_v43 = vpop.f32.mrb[4].mxu0 }
  0xfe   :  { %v1140_v44 = vpop.f32.mrb[5].mxu0 }
  0xff   :  { %v1141_v45 = vadd.f32 %v1140_v44, %v1139_v43  ;;  %v1142_v46 = vpop.f32.mrb[6].mxu0  ;;  %v1167_v47 = vpop.f32.mrb[4].mxu1 }
 0x100   :  { %v1143_v48 = vpop.f32.mrb[7].mxu0  ;;  %v1168_v51 = vpop.f32.mrb[5].mxu1 }
 0x101   :  { %v756_v49 = vadd.f32 %v1141_v45, %v998_v27  ;;  %v1144_v50 = vadd.f32 %v1143_v48, %v1142_v46  ;;  %v1169_v52 = vadd.f32 %v1168_v51, %v1167_v47  ;;  %v1170_v53 = vpop.f32.mrb[6].mxu1 }
 0x102   :  { %v1171_v55 = vpop.f32.mrb[7].mxu1 }
 0x103   :  { %v759_v54 = vadd.f32 %v1144_v50, %v998_v27  ;;  %v805_v56 = vadd.f32 %v1169_v52, %v756_v49  ;;  %v1172_v57 = vadd.f32 %v1171_v55, %v1170_v53  ;;  %v1115_v27 = vld [vmem:[%s1670_s3 + $0x8] sm:$0xff]  }
 0x104   :  { %v1103_v29 = vunpack.c.l.bf16 %v1115_v27  ;;  %v1104_v34 = vunpack.c.h.bf16 %v1115_v27 }
 0x105   :  { %v808_v58 = vadd.f32 %v1172_v57, %v759_v54 }
 0x115   :  { %v1189_v59 = vpop.f32.mrb[8].mxu0 }
 0x116   :  { %v1190_v60 = vpop.f32.mrb[9].mxu0 }
 0x117   :  { %v1191_v61 = vadd.f32 %v1190_v60, %v1189_v59  ;;  %v1192_v62 = vpop.f32.mrb[10].mxu0  ;;  %v1217_v63 = vpop.f32.mrb[8].mxu1 }
 0x118   :  { %v1193_v0 = vpop.f32.mrb[11].mxu0  ;;  %v1218_v3 = vpop.f32.mrb[9].mxu1 }
 0x119   :  { %v846_v1 = vadd.f32 %v1191_v61, %v797_v40  ;;  %v1194_v2 = vadd.f32 %v1193_v0, %v1192_v62  ;;  %v1219_v4 = vadd.f32 %v1218_v3, %v1217_v63  ;;  %v1220_v5 = vpop.f32.mrb[10].mxu1 }
 0x11a   :  { %v1221_v7 = vpop.f32.mrb[11].mxu1 }
 0x11b   :  { %v849_v6 = vadd.f32 %v1194_v2, %v800_v42  ;;  %v1222_v8 = vadd.f32 %v1221_v7, %v1220_v5  ;;  %v895_v9 = vadd.f32 %v1219_v4, %v846_v1 }
 0x11d   :  { %v1195_v10 = vpop.f32.mrb[12].mxu0  ;;  %v898_v12 = vadd.f32 %v1222_v8, %v849_v6 }
 0x11e   :  { %v1196_v11 = vpop.f32.mrb[13].mxu0 }
 0x11f   :  { %v1197_v13 = vadd.f32 %v1196_v11, %v1195_v10  ;;  %v1198_v14 = vpop.f32.mrb[14].mxu0  ;;  %v1223_v15 = vpop.f32.mrb[12].mxu1 }
 0x120   :  { %v1199_v16 = vpop.f32.mrb[15].mxu0  ;;  %v1224_v19 = vpop.f32.mrb[13].mxu1 }
 0x121   :  { %v854_v17 = vadd.f32 %v1197_v13, %v805_v56  ;;  %v1200_v18 = vadd.f32 %v1199_v16, %v1198_v14  ;;  %v1225_v20 = vadd.f32 %v1224_v19, %v1223_v15  ;;  %v1226_v21 = vpop.f32.mrb[14].mxu1 }
 0x122   :  { %v1227_v23 = vpop.f32.mrb[15].mxu1 }
 0x123   :  { %v857_v22 = vadd.f32 %v1200_v18, %v808_v58  ;;  %v1228_v24 = vadd.f32 %v1227_v23, %v1226_v21  ;;  %v903_v25 = vadd.f32 %v1225_v20, %v854_v17 }
 0x125   :  { %v906_v26 = vadd.f32 %v1228_v24, %v857_v22 }
 0x135   :  { %v1257_v30 = vpop.f32.mrb[16].mxu0 }
 0x136   :  { %v952_v32 = vadd.f32 %v1257_v30, %v903_v25  ;;  %v943_v33 = vpop.f32.mrb[17].mxu0 }
 0x137   :  { %v944_v35 = vadd.f32 %v943_v33, %v895_v9  ;;  %v1258_v36 = vpop.f32.mrb[18].mxu0 }
 0x138   :  { %v968_v38 = vadd.f32 %v1103_v29, %v952_v32  ;;  %v955_v39 = vadd.f32 %v1258_v36, %v906_v26  ;;  %v946_v40 = vpop.f32.mrb[19].mxu0 }
 0x139   :  { %v966_v41 = vadd.f32 %v1099_v31, %v944_v35  ;;  %v947_v42 = vadd.f32 %v946_v40, %v898_v12 }
 0x13a   :  { %v969_v43 = vadd.f32 %v1104_v34, %v955_v39  ;;  %v972_v45 = vmax.f32 %v968_v38, 0.0 }
 0x13b   :  { %v967_v44 = vadd.f32 %v1100_v37, %v947_v42  ;;  %v970_v47 = vmax.f32 %v966_v41, 0.0 }
 0x13c   :  { %v973_v46 = vmax.f32 %v969_v43, 0.0 }
 0x13d   :  { %v971_v48 = vmax.f32 %v967_v44, 0.0 }
 0x13e   :  { %v1113_v49 = vpack.c.bf16 %v973_v46, %v972_v45 }
 0x13f   :  { %v1108_v50 = vpack.c.bf16 %v971_v48, %v970_v47 }
 0x140   :  { %1116 = vst [vmem:[%s1671_s4 + $0x8] sm:$0xff] %v1113_v49  }
 0x141   :  { %1109 = vst [vmem:[%s1671_s4] sm:$0xff] %v1108_v50  }

// kernel: resbase_forward.26
= control target key start
LH: loop header
LB: loop body
LE: loop exit
PB: predicated region body
PF: predicated region fallthrough
CT: control target
= control target key end

     0   :  { %s1632_s1 = inlined_call_operand.vmem [shape: bf16[1152,128], index: 1, kind: input, shape index: {}]   ;;  %s1633_s0 = inlined_call_operand.vmem [shape: bf16[32,1152], index: 0, kind: input, shape index: {}]   ;;  %s1634_s2 = inlined_call_operand.vmem [shape: f32[1,128], index: 2, kind: input, shape index: {}]   ;;  %s1635_s3 = inlined_call_operand.vmem [shape: bf16[32,128], index: 3, kind: output, shape index: {}]  }
   0x1   :  { %v1235_v0 = vld [vmem:[%s1632_s1 + $0x40] sm:$0xff]   ;;  %v1239_v4 = vld [vmem:[%s1632_s1 + $0x48] sm:$0xff]   ;;  %v1243_v8 = vld [vmem:[%s1632_s1 + $0x50] sm:$0xff]  }
   0x2   :  { %v1236_v1 = vld [vmem:[%s1632_s1] sm:$0xff]   ;;  %1093 = vmatprep.subr.bf16.mxu0 %v1235_v0  ;;  %v1240_v5 = vld [vmem:[%s1632_s1 + $0x8] sm:$0xff]   ;;  %v1244_v9 = vld [vmem:[%s1632_s1 + $0x10] sm:$0xff]  }
   0x3   :  { %v1237_v2 = vld [vmem:[%s1632_s1 + $0xc0] sm:$0xff]   ;;  %1094 = vmatpush3.bf16.msra.mxu0 %v1236_v1  ;;  %v1241_v6 = vld [vmem:[%s1632_s1 + $0xc8] sm:$0xff]   ;;  %v1245_v10 = vld [vmem:[%s1632_s1 + $0xd0] sm:$0xff]  }
   0x4   :  { %v1238_v3 = vld [vmem:[%s1632_s1 + $0x80] sm:$0xff]   ;;  %1121 = vmatprep.subr.bf16.mxu1 %v1237_v2  ;;  %1095 = vmatprep.subr.bf16.mxu0 %v1239_v4  ;;  %v1242_v7 = vld [vmem:[%s1632_s1 + $0x88] sm:$0xff]   ;;  %v1246_v11 = vld [vmem:[%s1632_s1 + $0x90] sm:$0xff]  }
   0x5   :  { %1122 = vmatpush3.bf16.msra.mxu1 %v1238_v3  ;;  %v1247_v12 = vld [vmem:[%s1632_s1 + $0x58] sm:$0xff]   ;;  %v1251_v16 = vld [vmem:[%s1632_s1 + $0x60] sm:$0xff]   ;;  %v1255_v20 = vld [vmem:[%s1632_s1 + $0x68] sm:$0xff]  }
   0x6   :  { %1123 = vmatprep.subr.bf16.mxu1 %v1241_v6  ;;  %v1248_v13 = vld [vmem:[%s1632_s1 + $0x18] sm:$0xff]   ;;  %v1252_v17 = vld [vmem:[%s1632_s1 + $0x20] sm:$0xff]   ;;  %v1256_v21 = vld [vmem:[%s1632_s1 + $0x28] sm:$0xff]  }
   0x7   :  { %1096 = vmatpush3.bf16.msra.mxu0 %v1240_v5  ;;  %v1249_v14 = vld [vmem:[%s1632_s1 + $0xd8] sm:$0xff]   ;;  %v1253_v18 = vld [vmem:[%s1632_s1 + $0xe0] sm:$0xff]   ;;  %v1257_v22 = vld [vmem:[%s1632_s1 + $0xe8] sm:$0xff]  }
   0x8   :  { %1097 = vmatprep.subr.bf16.mxu0 %v1243_v8  ;;  %v1250_v15 = vld [vmem:[%s1632_s1 + $0x98] sm:$0xff]   ;;  %v1254_v19 = vld [vmem:[%s1632_s1 + $0xa0] sm:$0xff]   ;;  %v1258_v23 = vld [vmem:[%s1632_s1 + $0xa8] sm:$0xff]  }
   0x9   :  { %1124 = vmatpush3.bf16.msra.mxu1 %v1242_v7  ;;  %v1259_v24 = vld [vmem:[%s1632_s1 + $0x70] sm:$0xff]   ;;  %v1263_v28 = vld [vmem:[%s1632_s1 + $0x78] sm:$0xff]   ;;  %v1266_v31 = vld [vmem:[%s1633_s0] ss:$36 sps:$4 sm:$0xff]  }
   0xa   :  { %1125 = vmatprep.subr.bf16.mxu1 %v1245_v10  ;;  %v1260_v25 = vld [vmem:[%s1632_s1 + $0x30] sm:$0xff]   ;;  %v1264_v29 = vld [vmem:[%s1632_s1 + $0x38] sm:$0xff]   ;;  %v1268_v32 = vld [vmem:[%s1633_s0 + $0x4] ss:$36 sps:$4 sm:$0xff]  }
   0xb   :  { %1098 = vmatpush3.bf16.msra.mxu0 %v1244_v9  ;;  %v1261_v26 = vld [vmem:[%s1632_s1 + $0xf0] sm:$0xff]   ;;  %v1265_v30 = vld [vmem:[%s1632_s1 + $0xf8] sm:$0xff]   ;;  %742 = vmatprep.mubr.bf16.mxu0 %v1268_v32  ;;  %v1270_v34 = vld [vmem:[%s1632_s1 + $0x140] sm:$0xff]  }
   0xc   :  { %1099 = vmatprep.subr.bf16.mxu0 %v1247_v12  ;;  %v1262_v27 = vld [vmem:[%s1632_s1 + $0xb0] sm:$0xff]   ;;  %v1269_v33 = vld [vmem:[%s1632_s1 + $0xb8] sm:$0xff]   ;;  %v1271_v35 = vld [vmem:[%s1633_s0 + $0x8] ss:$36 sps:$4 sm:$0xff]  }
   0xd   :  { %1126 = vmatpush3.bf16.msra.mxu1 %v1246_v11  ;;  %v1273_v36 = vld [vmem:[%s1633_s0 + $0xc] ss:$36 sps:$4 sm:$0xff]   ;;  %v1274_v37 = vld [vmem:[%s1632_s1 + $0x100] sm:$0xff]   ;;  %v1285_v48 = vld [vmem:[%s1632_s1 + $0x158] sm:$0xff]  }
   0xe   :  { %1127 = vmatprep.subr.bf16.mxu1 %v1249_v14  ;;  %791 = vmatprep.mubr.bf16.mxu1 %v1273_v36  ;;  %v1275_v38 = vld [vmem:[%s1632_s1 + $0x1c0] sm:$0xff]   ;;  %v1277_v40 = vld [vmem:[%s1632_s1 + $0x148] sm:$0xff]   ;;  %v1281_v44 = vld [vmem:[%s1632_s1 + $0x150] sm:$0xff]  }
   0xf   :  { %1100 = vmatpush3.bf16.msra.mxu0 %v1248_v13  ;;  %v1276_v39 = vld [vmem:[%s1632_s1 + $0x180] sm:$0xff]   ;;  %v1278_v41 = vld [vmem:[%s1632_s1 + $0x108] sm:$0xff]   ;;  %v1282_v45 = vld [vmem:[%s1632_s1 + $0x110] sm:$0xff]  }
  0x10   :  { %1101 = vmatprep.subr.bf16.mxu0 %v1251_v16  ;;  %v1279_v42 = vld [vmem:[%s1632_s1 + $0x1c8] sm:$0xff]   ;;  %v1283_v46 = vld [vmem:[%s1632_s1 + $0x1d0] sm:$0xff]   ;;  %v1286_v49 = vld [vmem:[%s1632_s1 + $0x118] sm:$0xff]  }
  0x11   :  { %1128 = vmatpush3.bf16.msra.mxu1 %v1250_v15  ;;  %v1280_v43 = vld [vmem:[%s1632_s1 + $0x188] sm:$0xff]   ;;  %v1284_v47 = vld [vmem:[%s1632_s1 + $0x190] sm:$0xff]   ;;  %v1287_v50 = vld [vmem:[%s1632_s1 + $0x1d8] sm:$0xff]  }
  0x12   :  { %1129 = vmatprep.subr.bf16.mxu1 %v1253_v18  ;;  %v1288_v51 = vld [vmem:[%s1632_s1 + $0x198] sm:$0xff]   ;;  %v1289_v52 = vld [vmem:[%s1632_s1 + $0x160] sm:$0xff]   ;;  %v1293_v56 = vld [vmem:[%s1632_s1 + $0x168] sm:$0xff]  }
  0x13   :  { %1102 = vmatpush3.bf16.msra.mxu0 %v1252_v17  ;;  %v1290_v53 = vld [vmem:[%s1632_s1 + $0x120] sm:$0xff]   ;;  %v1294_v57 = vld [vmem:[%s1633_s0 + $0x4c] ss:$36 sps:$4 sm:$0xff]   ;;  %v1299_v61 = vld [vmem:[%s1633_s0 + $0x54] ss:$36 sps:$4 sm:$0xff]  }
  0x14   :  { %1103 = vmatprep.subr.bf16.mxu0 %v1255_v20  ;;  %v1291_v54 = vld [vmem:[%s1632_s1 + $0x1e0] sm:$0xff]   ;;  %v1296_v58 = vld [vmem:[%s1632_s1 + $0x128] sm:$0xff]   ;;  %v1302_v63 = vld [vmem:[%s1633_s0 + $0x50] ss:$36 sps:$4 sm:$0xff]  }
  0x15   :  { %1130 = vmatpush3.bf16.msra.mxu1 %v1254_v19  ;;  %v1292_v55 = vld [vmem:[%s1632_s1 + $0x1a0] sm:$0xff]   ;;  %v1297_v59 = vld [vmem:[%s1633_s0 + $0x48] ss:$36 sps:$4 sm:$0xff]   ;;  %v1303_v0 = vld [vmem:[%s1632_s1 + $0x170] sm:$0xff]  }
  0x16   :  { %1131 = vmatprep.subr.bf16.mxu1 %v1257_v22  ;;  %v1298_v60 = vld [vmem:[%s1632_s1 + $0x1e8] sm:$0xff]   ;;  %v1304_v1 = vld [vmem:[%s1632_s1 + $0x130] sm:$0xff]   ;;  %v1307_v4 = vld [vmem:[%s1632_s1 + $0x178] sm:$0xff]  }
  0x17   :  { %1104 = vmatpush3.bf16.msra.mxu0 %v1256_v21  ;;  %v1301_v62 = vld [vmem:[%s1632_s1 + $0x1a8] sm:$0xff]   ;;  %v1305_v2 = vld [vmem:[%s1632_s1 + $0x1f0] sm:$0xff]   ;;  %v1308_v5 = vld [vmem:[%s1632_s1 + $0x138] sm:$0xff]  }
  0x18   :  { %1105 = vmatprep.subr.bf16.mxu0 %v1259_v24  ;;  %v1306_v3 = vld [vmem:[%s1632_s1 + $0x1b0] sm:$0xff]   ;;  %v1309_v6 = vld [vmem:[%s1632_s1 + $0x1f8] sm:$0xff]   ;;  %v1314_v10 = vld [vmem:[%s1632_s1 + $0x200] sm:$0xff]  }
  0x19   :  { %1132 = vmatpush3.bf16.msra.mxu1 %v1258_v23  ;;  %v1310_v7 = vld [vmem:[%s1633_s0 + $0x10] ss:$36 sps:$4 sm:$0xff]   ;;  %v1313_v9 = vld [vmem:[%s1632_s1 + $0x1b8] sm:$0xff]   ;;  %v1318_v13 = vld [vmem:[%s1632_s1 + $0x208] sm:$0xff]  }
  0x1a   :  { %1133 = vmatprep.subr.bf16.mxu1 %v1261_v26  ;;  %v1312_v8 = vld [vmem:[%s1633_s0 + $0x14] ss:$36 sps:$4 sm:$0xff]   ;;  %v1317_v12 = vld [vmem:[%s1633_s0 + $0x1c] ss:$36 sps:$4 sm:$0xff]   ;;  %v1323_v17 = vld [vmem:[%s1633_s0 + $0x64] ss:$36 sps:$4 sm:$0xff]  }
  0x1b   :  { %1106 = vmatpush3.bf16.msra.mxu0 %v1260_v25  ;;  %v1315_v11 = vld [vmem:[%s1633_s0 + $0x18] ss:$36 sps:$4 sm:$0xff]   ;;  %v1322_v16 = vld [vmem:[%s1632_s1 + $0x210] sm:$0xff]   ;;  %v1325_v18 = vld [vmem:[%s1633_s0 + $0x60] ss:$36 sps:$4 sm:$0xff]  }
  0x1c   :  { %1107 = vmatprep.subr.bf16.mxu0 %v1263_v28  ;;  %v1319_v14 = vld [vmem:[%s1633_s0 + $0x5c] ss:$36 sps:$4 sm:$0xff]   ;;  %v1328_v22 = vld [vmem:[%s1632_s1 + $0x228] sm:$0xff]   ;;  %v1329_v23 = vld [vmem:[%s1632_s1 + $0x230] sm:$0xff]  }
  0x1d   :  { %1134 = vmatpush3.bf16.msra.mxu1 %v1262_v27  ;;  %v1321_v15 = vld [vmem:[%s1633_s0 + $0x58] ss:$36 sps:$4 sm:$0xff]   ;;  %v1327_v20 = vld [vmem:[%s1632_s1 + $0x220] sm:$0xff]   ;;  %v1332_v25 = vld [vmem:[%s1633_s0 + $0x68] ss:$36 sps:$4 sm:$0xff]  }
  0x1e   :  { %1135 = vmatprep.subr.bf16.mxu1 %v1265_v30  ;;  %v1326_v19 = vld [vmem:[%s1632_s1 + $0x218] sm:$0xff]   ;;  %v1331_v21 = vld [vmem:[%s1633_s0 + $0x20] ss:$36 sps:$4 sm:$0xff]  }
  0x1f   :  { %1108 = vmatpush3.bf16.msra.mxu0 %v1264_v29  ;;  %v1330_v24 = vld [vmem:[%s1632_s1 + $0x238] sm:$0xff]   ;;  %v983_v27 = vld [vmem:[%s1634_s2] ss:$0 sm:$0xff] }
  0x20   :  { %1149 = vmatprep.subr.bf16.mxu0 %v1270_v34 }
  0x21   :  { %1136 = vmatpush3.bf16.msra.mxu1 %v1269_v33 }
  0x22   :  { %743 = vmatmul.mubr.bf16.vlgmr.msra.gmra.mrb[0].mxu0 %v1266_v31  ;;  %1177 = vmatprep.subr.bf16.mxu1 %v1275_v38 }
  0x23   :  { %1150 = vmatpush3.bf16.msra.mxu0 %v1274_v37  ;;  %750 = vmatprep.mubr.bf16.mxu0 %v1294_v57 }
  0x24   :  { %792 = vmatmul.mubr.bf16.vlgmr.msra.gmra.mrb[0].mxu1 %v1271_v35  ;;  %1151 = vmatprep.subr.bf16.mxu0 %v1277_v40 }
  0x25   :  { %1178 = vmatpush3.bf16.msra.mxu1 %v1276_v39  ;;  %799 = vmatprep.mubr.bf16.mxu1 %v1299_v61 }
  0x26   :  { %1179 = vmatprep.subr.bf16.mxu1 %v1279_v42 }
  0x27   :  { %1152 = vmatpush3.bf16.msra.mxu0 %v1278_v41 }
  0x28   :  { %1153 = vmatprep.subr.bf16.mxu0 %v1281_v44 }
  0x29   :  { %1180 = vmatpush3.bf16.msra.mxu1 %v1280_v43 }
  0x2a   :  { %1181 = vmatprep.subr.bf16.mxu1 %v1283_v46  ;;  %751 = vmatmul.mubr.bf16.gmra.mrb[4].mxu0 %v1297_v59 }
  0x2b   :  { %1154 = vmatpush3.bf16.msra.mxu0 %v1282_v45  ;;  %840 = vmatprep.mubr.bf16.mxu0 %v1312_v8 }
  0x2c   :  { %1155 = vmatprep.subr.bf16.mxu0 %v1285_v48  ;;  %800 = vmatmul.mubr.bf16.gmra.mrb[4].mxu1 %v1302_v63 }
  0x2d   :  { %1182 = vmatpush3.bf16.msra.mxu1 %v1284_v47  ;;  %889 = vmatprep.mubr.bf16.mxu1 %v1317_v12 }
  0x2e   :  { %1183 = vmatprep.subr.bf16.mxu1 %v1287_v50 }
  0x2f   :  { %1156 = vmatpush3.bf16.msra.mxu0 %v1286_v49 }
  0x30   :  { %1157 = vmatprep.subr.bf16.mxu0 %v1289_v52 }
  0x31   :  { %1184 = vmatpush3.bf16.msra.mxu1 %v1288_v51 }
  0x32   :  { %1185 = vmatprep.subr.bf16.mxu1 %v1291_v54 }
  0x33   :  { %1158 = vmatpush3.bf16.msra.mxu0 %v1290_v53 }
  0x34   :  { %1159 = vmatprep.subr.bf16.mxu0 %v1293_v56 }
  0x35   :  { %1186 = vmatpush3.bf16.msra.mxu1 %v1292_v55 }
  0x36   :  { %1187 = vmatprep.subr.bf16.mxu1 %v1298_v60 }
  0x37   :  { %1160 = vmatpush3.bf16.msra.mxu0 %v1296_v58 }
  0x38   :  { %1161 = vmatprep.subr.bf16.mxu0 %v1303_v0 }
  0x39   :  { %1188 = vmatpush3.bf16.msra.mxu1 %v1301_v62 }
  0x3a   :  { %1189 = vmatprep.subr.bf16.mxu1 %v1305_v2 }
  0x3b   :  { %1162 = vmatpush3.bf16.msra.mxu0 %v1304_v1 }
  0x3c   :  { %1163 = vmatprep.subr.bf16.mxu0 %v1307_v4 }
  0x3d   :  { %1190 = vmatpush3.bf16.msra.mxu1 %v1306_v3 }
  0x3e   :  { %1191 = vmatprep.subr.bf16.mxu1 %v1309_v6 }
  0x3f   :  { %1164 = vmatpush3.bf16.msra.mxu0 %v1308_v5 }
  0x40   :  { %1215 = vmatprep.subr.bf16.mxu0 %v1314_v10 }
  0x41   :  { %1192 = vmatpush3.bf16.msra.mxu1 %v1313_v9 }
  0x42   :  { %841 = vmatmul.mubr.bf16.vlgmr.msra.gmra.mrb[8].mxu0 %v1310_v7 }
  0x43   :  { %1216 = vmatpush3.bf16.msra.mxu0 %v1314_v10  ;;  %848 = vmatprep.mubr.bf16.mxu0 %v1319_v14 }
  0x44   :  { %890 = vmatmul.mubr.bf16.vlgmr.msra.gmra.mrb[8].mxu1 %v1315_v11  ;;  %1217 = vmatprep.subr.bf16.mxu0 %v1318_v13 }
  0x45   :  { %897 = vmatprep.mubr.bf16.mxu1 %v1323_v17 }
  0x47   :  { %1218 = vmatpush3.bf16.msra.mxu0 %v1318_v13 }
  0x48   :  { %1219 = vmatprep.subr.bf16.mxu0 %v1322_v16 }
  0x4a   :  { %849 = vmatmul.mubr.bf16.gmra.mrb[12].mxu0 %v1321_v15 }
  0x4b   :  { %1220 = vmatpush3.bf16.msra.mxu0 %v1322_v16  ;;  %1231 = vmatprep.mubr.bf16.mxu0 %v1331_v21 }
  0x4c   :  { %898 = vmatmul.mubr.bf16.gmra.mrb[12].mxu1 %v1325_v18  ;;  %1221 = vmatprep.subr.bf16.mxu0 %v1326_v19 }
  0x4f   :  { %1222 = vmatpush3.bf16.msra.mxu0 %v1326_v19 }
  0x50   :  { %1223 = vmatprep.subr.bf16.mxu0 %v1327_v20 }
  0x53   :  { %1224 = vmatpush3.bf16.msra.mxu0 %v1327_v20 }
  0x54   :  { %1225 = vmatprep.subr.bf16.mxu0 %v1328_v22 }
  0x57   :  { %1226 = vmatpush3.bf16.msra.mxu0 %v1328_v22 }
  0x58   :  { %1227 = vmatprep.subr.bf16.mxu0 %v1329_v23 }
  0x5b   :  { %1228 = vmatpush3.bf16.msra.mxu0 %v1329_v23 }
  0x5c   :  { %1229 = vmatprep.subr.bf16.mxu0 %v1330_v24 }
  0x5f   :  { %1230 = vmatpush3.bf16.msra.mxu0 %v1330_v24 }
  0x62   :  { %1232 = vmatmul.mubr.bf16.vlgmr.msra.gmra.mrb[16].mxu0 %v1332_v25 }
  0xf5   :  { %v1109_v26 = vpop.f32.mrb[0].mxu0 }
  0xf6   :  { %v1110_v28 = vpop.f32.mrb[1].mxu0 }
  0xf7   :  { %v1111_v29 = vadd.f32 %v1110_v28, %v1109_v26  ;;  %v1112_v30 = vpop.f32.mrb[2].mxu0  ;;  %v1137_v31 = vpop.f32.mrb[0].mxu1 }
  0xf8   :  { %v1113_v32 = vpop.f32.mrb[3].mxu0  ;;  %v1138_v35 = vpop.f32.mrb[1].mxu1 }
  0xf9   :  { %v745_v33 = vadd.f32 %v1111_v29, %v983_v27  ;;  %v1114_v34 = vadd.f32 %v1113_v32, %v1112_v30  ;;  %v1139_v36 = vadd.f32 %v1138_v35, %v1137_v31  ;;  %v1140_v37 = vpop.f32.mrb[2].mxu1 }
  0xfa   :  { %v1141_v39 = vpop.f32.mrb[3].mxu1 }
  0xfb   :  { %v748_v38 = vadd.f32 %v1114_v34, %v983_v27  ;;  %v794_v40 = vadd.f32 %v1139_v36, %v745_v33  ;;  %v1142_v41 = vadd.f32 %v1141_v39, %v1140_v37 }
  0xfd   :  { %v797_v42 = vadd.f32 %v1142_v41, %v748_v38  ;;  %v1115_v43 = vpop.f32.mrb[4].mxu0 }
  0xfe   :  { %v1116_v44 = vpop.f32.mrb[5].mxu0 }
  0xff   :  { %v1117_v45 = vadd.f32 %v1116_v44, %v1115_v43  ;;  %v1118_v46 = vpop.f32.mrb[6].mxu0  ;;  %v1143_v47 = vpop.f32.mrb[4].mxu1 }
 0x100   :  { %v1119_v48 = vpop.f32.mrb[7].mxu0  ;;  %v1144_v51 = vpop.f32.mrb[5].mxu1 }
 0x101   :  { %v753_v49 = vadd.f32 %v1117_v45, %v983_v27  ;;  %v1120_v50 = vadd.f32 %v1119_v48, %v1118_v46  ;;  %v1145_v52 = vadd.f32 %v1144_v51, %v1143_v47  ;;  %v1146_v53 = vpop.f32.mrb[6].mxu1 }
 0x102   :  { %v1147_v55 = vpop.f32.mrb[7].mxu1 }
 0x103   :  { %v756_v54 = vadd.f32 %v1120_v50, %v983_v27  ;;  %v802_v56 = vadd.f32 %v1145_v52, %v753_v49  ;;  %v1148_v57 = vadd.f32 %v1147_v55, %v1146_v53 }
 0x105   :  { %v805_v58 = vadd.f32 %v1148_v57, %v756_v54 }
 0x115   :  { %v1165_v59 = vpop.f32.mrb[8].mxu0 }
 0x116   :  { %v1166_v60 = vpop.f32.mrb[9].mxu0 }
 0x117   :  { %v1167_v61 = vadd.f32 %v1166_v60, %v1165_v59  ;;  %v1168_v62 = vpop.f32.mrb[10].mxu0  ;;  %v1193_v63 = vpop.f32.mrb[8].mxu1 }
 0x118   :  { %v1169_v0 = vpop.f32.mrb[11].mxu0  ;;  %v1194_v3 = vpop.f32.mrb[9].mxu1 }
 0x119   :  { %v843_v1 = vadd.f32 %v1167_v61, %v794_v40  ;;  %v1170_v2 = vadd.f32 %v1169_v0, %v1168_v62  ;;  %v1195_v4 = vadd.f32 %v1194_v3, %v1193_v63  ;;  %v1196_v5 = vpop.f32.mrb[10].mxu1 }
 0x11a   :  { %v1197_v7 = vpop.f32.mrb[11].mxu1 }
 0x11b   :  { %v846_v6 = vadd.f32 %v1170_v2, %v797_v42  ;;  %v1198_v8 = vadd.f32 %v1197_v7, %v1196_v5  ;;  %v892_v9 = vadd.f32 %v1195_v4, %v843_v1 }
 0x11d   :  { %v1171_v10 = vpop.f32.mrb[12].mxu0  ;;  %v895_v12 = vadd.f32 %v1198_v8, %v846_v6 }
 0x11e   :  { %v1172_v11 = vpop.f32.mrb[13].mxu0 }
 0x11f   :  { %v1173_v13 = vadd.f32 %v1172_v11, %v1171_v10  ;;  %v1174_v14 = vpop.f32.mrb[14].mxu0  ;;  %v1199_v15 = vpop.f32.mrb[12].mxu1 }
 0x120   :  { %v1175_v16 = vpop.f32.mrb[15].mxu0  ;;  %v1200_v19 = vpop.f32.mrb[13].mxu1 }
 0x121   :  { %v851_v17 = vadd.f32 %v1173_v13, %v802_v56  ;;  %v1176_v18 = vadd.f32 %v1175_v16, %v1174_v14  ;;  %v1201_v20 = vadd.f32 %v1200_v19, %v1199_v15  ;;  %v1202_v21 = vpop.f32.mrb[14].mxu1 }
 0x122   :  { %v1203_v23 = vpop.f32.mrb[15].mxu1 }
 0x123   :  { %v854_v22 = vadd.f32 %v1176_v18, %v805_v58  ;;  %v1204_v24 = vadd.f32 %v1203_v23, %v1202_v21  ;;  %v900_v25 = vadd.f32 %v1201_v20, %v851_v17 }
 0x125   :  { %v903_v26 = vadd.f32 %v1204_v24, %v854_v22 }
 0x135   :  { %v1233_v27 = vpop.f32.mrb[16].mxu0 }
 0x136   :  { %v949_v28 = vadd.f32 %v1233_v27, %v900_v25  ;;  %v940_v29 = vpop.f32.mrb[17].mxu0 }
 0x137   :  { %v941_v30 = vadd.f32 %v940_v29, %v892_v9  ;;  %v1234_v31 = vpop.f32.mrb[18].mxu0 }
 0x138   :  { %v952_v32 = vadd.f32 %v1234_v31, %v903_v26  ;;  %v943_v33 = vpop.f32.mrb[19].mxu0  ;;  %v957_v35 = vmax.f32 %v949_v28, 0.0 }
 0x139   :  { %v944_v34 = vadd.f32 %v943_v33, %v895_v12  ;;  %v955_v37 = vmax.f32 %v941_v30, 0.0 }
 0x13a   :  { %v958_v36 = vmax.f32 %v952_v32, 0.0 }
 0x13b   :  { %v956_v38 = vmax.f32 %v944_v34, 0.0 }
 0x13c   :  { %v1090_v39 = vpack.c.bf16 %v958_v36, %v957_v35 }
 0x13d   :  { %v1085_v40 = vpack.c.bf16 %v956_v38, %v955_v37 }
 0x13e   :  { %1092 = vst [vmem:[%s1635_s3 + $0x8] sm:$0xff] %v1090_v39  }
 0x13f   :  { %1086 = vst [vmem:[%s1635_s3] sm:$0xff] %v1085_v40  }

// kernel: resbase_forward.28
= control target key start
LH: loop header
LB: loop body
LE: loop exit
PB: predicated region body
PF: predicated region fallthrough
CT: control target
= control target key end

     0   :  { %vm204_vm0 = vcmask 261120   ;;  %v309_v31 = vlaneseq  ;;  %s562_s1 = inlined_call_operand.vmem [shape: bf16[288,128], index: 1, kind: input, shape index: {}]   ;;  %s563_s0 = inlined_call_operand.vmem [shape: bf16[32,288], index: 0, kind: input, shape index: {}]   ;;  %s564_s2 = inlined_call_operand.vmem [shape: f32[1,128], index: 2, kind: input, shape index: {}]   ;;  %s565_s3 = inlined_call_operand.vmem [shape: bf16[32,128], index: 3, kind: output, shape index: {}]  }
   0x1   :  { %v431_v0 = vld [vmem:[%s562_s1 + $0x40] sm:$0xff]   ;;  %v433_v2 = vld [vmem:[%s562_s1 + $0x48] sm:$0xff]   ;;  %v435_v4 = vld [vmem:[%s562_s1 + $0x50] sm:$0xff]  }
   0x2   :  { %v432_v1 = vld [vmem:[%s562_s1] sm:$0xff]   ;;  %391 = vmatprep.subr.bf16.mxu0 %v431_v0  ;;  %v434_v3 = vld [vmem:[%s562_s1 + $0x8] sm:$0xff]   ;;  %v436_v5 = vld [vmem:[%s562_s1 + $0x10] sm:$0xff]   ;;  %v310_v37 = vand.u32 127, %v309_v31 }
   0x3   :  { %392 = vmatpush3.bf16.msra.mxu0 %v432_v1  ;;  %v437_v6 = vld [vmem:[%s562_s1 + $0x58] sm:$0xff]   ;;  %v439_v8 = vld [vmem:[%s562_s1 + $0x60] sm:$0xff]   ;;  %v441_v11 = vld [vmem:[%s562_s1 + $0x68] sm:$0xff]  }
   0x4   :  { %393 = vmatprep.subr.bf16.mxu0 %v433_v2  ;;  %v438_v7 = vld [vmem:[%s562_s1 + $0x18] sm:$0xff]   ;;  %v440_v9 = vld [vmem:[%s562_s1 + $0x20] sm:$0xff]   ;;  %v442_v12 = vld [vmem:[%s562_s1 + $0x28] sm:$0xff]   ;;  %vm312_vm1 = vcmp.lt.s32.totalorder %v310_v37, 64 }
   0x5   :  { %v446_v10 = vld [vmem:[%s562_s1 + $0x80] sm:$0xff]   ;;  %v443_v13 = vld [vmem:[%s562_s1 + $0x70] sm:$0xff]   ;;  %v451_v15 = vld [vmem:[%s562_s1 + $0x88] sm:$0xff]  }
   0x6   :  { %423 = vmatprep.subr.bf16.mxu1 %v446_v10  ;;  %v450_v14 = vld [vmem:[%s563_s0 + $0x4] ss:$12 sps:$4 sm:$0xff]   ;;  %v452_v16 = vld [vmem:[%s563_s0 + $0x8] ss:$12 sps:$4 sm:$0xff]   ;;  %v453_v17 = vld [vmem:[%s563_s0 + $0x20] ss:$12 sps:$4 sm:$0xff]  }
   0x7   :  { %394 = vmatpush3.bf16.msra.mxu0 %v434_v3  ;;  %424 = vmatpush3.bf16.msra.mxu1 %v446_v10  ;;  %v444_v18 = vld [vmem:[%s562_s1 + $0x30] sm:$0xff]   ;;  %v445_v19 = vld [vmem:[%s562_s1 + $0x78] sm:$0xff]   ;;  %v448_v21 = vld [vmem:[%s563_s0] ss:$12 sps:$4 sm:$0xff]  }
   0x8   :  { %395 = vmatprep.subr.bf16.mxu0 %v435_v4  ;;  %243 = vmatprep.mubr.bf16.mxu0 %v450_v14  ;;  %v447_v20 = vld [vmem:[%s562_s1 + $0x38] sm:$0xff]   ;;  %v345_v30 = vld [vmem:[%s564_s2] ss:$0 sm:$0xff] }
   0x9   :  { %425 = vmatprep.subr.bf16.mxu1 %v451_v15  ;;  %427 = vmatprep.mubr.msk.bf16.mxu1 %vm204_vm0, %v452_v16  ;;  %v454_v22 = vld [vmem:[%s563_s0 + $0x1c] ss:$12 sps:$4 sm:$0xff]   ;;  %v456_v23 = vld [vmem:[%s563_s0 + $0x18] ss:$12 sps:$4 sm:$0xff]  }
   0xb   :  { %396 = vmatpush3.bf16.msra.mxu0 %v436_v5  ;;  %426 = vmatpush3.bf16.msra.mxu1 %v451_v15 }
   0xc   :  { %397 = vmatprep.subr.bf16.mxu0 %v437_v6 }
   0xe   :  { %428 = vmatmul.mubr.msk.bf16.vlgmr.msra.gmra.mrb[0].mxu1 %vm204_vm0, %v453_v17 }
   0xf   :  { %398 = vmatpush3.bf16.msra.mxu0 %v438_v7 }
  0x10   :  { %399 = vmatprep.subr.bf16.mxu0 %v439_v8 }
  0x13   :  { %400 = vmatpush3.bf16.msra.mxu0 %v440_v9 }
  0x14   :  { %401 = vmatprep.subr.bf16.mxu0 %v441_v11 }
  0x17   :  { %402 = vmatpush3.bf16.msra.mxu0 %v442_v12 }
  0x18   :  { %403 = vmatprep.subr.bf16.mxu0 %v443_v13 }
  0x1b   :  { %404 = vmatpush3.bf16.msra.mxu0 %v444_v18 }
  0x1c   :  { %405 = vmatprep.subr.bf16.mxu0 %v445_v19 }
  0x1f   :  { %406 = vmatpush3.bf16.msra.mxu0 %v447_v20 }
  0x22   :  { %244 = vmatmul.mubr.bf16.vlgmr.msra.gmra.mrb[0].mxu0 %v448_v21 }
  0x23   :  { %251 = vmatprep.mubr.bf16.mxu0 %v454_v22 }
  0x2a   :  { %252 = vmatmul.mubr.bf16.gmra.mrb[4].mxu0 %v456_v23 }
  0xe1   :  { %v429_v24 = vpop.f32.mrb[0].mxu1 }
  0xe2   :  { %v294_v25 = vpop.f32.mrb[1].mxu1 }
  0xe3   :  { %v430_v26 = vpop.f32.mrb[2].mxu1 }
  0xe4   :  { %v297_v27 = vpop.f32.mrb[3].mxu1 }
  0xf5   :  { %v407_v28 = vpop.f32.mrb[0].mxu0 }
  0xf6   :  { %v408_v29 = vpop.f32.mrb[1].mxu0 }
  0xf7   :  { %v409_v32 = vadd.f32 %v408_v29, %v407_v28  ;;  %v410_v33 = vpop.f32.mrb[2].mxu0 }
  0xf8   :  { %v411_v34 = vpop.f32.mrb[3].mxu0 }
  0xf9   :  { %v412_v35 = vadd.f32 %v411_v34, %v410_v33  ;;  %v246_v36 = vadd.f32 %v409_v32, %v345_v30 }
  0xfb   :  { %v295_v38 = vadd.f32 %v294_v25, %v246_v36  ;;  %v249_v39 = vadd.f32 %v412_v35, %v345_v30 }
  0xfd   :  { %v313_v40 = vmax.f32 %v295_v38, 0.0  ;;  %v298_v41 = vadd.f32 %v297_v27, %v249_v39  ;;  %v413_v42 = vpop.f32.mrb[4].mxu0 }
  0xfe   :  { %v414_v43 = vpop.f32.mrb[5].mxu0 }
  0xff   :  { %v314_v44 = vmax.f32 %v298_v41, 0.0  ;;  %v415_v45 = vadd.f32 %v414_v43, %v413_v42  ;;  %v416_v46 = vpop.f32.mrb[6].mxu0  ;;  %v317_v48 = vsel %vm312_vm1, %v313_v40, %v295_v38 }
 0x100   :  { %v417_v47 = vpop.f32.mrb[7].mxu0 }
 0x101   :  { %v318_v49 = vsel %vm312_vm1, %v314_v44, %v298_v41  ;;  %v254_v50 = vadd.f32 %v415_v45, %v345_v30  ;;  %v418_v51 = vadd.f32 %v417_v47, %v416_v46 }
 0x102   :  { %v383_v52 = vpack.c.bf16 %v318_v49, %v317_v48 }
 0x103   :  { %v303_v53 = vadd.f32 %v429_v24, %v254_v50  ;;  %v257_v54 = vadd.f32 %v418_v51, %v345_v30 }
 0x104   :  { %384 = vst [vmem:[%s565_s3] sm:$0xff] %v383_v52  }
 0x105   :  { %v315_v55 = vmax.f32 %v303_v53, 0.0  ;;  %v306_v56 = vadd.f32 %v430_v26, %v257_v54 }
 0x107   :  { %v316_v57 = vmax.f32 %v306_v56, 0.0  ;;  %v319_v58 = vsel %vm312_vm1, %v315_v55, %v303_v53 }
 0x109   :  { %v320_v59 = vsel %vm312_vm1, %v316_v57, %v306_v56 }
 0x10a   :  { %v388_v60 = vpack.c.bf16 %v320_v59, %v319_v58 }
 0x10c   :  { %390 = vst [vmem:[%s565_s3 + $0x8] sm:$0xff] %v388_v60  }

// kernel: resbase_forward.30
= control target key start
LH: loop header
LB: loop body
LE: loop exit
PB: predicated region body
PF: predicated region fallthrough
CT: control target
= control target key end

     0   :  { %vm1171_vm0 = vmmov 0   ;;  %s1441_s1 = inlined_call_operand.vmem [shape: bf16[1152,128], index: 1, kind: input, shape index: {}]   ;;  %s1442_s0 = inlined_call_operand.vmem [shape: bf16[16,1152], index: 0, kind: input, shape index: {}]   ;;  %s1443_s2 = inlined_call_operand.vmem [shape: f32[1,128], index: 2, kind: input, shape index: {}]   ;;  %s1444_s3 = inlined_call_operand.vmem [shape: bf16[16,128], index: 3, kind: output, shape index: {}]  }
   0x1   :  { %v1085_v0 = vld [vmem:[%s1441_s1 + $0x40] sm:$0xff]   ;;  %v1089_v4 = vld [vmem:[%s1441_s1 + $0x48] sm:$0xff]   ;;  %v1093_v8 = vld [vmem:[%s1441_s1 + $0x50] sm:$0xff]  }
   0x2   :  { %v1086_v1 = vld [vmem:[%s1441_s1] sm:$0xff]   ;;  %966 = vmatprep.subr.bf16.mxu0 %v1085_v0  ;;  %v1090_v5 = vld [vmem:[%s1441_s1 + $0x8] sm:$0xff]   ;;  %v1094_v9 = vld [vmem:[%s1441_s1 + $0x10] sm:$0xff]  }
   0x3   :  { %v1087_v2 = vld [vmem:[%s1441_s1 + $0xc0] sm:$0xff]   ;;  %967 = vmatpush3.bf16.msra.mxu0 %v1086_v1  ;;  %v1091_v6 = vld [vmem:[%s1441_s1 + $0xc8] sm:$0xff]   ;;  %v1095_v10 = vld [vmem:[%s1441_s1 + $0xd0] sm:$0xff]  }
   0x4   :  { %v1088_v3 = vld [vmem:[%s1441_s1 + $0x80] sm:$0xff]   ;;  %988 = vmatprep.subr.bf16.mxu1 %v1087_v2  ;;  %968 = vmatprep.subr.bf16.mxu0 %v1089_v4  ;;  %v1092_v7 = vld [vmem:[%s1441_s1 + $0x88] sm:$0xff]   ;;  %v1096_v11 = vld [vmem:[%s1441_s1 + $0x90] sm:$0xff]  }
   0x5   :  { %989 = vmatpush3.bf16.msra.mxu1 %v1088_v3  ;;  %v1097_v12 = vld [vmem:[%s1441_s1 + $0x58] sm:$0xff]   ;;  %v1101_v16 = vld [vmem:[%s1441_s1 + $0x60] sm:$0xff]   ;;  %v1105_v20 = vld [vmem:[%s1441_s1 + $0x68] sm:$0xff]  }
   0x6   :  { %990 = vmatprep.subr.bf16.mxu1 %v1091_v6  ;;  %v1098_v13 = vld [vmem:[%s1441_s1 + $0x18] sm:$0xff]   ;;  %v1102_v17 = vld [vmem:[%s1441_s1 + $0x20] sm:$0xff]   ;;  %v1106_v21 = vld [vmem:[%s1441_s1 + $0x28] sm:$0xff]   ;;  %v1170_v6 = vmov 0.0  }
   0x7   :  { %969 = vmatpush3.bf16.msra.mxu0 %v1090_v5  ;;  %v1099_v14 = vld [vmem:[%s1441_s1 + $0xd8] sm:$0xff]   ;;  %v1103_v18 = vld [vmem:[%s1441_s1 + $0xe0] sm:$0xff]   ;;  %v1107_v22 = vld [vmem:[%s1441_s1 + $0xe8] sm:$0xff]  }
   0x8   :  { %970 = vmatprep.subr.bf16.mxu0 %v1093_v8  ;;  %v1100_v15 = vld [vmem:[%s1441_s1 + $0x98] sm:$0xff]   ;;  %v1104_v19 = vld [vmem:[%s1441_s1 + $0xa0] sm:$0xff]   ;;  %v1108_v23 = vld [vmem:[%s1441_s1 + $0xa8] sm:$0xff]  }
   0x9   :  { %991 = vmatpush3.bf16.msra.mxu1 %v1092_v7  ;;  %v1109_v24 = vld [vmem:[%s1441_s1 + $0x70] sm:$0xff]   ;;  %v1113_v28 = vld [vmem:[%s1441_s1 + $0x78] sm:$0xff]   ;;  %v1116_v31 = vld [vmem:[%s1442_s0] ss:$36 sps:$4 sm:$0xff]  }
   0xa   :  { %992 = vmatprep.subr.bf16.mxu1 %v1095_v10  ;;  %v1110_v25 = vld [vmem:[%s1441_s1 + $0x30] sm:$0xff]   ;;  %v1114_v29 = vld [vmem:[%s1441_s1 + $0x38] sm:$0xff]   ;;  %v1118_v32 = vld [vmem:[%s1442_s0 + $0x4] ss:$36 sps:$4 sm:$0xff]  }
   0xb   :  { %971 = vmatpush3.bf16.msra.mxu0 %v1094_v9  ;;  %v1111_v26 = vld [vmem:[%s1441_s1 + $0xf0] sm:$0xff]   ;;  %v1115_v30 = vld [vmem:[%s1441_s1 + $0xf8] sm:$0xff]   ;;  %686 = vmatprep.mubr.bf16.mxu0 %v1118_v32  ;;  %v1120_v34 = vld [vmem:[%s1441_s1 + $0x140] sm:$0xff]  }
   0xc   :  { %972 = vmatprep.subr.bf16.mxu0 %v1097_v12  ;;  %v1112_v27 = vld [vmem:[%s1441_s1 + $0xb0] sm:$0xff]   ;;  %v1119_v33 = vld [vmem:[%s1441_s1 + $0xb8] sm:$0xff]   ;;  %v1121_v35 = vld [vmem:[%s1442_s0 + $0x8] ss:$36 sps:$4 sm:$0xff]  }
   0xd   :  { %993 = vmatpush3.bf16.msra.mxu1 %v1096_v11  ;;  %v1123_v36 = vld [vmem:[%s1442_s0 + $0xc] ss:$36 sps:$4 sm:$0xff]   ;;  %v1124_v37 = vld [vmem:[%s1441_s1 + $0x100] sm:$0xff]   ;;  %v1135_v48 = vld [vmem:[%s1441_s1 + $0x158] sm:$0xff]  }
   0xe   :  { %994 = vmatprep.subr.bf16.mxu1 %v1099_v14  ;;  %727 = vmatprep.mubr.bf16.mxu1 %v1123_v36  ;;  %v1125_v38 = vld [vmem:[%s1441_s1 + $0x1c0] sm:$0xff]   ;;  %v1127_v40 = vld [vmem:[%s1441_s1 + $0x148] sm:$0xff]   ;;  %v1131_v44 = vld [vmem:[%s1441_s1 + $0x150] sm:$0xff]  }
   0xf   :  { %973 = vmatpush3.bf16.msra.mxu0 %v1098_v13  ;;  %v1126_v39 = vld [vmem:[%s1441_s1 + $0x180] sm:$0xff]   ;;  %v1128_v41 = vld [vmem:[%s1441_s1 + $0x108] sm:$0xff]   ;;  %v1132_v45 = vld [vmem:[%s1441_s1 + $0x110] sm:$0xff]  }
  0x10   :  { %974 = vmatprep.subr.bf16.mxu0 %v1101_v16  ;;  %v1129_v42 = vld [vmem:[%s1441_s1 + $0x1c8] sm:$0xff]   ;;  %v1133_v46 = vld [vmem:[%s1441_s1 + $0x1d0] sm:$0xff]   ;;  %v1136_v49 = vld [vmem:[%s1441_s1 + $0x118] sm:$0xff]  }
  0x11   :  { %995 = vmatpush3.bf16.msra.mxu1 %v1100_v15  ;;  %v1130_v43 = vld [vmem:[%s1441_s1 + $0x188] sm:$0xff]   ;;  %v1134_v47 = vld [vmem:[%s1441_s1 + $0x190] sm:$0xff]   ;;  %v1137_v50 = vld [vmem:[%s1441_s1 + $0x1d8] sm:$0xff]  }
  0x12   :  { %996 = vmatprep.subr.bf16.mxu1 %v1103_v18  ;;  %v1138_v51 = vld [vmem:[%s1441_s1 + $0x198] sm:$0xff]   ;;  %v1139_v52 = vld [vmem:[%s1441_s1 + $0x160] sm:$0xff]   ;;  %v1143_v56 = vld [vmem:[%s1441_s1 + $0x168] sm:$0xff]  }
  0x13   :  { %975 = vmatpush3.bf16.msra.mxu0 %v1102_v17  ;;  %v1140_v53 = vld [vmem:[%s1441_s1 + $0x120] sm:$0xff]   ;;  %v1144_v57 = vld [vmem:[%s1441_s1 + $0x128] sm:$0xff]   ;;  %v1147_v60 = vld [vmem:[%s1441_s1 + $0x170] sm:$0xff]  }
  0x14   :  { %976 = vmatprep.subr.bf16.mxu0 %v1105_v20  ;;  %v1141_v54 = vld [vmem:[%s1441_s1 + $0x1e0] sm:$0xff]   ;;  %v1145_v58 = vld [vmem:[%s1441_s1 + $0x1e8] sm:$0xff]   ;;  %v1148_v61 = vld [vmem:[%s1441_s1 + $0x130] sm:$0xff]  }
  0x15   :  { %997 = vmatpush3.bf16.msra.mxu1 %v1104_v19  ;;  %v1142_v55 = vld [vmem:[%s1441_s1 + $0x1a0] sm:$0xff]   ;;  %v1146_v59 = vld [vmem:[%s1441_s1 + $0x1a8] sm:$0xff]   ;;  %v1149_v62 = vld [vmem:[%s1441_s1 + $0x1f0] sm:$0xff]  }
  0x16   :  { %998 = vmatprep.subr.bf16.mxu1 %v1107_v22  ;;  %v1150_v63 = vld [vmem:[%s1441_s1 + $0x1b0] sm:$0xff]   ;;  %v1151_v0 = vld [vmem:[%s1441_s1 + $0x178] sm:$0xff]   ;;  %v1161_v9 = vld [vmem:[%s1441_s1 + $0x200] sm:$0xff]  }
  0x17   :  { %977 = vmatpush3.bf16.msra.mxu0 %v1106_v21  ;;  %v1152_v1 = vld [vmem:[%s1441_s1 + $0x138] sm:$0xff]   ;;  %v1154_v3 = vld [vmem:[%s1442_s0 + $0x10] ss:$36 sps:$4 sm:$0xff]   ;;  %v1162_v10 = vld [vmem:[%s1441_s1 + $0x208] sm:$0xff]  }
  0x18   :  { %978 = vmatprep.subr.bf16.mxu0 %v1109_v24  ;;  %v1153_v2 = vld [vmem:[%s1441_s1 + $0x1f8] sm:$0xff]   ;;  %v1163_v11 = vld [vmem:[%s1441_s1 + $0x210] sm:$0xff]   ;;  %v1165_v13 = vld [vmem:[%s1441_s1 + $0x220] sm:$0xff]  }
  0x19   :  { %999 = vmatpush3.bf16.msra.mxu1 %v1108_v23  ;;  %v1156_v4 = vld [vmem:[%s1442_s0 + $0x14] ss:$36 sps:$4 sm:$0xff]   ;;  %v1160_v8 = vld [vmem:[%s1442_s0 + $0x1c] ss:$36 sps:$4 sm:$0xff]   ;;  %v1166_v14 = vld [vmem:[%s1441_s1 + $0x228] sm:$0xff]  }
  0x1a   :  { %1000 = vmatprep.subr.bf16.mxu1 %v1111_v26  ;;  %v1157_v5 = vld [vmem:[%s1441_s1 + $0x1b8] sm:$0xff]   ;;  %v1167_v15 = vld [vmem:[%s1441_s1 + $0x230] sm:$0xff]   ;;  %v1169_v17 = vld [vmem:[%s1442_s0 + $0x20] ss:$36 sps:$4 sm:$0xff]  }
  0x1b   :  { %979 = vmatpush3.bf16.msra.mxu0 %v1110_v25  ;;  %v1158_v7 = vld [vmem:[%s1442_s0 + $0x18] ss:$36 sps:$4 sm:$0xff]   ;;  %v875_v19 = vld [vmem:[%s1443_s2] ss:$0 sm:$0xff] }
  0x1c   :  { %980 = vmatprep.subr.bf16.mxu0 %v1113_v28  ;;  %v1164_v12 = vld [vmem:[%s1441_s1 + $0x218] sm:$0xff]  }
  0x1d   :  { %1001 = vmatpush3.bf16.msra.mxu1 %v1112_v27  ;;  %v1168_v16 = vld [vmem:[%s1441_s1 + $0x238] sm:$0xff]  }
  0x1e   :  { %1002 = vmatprep.subr.bf16.mxu1 %v1115_v30 }
  0x1f   :  { %981 = vmatpush3.bf16.msra.mxu0 %v1114_v29 }
  0x20   :  { %1010 = vmatprep.subr.bf16.mxu0 %v1120_v34 }
  0x21   :  { %1003 = vmatpush3.bf16.msra.mxu1 %v1119_v33 }
  0x22   :  { %687 = vmatmul.mubr.bf16.vlgmr.msra.gmra.mrb[0].mxu0 %v1116_v31  ;;  %1032 = vmatprep.subr.bf16.mxu1 %v1125_v38 }
  0x23   :  { %1011 = vmatpush3.bf16.msra.mxu0 %v1124_v37  ;;  %768 = vmatprep.mubr.bf16.mxu0 %v1156_v4 }
  0x24   :  { %728 = vmatmul.mubr.bf16.vlgmr.msra.gmra.mrb[0].mxu1 %v1121_v35  ;;  %1012 = vmatprep.subr.bf16.mxu0 %v1127_v40 }
  0x25   :  { %1033 = vmatpush3.bf16.msra.mxu1 %v1126_v39  ;;  %809 = vmatprep.mubr.bf16.mxu1 %v1160_v8 }
  0x26   :  { %1034 = vmatprep.subr.bf16.mxu1 %v1129_v42 }
  0x27   :  { %1013 = vmatpush3.bf16.msra.mxu0 %v1128_v41 }
  0x28   :  { %1014 = vmatprep.subr.bf16.mxu0 %v1131_v44 }
  0x29   :  { %1035 = vmatpush3.bf16.msra.mxu1 %v1130_v43 }
  0x2a   :  { %1036 = vmatprep.subr.bf16.mxu1 %v1133_v46 }
  0x2b   :  { %1015 = vmatpush3.bf16.msra.mxu0 %v1132_v45 }
  0x2c   :  { %1016 = vmatprep.subr.bf16.mxu0 %v1135_v48 }
  0x2d   :  { %1037 = vmatpush3.bf16.msra.mxu1 %v1134_v47 }
  0x2e   :  { %1038 = vmatprep.subr.bf16.mxu1 %v1137_v50 }
  0x2f   :  { %1017 = vmatpush3.bf16.msra.mxu0 %v1136_v49 }
  0x30   :  { %1018 = vmatprep.subr.bf16.mxu0 %v1139_v52 }
  0x31   :  { %1039 = vmatpush3.bf16.msra.mxu1 %v1138_v51 }
  0x32   :  { %1040 = vmatprep.subr.bf16.mxu1 %v1141_v54 }
  0x33   :  { %1019 = vmatpush3.bf16.msra.mxu0 %v1140_v53 }
  0x34   :  { %1020 = vmatprep.subr.bf16.mxu0 %v1143_v56 }
  0x35   :  { %1041 = vmatpush3.bf16.msra.mxu1 %v1142_v55 }
  0x36   :  { %1042 = vmatprep.subr.bf16.mxu1 %v1145_v58 }
  0x37   :  { %1021 = vmatpush3.bf16.msra.mxu0 %v1144_v57 }
  0x38   :  { %1022 = vmatprep.subr.bf16.mxu0 %v1147_v60 }
  0x39   :  { %1043 = vmatpush3.bf16.msra.mxu1 %v1146_v59 }
  0x3a   :  { %1044 = vmatprep.subr.bf16.mxu1 %v1149_v62 }
  0x3b   :  { %1023 = vmatpush3.bf16.msra.mxu0 %v1148_v61 }
  0x3c   :  { %1024 = vmatprep.subr.bf16.mxu0 %v1151_v0 }
  0x3d   :  { %1045 = vmatpush3.bf16.msra.mxu1 %v1150_v63 }
  0x3e   :  { %1046 = vmatprep.subr.bf16.mxu1 %v1153_v2 }
  0x3f   :  { %1025 = vmatpush3.bf16.msra.mxu0 %v1152_v1 }
  0x40   :  { %1063 = vmatprep.subr.bf16.mxu0 %v1170_v6 }
  0x41   :  { %1047 = vmatpush3.bf16.msra.mxu1 %v1157_v5 }
  0x42   :  { %769 = vmatmul.mubr.bf16.vlgmr.msra.gmra.mrb[4].mxu0 %v1154_v3 }
  0x43   :  { %1079 = vmatprep.mubr.msk.bf16.mxu0 %vm1171_vm0, %v1170_v6  ;;  %1064 = vmatpush3.bf16.msra.mxu0 %v1161_v9 }
  0x44   :  { %810 = vmatmul.mubr.bf16.vlgmr.msra.gmra.mrb[4].mxu1 %v1158_v7  ;;  %1065 = vmatprep.subr.bf16.mxu0 %v1170_v6 }
  0x47   :  { %1066 = vmatpush3.bf16.msra.mxu0 %v1162_v10 }
  0x48   :  { %1067 = vmatprep.subr.bf16.mxu0 %v1170_v6 }
  0x4b   :  { %1068 = vmatpush3.bf16.msra.mxu0 %v1163_v11 }
  0x4c   :  { %1069 = vmatprep.subr.bf16.mxu0 %v1170_v6 }
  0x4f   :  { %1070 = vmatpush3.bf16.msra.mxu0 %v1164_v12 }
  0x50   :  { %1071 = vmatprep.subr.bf16.mxu0 %v1170_v6 }
  0x53   :  { %1072 = vmatpush3.bf16.msra.mxu0 %v1165_v13 }
  0x54   :  { %1073 = vmatprep.subr.bf16.mxu0 %v1170_v6 }
  0x57   :  { %1074 = vmatpush3.bf16.msra.mxu0 %v1166_v14 }
  0x58   :  { %1075 = vmatprep.subr.bf16.mxu0 %v1170_v6 }
  0x5b   :  { %1076 = vmatpush3.bf16.msra.mxu0 %v1167_v15 }
  0x5c   :  { %1077 = vmatprep.subr.bf16.mxu0 %v1170_v6 }
  0x5f   :  { %1078 = vmatpush3.bf16.msra.mxu0 %v1168_v16 }
  0x62   :  { %1080 = vmatmul.mubr.bf16.vlgmr.msra.gmra.mrb[8].mxu0 %v1169_v17 }
  0xf5   :  { %v982_v18 = vpop.f32.mrb[0].mxu0 }
  0xf6   :  { %v983_v20 = vpop.f32.mrb[1].mxu0 }
  0xf7   :  { %v984_v21 = vadd.f32 %v983_v20, %v982_v18  ;;  %v985_v22 = vpop.f32.mrb[2].mxu0  ;;  %v1004_v23 = vpop.f32.mrb[0].mxu1 }
  0xf8   :  { %v986_v24 = vpop.f32.mrb[3].mxu0  ;;  %v1005_v27 = vpop.f32.mrb[1].mxu1 }
  0xf9   :  { %v689_v25 = vadd.f32 %v984_v21, %v875_v19  ;;  %v987_v26 = vadd.f32 %v986_v24, %v985_v22  ;;  %v1006_v28 = vadd.f32 %v1005_v27, %v1004_v23  ;;  %v1007_v29 = vpop.f32.mrb[2].mxu1 }
  0xfa   :  { %v1008_v31 = vpop.f32.mrb[3].mxu1 }
  0xfb   :  { %v692_v30 = vadd.f32 %v987_v26, %v875_v19  ;;  %v730_v32 = vadd.f32 %v1006_v28, %v689_v25  ;;  %v1009_v33 = vadd.f32 %v1008_v31, %v1007_v29 }
  0xfd   :  { %v733_v34 = vadd.f32 %v1009_v33, %v692_v30 }
 0x115   :  { %v1026_v35 = vpop.f32.mrb[4].mxu0 }
 0x116   :  { %v1027_v36 = vpop.f32.mrb[5].mxu0 }
 0x117   :  { %v1028_v37 = vadd.f32 %v1027_v36, %v1026_v35  ;;  %v1029_v38 = vpop.f32.mrb[6].mxu0  ;;  %v1048_v39 = vpop.f32.mrb[4].mxu1 }
 0x118   :  { %v1030_v40 = vpop.f32.mrb[7].mxu0  ;;  %v1049_v43 = vpop.f32.mrb[5].mxu1 }
 0x119   :  { %v771_v41 = vadd.f32 %v1028_v37, %v730_v32  ;;  %v1031_v42 = vadd.f32 %v1030_v40, %v1029_v38  ;;  %v1050_v44 = vadd.f32 %v1049_v43, %v1048_v39  ;;  %v1051_v45 = vpop.f32.mrb[6].mxu1 }
 0x11a   :  { %v1052_v47 = vpop.f32.mrb[7].mxu1 }
 0x11b   :  { %v774_v46 = vadd.f32 %v1031_v42, %v733_v34  ;;  %v1053_v48 = vadd.f32 %v1052_v47, %v1051_v45  ;;  %v812_v49 = vadd.f32 %v1050_v44, %v771_v41 }
 0x11d   :  { %v815_v50 = vadd.f32 %v1053_v48, %v774_v46 }
 0x135   :  { %v852_v51 = vpop.f32.mrb[8].mxu0 }
 0x136   :  { %v853_v52 = vadd.f32 %v852_v51, %v812_v49  ;;  %v1081_v53 = vpop.f32.mrb[9].mxu0 }
 0x137   :  { %v855_v54 = vpop.f32.mrb[10].mxu0 }
 0x138   :  { %v856_v55 = vadd.f32 %v855_v54, %v815_v50  ;;  %v1082_v56 = vpop.f32.mrb[11].mxu0  ;;  %v859_v57 = vmax.f32 %v853_v52, 0.0 }
 0x13a   :  { %v860_v58 = vmax.f32 %v856_v55, 0.0 }
 0x13c   :  { %v964_v59 = vpack.c.bf16 %v860_v58, %v859_v57 }
 0x13e   :  { %965 = vst [vmem:[%s1444_s3] sm:$0xff] %v964_v59  }

// kernel: resbase_forward.29
= control target key start
LH: loop header
LB: loop body
LE: loop exit
PB: predicated region body
PF: predicated region fallthrough
CT: control target
= control target key end

     0   :  { %vm1184_vm0 = vmmov 0   ;;  %s1462_s1 = inlined_call_operand.vmem [shape: bf16[1152,128], index: 1, kind: input, shape index: {}]   ;;  %s1463_s0 = inlined_call_operand.vmem [shape: bf16[16,1152], index: 0, kind: input, shape index: {}]   ;;  %s1464_s2 = inlined_call_operand.vmem [shape: f32[1,128], index: 2, kind: input, shape index: {}]   ;;  %s1465_s3 = inlined_call_operand.vmem [shape: bf16[16,128], index: 3, kind: input, shape index: {}]   ;;  %s1466_s4 = inlined_call_operand.vmem [shape: bf16[16,128], index: 4, kind: output, shape index: {}]  }
   0x1   :  { %v1098_v0 = vld [vmem:[%s1462_s1 + $0x40] sm:$0xff]   ;;  %v1102_v4 = vld [vmem:[%s1462_s1 + $0x48] sm:$0xff]   ;;  %v1106_v8 = vld [vmem:[%s1462_s1 + $0x50] sm:$0xff]  }
   0x2   :  { %v1099_v1 = vld [vmem:[%s1462_s1] sm:$0xff]   ;;  %979 = vmatprep.subr.bf16.mxu0 %v1098_v0  ;;  %v1103_v5 = vld [vmem:[%s1462_s1 + $0x8] sm:$0xff]   ;;  %v1107_v9 = vld [vmem:[%s1462_s1 + $0x10] sm:$0xff]  }
   0x3   :  { %v1100_v2 = vld [vmem:[%s1462_s1 + $0xc0] sm:$0xff]   ;;  %980 = vmatpush3.bf16.msra.mxu0 %v1099_v1  ;;  %v1104_v6 = vld [vmem:[%s1462_s1 + $0xc8] sm:$0xff]   ;;  %v1108_v10 = vld [vmem:[%s1462_s1 + $0xd0] sm:$0xff]  }
   0x4   :  { %v1101_v3 = vld [vmem:[%s1462_s1 + $0x80] sm:$0xff]   ;;  %1001 = vmatprep.subr.bf16.mxu1 %v1100_v2  ;;  %981 = vmatprep.subr.bf16.mxu0 %v1102_v4  ;;  %v1105_v7 = vld [vmem:[%s1462_s1 + $0x88] sm:$0xff]   ;;  %v1109_v11 = vld [vmem:[%s1462_s1 + $0x90] sm:$0xff]  }
   0x5   :  { %1002 = vmatpush3.bf16.msra.mxu1 %v1101_v3  ;;  %v1110_v12 = vld [vmem:[%s1462_s1 + $0x58] sm:$0xff]   ;;  %v1114_v16 = vld [vmem:[%s1462_s1 + $0x60] sm:$0xff]   ;;  %v1118_v20 = vld [vmem:[%s1462_s1 + $0x68] sm:$0xff]  }
   0x6   :  { %1003 = vmatprep.subr.bf16.mxu1 %v1104_v6  ;;  %v1111_v13 = vld [vmem:[%s1462_s1 + $0x18] sm:$0xff]   ;;  %v1115_v17 = vld [vmem:[%s1462_s1 + $0x20] sm:$0xff]   ;;  %v1119_v21 = vld [vmem:[%s1462_s1 + $0x28] sm:$0xff]   ;;  %v1183_v6 = vmov 0.0  }
   0x7   :  { %982 = vmatpush3.bf16.msra.mxu0 %v1103_v5  ;;  %v1112_v14 = vld [vmem:[%s1462_s1 + $0xd8] sm:$0xff]   ;;  %v1116_v18 = vld [vmem:[%s1462_s1 + $0xe0] sm:$0xff]   ;;  %v1120_v22 = vld [vmem:[%s1462_s1 + $0xe8] sm:$0xff]  }
   0x8   :  { %983 = vmatprep.subr.bf16.mxu0 %v1106_v8  ;;  %v1113_v15 = vld [vmem:[%s1462_s1 + $0x98] sm:$0xff]   ;;  %v1117_v19 = vld [vmem:[%s1462_s1 + $0xa0] sm:$0xff]   ;;  %v1121_v23 = vld [vmem:[%s1462_s1 + $0xa8] sm:$0xff]  }
   0x9   :  { %1004 = vmatpush3.bf16.msra.mxu1 %v1105_v7  ;;  %v1122_v24 = vld [vmem:[%s1462_s1 + $0x70] sm:$0xff]   ;;  %v1126_v28 = vld [vmem:[%s1462_s1 + $0x78] sm:$0xff]   ;;  %v1129_v31 = vld [vmem:[%s1463_s0] ss:$36 sps:$4 sm:$0xff]  }
   0xa   :  { %1005 = vmatprep.subr.bf16.mxu1 %v1108_v10  ;;  %v1123_v25 = vld [vmem:[%s1462_s1 + $0x30] sm:$0xff]   ;;  %v1127_v29 = vld [vmem:[%s1462_s1 + $0x38] sm:$0xff]   ;;  %v1131_v32 = vld [vmem:[%s1463_s0 + $0x4] ss:$36 sps:$4 sm:$0xff]  }
   0xb   :  { %984 = vmatpush3.bf16.msra.mxu0 %v1107_v9  ;;  %v1124_v26 = vld [vmem:[%s1462_s1 + $0xf0] sm:$0xff]   ;;  %v1128_v30 = vld [vmem:[%s1462_s1 + $0xf8] sm:$0xff]   ;;  %689 = vmatprep.mubr.bf16.mxu0 %v1131_v32  ;;  %v1133_v34 = vld [vmem:[%s1462_s1 + $0x140] sm:$0xff]  }
   0xc   :  { %985 = vmatprep.subr.bf16.mxu0 %v1110_v12  ;;  %v1125_v27 = vld [vmem:[%s1462_s1 + $0xb0] sm:$0xff]   ;;  %v1132_v33 = vld [vmem:[%s1462_s1 + $0xb8] sm:$0xff]   ;;  %v1134_v35 = vld [vmem:[%s1463_s0 + $0x8] ss:$36 sps:$4 sm:$0xff]  }
   0xd   :  { %1006 = vmatpush3.bf16.msra.mxu1 %v1109_v11  ;;  %v1136_v36 = vld [vmem:[%s1463_s0 + $0xc] ss:$36 sps:$4 sm:$0xff]   ;;  %v1137_v37 = vld [vmem:[%s1462_s1 + $0x100] sm:$0xff]   ;;  %v1148_v48 = vld [vmem:[%s1462_s1 + $0x158] sm:$0xff]  }
   0xe   :  { %1007 = vmatprep.subr.bf16.mxu1 %v1112_v14  ;;  %730 = vmatprep.mubr.bf16.mxu1 %v1136_v36  ;;  %v1138_v38 = vld [vmem:[%s1462_s1 + $0x1c0] sm:$0xff]   ;;  %v1140_v40 = vld [vmem:[%s1462_s1 + $0x148] sm:$0xff]   ;;  %v1144_v44 = vld [vmem:[%s1462_s1 + $0x150] sm:$0xff]  }
   0xf   :  { %986 = vmatpush3.bf16.msra.mxu0 %v1111_v13  ;;  %v1139_v39 = vld [vmem:[%s1462_s1 + $0x180] sm:$0xff]   ;;  %v1141_v41 = vld [vmem:[%s1462_s1 + $0x108] sm:$0xff]   ;;  %v1145_v45 = vld [vmem:[%s1462_s1 + $0x110] sm:$0xff]  }
  0x10   :  { %987 = vmatprep.subr.bf16.mxu0 %v1114_v16  ;;  %v1142_v42 = vld [vmem:[%s1462_s1 + $0x1c8] sm:$0xff]   ;;  %v1146_v46 = vld [vmem:[%s1462_s1 + $0x1d0] sm:$0xff]   ;;  %v1149_v49 = vld [vmem:[%s1462_s1 + $0x118] sm:$0xff]  }
  0x11   :  { %1008 = vmatpush3.bf16.msra.mxu1 %v1113_v15  ;;  %v1143_v43 = vld [vmem:[%s1462_s1 + $0x188] sm:$0xff]   ;;  %v1147_v47 = vld [vmem:[%s1462_s1 + $0x190] sm:$0xff]   ;;  %v1150_v50 = vld [vmem:[%s1462_s1 + $0x1d8] sm:$0xff]  }
  0x12   :  { %1009 = vmatprep.subr.bf16.mxu1 %v1116_v18  ;;  %v1151_v51 = vld [vmem:[%s1462_s1 + $0x198] sm:$0xff]   ;;  %v1152_v52 = vld [vmem:[%s1462_s1 + $0x160] sm:$0xff]   ;;  %v1156_v56 = vld [vmem:[%s1462_s1 + $0x168] sm:$0xff]  }
  0x13   :  { %988 = vmatpush3.bf16.msra.mxu0 %v1115_v17  ;;  %v1153_v53 = vld [vmem:[%s1462_s1 + $0x120] sm:$0xff]   ;;  %v1157_v57 = vld [vmem:[%s1462_s1 + $0x128] sm:$0xff]   ;;  %v1160_v60 = vld [vmem:[%s1462_s1 + $0x170] sm:$0xff]  }
  0x14   :  { %989 = vmatprep.subr.bf16.mxu0 %v1118_v20  ;;  %v1154_v54 = vld [vmem:[%s1462_s1 + $0x1e0] sm:$0xff]   ;;  %v1158_v58 = vld [vmem:[%s1462_s1 + $0x1e8] sm:$0xff]   ;;  %v1161_v61 = vld [vmem:[%s1462_s1 + $0x130] sm:$0xff]  }
  0x15   :  { %1010 = vmatpush3.bf16.msra.mxu1 %v1117_v19  ;;  %v1155_v55 = vld [vmem:[%s1462_s1 + $0x1a0] sm:$0xff]   ;;  %v1159_v59 = vld [vmem:[%s1462_s1 + $0x1a8] sm:$0xff]   ;;  %v1162_v62 = vld [vmem:[%s1462_s1 + $0x1f0] sm:$0xff]  }
  0x16   :  { %1011 = vmatprep.subr.bf16.mxu1 %v1120_v22  ;;  %v1163_v63 = vld [vmem:[%s1462_s1 + $0x1b0] sm:$0xff]   ;;  %v1164_v0 = vld [vmem:[%s1462_s1 + $0x178] sm:$0xff]   ;;  %v1174_v9 = vld [vmem:[%s1462_s1 + $0x200] sm:$0xff]  }
  0x17   :  { %990 = vmatpush3.bf16.msra.mxu0 %v1119_v21  ;;  %v1165_v1 = vld [vmem:[%s1462_s1 + $0x138] sm:$0xff]   ;;  %v1167_v3 = vld [vmem:[%s1463_s0 + $0x10] ss:$36 sps:$4 sm:$0xff]   ;;  %v1175_v10 = vld [vmem:[%s1462_s1 + $0x208] sm:$0xff]  }
  0x18   :  { %991 = vmatprep.subr.bf16.mxu0 %v1122_v24  ;;  %v1166_v2 = vld [vmem:[%s1462_s1 + $0x1f8] sm:$0xff]   ;;  %v1176_v11 = vld [vmem:[%s1462_s1 + $0x210] sm:$0xff]   ;;  %v1178_v13 = vld [vmem:[%s1462_s1 + $0x220] sm:$0xff]  }
  0x19   :  { %1012 = vmatpush3.bf16.msra.mxu1 %v1121_v23  ;;  %v1169_v4 = vld [vmem:[%s1463_s0 + $0x14] ss:$36 sps:$4 sm:$0xff]   ;;  %v1173_v8 = vld [vmem:[%s1463_s0 + $0x1c] ss:$36 sps:$4 sm:$0xff]   ;;  %v1179_v14 = vld [vmem:[%s1462_s1 + $0x228] sm:$0xff]  }
  0x1a   :  { %1013 = vmatprep.subr.bf16.mxu1 %v1124_v26  ;;  %v1170_v5 = vld [vmem:[%s1462_s1 + $0x1b8] sm:$0xff]   ;;  %v1180_v15 = vld [vmem:[%s1462_s1 + $0x230] sm:$0xff]   ;;  %v1182_v17 = vld [vmem:[%s1463_s0 + $0x20] ss:$36 sps:$4 sm:$0xff]  }
  0x1b   :  { %992 = vmatpush3.bf16.msra.mxu0 %v1123_v25  ;;  %v1171_v7 = vld [vmem:[%s1463_s0 + $0x18] ss:$36 sps:$4 sm:$0xff]   ;;  %v884_v19 = vld [vmem:[%s1464_s2] ss:$0 sm:$0xff] }
  0x1c   :  { %993 = vmatprep.subr.bf16.mxu0 %v1126_v28  ;;  %v1177_v12 = vld [vmem:[%s1462_s1 + $0x218] sm:$0xff]  }
  0x1d   :  { %1014 = vmatpush3.bf16.msra.mxu1 %v1125_v27  ;;  %v1181_v16 = vld [vmem:[%s1462_s1 + $0x238] sm:$0xff]  }
  0x1e   :  { %1015 = vmatprep.subr.bf16.mxu1 %v1128_v30 }
  0x1f   :  { %994 = vmatpush3.bf16.msra.mxu0 %v1127_v29 }
  0x20   :  { %1023 = vmatprep.subr.bf16.mxu0 %v1133_v34 }
  0x21   :  { %1016 = vmatpush3.bf16.msra.mxu1 %v1132_v33 }
  0x22   :  { %690 = vmatmul.mubr.bf16.vlgmr.msra.gmra.mrb[0].mxu0 %v1129_v31  ;;  %1045 = vmatprep.subr.bf16.mxu1 %v1138_v38 }
  0x23   :  { %1024 = vmatpush3.bf16.msra.mxu0 %v1137_v37  ;;  %771 = vmatprep.mubr.bf16.mxu0 %v1169_v4 }
  0x24   :  { %731 = vmatmul.mubr.bf16.vlgmr.msra.gmra.mrb[0].mxu1 %v1134_v35  ;;  %1025 = vmatprep.subr.bf16.mxu0 %v1140_v40 }
  0x25   :  { %1046 = vmatpush3.bf16.msra.mxu1 %v1139_v39  ;;  %812 = vmatprep.mubr.bf16.mxu1 %v1173_v8 }
  0x26   :  { %1047 = vmatprep.subr.bf16.mxu1 %v1142_v42 }
  0x27   :  { %1026 = vmatpush3.bf16.msra.mxu0 %v1141_v41 }
  0x28   :  { %1027 = vmatprep.subr.bf16.mxu0 %v1144_v44 }
  0x29   :  { %1048 = vmatpush3.bf16.msra.mxu1 %v1143_v43 }
  0x2a   :  { %1049 = vmatprep.subr.bf16.mxu1 %v1146_v46 }
  0x2b   :  { %1028 = vmatpush3.bf16.msra.mxu0 %v1145_v45 }
  0x2c   :  { %1029 = vmatprep.subr.bf16.mxu0 %v1148_v48 }
  0x2d   :  { %1050 = vmatpush3.bf16.msra.mxu1 %v1147_v47 }
  0x2e   :  { %1051 = vmatprep.subr.bf16.mxu1 %v1150_v50 }
  0x2f   :  { %1030 = vmatpush3.bf16.msra.mxu0 %v1149_v49 }
  0x30   :  { %1031 = vmatprep.subr.bf16.mxu0 %v1152_v52 }
  0x31   :  { %1052 = vmatpush3.bf16.msra.mxu1 %v1151_v51  ;;  %v971_v51 = vld [vmem:[%s1465_s3] sm:$0xff]  }
  0x32   :  { %1053 = vmatprep.subr.bf16.mxu1 %v1154_v54  ;;  %v972_v52 = vunpack.c.l.bf16 %v971_v51 }
  0x33   :  { %1032 = vmatpush3.bf16.msra.mxu0 %v1153_v53 }
  0x34   :  { %1033 = vmatprep.subr.bf16.mxu0 %v1156_v56  ;;  %v973_v56 = vunpack.c.h.bf16 %v971_v51 }
  0x35   :  { %1054 = vmatpush3.bf16.msra.mxu1 %v1155_v55 }
  0x36   :  { %1055 = vmatprep.subr.bf16.mxu1 %v1158_v58 }
  0x37   :  { %1034 = vmatpush3.bf16.msra.mxu0 %v1157_v57 }
  0x38   :  { %1035 = vmatprep.subr.bf16.mxu0 %v1160_v60 }
  0x39   :  { %1056 = vmatpush3.bf16.msra.mxu1 %v1159_v59 }
  0x3a   :  { %1057 = vmatprep.subr.bf16.mxu1 %v1162_v62 }
  0x3b   :  { %1036 = vmatpush3.bf16.msra.mxu0 %v1161_v61 }
  0x3c   :  { %1037 = vmatprep.subr.bf16.mxu0 %v1164_v0 }
  0x3d   :  { %1058 = vmatpush3.bf16.msra.mxu1 %v1163_v63 }
  0x3e   :  { %1059 = vmatprep.subr.bf16.mxu1 %v1166_v2 }
  0x3f   :  { %1038 = vmatpush3.bf16.msra.mxu0 %v1165_v1 }
  0x40   :  { %1076 = vmatprep.subr.bf16.mxu0 %v1183_v6 }
  0x41   :  { %1060 = vmatpush3.bf16.msra.mxu1 %v1170_v5 }
  0x42   :  { %772 = vmatmul.mubr.bf16.vlgmr.msra.gmra.mrb[4].mxu0 %v1167_v3 }
  0x43   :  { %1092 = vmatprep.mubr.msk.bf16.mxu0 %vm1184_vm0, %v1183_v6  ;;  %1077 = vmatpush3.bf16.msra.mxu0 %v1174_v9 }
  0x44   :  { %813 = vmatmul.mubr.bf16.vlgmr.msra.gmra.mrb[4].mxu1 %v1171_v7  ;;  %1078 = vmatprep.subr.bf16.mxu0 %v1183_v6 }
  0x47   :  { %1079 = vmatpush3.bf16.msra.mxu0 %v1175_v10 }
  0x48   :  { %1080 = vmatprep.subr.bf16.mxu0 %v1183_v6 }
  0x4b   :  { %1081 = vmatpush3.bf16.msra.mxu0 %v1176_v11 }
  0x4c   :  { %1082 = vmatprep.subr.bf16.mxu0 %v1183_v6 }
  0x4f   :  { %1083 = vmatpush3.bf16.msra.mxu0 %v1177_v12 }
  0x50   :  { %1084 = vmatprep.subr.bf16.mxu0 %v1183_v6 }
  0x53   :  { %1085 = vmatpush3.bf16.msra.mxu0 %v1178_v13 }
  0x54   :  { %1086 = vmatprep.subr.bf16.mxu0 %v1183_v6 }
  0x57   :  { %1087 = vmatpush3.bf16.msra.mxu0 %v1179_v14 }
  0x58   :  { %1088 = vmatprep.subr.bf16.mxu0 %v1183_v6 }
  0x5b   :  { %1089 = vmatpush3.bf16.msra.mxu0 %v1180_v15 }
  0x5c   :  { %1090 = vmatprep.subr.bf16.mxu0 %v1183_v6 }
  0x5f   :  { %1091 = vmatpush3.bf16.msra.mxu0 %v1181_v16 }
  0x62   :  { %1093 = vmatmul.mubr.bf16.vlgmr.msra.gmra.mrb[8].mxu0 %v1182_v17 }
  0xf5   :  { %v995_v18 = vpop.f32.mrb[0].mxu0 }
  0xf6   :  { %v996_v20 = vpop.f32.mrb[1].mxu0 }
  0xf7   :  { %v997_v21 = vadd.f32 %v996_v20, %v995_v18  ;;  %v998_v22 = vpop.f32.mrb[2].mxu0  ;;  %v1017_v23 = vpop.f32.mrb[0].mxu1 }
  0xf8   :  { %v999_v24 = vpop.f32.mrb[3].mxu0  ;;  %v1018_v27 = vpop.f32.mrb[1].mxu1 }
  0xf9   :  { %v692_v25 = vadd.f32 %v997_v21, %v884_v19  ;;  %v1000_v26 = vadd.f32 %v999_v24, %v998_v22  ;;  %v1019_v28 = vadd.f32 %v1018_v27, %v1017_v23  ;;  %v1020_v29 = vpop.f32.mrb[2].mxu1 }
  0xfa   :  { %v1021_v31 = vpop.f32.mrb[3].mxu1 }
  0xfb   :  { %v695_v30 = vadd.f32 %v1000_v26, %v884_v19  ;;  %v733_v32 = vadd.f32 %v1019_v28, %v692_v25  ;;  %v1022_v33 = vadd.f32 %v1021_v31, %v1020_v29 }
  0xfd   :  { %v736_v34 = vadd.f32 %v1022_v33, %v695_v30 }
 0x115   :  { %v1039_v35 = vpop.f32.mrb[4].mxu0 }
 0x116   :  { %v1040_v36 = vpop.f32.mrb[5].mxu0 }
 0x117   :  { %v1041_v37 = vadd.f32 %v1040_v36, %v1039_v35  ;;  %v1042_v38 = vpop.f32.mrb[6].mxu0  ;;  %v1061_v39 = vpop.f32.mrb[4].mxu1 }
 0x118   :  { %v1043_v40 = vpop.f32.mrb[7].mxu0  ;;  %v1062_v43 = vpop.f32.mrb[5].mxu1 }
 0x119   :  { %v774_v41 = vadd.f32 %v1041_v37, %v733_v32  ;;  %v1044_v42 = vadd.f32 %v1043_v40, %v1042_v38  ;;  %v1063_v44 = vadd.f32 %v1062_v43, %v1061_v39  ;;  %v1064_v45 = vpop.f32.mrb[6].mxu1 }
 0x11a   :  { %v1065_v47 = vpop.f32.mrb[7].mxu1 }
 0x11b   :  { %v777_v46 = vadd.f32 %v1044_v42, %v736_v34  ;;  %v1066_v48 = vadd.f32 %v1065_v47, %v1064_v45  ;;  %v815_v49 = vadd.f32 %v1063_v44, %v774_v41 }
 0x11d   :  { %v818_v50 = vadd.f32 %v1066_v48, %v777_v46 }
 0x135   :  { %v855_v53 = vpop.f32.mrb[8].mxu0 }
 0x136   :  { %v856_v54 = vadd.f32 %v855_v53, %v815_v49  ;;  %v1094_v55 = vpop.f32.mrb[9].mxu0 }
 0x137   :  { %v858_v57 = vpop.f32.mrb[10].mxu0 }
 0x138   :  { %v866_v58 = vadd.f32 %v972_v52, %v856_v54  ;;  %v859_v59 = vadd.f32 %v858_v57, %v818_v50  ;;  %v1095_v60 = vpop.f32.mrb[11].mxu0 }
 0x13a   :  { %v867_v61 = vadd.f32 %v973_v56, %v859_v59  ;;  %v868_v62 = vmax.f32 %v866_v58, 0.0 }
 0x13c   :  { %v869_v63 = vmax.f32 %v867_v61, 0.0 }
 0x13e   :  { %v977_v0 = vpack.c.bf16 %v869_v63, %v868_v62 }
 0x140   :  { %978 = vst [vmem:[%s1466_s4] sm:$0xff] %v977_v0  }

// kernel: resbase_forward.32
= control target key start
LH: loop header
LB: loop body
LE: loop exit
PB: predicated region body
PF: predicated region fallthrough
CT: control target
= control target key end

     0   :  { %vm479_vm0 = vcmask 523264   ;;  %s1084_s1 = inlined_call_operand.vmem [shape: bf16[576,256], index: 1, kind: input, shape index: {}]   ;;  %s1085_s0 = inlined_call_operand.vmem [shape: bf16[8,576], index: 0, kind: input, shape index: {}]   ;;  %s1086_s2 = inlined_call_operand.vmem [shape: f32[1,256], index: 2, kind: input, shape index: {}]   ;;  %s1087_s3 = inlined_call_operand.vmem [shape: bf16[8,256], index: 3, kind: output, shape index: {}]  }
   0x1   :  { %v719_v0 = vld [vmem:[%s1084_s1 + $0x104] ss:$8 sps:$4 sm:$0xff]   ;;  %v721_v1 = vld [vmem:[%s1084_s1 + $0x100] ss:$8 sps:$4 sm:$0xff]   ;;  %v722_v2 = vld [vmem:[%s1084_s1 + $0x114] ss:$8 sps:$4 sm:$0xff]  }
   0x2   :  { %524 = vmatprep.subr.bf16.mxu0 %v719_v0  ;;  %v724_v3 = vld [vmem:[%s1084_s1 + $0x110] ss:$8 sps:$4 sm:$0xff]   ;;  %v725_v4 = vld [vmem:[%s1084_s1 + $0x124] ss:$8 sps:$4 sm:$0xff]   ;;  %v730_v6 = vld [vmem:[%s1084_s1] ss:$8 sps:$4 sm:$0xff]  }
   0x3   :  { %525 = vmatpush1.bf16.msra.mxu0 %v721_v1  ;;  %v728_v5 = vld [vmem:[%s1084_s1 + $0x4] ss:$8 sps:$4 sm:$0xff]   ;;  %v727_v7 = vld [vmem:[%s1084_s1 + $0x120] ss:$8 sps:$4 sm:$0xff]   ;;  %v734_v8 = vld [vmem:[%s1084_s1 + $0x14] ss:$8 sps:$4 sm:$0xff]  }
   0x4   :  { %526 = vmatprep.subr.bf16.mxu0 %v722_v2  ;;  %483 = vmatprep.subr.bf16.mxu1 %v728_v5  ;;  %v736_v9 = vld [vmem:[%s1084_s1 + $0x10] ss:$8 sps:$4 sm:$0xff]   ;;  %v731_v10 = vld [vmem:[%s1084_s1 + $0x134] ss:$8 sps:$4 sm:$0xff]   ;;  %v740_v12 = vld [vmem:[%s1084_s1 + $0x24] ss:$8 sps:$4 sm:$0xff]  }
   0x5   :  { %484 = vmatpush1.bf16.msra.mxu1 %v730_v6  ;;  %v733_v11 = vld [vmem:[%s1084_s1 + $0x130] ss:$8 sps:$4 sm:$0xff]   ;;  %v737_v13 = vld [vmem:[%s1084_s1 + $0x144] ss:$8 sps:$4 sm:$0xff]   ;;  %v742_v14 = vld [vmem:[%s1084_s1 + $0x20] ss:$8 sps:$4 sm:$0xff]  }
   0x6   :  { %485 = vmatprep.subr.bf16.mxu1 %v734_v8  ;;  %v746_v15 = vld [vmem:[%s1084_s1 + $0x34] ss:$8 sps:$4 sm:$0xff]   ;;  %v739_v16 = vld [vmem:[%s1084_s1 + $0x140] ss:$8 sps:$4 sm:$0xff]   ;;  %v748_v18 = vld [vmem:[%s1084_s1 + $0x30] ss:$8 sps:$4 sm:$0xff]  }
   0x7   :  { %527 = vmatpush1.bf16.msra.mxu0 %v724_v3  ;;  %v743_v17 = vld [vmem:[%s1084_s1 + $0x154] ss:$8 sps:$4 sm:$0xff]   ;;  %v752_v19 = vld [vmem:[%s1084_s1 + $0x44] ss:$8 sps:$4 sm:$0xff]   ;;  %v745_v20 = vld [vmem:[%s1084_s1 + $0x150] ss:$8 sps:$4 sm:$0xff]  }
   0x8   :  { %528 = vmatprep.subr.bf16.mxu0 %v725_v4  ;;  %v749_v21 = vld [vmem:[%s1084_s1 + $0x164] ss:$8 sps:$4 sm:$0xff]   ;;  %v754_v22 = vld [vmem:[%s1084_s1 + $0x40] ss:$8 sps:$4 sm:$0xff]   ;;  %v758_v23 = vld [vmem:[%s1084_s1 + $0x54] ss:$8 sps:$4 sm:$0xff]  }
   0x9   :  { %486 = vmatpush1.bf16.msra.mxu1 %v736_v9  ;;  %v751_v24 = vld [vmem:[%s1084_s1 + $0x160] ss:$8 sps:$4 sm:$0xff]   ;;  %v755_v25 = vld [vmem:[%s1084_s1 + $0x174] ss:$8 sps:$4 sm:$0xff]   ;;  %v760_v26 = vld [vmem:[%s1084_s1 + $0x50] ss:$8 sps:$4 sm:$0xff]  }
   0xa   :  { %487 = vmatprep.subr.bf16.mxu1 %v740_v12  ;;  %v764_v27 = vld [vmem:[%s1084_s1 + $0x64] ss:$8 sps:$4 sm:$0xff]   ;;  %v757_v28 = vld [vmem:[%s1084_s1 + $0x170] ss:$8 sps:$4 sm:$0xff]   ;;  %v766_v30 = vld [vmem:[%s1084_s1 + $0x60] ss:$8 sps:$4 sm:$0xff]  }
   0xb   :  { %529 = vmatpush1.bf16.msra.mxu0 %v727_v7  ;;  %v761_v29 = vld [vmem:[%s1084_s1 + $0x184] ss:$8 sps:$4 sm:$0xff]   ;;  %v770_v31 = vld [vmem:[%s1084_s1 + $0x74] ss:$8 sps:$4 sm:$0xff]   ;;  %v763_v32 = vld [vmem:[%s1084_s1 + $0x180] ss:$8 sps:$4 sm:$0xff]  }
   0xc   :  { %530 = vmatprep.subr.bf16.mxu0 %v731_v10  ;;  %v767_v33 = vld [vmem:[%s1084_s1 + $0x194] ss:$8 sps:$4 sm:$0xff]   ;;  %v772_v34 = vld [vmem:[%s1084_s1 + $0x70] ss:$8 sps:$4 sm:$0xff]   ;;  %v776_v35 = vld [vmem:[%s1084_s1 + $0x84] ss:$8 sps:$4 sm:$0xff]  }
   0xd   :  { %488 = vmatpush1.bf16.msra.mxu1 %v742_v14  ;;  %v769_v36 = vld [vmem:[%s1084_s1 + $0x190] ss:$8 sps:$4 sm:$0xff]   ;;  %v773_v37 = vld [vmem:[%s1084_s1 + $0x1a4] ss:$8 sps:$4 sm:$0xff]   ;;  %v778_v38 = vld [vmem:[%s1084_s1 + $0x80] ss:$8 sps:$4 sm:$0xff]  }
   0xe   :  { %489 = vmatprep.subr.bf16.mxu1 %v746_v15  ;;  %v782_v39 = vld [vmem:[%s1084_s1 + $0x94] ss:$8 sps:$4 sm:$0xff]   ;;  %v775_v40 = vld [vmem:[%s1084_s1 + $0x1a0] ss:$8 sps:$4 sm:$0xff]   ;;  %v784_v42 = vld [vmem:[%s1084_s1 + $0x90] ss:$8 sps:$4 sm:$0xff]  }
   0xf   :  { %531 = vmatpush1.bf16.msra.mxu0 %v733_v11  ;;  %v779_v41 = vld [vmem:[%s1084_s1 + $0x1b4] ss:$8 sps:$4 sm:$0xff]   ;;  %v788_v43 = vld [vmem:[%s1084_s1 + $0xa4] ss:$8 sps:$4 sm:$0xff]   ;;  %v781_v46 = vld [vmem:[%s1084_s1 + $0x1b0] ss:$8 sps:$4 sm:$0xff]  }
  0x10   :  { %532 = vmatprep.subr.bf16.mxu0 %v737_v13  ;;  %v16_v44 = vld [vmem:[%s1085_s0 + $0x8] sm:$0xff]  ;;  %v794_v49 = vld [vmem:[%s1084_s1 + $0xb4] ss:$8 sps:$4 sm:$0xff]   ;;  %v796_v52 = vld [vmem:[%s1084_s1 + $0xb0] ss:$8 sps:$4 sm:$0xff]   ;;  %v832_v11 = vmov 0  }
  0x11   :  { %490 = vmatpush1.bf16.msra.mxu1 %v748_v18  ;;  %v633_v45 = vcombine.high %v16_v44, %v16_v44  ;;  %v790_v47 = vld [vmem:[%s1084_s1 + $0xa0] ss:$8 sps:$4 sm:$0xff]   ;;  %v785_v48 = vld [vmem:[%s1084_s1 + $0x1c4] ss:$8 sps:$4 sm:$0xff]   ;;  %v791_v51 = vld [vmem:[%s1084_s1 + $0x1d4] ss:$8 sps:$4 sm:$0xff]   ;;  %v632_v4 = vcombine.low %v16_v44, %v16_v44 }
  0x12   :  { %491 = vmatprep.subr.bf16.mxu1 %v752_v19  ;;  %v787_v50 = vld [vmem:[%s1084_s1 + $0x1c0] ss:$8 sps:$4 sm:$0xff]   ;;  %v800_v54 = vld [vmem:[%s1084_s1 + $0xc4] ss:$8 sps:$4 sm:$0xff]   ;;  %v793_v56 = vld [vmem:[%s1084_s1 + $0x1d0] ss:$8 sps:$4 sm:$0xff]  }
  0x13   :  { %533 = vmatpush1.bf16.msra.mxu0 %v739_v16  ;;  %556 = vmatprep.mubr.bf16.mxu0 %v633_v45  ;;  %v15_v53 = vld [vmem:[%s1085_s0] sm:$0xff]  ;;  %v806_v59 = vld [vmem:[%s1084_s1 + $0xd4] ss:$8 sps:$4 sm:$0xff]   ;;  %v808_v61 = vld [vmem:[%s1084_s1 + $0xd0] ss:$8 sps:$4 sm:$0xff]   ;;  %v92_v16 = vlaneseq }
  0x14   :  { %534 = vmatprep.subr.bf16.mxu0 %v743_v17  ;;  %v631_v55 = vcombine.high %v15_v53, %v15_v53  ;;  %v802_v57 = vld [vmem:[%s1084_s1 + $0xc0] ss:$8 sps:$4 sm:$0xff]   ;;  %v797_v58 = vld [vmem:[%s1084_s1 + $0x1e4] ss:$8 sps:$4 sm:$0xff]   ;;  %v803_v62 = vld [vmem:[%s1084_s1 + $0x1f4] ss:$8 sps:$4 sm:$0xff]   ;;  %v630_v8 = vcombine.low %v15_v53, %v15_v53 }
  0x15   :  { %492 = vmatpush1.bf16.msra.mxu1 %v754_v22  ;;  %v799_v60 = vld [vmem:[%s1084_s1 + $0x1e0] ss:$8 sps:$4 sm:$0xff]   ;;  %v815_v63 = vld [vmem:[%s1084_s1 + $0xe4] ss:$8 sps:$4 sm:$0xff]   ;;  %v805_v0 = vld [vmem:[%s1084_s1 + $0x1f0] ss:$8 sps:$4 sm:$0xff]  }
  0x16   :  { %493 = vmatprep.subr.bf16.mxu1 %v758_v23  ;;  %515 = vmatprep.mubr.bf16.mxu1 %v631_v55  ;;  %v817_v1 = vld [vmem:[%s1084_s1 + $0xe0] ss:$8 sps:$4 sm:$0xff]   ;;  %v814_v2 = vld [vmem:[%s1084_s1 + $0x204] ss:$8 sps:$4 sm:$0xff]   ;;  %v821_v3 = vld [vmem:[%s1084_s1 + $0xf4] ss:$8 sps:$4 sm:$0xff]  }
  0x17   :  { %535 = vmatpush1.bf16.msra.mxu0 %v745_v20  ;;  %v812_v5 = vld [vmem:[%s1084_s1 + $0x200] ss:$8 sps:$4 sm:$0xff]   ;;  %v823_v6 = vld [vmem:[%s1084_s1 + $0xf0] ss:$8 sps:$4 sm:$0xff]   ;;  %v820_v7 = vld [vmem:[%s1084_s1 + $0x214] ss:$8 sps:$4 sm:$0xff]  }
  0x18   :  { %536 = vmatprep.subr.bf16.mxu0 %v749_v21  ;;  %v818_v9 = vld [vmem:[%s1084_s1 + $0x210] ss:$8 sps:$4 sm:$0xff]   ;;  %v826_v10 = vld [vmem:[%s1084_s1 + $0x224] ss:$8 sps:$4 sm:$0xff]   ;;  %v824_v12 = vld [vmem:[%s1084_s1 + $0x220] ss:$8 sps:$4 sm:$0xff]  }
  0x19   :  { %494 = vmatpush1.bf16.msra.mxu1 %v760_v26  ;;  %v831_v13 = vld [vmem:[%s1084_s1 + $0x234] ss:$8 sps:$4 sm:$0xff]   ;;  %v829_v14 = vld [vmem:[%s1084_s1 + $0x230] ss:$8 sps:$4 sm:$0xff]   ;;  %v93_v17 = vshrl.u32 %v92_v16, 7 }
  0x1a   :  { %495 = vmatprep.subr.bf16.mxu1 %v764_v27  ;;  %v811_v15 = vld [vmem:[%s1085_s0 + $0x10] ss:$0 sps:$4 sm:$0xff]   ;;  %v90_v21 = vld [vmem:[%s1086_s2] sm:$0x3] }
  0x1b   :  { %537 = vmatpush1.bf16.msra.mxu0 %v751_v24  ;;  %v94_v19 = vsub.s32 0, %v93_v17  ;;  %v98_v22 = vsub.s32 1, %v93_v17 }
  0x1c   :  { %538 = vmatprep.subr.bf16.mxu0 %v755_v25 }
  0x1d   :  { %496 = vmatpush1.bf16.msra.mxu1 %v766_v30  ;;  %v95_v25 = vrot.slane %v90_v21, %v94_v19  ;;  %v99_v26 = vrot.slane %v90_v21, %v98_v22 }
  0x1e   :  { %497 = vmatprep.subr.bf16.mxu1 %v770_v31 }
  0x1f   :  { %539 = vmatpush1.bf16.msra.mxu0 %v757_v28 }
  0x20   :  { %540 = vmatprep.subr.bf16.mxu0 %v761_v29 }
  0x21   :  { %498 = vmatpush1.bf16.msra.mxu1 %v772_v34 }
  0x22   :  { %499 = vmatprep.subr.bf16.mxu1 %v776_v35 }
  0x23   :  { %541 = vmatpush1.bf16.msra.mxu0 %v763_v32 }
  0x24   :  { %542 = vmatprep.subr.bf16.mxu0 %v767_v33 }
  0x25   :  { %500 = vmatpush1.bf16.msra.mxu1 %v778_v38 }
  0x26   :  { %501 = vmatprep.subr.bf16.mxu1 %v782_v39 }
  0x27   :  { %543 = vmatpush1.bf16.msra.mxu0 %v769_v36 }
  0x28   :  { %544 = vmatprep.subr.bf16.mxu0 %v773_v37 }
  0x29   :  { %502 = vmatpush1.bf16.msra.mxu1 %v784_v42 }
  0x2a   :  { %503 = vmatprep.subr.bf16.mxu1 %v788_v43 }
  0x2b   :  { %545 = vmatpush1.bf16.msra.mxu0 %v775_v40 }
  0x2c   :  { %546 = vmatprep.subr.bf16.mxu0 %v779_v41 }
  0x2d   :  { %504 = vmatpush1.bf16.msra.mxu1 %v790_v47 }
  0x2e   :  { %505 = vmatprep.subr.bf16.mxu1 %v794_v49 }
  0x2f   :  { %547 = vmatpush1.bf16.msra.mxu0 %v781_v46 }
  0x30   :  { %548 = vmatprep.subr.bf16.mxu0 %v785_v48 }
  0x31   :  { %506 = vmatpush1.bf16.msra.mxu1 %v796_v52 }
  0x32   :  { %507 = vmatprep.subr.bf16.mxu1 %v800_v54 }
  0x33   :  { %549 = vmatpush1.bf16.msra.mxu0 %v787_v50 }
  0x34   :  { %550 = vmatprep.subr.bf16.mxu0 %v791_v51 }
  0x35   :  { %508 = vmatpush1.bf16.msra.mxu1 %v802_v57 }
  0x36   :  { %509 = vmatprep.subr.bf16.mxu1 %v806_v59 }
  0x37   :  { %551 = vmatpush1.bf16.msra.mxu0 %v793_v56 }
  0x38   :  { %552 = vmatprep.subr.bf16.mxu0 %v797_v58 }
  0x39   :  { %510 = vmatpush1.bf16.msra.mxu1 %v808_v61 }
  0x3a   :  { %511 = vmatprep.subr.bf16.mxu1 %v815_v63 }
  0x3b   :  { %553 = vmatpush1.bf16.msra.mxu0 %v799_v60 }
  0x3c   :  { %554 = vmatprep.subr.bf16.mxu0 %v803_v62 }
  0x3d   :  { %512 = vmatpush1.bf16.msra.mxu1 %v817_v1 }
  0x3e   :  { %513 = vmatprep.subr.bf16.mxu1 %v821_v3 }
  0x3f   :  { %555 = vmatpush1.bf16.msra.mxu0 %v805_v0 }
  0x40   :  { %565 = vmatprep.subr.bf16.mxu0 %v814_v2 }
  0x41   :  { %514 = vmatpush1.bf16.msra.mxu1 %v823_v6 }
  0x42   :  { %557 = vmatmul.mubr.bf16.vlgmr.msra.gmra.mrb[0].mxu0 %v632_v4 }
  0x43   :  { %566 = vmatpush1.bf16.msra.mxu0 %v812_v5  ;;  %597 = vmatprep.mubr.bf16.mxu0 %v832_v11 }
  0x44   :  { %567 = vmatprep.subr.bf16.mxu0 %v820_v7  ;;  %516 = vmatmul.mubr.bf16.vlgmr.msra.gmra.mrb[0].mxu1 %v630_v8 }
  0x47   :  { %568 = vmatpush1.bf16.msra.mxu0 %v818_v9 }
  0x48   :  { %569 = vmatprep.subr.bf16.mxu0 %v826_v10 }
  0x4b   :  { %570 = vmatpush1.bf16.msra.mxu0 %v824_v12 }
  0x4c   :  { %571 = vmatprep.subr.bf16.mxu0 %v831_v13 }
  0x4f   :  { %572 = vmatpush1.bf16.msra.mxu0 %v829_v14 }
  0x52   :  { %707 = vmatmul.mubr.msk.bf16.vlgmr.msra.gmra.mrb[0].mxu0 %vm479_vm0, %v811_v15 }
 0x117   :  { %v517_v18 = vpop.f32.mrb[0].mxu1 }
 0x118   :  { %v519_v20 = vpop.f32.mrb[1].mxu1  ;;  %v518_v27 = vadd.f32 %v517_v18, %v95_v25 }
 0x119   :  { %v521_v23 = vpop.f32.mrb[2].mxu1  ;;  %v520_v28 = vadd.f32 %v519_v20, %v99_v26 }
 0x11a   :  { %v522_v24 = vpop.f32.mrb[3].mxu1 }
 0x125   :  { %v599_v29 = vpop.f32.mrb[0].mxu0 }
 0x126   :  { %v711_v30 = vadd.f32 %v599_v29, %v518_v27  ;;  %v601_v31 = vpop.f32.mrb[1].mxu0 }
 0x127   :  { %v713_v32 = vadd.f32 %v601_v31, %v520_v28  ;;  %v603_v33 = vpop.f32.mrb[2].mxu0 }
 0x128   :  { %v613_v34 = vmax.f32 %v711_v30, 0.0  ;;  %v604_v35 = vpop.f32.mrb[3].mxu0 }
 0x12a   :  { %v709_v36 = vpack.c.bf16 %v713_v32, %v613_v34 }
 0x12c   :  { %625 = vst [vmem:[%s1087_s3] sm:$0xff] %v709_v36 }

// kernel: resbase_forward.34
= control target key start
LH: loop header
LB: loop body
LE: loop exit
PB: predicated region body
PF: predicated region fallthrough
CT: control target
= control target key end

     0   :  { %vm1125_vm0 = vmmov 0   ;;  %s1383_s1 = inlined_call_operand.vmem [shape: bf16[1152,128], index: 1, kind: input, shape index: {}]   ;;  %s1384_s0 = inlined_call_operand.vmem [shape: bf16[8,1152], index: 0, kind: input, shape index: {}]   ;;  %s1385_s2 = inlined_call_operand.vmem [shape: f32[1,128], index: 2, kind: input, shape index: {}]   ;;  %s1386_s3 = inlined_call_operand.vmem [shape: bf16[8,128], index: 3, kind: output, shape index: {}]  }
   0x1   :  { %v1043_v0 = vld [vmem:[%s1383_s1 + $0x40] sm:$0xff]   ;;  %v1047_v4 = vld [vmem:[%s1383_s1 + $0x48] sm:$0xff]   ;;  %v1051_v8 = vld [vmem:[%s1383_s1 + $0x50] sm:$0xff]  }
   0x2   :  { %v1044_v1 = vld [vmem:[%s1383_s1] sm:$0xff]   ;;  %924 = vmatprep.subr.bf16.mxu0 %v1043_v0  ;;  %v1048_v5 = vld [vmem:[%s1383_s1 + $0x8] sm:$0xff]   ;;  %v1052_v9 = vld [vmem:[%s1383_s1 + $0x10] sm:$0xff]  }
   0x3   :  { %v1045_v2 = vld [vmem:[%s1383_s1 + $0xc0] sm:$0xff]   ;;  %925 = vmatpush3.bf16.msra.mxu0 %v1044_v1  ;;  %v1049_v6 = vld [vmem:[%s1383_s1 + $0xc8] sm:$0xff]   ;;  %v1053_v10 = vld [vmem:[%s1383_s1 + $0xd0] sm:$0xff]  }
   0x4   :  { %v1046_v3 = vld [vmem:[%s1383_s1 + $0x80] sm:$0xff]   ;;  %946 = vmatprep.subr.bf16.mxu1 %v1045_v2  ;;  %926 = vmatprep.subr.bf16.mxu0 %v1047_v4  ;;  %v1050_v7 = vld [vmem:[%s1383_s1 + $0x88] sm:$0xff]   ;;  %v1054_v11 = vld [vmem:[%s1383_s1 + $0x90] sm:$0xff]  }
   0x5   :  { %947 = vmatpush3.bf16.msra.mxu1 %v1046_v3  ;;  %v1055_v12 = vld [vmem:[%s1383_s1 + $0x58] sm:$0xff]   ;;  %v1059_v16 = vld [vmem:[%s1383_s1 + $0x60] sm:$0xff]   ;;  %v1063_v20 = vld [vmem:[%s1383_s1 + $0x68] sm:$0xff]  }
   0x6   :  { %948 = vmatprep.subr.bf16.mxu1 %v1049_v6  ;;  %v1056_v13 = vld [vmem:[%s1383_s1 + $0x18] sm:$0xff]   ;;  %v1060_v17 = vld [vmem:[%s1383_s1 + $0x20] sm:$0xff]   ;;  %v1064_v21 = vld [vmem:[%s1383_s1 + $0x28] sm:$0xff]  }
   0x7   :  { %927 = vmatpush3.bf16.msra.mxu0 %v1048_v5  ;;  %v1057_v14 = vld [vmem:[%s1383_s1 + $0xd8] sm:$0xff]   ;;  %v1061_v18 = vld [vmem:[%s1383_s1 + $0xe0] sm:$0xff]   ;;  %v1065_v22 = vld [vmem:[%s1383_s1 + $0xe8] sm:$0xff]  }
   0x8   :  { %928 = vmatprep.subr.bf16.mxu0 %v1051_v8  ;;  %v1058_v15 = vld [vmem:[%s1383_s1 + $0x98] sm:$0xff]   ;;  %v1062_v19 = vld [vmem:[%s1383_s1 + $0xa0] sm:$0xff]   ;;  %v1066_v23 = vld [vmem:[%s1383_s1 + $0xa8] sm:$0xff]  }
   0x9   :  { %949 = vmatpush3.bf16.msra.mxu1 %v1050_v7  ;;  %v1067_v24 = vld [vmem:[%s1383_s1 + $0x70] sm:$0xff]   ;;  %v1071_v28 = vld [vmem:[%s1383_s1 + $0x78] sm:$0xff]   ;;  %v15_v31 = vld [vmem:[%s1384_s0] sm:$0xff] }
   0xa   :  { %950 = vmatprep.subr.bf16.mxu1 %v1053_v10  ;;  %v1068_v25 = vld [vmem:[%s1383_s1 + $0x30] sm:$0xff]   ;;  %v1072_v29 = vld [vmem:[%s1383_s1 + $0x38] sm:$0xff]   ;;  %v843_v32 = vcombine.low %v15_v31, %v15_v31  ;;  %v844_v33 = vcombine.high %v15_v31, %v15_v31  ;;  %v1077_v35 = vld [vmem:[%s1383_s1 + $0x140] sm:$0xff]  }
   0xb   :  { %929 = vmatpush3.bf16.msra.mxu0 %v1052_v9  ;;  %v1069_v26 = vld [vmem:[%s1383_s1 + $0xf0] sm:$0xff]   ;;  %v1073_v30 = vld [vmem:[%s1383_s1 + $0xf8] sm:$0xff]   ;;  %v16_v36 = vld [vmem:[%s1384_s0 + $0x8] sm:$0xff]  ;;  %v1124_v9 = vmov 0.0  }
   0xc   :  { %930 = vmatprep.subr.bf16.mxu0 %v1055_v12  ;;  %v1070_v27 = vld [vmem:[%s1383_s1 + $0xb0] sm:$0xff]   ;;  %v1076_v34 = vld [vmem:[%s1383_s1 + $0xb8] sm:$0xff]   ;;  %667 = vmatprep.mubr.bf16.mxu0 %v844_v33  ;;  %v845_v37 = vcombine.low %v16_v36, %v16_v36  ;;  %v846_v38 = vcombine.high %v16_v36, %v16_v36  ;;  %v1080_v39 = vld [vmem:[%s1383_s1 + $0x100] sm:$0xff]  }
   0xd   :  { %951 = vmatpush3.bf16.msra.mxu1 %v1054_v11  ;;  %v1081_v40 = vld [vmem:[%s1383_s1 + $0x1c0] sm:$0xff]   ;;  %v1083_v42 = vld [vmem:[%s1383_s1 + $0x148] sm:$0xff]   ;;  %v1087_v46 = vld [vmem:[%s1383_s1 + $0x150] sm:$0xff]  }
   0xe   :  { %952 = vmatprep.subr.bf16.mxu1 %v1057_v14  ;;  %707 = vmatprep.mubr.bf16.mxu1 %v846_v38  ;;  %v1082_v41 = vld [vmem:[%s1383_s1 + $0x180] sm:$0xff]   ;;  %v1084_v43 = vld [vmem:[%s1383_s1 + $0x108] sm:$0xff]   ;;  %v1088_v47 = vld [vmem:[%s1383_s1 + $0x110] sm:$0xff]  }
   0xf   :  { %931 = vmatpush3.bf16.msra.mxu0 %v1056_v13  ;;  %v1085_v44 = vld [vmem:[%s1383_s1 + $0x1c8] sm:$0xff]   ;;  %v1089_v48 = vld [vmem:[%s1383_s1 + $0x1d0] sm:$0xff]   ;;  %v1091_v50 = vld [vmem:[%s1383_s1 + $0x158] sm:$0xff]  }
  0x10   :  { %932 = vmatprep.subr.bf16.mxu0 %v1059_v16  ;;  %v1086_v45 = vld [vmem:[%s1383_s1 + $0x188] sm:$0xff]   ;;  %v1090_v49 = vld [vmem:[%s1383_s1 + $0x190] sm:$0xff]   ;;  %v1092_v51 = vld [vmem:[%s1383_s1 + $0x118] sm:$0xff]  }
  0x11   :  { %953 = vmatpush3.bf16.msra.mxu1 %v1058_v15  ;;  %v1093_v52 = vld [vmem:[%s1383_s1 + $0x1d8] sm:$0xff]   ;;  %v1095_v54 = vld [vmem:[%s1383_s1 + $0x160] sm:$0xff]   ;;  %v1099_v58 = vld [vmem:[%s1383_s1 + $0x168] sm:$0xff]  }
  0x12   :  { %954 = vmatprep.subr.bf16.mxu1 %v1061_v18  ;;  %v1094_v53 = vld [vmem:[%s1383_s1 + $0x198] sm:$0xff]   ;;  %v1096_v55 = vld [vmem:[%s1383_s1 + $0x120] sm:$0xff]   ;;  %v1100_v59 = vld [vmem:[%s1383_s1 + $0x128] sm:$0xff]  }
  0x13   :  { %933 = vmatpush3.bf16.msra.mxu0 %v1060_v17  ;;  %v1097_v56 = vld [vmem:[%s1383_s1 + $0x1e0] sm:$0xff]   ;;  %v1101_v60 = vld [vmem:[%s1383_s1 + $0x1e8] sm:$0xff]   ;;  %v1103_v62 = vld [vmem:[%s1383_s1 + $0x170] sm:$0xff]  }
  0x14   :  { %934 = vmatprep.subr.bf16.mxu0 %v1063_v20  ;;  %v1098_v57 = vld [vmem:[%s1383_s1 + $0x1a0] sm:$0xff]   ;;  %v1102_v61 = vld [vmem:[%s1383_s1 + $0x1a8] sm:$0xff]   ;;  %v1104_v63 = vld [vmem:[%s1383_s1 + $0x130] sm:$0xff]  }
  0x15   :  { %955 = vmatpush3.bf16.msra.mxu1 %v1062_v19  ;;  %v1105_v0 = vld [vmem:[%s1383_s1 + $0x1f0] sm:$0xff]   ;;  %v1107_v2 = vld [vmem:[%s1383_s1 + $0x178] sm:$0xff]   ;;  %v1115_v13 = vld [vmem:[%s1383_s1 + $0x200] sm:$0xff]  }
  0x16   :  { %956 = vmatprep.subr.bf16.mxu1 %v1065_v22  ;;  %v1106_v1 = vld [vmem:[%s1383_s1 + $0x1b0] sm:$0xff]   ;;  %v1108_v3 = vld [vmem:[%s1383_s1 + $0x138] sm:$0xff]   ;;  %v1116_v14 = vld [vmem:[%s1383_s1 + $0x208] sm:$0xff]  }
  0x17   :  { %935 = vmatpush3.bf16.msra.mxu0 %v1064_v21  ;;  %v1109_v4 = vld [vmem:[%s1383_s1 + $0x1f8] sm:$0xff]   ;;  %v17_v5 = vld [vmem:[%s1384_s0 + $0x10] sm:$0xff]  ;;  %v1119_v17 = vld [vmem:[%s1383_s1 + $0x220] sm:$0xff]  }
  0x18   :  { %936 = vmatprep.subr.bf16.mxu0 %v1067_v24  ;;  %v847_v6 = vcombine.low %v17_v5, %v17_v5  ;;  %v848_v7 = vcombine.high %v17_v5, %v17_v5  ;;  %v1112_v8 = vld [vmem:[%s1383_s1 + $0x1b8] sm:$0xff]   ;;  %v1117_v15 = vld [vmem:[%s1383_s1 + $0x210] sm:$0xff]   ;;  %v1120_v18 = vld [vmem:[%s1383_s1 + $0x228] sm:$0xff]  }
  0x19   :  { %957 = vmatpush3.bf16.msra.mxu1 %v1066_v23  ;;  %v18_v10 = vld [vmem:[%s1384_s0 + $0x18] sm:$0xff]  ;;  %v1121_v19 = vld [vmem:[%s1383_s1 + $0x230] sm:$0xff]   ;;  %v1123_v21 = vld [vmem:[%s1384_s0 + $0x20] ss:$0 sps:$4 sm:$0xff]  }
  0x1a   :  { %958 = vmatprep.subr.bf16.mxu1 %v1069_v26  ;;  %v849_v11 = vcombine.low %v18_v10, %v18_v10  ;;  %v850_v12 = vcombine.high %v18_v10, %v18_v10  ;;  %v1118_v16 = vld [vmem:[%s1383_s1 + $0x218] sm:$0xff]   ;;  %v842_v23 = vld [vmem:[%s1385_s2] ss:$0 sm:$0xff] }
  0x1b   :  { %937 = vmatpush3.bf16.msra.mxu0 %v1068_v25  ;;  %v1122_v20 = vld [vmem:[%s1383_s1 + $0x238] sm:$0xff]  }
  0x1c   :  { %938 = vmatprep.subr.bf16.mxu0 %v1071_v28 }
  0x1d   :  { %959 = vmatpush3.bf16.msra.mxu1 %v1070_v27 }
  0x1e   :  { %960 = vmatprep.subr.bf16.mxu1 %v1073_v30 }
  0x1f   :  { %939 = vmatpush3.bf16.msra.mxu0 %v1072_v29 }
  0x20   :  { %968 = vmatprep.subr.bf16.mxu0 %v1077_v35 }
  0x21   :  { %961 = vmatpush3.bf16.msra.mxu1 %v1076_v34 }
  0x22   :  { %668 = vmatmul.mubr.bf16.vlgmr.msra.gmra.mrb[0].mxu0 %v843_v32  ;;  %990 = vmatprep.subr.bf16.mxu1 %v1081_v40 }
  0x23   :  { %969 = vmatpush3.bf16.msra.mxu0 %v1080_v39  ;;  %747 = vmatprep.mubr.bf16.mxu0 %v848_v7 }
  0x24   :  { %708 = vmatmul.mubr.bf16.vlgmr.msra.gmra.mrb[0].mxu1 %v845_v37  ;;  %970 = vmatprep.subr.bf16.mxu0 %v1083_v42 }
  0x25   :  { %991 = vmatpush3.bf16.msra.mxu1 %v1082_v41  ;;  %787 = vmatprep.mubr.bf16.mxu1 %v850_v12 }
  0x26   :  { %992 = vmatprep.subr.bf16.mxu1 %v1085_v44 }
  0x27   :  { %971 = vmatpush3.bf16.msra.mxu0 %v1084_v43 }
  0x28   :  { %972 = vmatprep.subr.bf16.mxu0 %v1087_v46 }
  0x29   :  { %993 = vmatpush3.bf16.msra.mxu1 %v1086_v45 }
  0x2a   :  { %994 = vmatprep.subr.bf16.mxu1 %v1089_v48 }
  0x2b   :  { %973 = vmatpush3.bf16.msra.mxu0 %v1088_v47 }
  0x2c   :  { %974 = vmatprep.subr.bf16.mxu0 %v1091_v50 }
  0x2d   :  { %995 = vmatpush3.bf16.msra.mxu1 %v1090_v49 }
  0x2e   :  { %996 = vmatprep.subr.bf16.mxu1 %v1093_v52 }
  0x2f   :  { %975 = vmatpush3.bf16.msra.mxu0 %v1092_v51 }
  0x30   :  { %976 = vmatprep.subr.bf16.mxu0 %v1095_v54 }
  0x31   :  { %997 = vmatpush3.bf16.msra.mxu1 %v1094_v53 }
  0x32   :  { %998 = vmatprep.subr.bf16.mxu1 %v1097_v56 }
  0x33   :  { %977 = vmatpush3.bf16.msra.mxu0 %v1096_v55 }
  0x34   :  { %978 = vmatprep.subr.bf16.mxu0 %v1099_v58 }
  0x35   :  { %999 = vmatpush3.bf16.msra.mxu1 %v1098_v57 }
  0x36   :  { %1000 = vmatprep.subr.bf16.mxu1 %v1101_v60 }
  0x37   :  { %979 = vmatpush3.bf16.msra.mxu0 %v1100_v59 }
  0x38   :  { %980 = vmatprep.subr.bf16.mxu0 %v1103_v62 }
  0x39   :  { %1001 = vmatpush3.bf16.msra.mxu1 %v1102_v61 }
  0x3a   :  { %1002 = vmatprep.subr.bf16.mxu1 %v1105_v0 }
  0x3b   :  { %981 = vmatpush3.bf16.msra.mxu0 %v1104_v63 }
  0x3c   :  { %982 = vmatprep.subr.bf16.mxu0 %v1107_v2 }
  0x3d   :  { %1003 = vmatpush3.bf16.msra.mxu1 %v1106_v1 }
  0x3e   :  { %1004 = vmatprep.subr.bf16.mxu1 %v1109_v4 }
  0x3f   :  { %983 = vmatpush3.bf16.msra.mxu0 %v1108_v3 }
  0x40   :  { %1021 = vmatprep.subr.bf16.mxu0 %v1124_v9 }
  0x41   :  { %1005 = vmatpush3.bf16.msra.mxu1 %v1112_v8 }
  0x42   :  { %748 = vmatmul.mubr.bf16.vlgmr.msra.gmra.mrb[4].mxu0 %v847_v6 }
  0x43   :  { %1022 = vmatpush3.bf16.msra.mxu0 %v1115_v13  ;;  %1037 = vmatprep.mubr.msk.bf16.mxu0 %vm1125_vm0, %v1124_v9 }
  0x44   :  { %788 = vmatmul.mubr.bf16.vlgmr.msra.gmra.mrb[4].mxu1 %v849_v11  ;;  %1023 = vmatprep.subr.bf16.mxu0 %v1124_v9 }
  0x47   :  { %1024 = vmatpush3.bf16.msra.mxu0 %v1116_v14 }
  0x48   :  { %1025 = vmatprep.subr.bf16.mxu0 %v1124_v9 }
  0x4b   :  { %1026 = vmatpush3.bf16.msra.mxu0 %v1117_v15 }
  0x4c   :  { %1027 = vmatprep.subr.bf16.mxu0 %v1124_v9 }
  0x4f   :  { %1028 = vmatpush3.bf16.msra.mxu0 %v1118_v16 }
  0x50   :  { %1029 = vmatprep.subr.bf16.mxu0 %v1124_v9 }
  0x53   :  { %1030 = vmatpush3.bf16.msra.mxu0 %v1119_v17 }
  0x54   :  { %1031 = vmatprep.subr.bf16.mxu0 %v1124_v9 }
  0x57   :  { %1032 = vmatpush3.bf16.msra.mxu0 %v1120_v18 }
  0x58   :  { %1033 = vmatprep.subr.bf16.mxu0 %v1124_v9 }
  0x5b   :  { %1034 = vmatpush3.bf16.msra.mxu0 %v1121_v19 }
  0x5c   :  { %1035 = vmatprep.subr.bf16.mxu0 %v1124_v9 }
  0x5f   :  { %1036 = vmatpush3.bf16.msra.mxu0 %v1122_v20 }
  0x62   :  { %1038 = vmatmul.mubr.bf16.vlgmr.msra.gmra.mrb[8].mxu0 %v1123_v21 }
  0xf5   :  { %v940_v22 = vpop.f32.mrb[0].mxu0 }
  0xf6   :  { %v941_v24 = vpop.f32.mrb[1].mxu0 }
  0xf7   :  { %v942_v25 = vadd.f32 %v941_v24, %v940_v22  ;;  %v943_v26 = vpop.f32.mrb[2].mxu0  ;;  %v962_v27 = vpop.f32.mrb[0].mxu1 }
  0xf8   :  { %v944_v28 = vpop.f32.mrb[3].mxu0  ;;  %v963_v29 = vpop.f32.mrb[1].mxu1 }
  0xf9   :  { %v670_v30 = vadd.f32 %v942_v25, %v842_v23  ;;  %v964_v31 = vadd.f32 %v963_v29, %v962_v27  ;;  %v965_v32 = vpop.f32.mrb[2].mxu1 }
  0xfa   :  { %v966_v33 = vpop.f32.mrb[3].mxu1 }
  0xfb   :  { %v710_v34 = vadd.f32 %v964_v31, %v670_v30 }
 0x115   :  { %v984_v35 = vpop.f32.mrb[4].mxu0 }
 0x116   :  { %v985_v36 = vpop.f32.mrb[5].mxu0 }
 0x117   :  { %v986_v37 = vadd.f32 %v985_v36, %v984_v35  ;;  %v987_v38 = vpop.f32.mrb[6].mxu0  ;;  %v1006_v39 = vpop.f32.mrb[4].mxu1 }
 0x118   :  { %v988_v40 = vpop.f32.mrb[7].mxu0  ;;  %v1007_v41 = vpop.f32.mrb[5].mxu1 }
 0x119   :  { %v750_v42 = vadd.f32 %v986_v37, %v710_v34  ;;  %v1008_v43 = vadd.f32 %v1007_v41, %v1006_v39  ;;  %v1009_v44 = vpop.f32.mrb[6].mxu1 }
 0x11a   :  { %v1010_v45 = vpop.f32.mrb[7].mxu1 }
 0x11b   :  { %v790_v46 = vadd.f32 %v1008_v43, %v750_v42 }
 0x135   :  { %v829_v47 = vpop.f32.mrb[8].mxu0 }
 0x136   :  { %v830_v48 = vadd.f32 %v829_v47, %v790_v46  ;;  %v1039_v49 = vpop.f32.mrb[9].mxu0 }
 0x137   :  { %v832_v50 = vpop.f32.mrb[10].mxu0 }
 0x138   :  { %v835_v51 = vmax.f32 %v830_v48, 0.0  ;;  %v1040_v52 = vpop.f32.mrb[11].mxu0 }
 0x13a   :  { %v836_v53 = vpack.c.bf16 %v835_v51, %v835_v51 }
 0x13c   :  { %837 = vst [vmem:[%s1386_s3] sm:$0xf] %v836_v53 }

// kernel: resbase_forward.33
= control target key start
LH: loop header
LB: loop body
LE: loop exit
PB: predicated region body
PF: predicated region fallthrough
CT: control target
= control target key end

     0   :  { %vm1131_vm0 = vmmov 0   ;;  %s1397_s1 = inlined_call_operand.vmem [shape: bf16[1152,128], index: 1, kind: input, shape index: {}]   ;;  %s1398_s0 = inlined_call_operand.vmem [shape: bf16[8,1152], index: 0, kind: input, shape index: {}]   ;;  %s1399_s2 = inlined_call_operand.vmem [shape: f32[1,128], index: 2, kind: input, shape index: {}]   ;;  %s1400_s3 = inlined_call_operand.vmem [shape: bf16[8,128], index: 3, kind: input, shape index: {}]   ;;  %s1401_s4 = inlined_call_operand.vmem [shape: bf16[8,128], index: 4, kind: output, shape index: {}]  }
   0x1   :  { %v1049_v0 = vld [vmem:[%s1397_s1 + $0x40] sm:$0xff]   ;;  %v1053_v4 = vld [vmem:[%s1397_s1 + $0x48] sm:$0xff]   ;;  %v1057_v8 = vld [vmem:[%s1397_s1 + $0x50] sm:$0xff]  }
   0x2   :  { %v1050_v1 = vld [vmem:[%s1397_s1] sm:$0xff]   ;;  %930 = vmatprep.subr.bf16.mxu0 %v1049_v0  ;;  %v1054_v5 = vld [vmem:[%s1397_s1 + $0x8] sm:$0xff]   ;;  %v1058_v9 = vld [vmem:[%s1397_s1 + $0x10] sm:$0xff]  }
   0x3   :  { %v1051_v2 = vld [vmem:[%s1397_s1 + $0xc0] sm:$0xff]   ;;  %931 = vmatpush3.bf16.msra.mxu0 %v1050_v1  ;;  %v1055_v6 = vld [vmem:[%s1397_s1 + $0xc8] sm:$0xff]   ;;  %v1059_v10 = vld [vmem:[%s1397_s1 + $0xd0] sm:$0xff]  }
   0x4   :  { %v1052_v3 = vld [vmem:[%s1397_s1 + $0x80] sm:$0xff]   ;;  %952 = vmatprep.subr.bf16.mxu1 %v1051_v2  ;;  %932 = vmatprep.subr.bf16.mxu0 %v1053_v4  ;;  %v1056_v7 = vld [vmem:[%s1397_s1 + $0x88] sm:$0xff]   ;;  %v1060_v11 = vld [vmem:[%s1397_s1 + $0x90] sm:$0xff]  }
   0x5   :  { %953 = vmatpush3.bf16.msra.mxu1 %v1052_v3  ;;  %v1061_v12 = vld [vmem:[%s1397_s1 + $0x58] sm:$0xff]   ;;  %v1065_v16 = vld [vmem:[%s1397_s1 + $0x60] sm:$0xff]   ;;  %v1069_v20 = vld [vmem:[%s1397_s1 + $0x68] sm:$0xff]  }
   0x6   :  { %954 = vmatprep.subr.bf16.mxu1 %v1055_v6  ;;  %v1062_v13 = vld [vmem:[%s1397_s1 + $0x18] sm:$0xff]   ;;  %v1066_v17 = vld [vmem:[%s1397_s1 + $0x20] sm:$0xff]   ;;  %v1070_v21 = vld [vmem:[%s1397_s1 + $0x28] sm:$0xff]  }
   0x7   :  { %933 = vmatpush3.bf16.msra.mxu0 %v1054_v5  ;;  %v1063_v14 = vld [vmem:[%s1397_s1 + $0xd8] sm:$0xff]   ;;  %v1067_v18 = vld [vmem:[%s1397_s1 + $0xe0] sm:$0xff]   ;;  %v1071_v22 = vld [vmem:[%s1397_s1 + $0xe8] sm:$0xff]  }
   0x8   :  { %934 = vmatprep.subr.bf16.mxu0 %v1057_v8  ;;  %v1064_v15 = vld [vmem:[%s1397_s1 + $0x98] sm:$0xff]   ;;  %v1068_v19 = vld [vmem:[%s1397_s1 + $0xa0] sm:$0xff]   ;;  %v1072_v23 = vld [vmem:[%s1397_s1 + $0xa8] sm:$0xff]  }
   0x9   :  { %955 = vmatpush3.bf16.msra.mxu1 %v1056_v7  ;;  %v1073_v24 = vld [vmem:[%s1397_s1 + $0x70] sm:$0xff]   ;;  %v1077_v28 = vld [vmem:[%s1397_s1 + $0x78] sm:$0xff]   ;;  %v18_v31 = vld [vmem:[%s1398_s0] sm:$0xff] }
   0xa   :  { %956 = vmatprep.subr.bf16.mxu1 %v1059_v10  ;;  %v1074_v25 = vld [vmem:[%s1397_s1 + $0x30] sm:$0xff]   ;;  %v1078_v29 = vld [vmem:[%s1397_s1 + $0x38] sm:$0xff]   ;;  %v849_v32 = vcombine.low %v18_v31, %v18_v31  ;;  %v850_v33 = vcombine.high %v18_v31, %v18_v31  ;;  %v1083_v35 = vld [vmem:[%s1397_s1 + $0x140] sm:$0xff]  }
   0xb   :  { %935 = vmatpush3.bf16.msra.mxu0 %v1058_v9  ;;  %v1075_v26 = vld [vmem:[%s1397_s1 + $0xf0] sm:$0xff]   ;;  %v1079_v30 = vld [vmem:[%s1397_s1 + $0xf8] sm:$0xff]   ;;  %v19_v36 = vld [vmem:[%s1398_s0 + $0x8] sm:$0xff]  ;;  %v1130_v9 = vmov 0.0  }
   0xc   :  { %936 = vmatprep.subr.bf16.mxu0 %v1061_v12  ;;  %v1076_v27 = vld [vmem:[%s1397_s1 + $0xb0] sm:$0xff]   ;;  %v1082_v34 = vld [vmem:[%s1397_s1 + $0xb8] sm:$0xff]   ;;  %670 = vmatprep.mubr.bf16.mxu0 %v850_v33  ;;  %v851_v37 = vcombine.low %v19_v36, %v19_v36  ;;  %v852_v38 = vcombine.high %v19_v36, %v19_v36  ;;  %v1086_v39 = vld [vmem:[%s1397_s1 + $0x100] sm:$0xff]  }
   0xd   :  { %957 = vmatpush3.bf16.msra.mxu1 %v1060_v11  ;;  %v1087_v40 = vld [vmem:[%s1397_s1 + $0x1c0] sm:$0xff]   ;;  %v1089_v42 = vld [vmem:[%s1397_s1 + $0x148] sm:$0xff]   ;;  %v1093_v46 = vld [vmem:[%s1397_s1 + $0x150] sm:$0xff]  }
   0xe   :  { %958 = vmatprep.subr.bf16.mxu1 %v1063_v14  ;;  %710 = vmatprep.mubr.bf16.mxu1 %v852_v38  ;;  %v1088_v41 = vld [vmem:[%s1397_s1 + $0x180] sm:$0xff]   ;;  %v1090_v43 = vld [vmem:[%s1397_s1 + $0x108] sm:$0xff]   ;;  %v1094_v47 = vld [vmem:[%s1397_s1 + $0x110] sm:$0xff]  }
   0xf   :  { %937 = vmatpush3.bf16.msra.mxu0 %v1062_v13  ;;  %v1091_v44 = vld [vmem:[%s1397_s1 + $0x1c8] sm:$0xff]   ;;  %v1095_v48 = vld [vmem:[%s1397_s1 + $0x1d0] sm:$0xff]   ;;  %v1097_v50 = vld [vmem:[%s1397_s1 + $0x158] sm:$0xff]  }
  0x10   :  { %938 = vmatprep.subr.bf16.mxu0 %v1065_v16  ;;  %v1092_v45 = vld [vmem:[%s1397_s1 + $0x188] sm:$0xff]   ;;  %v1096_v49 = vld [vmem:[%s1397_s1 + $0x190] sm:$0xff]   ;;  %v1098_v51 = vld [vmem:[%s1397_s1 + $0x118] sm:$0xff]  }
  0x11   :  { %959 = vmatpush3.bf16.msra.mxu1 %v1064_v15  ;;  %v1099_v52 = vld [vmem:[%s1397_s1 + $0x1d8] sm:$0xff]   ;;  %v1101_v54 = vld [vmem:[%s1397_s1 + $0x160] sm:$0xff]   ;;  %v1105_v58 = vld [vmem:[%s1397_s1 + $0x168] sm:$0xff]  }
  0x12   :  { %960 = vmatprep.subr.bf16.mxu1 %v1067_v18  ;;  %v1100_v53 = vld [vmem:[%s1397_s1 + $0x198] sm:$0xff]   ;;  %v1102_v55 = vld [vmem:[%s1397_s1 + $0x120] sm:$0xff]   ;;  %v1106_v59 = vld [vmem:[%s1397_s1 + $0x128] sm:$0xff]  }
  0x13   :  { %939 = vmatpush3.bf16.msra.mxu0 %v1066_v17  ;;  %v1103_v56 = vld [vmem:[%s1397_s1 + $0x1e0] sm:$0xff]   ;;  %v1107_v60 = vld [vmem:[%s1397_s1 + $0x1e8] sm:$0xff]   ;;  %v1109_v62 = vld [vmem:[%s1397_s1 + $0x170] sm:$0xff]  }
  0x14   :  { %940 = vmatprep.subr.bf16.mxu0 %v1069_v20  ;;  %v1104_v57 = vld [vmem:[%s1397_s1 + $0x1a0] sm:$0xff]   ;;  %v1108_v61 = vld [vmem:[%s1397_s1 + $0x1a8] sm:$0xff]   ;;  %v1110_v63 = vld [vmem:[%s1397_s1 + $0x130] sm:$0xff]  }
  0x15   :  { %961 = vmatpush3.bf16.msra.mxu1 %v1068_v19  ;;  %v1111_v0 = vld [vmem:[%s1397_s1 + $0x1f0] sm:$0xff]   ;;  %v1113_v2 = vld [vmem:[%s1397_s1 + $0x178] sm:$0xff]   ;;  %v1121_v13 = vld [vmem:[%s1397_s1 + $0x200] sm:$0xff]  }
  0x16   :  { %962 = vmatprep.subr.bf16.mxu1 %v1071_v22  ;;  %v1112_v1 = vld [vmem:[%s1397_s1 + $0x1b0] sm:$0xff]   ;;  %v1114_v3 = vld [vmem:[%s1397_s1 + $0x138] sm:$0xff]   ;;  %v1122_v14 = vld [vmem:[%s1397_s1 + $0x208] sm:$0xff]  }
  0x17   :  { %941 = vmatpush3.bf16.msra.mxu0 %v1070_v21  ;;  %v1115_v4 = vld [vmem:[%s1397_s1 + $0x1f8] sm:$0xff]   ;;  %v20_v5 = vld [vmem:[%s1398_s0 + $0x10] sm:$0xff]  ;;  %v1125_v17 = vld [vmem:[%s1397_s1 + $0x220] sm:$0xff]  }
  0x18   :  { %942 = vmatprep.subr.bf16.mxu0 %v1073_v24  ;;  %v853_v6 = vcombine.low %v20_v5, %v20_v5  ;;  %v854_v7 = vcombine.high %v20_v5, %v20_v5  ;;  %v1118_v8 = vld [vmem:[%s1397_s1 + $0x1b8] sm:$0xff]   ;;  %v1123_v15 = vld [vmem:[%s1397_s1 + $0x210] sm:$0xff]   ;;  %v1126_v18 = vld [vmem:[%s1397_s1 + $0x228] sm:$0xff]  }
  0x19   :  { %963 = vmatpush3.bf16.msra.mxu1 %v1072_v23  ;;  %v21_v10 = vld [vmem:[%s1398_s0 + $0x18] sm:$0xff]  ;;  %v1127_v19 = vld [vmem:[%s1397_s1 + $0x230] sm:$0xff]   ;;  %v1129_v21 = vld [vmem:[%s1398_s0 + $0x20] ss:$0 sps:$4 sm:$0xff]  }
  0x1a   :  { %964 = vmatprep.subr.bf16.mxu1 %v1075_v26  ;;  %v855_v11 = vcombine.low %v21_v10, %v21_v10  ;;  %v856_v12 = vcombine.high %v21_v10, %v21_v10  ;;  %v1124_v16 = vld [vmem:[%s1397_s1 + $0x218] sm:$0xff]   ;;  %v848_v23 = vld [vmem:[%s1399_s2] ss:$0 sm:$0xff] }
  0x1b   :  { %943 = vmatpush3.bf16.msra.mxu0 %v1074_v25  ;;  %v1128_v20 = vld [vmem:[%s1397_s1 + $0x238] sm:$0xff]  }
  0x1c   :  { %944 = vmatprep.subr.bf16.mxu0 %v1077_v28 }
  0x1d   :  { %965 = vmatpush3.bf16.msra.mxu1 %v1076_v27 }
  0x1e   :  { %966 = vmatprep.subr.bf16.mxu1 %v1079_v30 }
  0x1f   :  { %945 = vmatpush3.bf16.msra.mxu0 %v1078_v29 }
  0x20   :  { %974 = vmatprep.subr.bf16.mxu0 %v1083_v35 }
  0x21   :  { %967 = vmatpush3.bf16.msra.mxu1 %v1082_v34 }
  0x22   :  { %671 = vmatmul.mubr.bf16.vlgmr.msra.gmra.mrb[0].mxu0 %v849_v32  ;;  %996 = vmatprep.subr.bf16.mxu1 %v1087_v40 }
  0x23   :  { %975 = vmatpush3.bf16.msra.mxu0 %v1086_v39  ;;  %750 = vmatprep.mubr.bf16.mxu0 %v854_v7 }
  0x24   :  { %711 = vmatmul.mubr.bf16.vlgmr.msra.gmra.mrb[0].mxu1 %v851_v37  ;;  %976 = vmatprep.subr.bf16.mxu0 %v1089_v42 }
  0x25   :  { %997 = vmatpush3.bf16.msra.mxu1 %v1088_v41  ;;  %790 = vmatprep.mubr.bf16.mxu1 %v856_v12 }
  0x26   :  { %998 = vmatprep.subr.bf16.mxu1 %v1091_v44 }
  0x27   :  { %977 = vmatpush3.bf16.msra.mxu0 %v1090_v43 }
  0x28   :  { %978 = vmatprep.subr.bf16.mxu0 %v1093_v46 }
  0x29   :  { %999 = vmatpush3.bf16.msra.mxu1 %v1092_v45 }
  0x2a   :  { %1000 = vmatprep.subr.bf16.mxu1 %v1095_v48 }
  0x2b   :  { %979 = vmatpush3.bf16.msra.mxu0 %v1094_v47  ;;  %v838_v47 = vld [vmem:[%s1400_s3] sm:$0xf] }
  0x2c   :  { %980 = vmatprep.subr.bf16.mxu0 %v1097_v50  ;;  %v839_v48 = vunpack.c.l.bf16 %v838_v47 }
  0x2d   :  { %1001 = vmatpush3.bf16.msra.mxu1 %v1096_v49 }
  0x2e   :  { %1002 = vmatprep.subr.bf16.mxu1 %v1099_v52 }
  0x2f   :  { %981 = vmatpush3.bf16.msra.mxu0 %v1098_v51 }
  0x30   :  { %982 = vmatprep.subr.bf16.mxu0 %v1101_v54 }
  0x31   :  { %1003 = vmatpush3.bf16.msra.mxu1 %v1100_v53 }
  0x32   :  { %1004 = vmatprep.subr.bf16.mxu1 %v1103_v56 }
  0x33   :  { %983 = vmatpush3.bf16.msra.mxu0 %v1102_v55 }
  0x34   :  { %984 = vmatprep.subr.bf16.mxu0 %v1105_v58 }
  0x35   :  { %1005 = vmatpush3.bf16.msra.mxu1 %v1104_v57 }
  0x36   :  { %1006 = vmatprep.subr.bf16.mxu1 %v1107_v60 }
  0x37   :  { %985 = vmatpush3.bf16.msra.mxu0 %v1106_v59 }
  0x38   :  { %986 = vmatprep.subr.bf16.mxu0 %v1109_v62 }
  0x39   :  { %1007 = vmatpush3.bf16.msra.mxu1 %v1108_v61 }
  0x3a   :  { %1008 = vmatprep.subr.bf16.mxu1 %v1111_v0 }
  0x3b   :  { %987 = vmatpush3.bf16.msra.mxu0 %v1110_v63 }
  0x3c   :  { %988 = vmatprep.subr.bf16.mxu0 %v1113_v2 }
  0x3d   :  { %1009 = vmatpush3.bf16.msra.mxu1 %v1112_v1 }
  0x3e   :  { %1010 = vmatprep.subr.bf16.mxu1 %v1115_v4 }
  0x3f   :  { %989 = vmatpush3.bf16.msra.mxu0 %v1114_v3 }
  0x40   :  { %1027 = vmatprep.subr.bf16.mxu0 %v1130_v9 }
  0x41   :  { %1011 = vmatpush3.bf16.msra.mxu1 %v1118_v8 }
  0x42   :  { %751 = vmatmul.mubr.bf16.vlgmr.msra.gmra.mrb[4].mxu0 %v853_v6 }
  0x43   :  { %1028 = vmatpush3.bf16.msra.mxu0 %v1121_v13  ;;  %1043 = vmatprep.mubr.msk.bf16.mxu0 %vm1131_vm0, %v1130_v9 }
  0x44   :  { %791 = vmatmul.mubr.bf16.vlgmr.msra.gmra.mrb[4].mxu1 %v855_v11  ;;  %1029 = vmatprep.subr.bf16.mxu0 %v1130_v9 }
  0x47   :  { %1030 = vmatpush3.bf16.msra.mxu0 %v1122_v14 }
  0x48   :  { %1031 = vmatprep.subr.bf16.mxu0 %v1130_v9 }
  0x4b   :  { %1032 = vmatpush3.bf16.msra.mxu0 %v1123_v15 }
  0x4c   :  { %1033 = vmatprep.subr.bf16.mxu0 %v1130_v9 }
  0x4f   :  { %1034 = vmatpush3.bf16.msra.mxu0 %v1124_v16 }
  0x50   :  { %1035 = vmatprep.subr.bf16.mxu0 %v1130_v9 }
  0x53   :  { %1036 = vmatpush3.bf16.msra.mxu0 %v1125_v17 }
  0x54   :  { %1037 = vmatprep.subr.bf16.mxu0 %v1130_v9 }
  0x57   :  { %1038 = vmatpush3.bf16.msra.mxu0 %v1126_v18 }
  0x58   :  { %1039 = vmatprep.subr.bf16.mxu0 %v1130_v9 }
  0x5b   :  { %1040 = vmatpush3.bf16.msra.mxu0 %v1127_v19 }
  0x5c   :  { %1041 = vmatprep.subr.bf16.mxu0 %v1130_v9 }
  0x5f   :  { %1042 = vmatpush3.bf16.msra.mxu0 %v1128_v20 }
  0x62   :  { %1044 = vmatmul.mubr.bf16.vlgmr.msra.gmra.mrb[8].mxu0 %v1129_v21 }
  0xf5   :  { %v946_v22 = vpop.f32.mrb[0].mxu0 }
  0xf6   :  { %v947_v24 = vpop.f32.mrb[1].mxu0 }
  0xf7   :  { %v948_v25 = vadd.f32 %v947_v24, %v946_v22  ;;  %v949_v26 = vpop.f32.mrb[2].mxu0  ;;  %v968_v27 = vpop.f32.mrb[0].mxu1 }
  0xf8   :  { %v950_v28 = vpop.f32.mrb[3].mxu0  ;;  %v969_v29 = vpop.f32.mrb[1].mxu1 }
  0xf9   :  { %v673_v30 = vadd.f32 %v948_v25, %v848_v23  ;;  %v970_v31 = vadd.f32 %v969_v29, %v968_v27  ;;  %v971_v32 = vpop.f32.mrb[2].mxu1 }
  0xfa   :  { %v972_v33 = vpop.f32.mrb[3].mxu1 }
  0xfb   :  { %v713_v34 = vadd.f32 %v970_v31, %v673_v30 }
 0x115   :  { %v990_v35 = vpop.f32.mrb[4].mxu0 }
 0x116   :  { %v991_v36 = vpop.f32.mrb[5].mxu0 }
 0x117   :  { %v992_v37 = vadd.f32 %v991_v36, %v990_v35  ;;  %v993_v38 = vpop.f32.mrb[6].mxu0  ;;  %v1012_v39 = vpop.f32.mrb[4].mxu1 }
 0x118   :  { %v994_v40 = vpop.f32.mrb[7].mxu0  ;;  %v1013_v41 = vpop.f32.mrb[5].mxu1 }
 0x119   :  { %v753_v42 = vadd.f32 %v992_v37, %v713_v34  ;;  %v1014_v43 = vadd.f32 %v1013_v41, %v1012_v39  ;;  %v1015_v44 = vpop.f32.mrb[6].mxu1 }
 0x11a   :  { %v1016_v45 = vpop.f32.mrb[7].mxu1 }
 0x11b   :  { %v793_v46 = vadd.f32 %v1014_v43, %v753_v42 }
 0x135   :  { %v832_v49 = vpop.f32.mrb[8].mxu0 }
 0x136   :  { %v833_v50 = vadd.f32 %v832_v49, %v793_v46  ;;  %v1045_v51 = vpop.f32.mrb[9].mxu0 }
 0x137   :  { %v835_v52 = vpop.f32.mrb[10].mxu0 }
 0x138   :  { %v840_v53 = vadd.f32 %v839_v48, %v833_v50  ;;  %v1046_v54 = vpop.f32.mrb[11].mxu0 }
 0x13a   :  { %v841_v55 = vmax.f32 %v840_v53, 0.0 }
 0x13c   :  { %v842_v56 = vpack.c.bf16 %v841_v55, %v841_v55 }
 0x13e   :  { %843 = vst [vmem:[%s1401_s4] sm:$0xf] %v842_v56 }

</bundles_post_ra>
